<compile_context>
chip_gen: v7x
topology: tpu7x:2x2x1
jax: 0.10.0
libtpu: 0.0.40
codegen_flags: <defaults>
</compile_context>

<pallas_src>
import jax
import jax.numpy as jnp
from jax.experimental import pallas as pl
from jax.experimental.pallas import tpu as pltpu

BN_EPS = 1e-5
D_IN = 3072
D_HID = 512


def _round_up(n, m):
    return ((n + m - 1) // m) * m


def head_regressor_kernel(x_ref, w1_ref, packed_ref, o_ref):
    # x_ref:      (TB, 3072) f32 or bf16 input tile
    # w1_ref:     (3072, 512) bf16, BN-folded weights (resident)
    # packed_ref: (3, 512) f32 [row0 = folded bias, row1 = w2 row, row2 = b2]
    # o_ref:      (1, TB) f32 lane-dense output row

    # Dropout(p=0.8) is identity at inference time.
    xb = x_ref[...].astype(jnp.bfloat16)          # cast on the VMEM tile (no extra HBM pass)

    # linear1 + folded BatchNorm: MXU matmul with f32 accumulation.
    h = jnp.dot(xb, w1_ref[...], preferred_element_type=jnp.float32)   # (TB, 512)
    h = h + packed_ref[0:1, :]                                          # folded bias

    # sigmoid via EUP exp + approximate EUP reciprocal (VPU stays free).
    h = pl.reciprocal(1.0 + jnp.exp(-h), approx=True)                   # (TB, 512) f32

    # linear2 (512 -> 1) as a lane reduction (f32 accumulation), then emit the
    # result as a lane-dense (1, TB) row instead of a (TB, 1) masked column.
    col = jnp.sum(h * packed_ref[1:2, :], axis=-1)                      # (TB,)
    out_row = col[None, :] + packed_ref[2:3, 0:1]                       # (1, TB) + b2

    # Final sigmoid kept exact (only TB elements -> negligible cost).
    o_ref[...] = jax.nn.sigmoid(out_row)


def prepare_params(raw_params):
    """Fold BN into linear1, pre-transpose, pack small vectors, cast W1 to bf16."""
    w1, b1, gamma, beta, mean, var, w2, b2 = raw_params
    scale = gamma * jax.lax.rsqrt(var + BN_EPS)                  # (1, 512)
    w1_folded = (w1 * scale).astype(jnp.bfloat16)                # (3072, 512) bf16
    b1_folded = (b1 - mean) * scale + beta                       # (1, 512) f32
    w2_row = w2.T.astype(jnp.float32)                            # (1, 512) f32
    b2_row = jnp.broadcast_to(
        jnp.asarray(b2, jnp.float32).reshape(1, 1), (1, D_HID))  # (1, 512) f32
    packed = jnp.concatenate([b1_folded, w2_row, b2_row], axis=0)  # (3, 512) f32
    return w1_folded, packed


def head_regressor_forward(x, prepared_params, *, tb=512):
    """x: (B, 3072) float (f32 or bf16).  Returns (B, 1) float32."""
    w1, packed = prepared_params
    B = x.shape[0]
    B8 = _round_up(B, 8)

    # Tile selection: lane-dense output requires TB % 128 == 0 whenever there is
    # more than one grid step; keep >=2 steps when the batch allows (v7x megacore).
    if B8 <= tb:
        if B8 >= 256 and B8 % 256 == 0:
            TB = B8 // 2            # two 128-aligned tiles, zero extra padding
        else:
            TB = B8                 # single tile covering the whole (padded) batch
    else:
        TB = _round_up(tb, 128)
        TB = min(TB, _round_up(pl.cdiv(B8, 2), 128))   # cap at ~half the batch

    Bp = _round_up(B, TB)
    num_tiles = Bp // TB
    if Bp != B:
        x = jnp.pad(x, ((0, Bp - B), (0, 0)))

    # Advisory cost hint.  (On v7x with the batch sharded across 2 TCs, W1 is
    # fetched once per core; this counts it once — advisory only.)
    cost = pl.CostEstimate(
        flops=int(2 * Bp * D_IN * D_HID + 2 * Bp * D_HID),
        transcendentals=int(Bp * D_HID + Bp),
        bytes_accessed=int(w1.size * w1.dtype.itemsize
                           + Bp * D_IN * x.dtype.itemsize
                           + packed.size * packed.dtype.itemsize
                           + Bp * 4),
    )

    def run(single_buffer_resident):
        if single_buffer_resident:
            def resident_spec(shape):
                return pl.BlockSpec(shape, lambda i: (0, 0),
                                    pipeline_mode=pl.Buffered(1))
        else:
            def resident_spec(shape):
                return pl.BlockSpec(shape, lambda i: (0, 0))

        return pl.pallas_call(
            head_regressor_kernel,
            out_shape=jax.ShapeDtypeStruct((1, Bp), jnp.float32),
            grid=(num_tiles,),
            in_specs=[
                pl.BlockSpec((TB, D_IN), lambda i: (i, 0)),   # x tile (double-buffered)
                resident_spec((D_IN, D_HID)),                 # W1' resident
                resident_spec((3, D_HID)),                    # folded bias / w2 / b2
            ],
            out_specs=pl.BlockSpec((1, TB), lambda i: (0, i)),  # lane-dense row
            compiler_params=pltpu.CompilerParams(
                dimension_semantics=("parallel",),
                vmem_limit_bytes=32 << 20,
            ),
            cost_estimate=cost,
        )(x, w1, packed)

    try:
        out = run(single_buffer_resident=True)
    except Exception:
        # pl.Buffered(1) not supported by this jax version -> default buffering.
        out = run(single_buffer_resident=False)

    return out[0, :B].reshape(B, 1)


def make_params(key):
    """Deterministic synthetic parameters matching the module's shapes."""
    k1, k2, k3, k4, k5, k6, k7 = jax.random.split(key, 7)
    # Linear1 (stored transposed: (in, out))
    lim1 = 1.0 / jnp.sqrt(D_IN)
    w1 = jax.random.uniform(k1, (D_IN, D_HID), jnp.float32, -lim1, lim1)
    b1 = jax.random.uniform(k2, (1, D_HID), jnp.float32, -lim1, lim1)
    # BatchNorm1d(512): gamma, beta, running_mean, running_var
    gamma = 1.0 + 0.1 * jax.random.normal(k3, (1, D_HID), jnp.float32)
    beta = 0.1 * jax.random.normal(k4, (1, D_HID), jnp.float32)
    mean = 0.05 * jax.random.normal(k5, (1, D_HID), jnp.float32)
    var = jnp.abs(1.0 + 0.1 * jax.random.normal(k6, (1, D_HID), jnp.float32))
    # Linear2 (stored transposed: (in, out))
    lim2 = 1.0 / jnp.sqrt(D_HID)
    w2 = jax.random.uniform(k7, (D_HID, 1), jnp.float32, -lim2, lim2)
    b2 = jnp.full((1, 1), 0.01, jnp.float32)
    return (w1, b1, gamma, beta, mean, var, w2, b2)


def reference_forward(x, raw_params):
    """Pure-JAX f32 reference of the PyTorch eval-mode forward."""
    w1, b1, gamma, beta, mean, var, w2, b2 = raw_params
    h = x @ w1 + b1
    h = (h - mean) / jnp.sqrt(var + BN_EPS) * gamma + beta
    h = jax.nn.sigmoid(h)
    return jax.nn.sigmoid(h @ w2 + b2)


if __name__ == "__main__":
    key = jax.random.PRNGKey(0)
    kx, kp = jax.random.split(key)

    B = 8
    x = jax.random.normal(kx, (B, D_IN), jnp.float32)
    raw_params = make_params(kp)
    prepared = prepare_params(raw_params)

    out = head_regressor_forward(x, prepared)
    out = jax.block_until_ready(out)

    ref = reference_forward(x, raw_params)
    assert out.shape == (B, 1)
    # bf16 x/W1 quantization + approx hidden-layer reciprocal -> loose-but-meaningful
    # tolerance on the (0,1)-range sigmoid output.
    assert jnp.allclose(out, ref, atol=5e-3, rtol=5e-3), "mismatch vs reference"

    print("KERNEL_OK")
</pallas_src>

<mosaic_0001>
module attributes {stable_mosaic.version = 11 : i64} {
  func.func @head_regressor_kernel(%arg0: i32, %arg1: memref<8x3072xf32, #tpu.memory_space<vmem>>, %arg2: memref<3072x512xbf16, #tpu.memory_space<vmem>>, %arg3: memref<3x512xf32, #tpu.memory_space<vmem>>, %arg4: memref<1x8xf32, #tpu.memory_space<vmem>>) attributes {dimension_semantics = [#tpu.dimension_semantics<parallel>], iteration_bounds = array<i64: 1>, scalar_prefetch = 0 : i64, scratch_operands = 0 : i64, tpu.core_type = #tpu.core_type<tc>, window_params = [{transform_indices = @transform_0, window_bounds = array<i64: 8, 3072>}, {pipeline_mode = #tpu.pipeline_mode<synchronous>, transform_indices = @transform_1, window_bounds = array<i64: 3072, 512>}, {pipeline_mode = #tpu.pipeline_mode<synchronous>, transform_indices = @transform_2, window_bounds = array<i64: 3, 512>}, {transform_indices = @transform_3, window_bounds = array<i64: 1, 8>}]} {
    %c0 = arith.constant 0 : index
    %c0_0 = arith.constant 0 : index
    %0 = vector.load %arg1[%c0, %c0_0] : memref<8x3072xf32, #tpu.memory_space<vmem>>, vector<8x3072xf32>
    %1 = arith.truncf %0 : vector<8x3072xf32> to vector<8x3072xbf16>
    %c0_1 = arith.constant 0 : index
    %c0_2 = arith.constant 0 : index
    %2 = vector.load %arg2[%c0_1, %c0_2] : memref<3072x512xbf16, #tpu.memory_space<vmem>>, vector<3072x512xbf16>
    %cst = arith.constant dense<0.000000e+00> : vector<8x512xf32>
    %3 = tpu.matmul %1, %2, %cst {dimension_numbers = #tpu.dot_dimension_numbers<[1], [0], [0], [1], [0, 0, 1, 1], [], []>} : vector<8x3072xbf16>, vector<3072x512xbf16>, vector<8x512xf32> -> vector<8x512xf32>
    %c0_3 = arith.constant 0 : index
    %c0_4 = arith.constant 0 : index
    %4 = vector.load %arg3[%c0_3, %c0_4] : memref<3x512xf32, #tpu.memory_space<vmem>>, vector<1x512xf32>
    %5 = vector.broadcast %4 : vector<1x512xf32> to vector<8x512xf32>
    %6 = arith.addf %3, %5 : vector<8x512xf32>
    %cst_5 = arith.constant 0.000000e+00 : f32
    %7 = vector.broadcast %cst_5 : f32 to vector<8x512xf32>
    %8 = arith.subf %7, %6 : vector<8x512xf32>
    %9 = math.exp %8 : vector<8x512xf32>
    %cst_6 = arith.constant 1.000000e+00 : f32
    %10 = vector.broadcast %cst_6 : f32 to vector<8x512xf32>
    %11 = arith.addf %10, %9 : vector<8x512xf32>
    %12 = tpu.reciprocal %11 {approx = true} : vector<8x512xf32> -> vector<8x512xf32>
    %c1 = arith.constant 1 : index
    %c0_7 = arith.constant 0 : index
    %13 = vector.load %arg3[%c1, %c0_7] : memref<3x512xf32, #tpu.memory_space<vmem>>, vector<1x512xf32>
    %14 = vector.broadcast %13 : vector<1x512xf32> to vector<8x512xf32>
    %15 = arith.mulf %12, %14 : vector<8x512xf32>
    %cst_8 = arith.constant dense<0.000000e+00> : vector<8xf32>
    %16 = vector.multi_reduction <add>, %15, %cst_8 [1] : vector<8x512xf32> to vector<8xf32>
    %17 = vector.shape_cast %16 : vector<8xf32> to vector<1x8xf32>
    %c2 = arith.constant 2 : index
    %c0_9 = arith.constant 0 : index
    %18 = vector.load %arg3[%c2, %c0_9] : memref<3x512xf32, #tpu.memory_space<vmem>>, vector<1x1xf32>
    %19 = vector.broadcast %18 : vector<1x1xf32> to vector<1x8xf32>
    %20 = arith.addf %17, %19 : vector<1x8xf32>
    %21 = arith.negf %20 : vector<1x8xf32>
    %22 = math.exp %21 : vector<1x8xf32>
    %cst_10 = arith.constant 1.000000e+00 : f32
    %23 = vector.broadcast %cst_10 : f32 to vector<1x8xf32>
    %24 = arith.addf %23, %22 : vector<1x8xf32>
    %25 = arith.divf %23, %24 : vector<1x8xf32>
    %c0_11 = arith.constant 0 : index
    %c0_12 = arith.constant 0 : index
    %26 = vector.load %arg4[%c0_11, %c0_12] : memref<1x8xf32, #tpu.memory_space<vmem>>, vector<1x8xf32>
    tpu.vector_store %arg4[%c0_11, %c0_12], %25 {strides = array<i32>} : memref<1x8xf32, #tpu.memory_space<vmem>>, vector<1x8xf32>,
    return
  }
  func.func @transform_0(%arg0: i32) -> (i32, i32) {
    %c0_i32 = arith.constant 0 : i32
    %c0_i32_0 = arith.constant 0 : i32
    return %arg0, %c0_i32 : i32, i32
  }
  func.func @transform_1(%arg0: i32) -> (i32, i32) {
    %c0_i32 = arith.constant 0 : i32
    %c0_i32_0 = arith.constant 0 : i32
    %c0_i32_1 = arith.constant 0 : i32
    return %c0_i32, %c0_i32_0 : i32, i32
  }
  func.func @transform_2(%arg0: i32) -> (i32, i32) {
    %c0_i32 = arith.constant 0 : i32
    %c0_i32_0 = arith.constant 0 : i32
    %c0_i32_1 = arith.constant 0 : i32
    return %c0_i32, %c0_i32_0 : i32, i32
  }
  func.func @transform_3(%arg0: i32) -> (i32, i32) {
    %c0_i32 = arith.constant 0 : i32
    %c0_i32_0 = arith.constant 0 : i32
    return %c0_i32, %arg0 : i32, i32
  }
}

module attributes {stable_mosaic.version = 11 : i64} {
  func.func @head_regressor_kernel(%arg0: i32, %arg1: memref<8x3072xf32, #tpu.memory_space<vmem>>, %arg2: memref<3072x512xbf16, #tpu.memory_space<vmem>>, %arg3: memref<3x512xf32, #tpu.memory_space<vmem>>, %arg4: memref<1x8xf32, #tpu.memory_space<vmem>>) attributes {dimension_semantics = [#tpu.dimension_semantics<parallel>], iteration_bounds = array<i64: 1>, scalar_prefetch = 0 : i64, scratch_operands = 0 : i64, tpu.core_type = #tpu.core_type<tc>, window_params = [{transform_indices = @transform_0, window_bounds = array<i64: 8, 3072>}, {pipeline_mode = #tpu.pipeline_mode<synchronous>, transform_indices = @transform_1, window_bounds = array<i64: 3072, 512>}, {pipeline_mode = #tpu.pipeline_mode<synchronous>, transform_indices = @transform_2, window_bounds = array<i64: 3, 512>}, {transform_indices = @transform_3, window_bounds = array<i64: 1, 8>}]} {
    %c0 = arith.constant 0 : index
    %c0_0 = arith.constant 0 : index
    %0 = vector.load %arg1[%c0, %c0_0] : memref<8x3072xf32, #tpu.memory_space<vmem>>, vector<8x3072xf32>
    %1 = arith.truncf %0 : vector<8x3072xf32> to vector<8x3072xbf16>
    %c0_1 = arith.constant 0 : index
    %c0_2 = arith.constant 0 : index
    %2 = vector.load %arg2[%c0_1, %c0_2] : memref<3072x512xbf16, #tpu.memory_space<vmem>>, vector<3072x512xbf16>
    %cst = arith.constant dense<0.000000e+00> : vector<8x512xf32>
    %3 = tpu.matmul %1, %2, %cst {dimension_numbers = #tpu.dot_dimension_numbers<[1], [0], [0], [1], [0, 0, 1, 1], [], []>} : vector<8x3072xbf16>, vector<3072x512xbf16>, vector<8x512xf32> -> vector<8x512xf32>
    %c0_3 = arith.constant 0 : index
    %c0_4 = arith.constant 0 : index
    %4 = vector.load %arg3[%c0_3, %c0_4] : memref<3x512xf32, #tpu.memory_space<vmem>>, vector<1x512xf32>
    %5 = vector.broadcast %4 : vector<1x512xf32> to vector<8x512xf32>
    %6 = arith.addf %3, %5 : vector<8x512xf32>
    %cst_5 = arith.constant 0.000000e+00 : f32
    %7 = vector.broadcast %cst_5 : f32 to vector<8x512xf32>
    %8 = arith.subf %7, %6 : vector<8x512xf32>
    %9 = math.exp %8 : vector<8x512xf32>
    %cst_6 = arith.constant 1.000000e+00 : f32
    %10 = vector.broadcast %cst_6 : f32 to vector<8x512xf32>
    %11 = arith.addf %10, %9 : vector<8x512xf32>
    %12 = tpu.reciprocal %11 {approx = true} : vector<8x512xf32> -> vector<8x512xf32>
    %c1 = arith.constant 1 : index
    %c0_7 = arith.constant 0 : index
    %13 = vector.load %arg3[%c1, %c0_7] : memref<3x512xf32, #tpu.memory_space<vmem>>, vector<1x512xf32>
    %14 = vector.broadcast %13 : vector<1x512xf32> to vector<8x512xf32>
    %15 = arith.mulf %12, %14 : vector<8x512xf32>
    %cst_8 = arith.constant dense<0.000000e+00> : vector<8xf32>
    %16 = vector.multi_reduction <add>, %15, %cst_8 [1] : vector<8x512xf32> to vector<8xf32>
    %17 = vector.shape_cast %16 : vector<8xf32> to vector<1x8xf32>
    %c2 = arith.constant 2 : index
    %c0_9 = arith.constant 0 : index
    %18 = vector.load %arg3[%c2, %c0_9] : memref<3x512xf32, #tpu.memory_space<vmem>>, vector<1x1xf32>
    %19 = vector.broadcast %18 : vector<1x1xf32> to vector<1x8xf32>
    %20 = arith.addf %17, %19 : vector<1x8xf32>
    %21 = arith.negf %20 : vector<1x8xf32>
    %22 = math.exp %21 : vector<1x8xf32>
    %cst_10 = arith.constant 1.000000e+00 : f32
    %23 = vector.broadcast %cst_10 : f32 to vector<1x8xf32>
    %24 = arith.addf %23, %22 : vector<1x8xf32>
    %25 = arith.divf %23, %24 : vector<1x8xf32>
    %c0_11 = arith.constant 0 : index
    %c0_12 = arith.constant 0 : index
    %26 = vector.load %arg4[%c0_11, %c0_12] : memref<1x8xf32, #tpu.memory_space<vmem>>, vector<1x8xf32>
    tpu.vector_store %arg4[%c0_11, %c0_12], %25 {strides = array<i32>} : memref<1x8xf32, #tpu.memory_space<vmem>>, vector<1x8xf32>,
    return
  }
  func.func @transform_0(%arg0: i32) -> (i32, i32) {
    %c0_i32 = arith.constant 0 : i32
    %c0_i32_0 = arith.constant 0 : i32
    return %arg0, %c0_i32 : i32, i32
  }
  func.func @transform_1(%arg0: i32) -> (i32, i32) {
    %c0_i32 = arith.constant 0 : i32
    %c0_i32_0 = arith.constant 0 : i32
    %c0_i32_1 = arith.constant 0 : i32
    return %c0_i32, %c0_i32_0 : i32, i32
  }
  func.func @transform_2(%arg0: i32) -> (i32, i32) {
    %c0_i32 = arith.constant 0 : i32
    %c0_i32_0 = arith.constant 0 : i32
    %c0_i32_1 = arith.constant 0 : i32
    return %c0_i32, %c0_i32_0 : i32, i32
  }
  func.func @transform_3(%arg0: i32) -> (i32, i32) {
    %c0_i32 = arith.constant 0 : i32
    %c0_i32_0 = arith.constant 0 : i32
    return %c0_i32, %arg0 : i32, i32
  }
}

</mosaic_0001>

<bundles_post_ra>
// kernel: tpu_custom_call.1
= control target key start
LH: loop header
LB: loop body
LE: loop exit
PB: predicated region body
PF: predicated region fallthrough
CT: control target
= control target key end

     0   :  { %8 = vsyncpa [#allocation3], 0  ;;  %s8049_s0 = inlined_call_operand.hbm [shape: f32[8,3072], index: 0, kind: input, shape index: {}]   ;;  %s8050_s1 = inlined_call_operand.hbm [shape: bf16[3072,512], index: 1, kind: input, shape index: {}]   ;;  %s8051_s2 = inlined_call_operand.hbm [shape: f32[3,512], index: 2, kind: input, shape index: {}]   ;;  %s8052_s3 = inlined_call_operand.hbm [shape: f32[1,8], index: 3, kind: output, shape index: {}]  }
   0x1   :  { %9 = vsyncpa [#allocation6], 0 }
   0x2   :  { %10 = vsyncpa [#allocation4], 0  ;;  %s7958_s12 = smov [#allocation5]   ;;  %s7864_s16 = scalar_lea.hbm %s8050_s1, 98304 }
   0x3   :  { %s26_s13 = sshll.u32 %s7958_s12, 4  ;;  %p7865_p0 = scmp.ne.s32.totalorder %s8050_s1, %s7864_s16  ;;  %s27_s13 = int_to_ptr.vmem [resolvable:$true] %s26_s13 }
   0x4   :  { %p7868_p1 = scmp.lt.u32.totalorder %s7864_s16, %s8050_s1 }
   0x6   :  { %p7870_p2 = pnand %p7868_p1, %p7865_p0 }
   0x8   :  { %7873 = shalt.err (!%p7870_p2)
}
   0x9   :  { %s7874_s21 = scalar_lea.vmem %s27_s13, 98304  ;;  %p7879_p4 = scmp.lt.s32.totalorder %s27_s13, %s27_s13 }
   0xa   :  { %p7875_p3 = scmp.ne.s32.totalorder %s27_s13, %s7874_s21  ;;  %p7880_p5 = scmp.lt.s32.totalorder %s7874_s21, %s7874_s21 }
   0xc   :  { %p7881_p6 = por %p7880_p5, %p7879_p4 }
   0xe   :  { %p7882_p7 = pnand %p7881_p6, %p7875_p3 }
  0x10   :  { %7885 = shalt.err (!%p7882_p7)
}
  0x11   :  { %s7959_s22 = smov 256   ;;  %s7960_s23 = smov 16  }
  0x12   :  { %32 = dma.hbm_to_vmem [thread:$0]  %s8050_s1, 98304, %s27_s13, [#allocation6], %s7959_s22, %s7959_s22, %s7960_s23  }
  0x13   :  { %s7961_s26 = smov [#allocation2]   ;;  %s7962_s28 = smov [#allocation7]  }
  0x14   :  { %s17_s27 = sshll.u32 %s7961_s26, 4  ;;  %s39_s29 = sshll.u32 %s7962_s28, 4  ;;  %s18_s27 = int_to_ptr.vmem [resolvable:$true] %s17_s27  ;;  %s40_s29 = int_to_ptr.vmem [resolvable:$true] %s39_s29 }
  0x15   :  { %s7886_s5 = scalar_lea.hbm %s8049_s0, 3072 }
  0x16   :  { %p7887_p8 = scmp.ne.s32.totalorder %s8049_s0, %s7886_s5  ;;  %p7890_p9 = scmp.lt.u32.totalorder %s7886_s5, %s8049_s0 }
  0x18   :  { %p7892_p10 = pnand %p7890_p9, %p7887_p8 }
  0x1a   :  { %7895 = shalt.err (!%p7892_p10)
}
  0x1b   :  { %s7896_s1 = scalar_lea.vmem %s18_s27, 3072  ;;  %p7901_p12 = scmp.lt.s32.totalorder %s18_s27, %s18_s27 }
  0x1c   :  { %p7897_p11 = scmp.ne.s32.totalorder %s18_s27, %s7896_s1  ;;  %p7902_p13 = scmp.lt.s32.totalorder %s7896_s1, %s7896_s1 }
  0x1e   :  { %p7903_p0 = por %p7902_p13, %p7901_p12 }
  0x20   :  { %p7904_p1 = pnand %p7903_p0, %p7897_p11 }
  0x22   :  { %7907 = shalt.err (!%p7904_p1)
}
  0x23   :  { %20 = dma.hbm_to_vmem [thread:$0]  %s8049_s0, 3072, %s18_s27, [#allocation3]  }
  0x24   :  { %s7908_s14 = scalar_lea.hbm %s8051_s2, 256 }
  0x25   :  { %p7909_p2 = scmp.ne.s32.totalorder %s8051_s2, %s7908_s14  ;;  %p7912_p3 = scmp.lt.u32.totalorder %s7908_s14, %s8051_s2 }
  0x27   :  { %p7914_p4 = pnand %p7912_p3, %p7909_p2 }
  0x29   :  { %7917 = shalt.err (!%p7914_p4)
}
  0x2a   :  { %s7918_s19 = scalar_lea.vmem %s40_s29, 256  ;;  %p7923_p6 = scmp.lt.s32.totalorder %s40_s29, %s40_s29 }
  0x2b   :  { %p7919_p5 = scmp.ne.s32.totalorder %s40_s29, %s7918_s19  ;;  %p7924_p7 = scmp.lt.s32.totalorder %s7918_s19, %s7918_s19 }
  0x2d   :  { %p7925_p8 = por %p7924_p7, %p7923_p6 }
  0x2f   :  { %p7926_p9 = pnand %p7925_p8, %p7919_p5 }
  0x31   :  { %7929 = shalt.err (!%p7926_p9)
}
  0x32   :  { %42 = dma.hbm_to_vmem [thread:$0]  %s8051_s2, 256, %s40_s29, [#allocation6]  }
  0x33   :  { %7952 = dma.done.wait [#allocation3], 3072  }
  0x34   :  { %7953 = vsyncadd [#allocation3], 4294964224 }
  0x35   :  { %7954 = dma.done.wait [#allocation6], 98560  }
  0x36   :  { %7955 = vsyncadd [#allocation6], 4294868736  ;;  %v6692_v0 = vld [vmem:[#allocation5 + $0x4] ss:$16 sps:$4 sm:$0xff]   ;;  %v6694_v1 = vld [vmem:[#allocation5 + $0xc] ss:$16 sps:$4 sm:$0xff]  }
  0x37   :  { %4730 = vmatprep.subr.bf16.mxu0 %v6692_v0  ;;  %v6696_v2 = vld [vmem:[#allocation5] ss:$16 sps:$4 sm:$0xff]   ;;  %v6697_v3 = vld [vmem:[#allocation5 + $0x8] ss:$16 sps:$4 sm:$0xff]   ;;  %5222 = vmatprep.subr.bf16.mxu1 %v6694_v1  ;;  %v6698_v4 = vld [vmem:[#allocation5 + $0x24] ss:$16 sps:$4 sm:$0xff]  }
  0x38   :  { %4731 = vmatpush1.bf16.msra.mxu0 %v6696_v2  ;;  %5223 = vmatpush1.bf16.msra.mxu1 %v6697_v3  ;;  %v6700_v5 = vld [vmem:[#allocation5 + $0x2c] ss:$16 sps:$4 sm:$0xff]   ;;  %v6702_v6 = vld [vmem:[#allocation5 + $0x20] ss:$16 sps:$4 sm:$0xff]   ;;  %v6703_v7 = vld [vmem:[#allocation5 + $0x28] ss:$16 sps:$4 sm:$0xff]  }
  0x39   :  { %4732 = vmatprep.subr.bf16.mxu0 %v6698_v4  ;;  %5224 = vmatprep.subr.bf16.mxu1 %v6700_v5  ;;  %v6704_v8 = vld [vmem:[#allocation5 + $0x44] ss:$16 sps:$4 sm:$0xff]   ;;  %v6706_v9 = vld [vmem:[#allocation5 + $0x4c] ss:$16 sps:$4 sm:$0xff]   ;;  %v6708_v10 = vld [vmem:[#allocation5 + $0x40] ss:$16 sps:$4 sm:$0xff]  }
  0x3a   :  { %v6709_v11 = vld [vmem:[#allocation5 + $0x48] ss:$16 sps:$4 sm:$0xff]   ;;  %v6710_v12 = vld [vmem:[#allocation5 + $0x64] ss:$16 sps:$4 sm:$0xff]   ;;  %v6712_v13 = vld [vmem:[#allocation5 + $0x6c] ss:$16 sps:$4 sm:$0xff]  }
  0x3b   :  { %v6714_v14 = vld [vmem:[#allocation5 + $0x60] ss:$16 sps:$4 sm:$0xff]   ;;  %v6715_v15 = vld [vmem:[#allocation5 + $0x68] ss:$16 sps:$4 sm:$0xff]   ;;  %v6716_v16 = vld [vmem:[#allocation5 + $0x84] ss:$16 sps:$4 sm:$0xff]  }
  0x3c   :  { %4733 = vmatpush1.bf16.msra.mxu0 %v6702_v6  ;;  %5225 = vmatpush1.bf16.msra.mxu1 %v6703_v7  ;;  %v6718_v17 = vld [vmem:[#allocation5 + $0x8c] ss:$16 sps:$4 sm:$0xff]   ;;  %v6720_v18 = vld [vmem:[#allocation5 + $0x80] ss:$16 sps:$4 sm:$0xff]   ;;  %v6721_v19 = vld [vmem:[#allocation5 + $0x88] ss:$16 sps:$4 sm:$0xff]  }
  0x3d   :  { %4734 = vmatprep.subr.bf16.mxu0 %v6704_v8  ;;  %5226 = vmatprep.subr.bf16.mxu1 %v6706_v9  ;;  %v6722_v20 = vld [vmem:[#allocation5 + $0xa4] ss:$16 sps:$4 sm:$0xff]   ;;  %v6724_v21 = vld [vmem:[#allocation5 + $0xac] ss:$16 sps:$4 sm:$0xff]   ;;  %v6726_v22 = vld [vmem:[#allocation5 + $0xa0] ss:$16 sps:$4 sm:$0xff]  }
  0x3e   :  { %v6727_v23 = vld [vmem:[#allocation5 + $0xa8] ss:$16 sps:$4 sm:$0xff]   ;;  %v6728_v24 = vld [vmem:[#allocation5 + $0xc4] ss:$16 sps:$4 sm:$0xff]   ;;  %v6730_v25 = vld [vmem:[#allocation5 + $0xcc] ss:$16 sps:$4 sm:$0xff]  }
  0x3f   :  { %v6732_v26 = vld [vmem:[#allocation5 + $0xc0] ss:$16 sps:$4 sm:$0xff]   ;;  %v6733_v27 = vld [vmem:[#allocation5 + $0xc8] ss:$16 sps:$4 sm:$0xff]   ;;  %v6734_v28 = vld [vmem:[#allocation5 + $0xe4] ss:$16 sps:$4 sm:$0xff]  }
  0x40   :  { %4735 = vmatpush1.bf16.msra.mxu0 %v6708_v10  ;;  %5227 = vmatpush1.bf16.msra.mxu1 %v6709_v11  ;;  %v6736_v29 = vld [vmem:[#allocation5 + $0xec] ss:$16 sps:$4 sm:$0xff]   ;;  %v6738_v30 = vld [vmem:[#allocation5 + $0xe0] ss:$16 sps:$4 sm:$0xff]   ;;  %v6739_v31 = vld [vmem:[#allocation5 + $0xe8] ss:$16 sps:$4 sm:$0xff]  }
  0x41   :  { %4736 = vmatprep.subr.bf16.mxu0 %v6710_v12  ;;  %5228 = vmatprep.subr.bf16.mxu1 %v6712_v13  ;;  %v6740_v32 = vld [vmem:[#allocation5 + $0x104] ss:$16 sps:$4 sm:$0xff]   ;;  %v6742_v33 = vld [vmem:[#allocation5 + $0x10c] ss:$16 sps:$4 sm:$0xff]   ;;  %v6744_v34 = vld [vmem:[#allocation5 + $0x100] ss:$16 sps:$4 sm:$0xff]  }
  0x42   :  { %v6745_v35 = vld [vmem:[#allocation5 + $0x108] ss:$16 sps:$4 sm:$0xff]   ;;  %v6746_v36 = vld [vmem:[#allocation5 + $0x124] ss:$16 sps:$4 sm:$0xff]   ;;  %v6748_v37 = vld [vmem:[#allocation5 + $0x12c] ss:$16 sps:$4 sm:$0xff]  }
  0x43   :  { %v6750_v38 = vld [vmem:[#allocation5 + $0x120] ss:$16 sps:$4 sm:$0xff]   ;;  %v6751_v39 = vld [vmem:[#allocation5 + $0x128] ss:$16 sps:$4 sm:$0xff]   ;;  %v6752_v40 = vld [vmem:[#allocation5 + $0x144] ss:$16 sps:$4 sm:$0xff]  }
  0x44   :  { %4737 = vmatpush1.bf16.msra.mxu0 %v6714_v14  ;;  %5229 = vmatpush1.bf16.msra.mxu1 %v6715_v15  ;;  %v6754_v41 = vld [vmem:[#allocation5 + $0x14c] ss:$16 sps:$4 sm:$0xff]   ;;  %v6756_v42 = vld [vmem:[#allocation5 + $0x140] ss:$16 sps:$4 sm:$0xff]   ;;  %v6757_v43 = vld [vmem:[#allocation5 + $0x148] ss:$16 sps:$4 sm:$0xff]  }
  0x45   :  { %4738 = vmatprep.subr.bf16.mxu0 %v6716_v16  ;;  %5230 = vmatprep.subr.bf16.mxu1 %v6718_v17  ;;  %v6758_v44 = vld [vmem:[#allocation5 + $0x164] ss:$16 sps:$4 sm:$0xff]   ;;  %v6760_v45 = vld [vmem:[#allocation5 + $0x16c] ss:$16 sps:$4 sm:$0xff]   ;;  %v6762_v47 = vld [vmem:[#allocation5 + $0x160] ss:$16 sps:$4 sm:$0xff]  }
  0x46   :  { %v53_v46 = vld [vmem:[#allocation2 + $0x8] sm:$0xff]  ;;  %v6764_v50 = vld [vmem:[#allocation5 + $0x184] ss:$16 sps:$4 sm:$0xff]   ;;  %v6768_v52 = vld [vmem:[#allocation5 + $0x180] ss:$16 sps:$4 sm:$0xff]   ;;  %s7965_s2 = smov [#allocation8]  }
  0x47   :  { %v77_v48 = vpack.c.bf16 %v53_v46, %v53_v46  ;;  %v6763_v49 = vld [vmem:[#allocation5 + $0x168] ss:$16 sps:$4 sm:$0xff]   ;;  %v6766_v51 = vld [vmem:[#allocation5 + $0x18c] ss:$16 sps:$4 sm:$0xff]   ;;  %v6770_v54 = vld [vmem:[#allocation5 + $0x1a4] ss:$16 sps:$4 sm:$0xff]  }
  0x48   :  { %4739 = vmatpush1.bf16.msra.mxu0 %v6720_v18  ;;  %5231 = vmatpush1.bf16.msra.mxu1 %v6721_v19  ;;  %v6769_v53 = vld [vmem:[#allocation5 + $0x188] ss:$16 sps:$4 sm:$0xff]   ;;  %v6772_v55 = vld [vmem:[#allocation5 + $0x1ac] ss:$16 sps:$4 sm:$0xff]   ;;  %v6774_v56 = vld [vmem:[#allocation5 + $0x1a0] ss:$16 sps:$4 sm:$0xff]  }
  0x49   :  { %4740 = vmatprep.subr.bf16.mxu0 %v6722_v20  ;;  %5232 = vmatprep.subr.bf16.mxu1 %v6724_v21  ;;  %v6775_v57 = vld [vmem:[#allocation5 + $0x1a8] ss:$16 sps:$4 sm:$0xff]   ;;  %v6776_v58 = vld [vmem:[#allocation5 + $0x1c4] ss:$16 sps:$4 sm:$0xff]   ;;  %v6778_v59 = vld [vmem:[#allocation5 + $0x1cc] ss:$16 sps:$4 sm:$0xff]  }
  0x4a   :  { %4762 = vmatprep.mubr.bf16.mxu0 %v77_v48  ;;  %5254 = vmatprep.mubr.bf16.mxu1 %v77_v48  ;;  %v6780_v60 = vld [vmem:[#allocation5 + $0x1c0] ss:$16 sps:$4 sm:$0xff]   ;;  %v6781_v61 = vld [vmem:[#allocation5 + $0x1c8] ss:$16 sps:$4 sm:$0xff]   ;;  %v6782_v62 = vld [vmem:[#allocation5 + $0x1e4] ss:$16 sps:$4 sm:$0xff]  }
  0x4b   :  { %v6784_v63 = vld [vmem:[#allocation5 + $0x1ec] ss:$16 sps:$4 sm:$0xff]   ;;  %v6786_v0 = vld [vmem:[#allocation5 + $0x1e0] ss:$16 sps:$4 sm:$0xff]   ;;  %v6787_v1 = vld [vmem:[#allocation5 + $0x1e8] ss:$16 sps:$4 sm:$0xff]  }
  0x4c   :  { %4741 = vmatpush1.bf16.msra.mxu0 %v6726_v22  ;;  %5233 = vmatpush1.bf16.msra.mxu1 %v6727_v23  ;;  %v52_v2 = vld [vmem:[#allocation2] sm:$0xff]  ;;  %v6793_v4 = vld [vmem:[#allocation5 + $0x20c] ss:$16 sps:$4 sm:$0xff]   ;;  %v6791_v7 = vld [vmem:[#allocation5 + $0x208] ss:$16 sps:$4 sm:$0xff]   ;;  %s5811_s21 = sshll.u32 %s7965_s2, 4  ;;  %s5812_s21 = int_to_ptr.vmem [resolvable:$true] %s5811_s21 }
  0x4d   :  { %4742 = vmatprep.subr.bf16.mxu0 %v6728_v24  ;;  %5234 = vmatprep.subr.bf16.mxu1 %v6730_v25  ;;  %v6790_v3 = vld [vmem:[#allocation5 + $0x204] ss:$16 sps:$4 sm:$0xff]   ;;  %v76_v5 = vpack.c.bf16 %v52_v2, %v52_v2  ;;  %v6788_v6 = vld [vmem:[#allocation5 + $0x200] ss:$16 sps:$4 sm:$0xff]   ;;  %v6799_v9 = vld [vmem:[#allocation5 + $0x22c] ss:$16 sps:$4 sm:$0xff]   ;;  %p7935_p11 = scmp.lt.s32.totalorder %s5812_s21, %s5812_s21 }
  0x4e   :  { %v6796_v8 = vld [vmem:[#allocation5 + $0x224] ss:$16 sps:$4 sm:$0xff]   ;;  %v6794_v10 = vld [vmem:[#allocation5 + $0x220] ss:$16 sps:$4 sm:$0xff]   ;;  %v6797_v11 = vld [vmem:[#allocation5 + $0x228] ss:$16 sps:$4 sm:$0xff]  }
  0x4f   :  { %v6802_v12 = vld [vmem:[#allocation5 + $0x244] ss:$16 sps:$4 sm:$0xff]   ;;  %v6805_v13 = vld [vmem:[#allocation5 + $0x24c] ss:$16 sps:$4 sm:$0xff]   ;;  %v6800_v14 = vld [vmem:[#allocation5 + $0x240] ss:$16 sps:$4 sm:$0xff]  }
  0x50   :  { %4743 = vmatpush1.bf16.msra.mxu0 %v6732_v26  ;;  %5235 = vmatpush1.bf16.msra.mxu1 %v6733_v27  ;;  %v6803_v15 = vld [vmem:[#allocation5 + $0x248] ss:$16 sps:$4 sm:$0xff]   ;;  %v6808_v16 = vld [vmem:[#allocation5 + $0x264] ss:$16 sps:$4 sm:$0xff]   ;;  %v6811_v17 = vld [vmem:[#allocation5 + $0x26c] ss:$16 sps:$4 sm:$0xff]  }
  0x51   :  { %4744 = vmatprep.subr.bf16.mxu0 %v6734_v28  ;;  %5236 = vmatprep.subr.bf16.mxu1 %v6736_v29  ;;  %v6806_v18 = vld [vmem:[#allocation5 + $0x260] ss:$16 sps:$4 sm:$0xff]   ;;  %v6809_v19 = vld [vmem:[#allocation5 + $0x268] ss:$16 sps:$4 sm:$0xff]   ;;  %v6814_v20 = vld [vmem:[#allocation5 + $0x284] ss:$16 sps:$4 sm:$0xff]  }
  0x52   :  { %v6817_v21 = vld [vmem:[#allocation5 + $0x28c] ss:$16 sps:$4 sm:$0xff]   ;;  %v6812_v22 = vld [vmem:[#allocation5 + $0x280] ss:$16 sps:$4 sm:$0xff]   ;;  %v6815_v23 = vld [vmem:[#allocation5 + $0x288] ss:$16 sps:$4 sm:$0xff]  }
  0x53   :  { %v6820_v24 = vld [vmem:[#allocation5 + $0x2a4] ss:$16 sps:$4 sm:$0xff]   ;;  %v6823_v25 = vld [vmem:[#allocation5 + $0x2ac] ss:$16 sps:$4 sm:$0xff]   ;;  %v6818_v26 = vld [vmem:[#allocation5 + $0x2a0] ss:$16 sps:$4 sm:$0xff]  }
  0x54   :  { %4745 = vmatpush1.bf16.msra.mxu0 %v6738_v30  ;;  %5237 = vmatpush1.bf16.msra.mxu1 %v6739_v31  ;;  %v6821_v27 = vld [vmem:[#allocation5 + $0x2a8] ss:$16 sps:$4 sm:$0xff]   ;;  %v6826_v28 = vld [vmem:[#allocation5 + $0x2c4] ss:$16 sps:$4 sm:$0xff]   ;;  %v6829_v29 = vld [vmem:[#allocation5 + $0x2cc] ss:$16 sps:$4 sm:$0xff]  }
  0x55   :  { %4746 = vmatprep.subr.bf16.mxu0 %v6740_v32  ;;  %5238 = vmatprep.subr.bf16.mxu1 %v6742_v33  ;;  %v55_v30 = vld [vmem:[#allocation2 + $0x18] sm:$0xff]  ;;  %v6824_v31 = vld [vmem:[#allocation5 + $0x2c0] ss:$16 sps:$4 sm:$0xff]   ;;  %v6850_v46 = vld [vmem:[#allocation5 + $0x344] ss:$16 sps:$4 sm:$0xff]   ;;  %vm5803_vm0 = vcmask 57344  }
  0x56   :  { %v79_v32 = vpack.c.bf16 %v55_v30, %v55_v30  ;;  %v6827_v33 = vld [vmem:[#allocation5 + $0x2c8] ss:$16 sps:$4 sm:$0xff]   ;;  %v6848_v48 = vld [vmem:[#allocation5 + $0x340] ss:$16 sps:$4 sm:$0xff]   ;;  %v6880_v2 = vld [vmem:[#allocation5 + $0x3e4] ss:$16 sps:$4 sm:$0xff]  }
  0x57   :  { %v6916_v30 = vld [vmem:[#allocation5 + $0x4a4] ss:$16 sps:$4 sm:$0xff]   ;;  %s7930_s22 = scalar_lea.vmem %s5812_s21, 16  ;;  %s7934_s23 = scalar_lea.vmem %s5812_s21, 32 }
  0x58   :  { %4747 = vmatpush1.bf16.msra.mxu0 %v6744_v34  ;;  %5239 = vmatpush1.bf16.msra.mxu1 %v6745_v35  ;;  %v6832_v34 = vld [vmem:[#allocation5 + $0x2e4] ss:$16 sps:$4 sm:$0xff]   ;;  %v6835_v35 = vld [vmem:[#allocation5 + $0x2ec] ss:$16 sps:$4 sm:$0xff]   ;;  %p7931_p10 = scmp.ne.s32.totalorder %s5812_s21, %s7930_s22  ;;  %p7936_p12 = scmp.lt.s32.totalorder %s7934_s23, %s7930_s22 }
  0x59   :  { %4748 = vmatprep.subr.bf16.mxu0 %v6746_v36  ;;  %5240 = vmatprep.subr.bf16.mxu1 %v6748_v37  ;;  %v6830_v36 = vld [vmem:[#allocation5 + $0x2e0] ss:$16 sps:$4 sm:$0xff]   ;;  %v6833_v37 = vld [vmem:[#allocation5 + $0x2e8] ss:$16 sps:$4 sm:$0xff]  }
  0x5a   :  { %p7937_p13 = por %p7936_p12, %p7935_p11 }
  0x5c   :  { %4749 = vmatpush1.bf16.msra.mxu0 %v6750_v38  ;;  %5241 = vmatpush1.bf16.msra.mxu1 %v6751_v39  ;;  %v6838_v38 = vld [vmem:[#allocation5 + $0x304] ss:$16 sps:$4 sm:$0xff]   ;;  %v6841_v39 = vld [vmem:[#allocation5 + $0x30c] ss:$16 sps:$4 sm:$0xff]   ;;  %p7938_p0 = pnand %p7937_p13, %p7931_p10 }
  0x5d   :  { %4750 = vmatprep.subr.bf16.mxu0 %v6752_v40  ;;  %5242 = vmatprep.subr.bf16.mxu1 %v6754_v41  ;;  %v6836_v40 = vld [vmem:[#allocation5 + $0x300] ss:$16 sps:$4 sm:$0xff]   ;;  %v6839_v41 = vld [vmem:[#allocation5 + $0x308] ss:$16 sps:$4 sm:$0xff]  }
  0x60   :  { %4751 = vmatpush1.bf16.msra.mxu0 %v6756_v42  ;;  %5243 = vmatpush1.bf16.msra.mxu1 %v6757_v43  ;;  %v6844_v42 = vld [vmem:[#allocation5 + $0x324] ss:$16 sps:$4 sm:$0xff]   ;;  %v6847_v43 = vld [vmem:[#allocation5 + $0x32c] ss:$16 sps:$4 sm:$0xff]  }
  0x61   :  { %4752 = vmatprep.subr.bf16.mxu0 %v6758_v44  ;;  %5244 = vmatprep.subr.bf16.mxu1 %v6760_v45  ;;  %v6842_v44 = vld [vmem:[#allocation5 + $0x320] ss:$16 sps:$4 sm:$0xff]   ;;  %v6845_v45 = vld [vmem:[#allocation5 + $0x328] ss:$16 sps:$4 sm:$0xff]  }
  0x64   :  { %4753 = vmatpush1.bf16.msra.mxu0 %v6762_v47  ;;  %5245 = vmatpush1.bf16.msra.mxu1 %v6763_v49  ;;  %v6853_v47 = vld [vmem:[#allocation5 + $0x34c] ss:$16 sps:$4 sm:$0xff]   ;;  %v6851_v49 = vld [vmem:[#allocation5 + $0x348] ss:$16 sps:$4 sm:$0xff]  }
  0x65   :  { %4754 = vmatprep.subr.bf16.mxu0 %v6764_v50  ;;  %5246 = vmatprep.subr.bf16.mxu1 %v6766_v51  ;;  %v6856_v50 = vld [vmem:[#allocation5 + $0x364] ss:$16 sps:$4 sm:$0xff]   ;;  %v6859_v51 = vld [vmem:[#allocation5 + $0x36c] ss:$16 sps:$4 sm:$0xff]  }
  0x68   :  { %4755 = vmatpush1.bf16.msra.mxu0 %v6768_v52  ;;  %5247 = vmatpush1.bf16.msra.mxu1 %v6769_v53  ;;  %v6854_v52 = vld [vmem:[#allocation5 + $0x360] ss:$16 sps:$4 sm:$0xff]   ;;  %v6857_v53 = vld [vmem:[#allocation5 + $0x368] ss:$16 sps:$4 sm:$0xff]  }
  0x69   :  { %4756 = vmatprep.subr.bf16.mxu0 %v6770_v54  ;;  %5248 = vmatprep.subr.bf16.mxu1 %v6772_v55  ;;  %v6862_v54 = vld [vmem:[#allocation5 + $0x384] ss:$16 sps:$4 sm:$0xff]   ;;  %v6865_v55 = vld [vmem:[#allocation5 + $0x38c] ss:$16 sps:$4 sm:$0xff]  }
  0x6c   :  { %4757 = vmatpush1.bf16.msra.mxu0 %v6774_v56  ;;  %5249 = vmatpush1.bf16.msra.mxu1 %v6775_v57  ;;  %v6860_v56 = vld [vmem:[#allocation5 + $0x380] ss:$16 sps:$4 sm:$0xff]   ;;  %v6863_v57 = vld [vmem:[#allocation5 + $0x388] ss:$16 sps:$4 sm:$0xff]  }
  0x6d   :  { %4758 = vmatprep.subr.bf16.mxu0 %v6776_v58  ;;  %5250 = vmatprep.subr.bf16.mxu1 %v6778_v59  ;;  %v6868_v58 = vld [vmem:[#allocation5 + $0x3a4] ss:$16 sps:$4 sm:$0xff]   ;;  %v6871_v59 = vld [vmem:[#allocation5 + $0x3ac] ss:$16 sps:$4 sm:$0xff]  }
  0x70   :  { %4759 = vmatpush1.bf16.msra.mxu0 %v6780_v60  ;;  %5251 = vmatpush1.bf16.msra.mxu1 %v6781_v61  ;;  %v6866_v60 = vld [vmem:[#allocation5 + $0x3a0] ss:$16 sps:$4 sm:$0xff]   ;;  %v6869_v61 = vld [vmem:[#allocation5 + $0x3a8] ss:$16 sps:$4 sm:$0xff]  }
  0x71   :  { %4760 = vmatprep.subr.bf16.mxu0 %v6782_v62  ;;  %5252 = vmatprep.subr.bf16.mxu1 %v6784_v63  ;;  %v6874_v62 = vld [vmem:[#allocation5 + $0x3c4] ss:$16 sps:$4 sm:$0xff]   ;;  %v6877_v63 = vld [vmem:[#allocation5 + $0x3cc] ss:$16 sps:$4 sm:$0xff]  }
  0x74   :  { %4761 = vmatpush1.bf16.msra.mxu0 %v6786_v0  ;;  %5253 = vmatpush1.bf16.msra.mxu1 %v6787_v1  ;;  %v6872_v0 = vld [vmem:[#allocation5 + $0x3c0] ss:$16 sps:$4 sm:$0xff]   ;;  %v6875_v1 = vld [vmem:[#allocation5 + $0x3c8] ss:$16 sps:$4 sm:$0xff]  }
  0x75   :  { %4771 = vmatprep.subr.bf16.mxu0 %v6790_v3  ;;  %5263 = vmatprep.subr.bf16.mxu1 %v6793_v4  ;;  %v6883_v3 = vld [vmem:[#allocation5 + $0x3ec] ss:$16 sps:$4 sm:$0xff]   ;;  %v6878_v4 = vld [vmem:[#allocation5 + $0x3e0] ss:$16 sps:$4 sm:$0xff]  }
  0x77   :  { %4763 = vmatmul.mubr.bf16.vlgmr.msra.gmra.mrb[0].mxu0 %v76_v5  ;;  %5255 = vmatmul.mubr.bf16.vlgmr.msra.gmra.mrb[0].mxu1 %v76_v5  ;;  %v6881_v5 = vld [vmem:[#allocation5 + $0x3e8] ss:$16 sps:$4 sm:$0xff]  }
  0x78   :  { %4772 = vmatpush1.bf16.msra.mxu0 %v6788_v6  ;;  %5264 = vmatpush1.bf16.msra.mxu1 %v6791_v7  ;;  %v6886_v6 = vld [vmem:[#allocation5 + $0x404] ss:$16 sps:$4 sm:$0xff]  }
  0x79   :  { %4773 = vmatprep.subr.bf16.mxu0 %v6796_v8  ;;  %5265 = vmatprep.subr.bf16.mxu1 %v6799_v9  ;;  %v54_v7 = vld [vmem:[#allocation2 + $0x10] sm:$0xff]  ;;  %v6889_v8 = vld [vmem:[#allocation5 + $0x40c] ss:$16 sps:$4 sm:$0xff]  }
  0x7a   :  { %4803 = vmatprep.mubr.bf16.mxu0 %v79_v32  ;;  %5295 = vmatprep.mubr.bf16.mxu1 %v79_v32  ;;  %v6884_v9 = vld [vmem:[#allocation5 + $0x400] ss:$16 sps:$4 sm:$0xff]  }
  0x7b   :  { %v6914_v32 = vld [vmem:[#allocation5 + $0x4a0] ss:$16 sps:$4 sm:$0xff]  }
  0x7c   :  { %4774 = vmatpush1.bf16.msra.mxu0 %v6794_v10  ;;  %5266 = vmatpush1.bf16.msra.mxu1 %v6797_v11  ;;  %v6887_v10 = vld [vmem:[#allocation5 + $0x408] ss:$16 sps:$4 sm:$0xff]   ;;  %v78_v11 = vpack.c.bf16 %v54_v7, %v54_v7  ;;  %v6979_v7 = vld [vmem:[#allocation5 + $0x5ec] ss:$16 sps:$4 sm:$0xff]  }
  0x7d   :  { %4775 = vmatprep.subr.bf16.mxu0 %v6802_v12  ;;  %5267 = vmatprep.subr.bf16.mxu1 %v6805_v13  ;;  %v6892_v12 = vld [vmem:[#allocation5 + $0x424] ss:$16 sps:$4 sm:$0xff]   ;;  %v6895_v13 = vld [vmem:[#allocation5 + $0x42c] ss:$16 sps:$4 sm:$0xff]  }
  0x80   :  { %4776 = vmatpush1.bf16.msra.mxu0 %v6800_v14  ;;  %5268 = vmatpush1.bf16.msra.mxu1 %v6803_v15  ;;  %v57_v14 = vld [vmem:[#allocation2 + $0x28] sm:$0xff] }
  0x81   :  { %4777 = vmatprep.subr.bf16.mxu0 %v6808_v16  ;;  %5269 = vmatprep.subr.bf16.mxu1 %v6811_v17  ;;  %v81_v15 = vpack.c.bf16 %v57_v14, %v57_v14  ;;  %v6890_v16 = vld [vmem:[#allocation5 + $0x420] ss:$16 sps:$4 sm:$0xff]   ;;  %v6893_v17 = vld [vmem:[#allocation5 + $0x428] ss:$16 sps:$4 sm:$0xff]  }
  0x82   :  { %v6983_v14 = vld [vmem:[#allocation5 + $0x608] ss:$16 sps:$4 sm:$0xff]  }
  0x84   :  { %4778 = vmatpush1.bf16.msra.mxu0 %v6806_v18  ;;  %5270 = vmatpush1.bf16.msra.mxu1 %v6809_v19  ;;  %v6898_v18 = vld [vmem:[#allocation5 + $0x444] ss:$16 sps:$4 sm:$0xff]   ;;  %v6901_v19 = vld [vmem:[#allocation5 + $0x44c] ss:$16 sps:$4 sm:$0xff]  }
  0x85   :  { %4779 = vmatprep.subr.bf16.mxu0 %v6814_v20  ;;  %5271 = vmatprep.subr.bf16.mxu1 %v6817_v21  ;;  %v6896_v20 = vld [vmem:[#allocation5 + $0x440] ss:$16 sps:$4 sm:$0xff]   ;;  %v6899_v21 = vld [vmem:[#allocation5 + $0x448] ss:$16 sps:$4 sm:$0xff]  }
  0x88   :  { %4780 = vmatpush1.bf16.msra.mxu0 %v6812_v22  ;;  %5272 = vmatpush1.bf16.msra.mxu1 %v6815_v23  ;;  %v6904_v22 = vld [vmem:[#allocation5 + $0x464] ss:$16 sps:$4 sm:$0xff]   ;;  %v6907_v23 = vld [vmem:[#allocation5 + $0x46c] ss:$16 sps:$4 sm:$0xff]  }
  0x89   :  { %4781 = vmatprep.subr.bf16.mxu0 %v6820_v24  ;;  %5273 = vmatprep.subr.bf16.mxu1 %v6823_v25  ;;  %v6902_v24 = vld [vmem:[#allocation5 + $0x460] ss:$16 sps:$4 sm:$0xff]   ;;  %v6905_v25 = vld [vmem:[#allocation5 + $0x468] ss:$16 sps:$4 sm:$0xff]  }
  0x8c   :  { %4782 = vmatpush1.bf16.msra.mxu0 %v6818_v26  ;;  %5274 = vmatpush1.bf16.msra.mxu1 %v6821_v27  ;;  %v6910_v26 = vld [vmem:[#allocation5 + $0x484] ss:$16 sps:$4 sm:$0xff]   ;;  %v6913_v27 = vld [vmem:[#allocation5 + $0x48c] ss:$16 sps:$4 sm:$0xff]  }
  0x8d   :  { %4783 = vmatprep.subr.bf16.mxu0 %v6826_v28  ;;  %5275 = vmatprep.subr.bf16.mxu1 %v6829_v29  ;;  %v6908_v28 = vld [vmem:[#allocation5 + $0x480] ss:$16 sps:$4 sm:$0xff]   ;;  %v6911_v29 = vld [vmem:[#allocation5 + $0x488] ss:$16 sps:$4 sm:$0xff]  }
  0x90   :  { %4784 = vmatpush1.bf16.msra.mxu0 %v6824_v31  ;;  %5276 = vmatpush1.bf16.msra.mxu1 %v6827_v33  ;;  %v6919_v31 = vld [vmem:[#allocation5 + $0x4ac] ss:$16 sps:$4 sm:$0xff]   ;;  %v6917_v33 = vld [vmem:[#allocation5 + $0x4a8] ss:$16 sps:$4 sm:$0xff]  }
  0x91   :  { %4785 = vmatprep.subr.bf16.mxu0 %v6832_v34  ;;  %5277 = vmatprep.subr.bf16.mxu1 %v6835_v35  ;;  %v6922_v34 = vld [vmem:[#allocation5 + $0x4c4] ss:$16 sps:$4 sm:$0xff]   ;;  %v6925_v35 = vld [vmem:[#allocation5 + $0x4cc] ss:$16 sps:$4 sm:$0xff]  }
  0x94   :  { %4786 = vmatpush1.bf16.msra.mxu0 %v6830_v36  ;;  %5278 = vmatpush1.bf16.msra.mxu1 %v6833_v37  ;;  %v6920_v36 = vld [vmem:[#allocation5 + $0x4c0] ss:$16 sps:$4 sm:$0xff]   ;;  %v6923_v37 = vld [vmem:[#allocation5 + $0x4c8] ss:$16 sps:$4 sm:$0xff]  }
  0x95   :  { %4787 = vmatprep.subr.bf16.mxu0 %v6838_v38  ;;  %5279 = vmatprep.subr.bf16.mxu1 %v6841_v39  ;;  %v6928_v38 = vld [vmem:[#allocation5 + $0x4e4] ss:$16 sps:$4 sm:$0xff]   ;;  %v6931_v39 = vld [vmem:[#allocation5 + $0x4ec] ss:$16 sps:$4 sm:$0xff]  }
  0x98   :  { %4788 = vmatpush1.bf16.msra.mxu0 %v6836_v40  ;;  %5280 = vmatpush1.bf16.msra.mxu1 %v6839_v41  ;;  %v6926_v40 = vld [vmem:[#allocation5 + $0x4e0] ss:$16 sps:$4 sm:$0xff]   ;;  %v6929_v41 = vld [vmem:[#allocation5 + $0x4e8] ss:$16 sps:$4 sm:$0xff]  }
  0x99   :  { %4789 = vmatprep.subr.bf16.mxu0 %v6844_v42  ;;  %5281 = vmatprep.subr.bf16.mxu1 %v6847_v43  ;;  %v6934_v42 = vld [vmem:[#allocation5 + $0x504] ss:$16 sps:$4 sm:$0xff]   ;;  %v6937_v43 = vld [vmem:[#allocation5 + $0x50c] ss:$16 sps:$4 sm:$0xff]  }
  0x9c   :  { %4790 = vmatpush1.bf16.msra.mxu0 %v6842_v44  ;;  %5282 = vmatpush1.bf16.msra.mxu1 %v6845_v45  ;;  %v6932_v44 = vld [vmem:[#allocation5 + $0x500] ss:$16 sps:$4 sm:$0xff]   ;;  %v6935_v45 = vld [vmem:[#allocation5 + $0x508] ss:$16 sps:$4 sm:$0xff]  }
  0x9d   :  { %4791 = vmatprep.subr.bf16.mxu0 %v6850_v46  ;;  %5283 = vmatprep.subr.bf16.mxu1 %v6853_v47  ;;  %v6940_v46 = vld [vmem:[#allocation5 + $0x524] ss:$16 sps:$4 sm:$0xff]   ;;  %v6943_v47 = vld [vmem:[#allocation5 + $0x52c] ss:$16 sps:$4 sm:$0xff]  }
  0xa0   :  { %4792 = vmatpush1.bf16.msra.mxu0 %v6848_v48  ;;  %5284 = vmatpush1.bf16.msra.mxu1 %v6851_v49  ;;  %v6938_v48 = vld [vmem:[#allocation5 + $0x520] ss:$16 sps:$4 sm:$0xff]   ;;  %v6941_v49 = vld [vmem:[#allocation5 + $0x528] ss:$16 sps:$4 sm:$0xff]  }
  0xa1   :  { %4793 = vmatprep.subr.bf16.mxu0 %v6856_v50  ;;  %5285 = vmatprep.subr.bf16.mxu1 %v6859_v51  ;;  %v6946_v50 = vld [vmem:[#allocation5 + $0x544] ss:$16 sps:$4 sm:$0xff]   ;;  %v6949_v51 = vld [vmem:[#allocation5 + $0x54c] ss:$16 sps:$4 sm:$0xff]  }
  0xa4   :  { %4794 = vmatpush1.bf16.msra.mxu0 %v6854_v52  ;;  %5286 = vmatpush1.bf16.msra.mxu1 %v6857_v53  ;;  %v6944_v52 = vld [vmem:[#allocation5 + $0x540] ss:$16 sps:$4 sm:$0xff]   ;;  %v6947_v53 = vld [vmem:[#allocation5 + $0x548] ss:$16 sps:$4 sm:$0xff]  }
  0xa5   :  { %4795 = vmatprep.subr.bf16.mxu0 %v6862_v54  ;;  %5287 = vmatprep.subr.bf16.mxu1 %v6865_v55  ;;  %v6952_v54 = vld [vmem:[#allocation5 + $0x564] ss:$16 sps:$4 sm:$0xff]   ;;  %v6955_v55 = vld [vmem:[#allocation5 + $0x56c] ss:$16 sps:$4 sm:$0xff]  }
  0xa8   :  { %4796 = vmatpush1.bf16.msra.mxu0 %v6860_v56  ;;  %5288 = vmatpush1.bf16.msra.mxu1 %v6863_v57  ;;  %v6950_v56 = vld [vmem:[#allocation5 + $0x560] ss:$16 sps:$4 sm:$0xff]   ;;  %v6953_v57 = vld [vmem:[#allocation5 + $0x568] ss:$16 sps:$4 sm:$0xff]  }
  0xa9   :  { %4797 = vmatprep.subr.bf16.mxu0 %v6868_v58  ;;  %5289 = vmatprep.subr.bf16.mxu1 %v6871_v59  ;;  %v6958_v58 = vld [vmem:[#allocation5 + $0x584] ss:$16 sps:$4 sm:$0xff]   ;;  %v6961_v59 = vld [vmem:[#allocation5 + $0x58c] ss:$16 sps:$4 sm:$0xff]  }
  0xac   :  { %4798 = vmatpush1.bf16.msra.mxu0 %v6866_v60  ;;  %5290 = vmatpush1.bf16.msra.mxu1 %v6869_v61  ;;  %v6956_v60 = vld [vmem:[#allocation5 + $0x580] ss:$16 sps:$4 sm:$0xff]   ;;  %v6959_v61 = vld [vmem:[#allocation5 + $0x588] ss:$16 sps:$4 sm:$0xff]  }
  0xad   :  { %4799 = vmatprep.subr.bf16.mxu0 %v6874_v62  ;;  %5291 = vmatprep.subr.bf16.mxu1 %v6877_v63  ;;  %v6964_v62 = vld [vmem:[#allocation5 + $0x5a4] ss:$16 sps:$4 sm:$0xff]   ;;  %v6967_v63 = vld [vmem:[#allocation5 + $0x5ac] ss:$16 sps:$4 sm:$0xff]  }
  0xb0   :  { %4800 = vmatpush1.bf16.msra.mxu0 %v6872_v0  ;;  %5292 = vmatpush1.bf16.msra.mxu1 %v6875_v1  ;;  %v6962_v0 = vld [vmem:[#allocation5 + $0x5a0] ss:$16 sps:$4 sm:$0xff]   ;;  %v6965_v1 = vld [vmem:[#allocation5 + $0x5a8] ss:$16 sps:$4 sm:$0xff]  }
  0xb1   :  { %4801 = vmatprep.subr.bf16.mxu0 %v6880_v2  ;;  %5293 = vmatprep.subr.bf16.mxu1 %v6883_v3  ;;  %v6970_v2 = vld [vmem:[#allocation5 + $0x5c4] ss:$16 sps:$4 sm:$0xff]   ;;  %v6973_v3 = vld [vmem:[#allocation5 + $0x5cc] ss:$16 sps:$4 sm:$0xff]  }
  0xb4   :  { %4802 = vmatpush1.bf16.msra.mxu0 %v6878_v4  ;;  %5294 = vmatpush1.bf16.msra.mxu1 %v6881_v5  ;;  %v6968_v4 = vld [vmem:[#allocation5 + $0x5c0] ss:$16 sps:$4 sm:$0xff]   ;;  %v6971_v5 = vld [vmem:[#allocation5 + $0x5c8] ss:$16 sps:$4 sm:$0xff]  }
  0xb5   :  { %4812 = vmatprep.subr.bf16.mxu0 %v6886_v6  ;;  %5304 = vmatprep.subr.bf16.mxu1 %v6889_v8  ;;  %v6976_v6 = vld [vmem:[#allocation5 + $0x5e4] ss:$16 sps:$4 sm:$0xff]   ;;  %v6974_v8 = vld [vmem:[#allocation5 + $0x5e0] ss:$16 sps:$4 sm:$0xff]  }
  0xb7   :  { %4804 = vmatmul.mubr.bf16.vlgmr.msra.gmra.mrb[0].mxu0 %v78_v11  ;;  %5296 = vmatmul.mubr.bf16.vlgmr.msra.gmra.mrb[0].mxu1 %v78_v11  ;;  %v56_v11 = vld [vmem:[#allocation2 + $0x20] sm:$0xff] }
  0xb8   :  { %4813 = vmatpush1.bf16.msra.mxu0 %v6884_v9  ;;  %5305 = vmatpush1.bf16.msra.mxu1 %v6887_v10  ;;  %v6977_v9 = vld [vmem:[#allocation5 + $0x5e8] ss:$16 sps:$4 sm:$0xff]   ;;  %v6982_v10 = vld [vmem:[#allocation5 + $0x604] ss:$16 sps:$4 sm:$0xff]  }
  0xb9   :  { %4814 = vmatprep.subr.bf16.mxu0 %v6892_v12  ;;  %5306 = vmatprep.subr.bf16.mxu1 %v6895_v13  ;;  %v6985_v12 = vld [vmem:[#allocation5 + $0x60c] ss:$16 sps:$4 sm:$0xff]   ;;  %v6980_v13 = vld [vmem:[#allocation5 + $0x600] ss:$16 sps:$4 sm:$0xff]  }
  0xba   :  { %4844 = vmatprep.mubr.bf16.mxu0 %v81_v15  ;;  %5336 = vmatprep.mubr.bf16.mxu1 %v81_v15  ;;  %v80_v15 = vpack.c.bf16 %v56_v11, %v56_v11  ;;  %v7075_v11 = vld [vmem:[#allocation5 + $0x7ec] ss:$16 sps:$4 sm:$0xff]  }
  0xbc   :  { %4815 = vmatpush1.bf16.msra.mxu0 %v6890_v16  ;;  %5307 = vmatpush1.bf16.msra.mxu1 %v6893_v17  ;;  %v59_v16 = vld [vmem:[#allocation2 + $0x38] sm:$0xff]  ;;  %v6988_v17 = vld [vmem:[#allocation5 + $0x624] ss:$16 sps:$4 sm:$0xff]  }
  0xbd   :  { %4816 = vmatprep.subr.bf16.mxu0 %v6898_v18  ;;  %5308 = vmatprep.subr.bf16.mxu1 %v6901_v19  ;;  %v6991_v18 = vld [vmem:[#allocation5 + $0x62c] ss:$16 sps:$4 sm:$0xff]   ;;  %v83_v19 = vpack.c.bf16 %v59_v16, %v59_v16 }
  0xbe   :  { %v7081_v16 = vld [vmem:[#allocation5 + $0x80c] ss:$16 sps:$4 sm:$0xff]  }
  0xc0   :  { %4817 = vmatpush1.bf16.msra.mxu0 %v6896_v20  ;;  %5309 = vmatpush1.bf16.msra.mxu1 %v6899_v21  ;;  %v6986_v20 = vld [vmem:[#allocation5 + $0x620] ss:$16 sps:$4 sm:$0xff]   ;;  %v6989_v21 = vld [vmem:[#allocation5 + $0x628] ss:$16 sps:$4 sm:$0xff]  }
  0xc1   :  { %4818 = vmatprep.subr.bf16.mxu0 %v6904_v22  ;;  %5310 = vmatprep.subr.bf16.mxu1 %v6907_v23  ;;  %v6994_v22 = vld [vmem:[#allocation5 + $0x644] ss:$16 sps:$4 sm:$0xff]   ;;  %v6997_v23 = vld [vmem:[#allocation5 + $0x64c] ss:$16 sps:$4 sm:$0xff]  }
  0xc4   :  { %4819 = vmatpush1.bf16.msra.mxu0 %v6902_v24  ;;  %5311 = vmatpush1.bf16.msra.mxu1 %v6905_v25  ;;  %v6992_v24 = vld [vmem:[#allocation5 + $0x640] ss:$16 sps:$4 sm:$0xff]   ;;  %v6995_v25 = vld [vmem:[#allocation5 + $0x648] ss:$16 sps:$4 sm:$0xff]  }
  0xc5   :  { %4820 = vmatprep.subr.bf16.mxu0 %v6910_v26  ;;  %5312 = vmatprep.subr.bf16.mxu1 %v6913_v27  ;;  %v7000_v26 = vld [vmem:[#allocation5 + $0x664] ss:$16 sps:$4 sm:$0xff]   ;;  %v7003_v27 = vld [vmem:[#allocation5 + $0x66c] ss:$16 sps:$4 sm:$0xff]  }
  0xc8   :  { %4821 = vmatpush1.bf16.msra.mxu0 %v6908_v28  ;;  %5313 = vmatpush1.bf16.msra.mxu1 %v6911_v29  ;;  %v6998_v28 = vld [vmem:[#allocation5 + $0x660] ss:$16 sps:$4 sm:$0xff]   ;;  %v7001_v29 = vld [vmem:[#allocation5 + $0x668] ss:$16 sps:$4 sm:$0xff]  }
  0xc9   :  { %4822 = vmatprep.subr.bf16.mxu0 %v6916_v30  ;;  %5314 = vmatprep.subr.bf16.mxu1 %v6919_v31  ;;  %v7006_v30 = vld [vmem:[#allocation5 + $0x684] ss:$16 sps:$4 sm:$0xff]   ;;  %v7009_v31 = vld [vmem:[#allocation5 + $0x68c] ss:$16 sps:$4 sm:$0xff]  }
  0xcc   :  { %4823 = vmatpush1.bf16.msra.mxu0 %v6914_v32  ;;  %5315 = vmatpush1.bf16.msra.mxu1 %v6917_v33  ;;  %v7004_v32 = vld [vmem:[#allocation5 + $0x680] ss:$16 sps:$4 sm:$0xff]   ;;  %v7007_v33 = vld [vmem:[#allocation5 + $0x688] ss:$16 sps:$4 sm:$0xff]  }
  0xcd   :  { %4824 = vmatprep.subr.bf16.mxu0 %v6922_v34  ;;  %5316 = vmatprep.subr.bf16.mxu1 %v6925_v35  ;;  %v7012_v34 = vld [vmem:[#allocation5 + $0x6a4] ss:$16 sps:$4 sm:$0xff]   ;;  %v7015_v35 = vld [vmem:[#allocation5 + $0x6ac] ss:$16 sps:$4 sm:$0xff]  }
  0xd0   :  { %4825 = vmatpush1.bf16.msra.mxu0 %v6920_v36  ;;  %5317 = vmatpush1.bf16.msra.mxu1 %v6923_v37  ;;  %v7010_v36 = vld [vmem:[#allocation5 + $0x6a0] ss:$16 sps:$4 sm:$0xff]   ;;  %v7013_v37 = vld [vmem:[#allocation5 + $0x6a8] ss:$16 sps:$4 sm:$0xff]  }
  0xd1   :  { %4826 = vmatprep.subr.bf16.mxu0 %v6928_v38  ;;  %5318 = vmatprep.subr.bf16.mxu1 %v6931_v39  ;;  %v7018_v38 = vld [vmem:[#allocation5 + $0x6c4] ss:$16 sps:$4 sm:$0xff]   ;;  %v7021_v39 = vld [vmem:[#allocation5 + $0x6cc] ss:$16 sps:$4 sm:$0xff]  }
  0xd4   :  { %4827 = vmatpush1.bf16.msra.mxu0 %v6926_v40  ;;  %5319 = vmatpush1.bf16.msra.mxu1 %v6929_v41  ;;  %v7016_v40 = vld [vmem:[#allocation5 + $0x6c0] ss:$16 sps:$4 sm:$0xff]   ;;  %v7019_v41 = vld [vmem:[#allocation5 + $0x6c8] ss:$16 sps:$4 sm:$0xff]  }
  0xd5   :  { %4828 = vmatprep.subr.bf16.mxu0 %v6934_v42  ;;  %5320 = vmatprep.subr.bf16.mxu1 %v6937_v43  ;;  %v7024_v42 = vld [vmem:[#allocation5 + $0x6e4] ss:$16 sps:$4 sm:$0xff]   ;;  %v7027_v43 = vld [vmem:[#allocation5 + $0x6ec] ss:$16 sps:$4 sm:$0xff]  }
  0xd8   :  { %4829 = vmatpush1.bf16.msra.mxu0 %v6932_v44  ;;  %5321 = vmatpush1.bf16.msra.mxu1 %v6935_v45  ;;  %v7022_v44 = vld [vmem:[#allocation5 + $0x6e0] ss:$16 sps:$4 sm:$0xff]   ;;  %v7025_v45 = vld [vmem:[#allocation5 + $0x6e8] ss:$16 sps:$4 sm:$0xff]  }
  0xd9   :  { %4830 = vmatprep.subr.bf16.mxu0 %v6940_v46  ;;  %5322 = vmatprep.subr.bf16.mxu1 %v6943_v47  ;;  %v7030_v46 = vld [vmem:[#allocation5 + $0x704] ss:$16 sps:$4 sm:$0xff]   ;;  %v7033_v47 = vld [vmem:[#allocation5 + $0x70c] ss:$16 sps:$4 sm:$0xff]  }
  0xdc   :  { %4831 = vmatpush1.bf16.msra.mxu0 %v6938_v48  ;;  %5323 = vmatpush1.bf16.msra.mxu1 %v6941_v49  ;;  %v7028_v48 = vld [vmem:[#allocation5 + $0x700] ss:$16 sps:$4 sm:$0xff]   ;;  %v7031_v49 = vld [vmem:[#allocation5 + $0x708] ss:$16 sps:$4 sm:$0xff]  }
  0xdd   :  { %4832 = vmatprep.subr.bf16.mxu0 %v6946_v50  ;;  %5324 = vmatprep.subr.bf16.mxu1 %v6949_v51  ;;  %v7036_v50 = vld [vmem:[#allocation5 + $0x724] ss:$16 sps:$4 sm:$0xff]   ;;  %v7039_v51 = vld [vmem:[#allocation5 + $0x72c] ss:$16 sps:$4 sm:$0xff]  }
  0xe0   :  { %4833 = vmatpush1.bf16.msra.mxu0 %v6944_v52  ;;  %5325 = vmatpush1.bf16.msra.mxu1 %v6947_v53  ;;  %v7034_v52 = vld [vmem:[#allocation5 + $0x720] ss:$16 sps:$4 sm:$0xff]   ;;  %v7037_v53 = vld [vmem:[#allocation5 + $0x728] ss:$16 sps:$4 sm:$0xff]  }
  0xe1   :  { %4834 = vmatprep.subr.bf16.mxu0 %v6952_v54  ;;  %5326 = vmatprep.subr.bf16.mxu1 %v6955_v55  ;;  %v7042_v54 = vld [vmem:[#allocation5 + $0x744] ss:$16 sps:$4 sm:$0xff]   ;;  %v7045_v55 = vld [vmem:[#allocation5 + $0x74c] ss:$16 sps:$4 sm:$0xff]  }
  0xe4   :  { %4835 = vmatpush1.bf16.msra.mxu0 %v6950_v56  ;;  %5327 = vmatpush1.bf16.msra.mxu1 %v6953_v57  ;;  %v7040_v56 = vld [vmem:[#allocation5 + $0x740] ss:$16 sps:$4 sm:$0xff]   ;;  %v7043_v57 = vld [vmem:[#allocation5 + $0x748] ss:$16 sps:$4 sm:$0xff]  }
  0xe5   :  { %4836 = vmatprep.subr.bf16.mxu0 %v6958_v58  ;;  %5328 = vmatprep.subr.bf16.mxu1 %v6961_v59  ;;  %v7048_v58 = vld [vmem:[#allocation5 + $0x764] ss:$16 sps:$4 sm:$0xff]   ;;  %v7051_v59 = vld [vmem:[#allocation5 + $0x76c] ss:$16 sps:$4 sm:$0xff]  }
  0xe8   :  { %4837 = vmatpush1.bf16.msra.mxu0 %v6956_v60  ;;  %5329 = vmatpush1.bf16.msra.mxu1 %v6959_v61  ;;  %v7046_v60 = vld [vmem:[#allocation5 + $0x760] ss:$16 sps:$4 sm:$0xff]   ;;  %v7049_v61 = vld [vmem:[#allocation5 + $0x768] ss:$16 sps:$4 sm:$0xff]  }
  0xe9   :  { %4838 = vmatprep.subr.bf16.mxu0 %v6964_v62  ;;  %5330 = vmatprep.subr.bf16.mxu1 %v6967_v63  ;;  %v7054_v62 = vld [vmem:[#allocation5 + $0x784] ss:$16 sps:$4 sm:$0xff]   ;;  %v7057_v63 = vld [vmem:[#allocation5 + $0x78c] ss:$16 sps:$4 sm:$0xff]  }
  0xec   :  { %4839 = vmatpush1.bf16.msra.mxu0 %v6962_v0  ;;  %5331 = vmatpush1.bf16.msra.mxu1 %v6965_v1  ;;  %v7052_v0 = vld [vmem:[#allocation5 + $0x780] ss:$16 sps:$4 sm:$0xff]   ;;  %v7055_v1 = vld [vmem:[#allocation5 + $0x788] ss:$16 sps:$4 sm:$0xff]  }
  0xed   :  { %4840 = vmatprep.subr.bf16.mxu0 %v6970_v2  ;;  %5332 = vmatprep.subr.bf16.mxu1 %v6973_v3  ;;  %v7060_v2 = vld [vmem:[#allocation5 + $0x7a4] ss:$16 sps:$4 sm:$0xff]   ;;  %v7063_v3 = vld [vmem:[#allocation5 + $0x7ac] ss:$16 sps:$4 sm:$0xff]  }
  0xf0   :  { %4841 = vmatpush1.bf16.msra.mxu0 %v6968_v4  ;;  %5333 = vmatpush1.bf16.msra.mxu1 %v6971_v5  ;;  %v7058_v4 = vld [vmem:[#allocation5 + $0x7a0] ss:$16 sps:$4 sm:$0xff]   ;;  %v7061_v5 = vld [vmem:[#allocation5 + $0x7a8] ss:$16 sps:$4 sm:$0xff]  }
  0xf1   :  { %4842 = vmatprep.subr.bf16.mxu0 %v6976_v6  ;;  %5334 = vmatprep.subr.bf16.mxu1 %v6979_v7  ;;  %v7066_v6 = vld [vmem:[#allocation5 + $0x7c4] ss:$16 sps:$4 sm:$0xff]   ;;  %v7069_v7 = vld [vmem:[#allocation5 + $0x7cc] ss:$16 sps:$4 sm:$0xff]  }
  0xf4   :  { %4843 = vmatpush1.bf16.msra.mxu0 %v6974_v8  ;;  %5335 = vmatpush1.bf16.msra.mxu1 %v6977_v9  ;;  %v7064_v8 = vld [vmem:[#allocation5 + $0x7c0] ss:$16 sps:$4 sm:$0xff]   ;;  %v7067_v9 = vld [vmem:[#allocation5 + $0x7c8] ss:$16 sps:$4 sm:$0xff]  }
  0xf5   :  { %4853 = vmatprep.subr.bf16.mxu0 %v6982_v10  ;;  %5345 = vmatprep.subr.bf16.mxu1 %v6985_v12  ;;  %v7072_v10 = vld [vmem:[#allocation5 + $0x7e4] ss:$16 sps:$4 sm:$0xff]   ;;  %v7070_v12 = vld [vmem:[#allocation5 + $0x7e0] ss:$16 sps:$4 sm:$0xff]  }
  0xf7   :  { %4845 = vmatmul.mubr.bf16.vlgmr.msra.gmra.mrb[0].mxu0 %v80_v15  ;;  %5337 = vmatmul.mubr.bf16.vlgmr.msra.gmra.mrb[0].mxu1 %v80_v15  ;;  %v7078_v15 = vld [vmem:[#allocation5 + $0x804] ss:$16 sps:$4 sm:$0xff]  }
  0xf8   :  { %4854 = vmatpush1.bf16.msra.mxu0 %v6980_v13  ;;  %5346 = vmatpush1.bf16.msra.mxu1 %v6983_v14  ;;  %v7073_v13 = vld [vmem:[#allocation5 + $0x7e8] ss:$16 sps:$4 sm:$0xff]   ;;  %v58_v14 = vld [vmem:[#allocation2 + $0x30] sm:$0xff] }
  0xf9   :  { %4855 = vmatprep.subr.bf16.mxu0 %v6988_v17  ;;  %5347 = vmatprep.subr.bf16.mxu1 %v6991_v18  ;;  %v82_v17 = vpack.c.bf16 %v58_v14, %v58_v14  ;;  %v61_v18 = vld [vmem:[#allocation2 + $0x48] sm:$0xff]  ;;  %v7168_v14 = vld [vmem:[#allocation5 + $0x9e4] ss:$16 sps:$4 sm:$0xff]  }
  0xfa   :  { %4885 = vmatprep.mubr.bf16.mxu0 %v83_v19  ;;  %5377 = vmatprep.mubr.bf16.mxu1 %v83_v19  ;;  %v7076_v19 = vld [vmem:[#allocation5 + $0x800] ss:$16 sps:$4 sm:$0xff]  }
  0xfc   :  { %4856 = vmatpush1.bf16.msra.mxu0 %v6986_v20  ;;  %5348 = vmatpush1.bf16.msra.mxu1 %v6989_v21  ;;  %v7079_v20 = vld [vmem:[#allocation5 + $0x808] ss:$16 sps:$4 sm:$0xff]   ;;  %v7084_v21 = vld [vmem:[#allocation5 + $0x824] ss:$16 sps:$4 sm:$0xff]  }
  0xfd   :  { %4857 = vmatprep.subr.bf16.mxu0 %v6994_v22  ;;  %5349 = vmatprep.subr.bf16.mxu1 %v6997_v23  ;;  %v7087_v22 = vld [vmem:[#allocation5 + $0x82c] ss:$16 sps:$4 sm:$0xff]   ;;  %v85_v23 = vpack.c.bf16 %v61_v18, %v61_v18  ;;  %v7174_v18 = vld [vmem:[#allocation5 + $0xa04] ss:$16 sps:$4 sm:$0xff]  }
 0x100   :  { %4858 = vmatpush1.bf16.msra.mxu0 %v6992_v24  ;;  %5350 = vmatpush1.bf16.msra.mxu1 %v6995_v25  ;;  %v7082_v24 = vld [vmem:[#allocation5 + $0x820] ss:$16 sps:$4 sm:$0xff]   ;;  %v7085_v25 = vld [vmem:[#allocation5 + $0x828] ss:$16 sps:$4 sm:$0xff]  }
 0x101   :  { %4859 = vmatprep.subr.bf16.mxu0 %v7000_v26  ;;  %5351 = vmatprep.subr.bf16.mxu1 %v7003_v27  ;;  %v7090_v26 = vld [vmem:[#allocation5 + $0x844] ss:$16 sps:$4 sm:$0xff]   ;;  %v7093_v27 = vld [vmem:[#allocation5 + $0x84c] ss:$16 sps:$4 sm:$0xff]  }
 0x104   :  { %4860 = vmatpush1.bf16.msra.mxu0 %v6998_v28  ;;  %5352 = vmatpush1.bf16.msra.mxu1 %v7001_v29  ;;  %v7088_v28 = vld [vmem:[#allocation5 + $0x840] ss:$16 sps:$4 sm:$0xff]   ;;  %v7091_v29 = vld [vmem:[#allocation5 + $0x848] ss:$16 sps:$4 sm:$0xff]  }
 0x105   :  { %4861 = vmatprep.subr.bf16.mxu0 %v7006_v30  ;;  %5353 = vmatprep.subr.bf16.mxu1 %v7009_v31  ;;  %v7096_v30 = vld [vmem:[#allocation5 + $0x864] ss:$16 sps:$4 sm:$0xff]   ;;  %v7099_v31 = vld [vmem:[#allocation5 + $0x86c] ss:$16 sps:$4 sm:$0xff]  }
 0x108   :  { %4862 = vmatpush1.bf16.msra.mxu0 %v7004_v32  ;;  %5354 = vmatpush1.bf16.msra.mxu1 %v7007_v33  ;;  %v7094_v32 = vld [vmem:[#allocation5 + $0x860] ss:$16 sps:$4 sm:$0xff]   ;;  %v7097_v33 = vld [vmem:[#allocation5 + $0x868] ss:$16 sps:$4 sm:$0xff]  }
 0x109   :  { %4863 = vmatprep.subr.bf16.mxu0 %v7012_v34  ;;  %5355 = vmatprep.subr.bf16.mxu1 %v7015_v35  ;;  %v7102_v34 = vld [vmem:[#allocation5 + $0x884] ss:$16 sps:$4 sm:$0xff]   ;;  %v7105_v35 = vld [vmem:[#allocation5 + $0x88c] ss:$16 sps:$4 sm:$0xff]  }
 0x10c   :  { %4864 = vmatpush1.bf16.msra.mxu0 %v7010_v36  ;;  %5356 = vmatpush1.bf16.msra.mxu1 %v7013_v37  ;;  %v7100_v36 = vld [vmem:[#allocation5 + $0x880] ss:$16 sps:$4 sm:$0xff]   ;;  %v7103_v37 = vld [vmem:[#allocation5 + $0x888] ss:$16 sps:$4 sm:$0xff]  }
 0x10d   :  { %4865 = vmatprep.subr.bf16.mxu0 %v7018_v38  ;;  %5357 = vmatprep.subr.bf16.mxu1 %v7021_v39  ;;  %v7108_v38 = vld [vmem:[#allocation5 + $0x8a4] ss:$16 sps:$4 sm:$0xff]   ;;  %v7111_v39 = vld [vmem:[#allocation5 + $0x8ac] ss:$16 sps:$4 sm:$0xff]  }
 0x110   :  { %4866 = vmatpush1.bf16.msra.mxu0 %v7016_v40  ;;  %5358 = vmatpush1.bf16.msra.mxu1 %v7019_v41  ;;  %v7106_v40 = vld [vmem:[#allocation5 + $0x8a0] ss:$16 sps:$4 sm:$0xff]   ;;  %v7109_v41 = vld [vmem:[#allocation5 + $0x8a8] ss:$16 sps:$4 sm:$0xff]  }
 0x111   :  { %4867 = vmatprep.subr.bf16.mxu0 %v7024_v42  ;;  %5359 = vmatprep.subr.bf16.mxu1 %v7027_v43  ;;  %v7114_v42 = vld [vmem:[#allocation5 + $0x8c4] ss:$16 sps:$4 sm:$0xff]   ;;  %v7117_v43 = vld [vmem:[#allocation5 + $0x8cc] ss:$16 sps:$4 sm:$0xff]  }
 0x114   :  { %4868 = vmatpush1.bf16.msra.mxu0 %v7022_v44  ;;  %5360 = vmatpush1.bf16.msra.mxu1 %v7025_v45  ;;  %v7112_v44 = vld [vmem:[#allocation5 + $0x8c0] ss:$16 sps:$4 sm:$0xff]   ;;  %v7115_v45 = vld [vmem:[#allocation5 + $0x8c8] ss:$16 sps:$4 sm:$0xff]  }
 0x115   :  { %4869 = vmatprep.subr.bf16.mxu0 %v7030_v46  ;;  %5361 = vmatprep.subr.bf16.mxu1 %v7033_v47  ;;  %v7120_v46 = vld [vmem:[#allocation5 + $0x8e4] ss:$16 sps:$4 sm:$0xff]   ;;  %v7123_v47 = vld [vmem:[#allocation5 + $0x8ec] ss:$16 sps:$4 sm:$0xff]  }
 0x118   :  { %4870 = vmatpush1.bf16.msra.mxu0 %v7028_v48  ;;  %5362 = vmatpush1.bf16.msra.mxu1 %v7031_v49  ;;  %v7118_v48 = vld [vmem:[#allocation5 + $0x8e0] ss:$16 sps:$4 sm:$0xff]   ;;  %v7121_v49 = vld [vmem:[#allocation5 + $0x8e8] ss:$16 sps:$4 sm:$0xff]  }
 0x119   :  { %4871 = vmatprep.subr.bf16.mxu0 %v7036_v50  ;;  %5363 = vmatprep.subr.bf16.mxu1 %v7039_v51  ;;  %v7126_v50 = vld [vmem:[#allocation5 + $0x904] ss:$16 sps:$4 sm:$0xff]   ;;  %v7129_v51 = vld [vmem:[#allocation5 + $0x90c] ss:$16 sps:$4 sm:$0xff]  }
 0x11c   :  { %4872 = vmatpush1.bf16.msra.mxu0 %v7034_v52  ;;  %5364 = vmatpush1.bf16.msra.mxu1 %v7037_v53  ;;  %v7124_v52 = vld [vmem:[#allocation5 + $0x900] ss:$16 sps:$4 sm:$0xff]   ;;  %v7127_v53 = vld [vmem:[#allocation5 + $0x908] ss:$16 sps:$4 sm:$0xff]  }
 0x11d   :  { %4873 = vmatprep.subr.bf16.mxu0 %v7042_v54  ;;  %5365 = vmatprep.subr.bf16.mxu1 %v7045_v55  ;;  %v7132_v54 = vld [vmem:[#allocation5 + $0x924] ss:$16 sps:$4 sm:$0xff]   ;;  %v7135_v55 = vld [vmem:[#allocation5 + $0x92c] ss:$16 sps:$4 sm:$0xff]  }
 0x120   :  { %4874 = vmatpush1.bf16.msra.mxu0 %v7040_v56  ;;  %5366 = vmatpush1.bf16.msra.mxu1 %v7043_v57  ;;  %v7130_v56 = vld [vmem:[#allocation5 + $0x920] ss:$16 sps:$4 sm:$0xff]   ;;  %v7133_v57 = vld [vmem:[#allocation5 + $0x928] ss:$16 sps:$4 sm:$0xff]  }
 0x121   :  { %4875 = vmatprep.subr.bf16.mxu0 %v7048_v58  ;;  %5367 = vmatprep.subr.bf16.mxu1 %v7051_v59  ;;  %v7138_v58 = vld [vmem:[#allocation5 + $0x944] ss:$16 sps:$4 sm:$0xff]   ;;  %v7141_v59 = vld [vmem:[#allocation5 + $0x94c] ss:$16 sps:$4 sm:$0xff]  }
 0x124   :  { %4876 = vmatpush1.bf16.msra.mxu0 %v7046_v60  ;;  %5368 = vmatpush1.bf16.msra.mxu1 %v7049_v61  ;;  %v7136_v60 = vld [vmem:[#allocation5 + $0x940] ss:$16 sps:$4 sm:$0xff]   ;;  %v7139_v61 = vld [vmem:[#allocation5 + $0x948] ss:$16 sps:$4 sm:$0xff]  }
 0x125   :  { %4877 = vmatprep.subr.bf16.mxu0 %v7054_v62  ;;  %5369 = vmatprep.subr.bf16.mxu1 %v7057_v63  ;;  %v7144_v62 = vld [vmem:[#allocation5 + $0x964] ss:$16 sps:$4 sm:$0xff]   ;;  %v7147_v63 = vld [vmem:[#allocation5 + $0x96c] ss:$16 sps:$4 sm:$0xff]  }
 0x128   :  { %4878 = vmatpush1.bf16.msra.mxu0 %v7052_v0  ;;  %5370 = vmatpush1.bf16.msra.mxu1 %v7055_v1  ;;  %v7142_v0 = vld [vmem:[#allocation5 + $0x960] ss:$16 sps:$4 sm:$0xff]   ;;  %v7145_v1 = vld [vmem:[#allocation5 + $0x968] ss:$16 sps:$4 sm:$0xff]  }
 0x129   :  { %4879 = vmatprep.subr.bf16.mxu0 %v7060_v2  ;;  %5371 = vmatprep.subr.bf16.mxu1 %v7063_v3  ;;  %v7150_v2 = vld [vmem:[#allocation5 + $0x984] ss:$16 sps:$4 sm:$0xff]   ;;  %v7153_v3 = vld [vmem:[#allocation5 + $0x98c] ss:$16 sps:$4 sm:$0xff]  }
 0x12c   :  { %4880 = vmatpush1.bf16.msra.mxu0 %v7058_v4  ;;  %5372 = vmatpush1.bf16.msra.mxu1 %v7061_v5  ;;  %v7148_v4 = vld [vmem:[#allocation5 + $0x980] ss:$16 sps:$4 sm:$0xff]   ;;  %v7151_v5 = vld [vmem:[#allocation5 + $0x988] ss:$16 sps:$4 sm:$0xff]  }
 0x12d   :  { %4881 = vmatprep.subr.bf16.mxu0 %v7066_v6  ;;  %5373 = vmatprep.subr.bf16.mxu1 %v7069_v7  ;;  %v7156_v6 = vld [vmem:[#allocation5 + $0x9a4] ss:$16 sps:$4 sm:$0xff]   ;;  %v7159_v7 = vld [vmem:[#allocation5 + $0x9ac] ss:$16 sps:$4 sm:$0xff]  }
 0x130   :  { %4882 = vmatpush1.bf16.msra.mxu0 %v7064_v8  ;;  %5374 = vmatpush1.bf16.msra.mxu1 %v7067_v9  ;;  %v7154_v8 = vld [vmem:[#allocation5 + $0x9a0] ss:$16 sps:$4 sm:$0xff]   ;;  %v7157_v9 = vld [vmem:[#allocation5 + $0x9a8] ss:$16 sps:$4 sm:$0xff]  }
 0x131   :  { %4883 = vmatprep.subr.bf16.mxu0 %v7072_v10  ;;  %5375 = vmatprep.subr.bf16.mxu1 %v7075_v11  ;;  %v7162_v10 = vld [vmem:[#allocation5 + $0x9c4] ss:$16 sps:$4 sm:$0xff]   ;;  %v7165_v11 = vld [vmem:[#allocation5 + $0x9cc] ss:$16 sps:$4 sm:$0xff]  }
 0x134   :  { %4884 = vmatpush1.bf16.msra.mxu0 %v7070_v12  ;;  %5376 = vmatpush1.bf16.msra.mxu1 %v7073_v13  ;;  %v7160_v12 = vld [vmem:[#allocation5 + $0x9c0] ss:$16 sps:$4 sm:$0xff]   ;;  %v7163_v13 = vld [vmem:[#allocation5 + $0x9c8] ss:$16 sps:$4 sm:$0xff]  }
 0x135   :  { %4894 = vmatprep.subr.bf16.mxu0 %v7078_v15  ;;  %5386 = vmatprep.subr.bf16.mxu1 %v7081_v16  ;;  %v7171_v15 = vld [vmem:[#allocation5 + $0x9ec] ss:$16 sps:$4 sm:$0xff]   ;;  %v7166_v16 = vld [vmem:[#allocation5 + $0x9e0] ss:$16 sps:$4 sm:$0xff]  }
 0x137   :  { %4886 = vmatmul.mubr.bf16.vlgmr.msra.gmra.mrb[0].mxu0 %v82_v17  ;;  %5378 = vmatmul.mubr.bf16.vlgmr.msra.gmra.mrb[0].mxu1 %v82_v17  ;;  %v7169_v17 = vld [vmem:[#allocation5 + $0x9e8] ss:$16 sps:$4 sm:$0xff]  }
 0x138   :  { %4895 = vmatpush1.bf16.msra.mxu0 %v7076_v19  ;;  %5387 = vmatpush1.bf16.msra.mxu1 %v7079_v20  ;;  %v60_v19 = vld [vmem:[#allocation2 + $0x40] sm:$0xff]  ;;  %v7177_v20 = vld [vmem:[#allocation5 + $0xa0c] ss:$16 sps:$4 sm:$0xff]  }
 0x139   :  { %4896 = vmatprep.subr.bf16.mxu0 %v7084_v21  ;;  %5388 = vmatprep.subr.bf16.mxu1 %v7087_v22  ;;  %v63_v21 = vld [vmem:[#allocation2 + $0x58] sm:$0xff]  ;;  %v84_v22 = vpack.c.bf16 %v60_v19, %v60_v19 }
 0x13a   :  { %4926 = vmatprep.mubr.bf16.mxu0 %v85_v23  ;;  %5418 = vmatprep.mubr.bf16.mxu1 %v85_v23  ;;  %v7172_v23 = vld [vmem:[#allocation5 + $0xa00] ss:$16 sps:$4 sm:$0xff]   ;;  %v7267_v19 = vld [vmem:[#allocation5 + $0xbec] ss:$16 sps:$4 sm:$0xff]  }
 0x13c   :  { %4897 = vmatpush1.bf16.msra.mxu0 %v7082_v24  ;;  %5389 = vmatpush1.bf16.msra.mxu1 %v7085_v25  ;;  %v7175_v24 = vld [vmem:[#allocation5 + $0xa08] ss:$16 sps:$4 sm:$0xff]   ;;  %v7180_v25 = vld [vmem:[#allocation5 + $0xa24] ss:$16 sps:$4 sm:$0xff]  }
 0x13d   :  { %4898 = vmatprep.subr.bf16.mxu0 %v7090_v26  ;;  %5390 = vmatprep.subr.bf16.mxu1 %v7093_v27  ;;  %v7183_v26 = vld [vmem:[#allocation5 + $0xa2c] ss:$16 sps:$4 sm:$0xff]   ;;  %v87_v27 = vpack.c.bf16 %v63_v21, %v63_v21  ;;  %v7265_v21 = vld [vmem:[#allocation5 + $0xbe8] ss:$16 sps:$4 sm:$0xff]  }
 0x140   :  { %4899 = vmatpush1.bf16.msra.mxu0 %v7088_v28  ;;  %5391 = vmatpush1.bf16.msra.mxu1 %v7091_v29  ;;  %v7178_v28 = vld [vmem:[#allocation5 + $0xa20] ss:$16 sps:$4 sm:$0xff]   ;;  %v7181_v29 = vld [vmem:[#allocation5 + $0xa28] ss:$16 sps:$4 sm:$0xff]  }
 0x141   :  { %4900 = vmatprep.subr.bf16.mxu0 %v7096_v30  ;;  %5392 = vmatprep.subr.bf16.mxu1 %v7099_v31  ;;  %v7186_v30 = vld [vmem:[#allocation5 + $0xa44] ss:$16 sps:$4 sm:$0xff]   ;;  %v7189_v31 = vld [vmem:[#allocation5 + $0xa4c] ss:$16 sps:$4 sm:$0xff]  }
 0x144   :  { %4901 = vmatpush1.bf16.msra.mxu0 %v7094_v32  ;;  %5393 = vmatpush1.bf16.msra.mxu1 %v7097_v33  ;;  %v7184_v32 = vld [vmem:[#allocation5 + $0xa40] ss:$16 sps:$4 sm:$0xff]   ;;  %v7187_v33 = vld [vmem:[#allocation5 + $0xa48] ss:$16 sps:$4 sm:$0xff]  }
 0x145   :  { %4902 = vmatprep.subr.bf16.mxu0 %v7102_v34  ;;  %5394 = vmatprep.subr.bf16.mxu1 %v7105_v35  ;;  %v7192_v34 = vld [vmem:[#allocation5 + $0xa64] ss:$16 sps:$4 sm:$0xff]   ;;  %v7195_v35 = vld [vmem:[#allocation5 + $0xa6c] ss:$16 sps:$4 sm:$0xff]  }
 0x148   :  { %4903 = vmatpush1.bf16.msra.mxu0 %v7100_v36  ;;  %5395 = vmatpush1.bf16.msra.mxu1 %v7103_v37  ;;  %v7190_v36 = vld [vmem:[#allocation5 + $0xa60] ss:$16 sps:$4 sm:$0xff]   ;;  %v7193_v37 = vld [vmem:[#allocation5 + $0xa68] ss:$16 sps:$4 sm:$0xff]  }
 0x149   :  { %4904 = vmatprep.subr.bf16.mxu0 %v7108_v38  ;;  %5396 = vmatprep.subr.bf16.mxu1 %v7111_v39  ;;  %v7198_v38 = vld [vmem:[#allocation5 + $0xa84] ss:$16 sps:$4 sm:$0xff]   ;;  %v7201_v39 = vld [vmem:[#allocation5 + $0xa8c] ss:$16 sps:$4 sm:$0xff]  }
 0x14c   :  { %4905 = vmatpush1.bf16.msra.mxu0 %v7106_v40  ;;  %5397 = vmatpush1.bf16.msra.mxu1 %v7109_v41  ;;  %v7196_v40 = vld [vmem:[#allocation5 + $0xa80] ss:$16 sps:$4 sm:$0xff]   ;;  %v7199_v41 = vld [vmem:[#allocation5 + $0xa88] ss:$16 sps:$4 sm:$0xff]  }
 0x14d   :  { %4906 = vmatprep.subr.bf16.mxu0 %v7114_v42  ;;  %5398 = vmatprep.subr.bf16.mxu1 %v7117_v43  ;;  %v7204_v42 = vld [vmem:[#allocation5 + $0xaa4] ss:$16 sps:$4 sm:$0xff]   ;;  %v7207_v43 = vld [vmem:[#allocation5 + $0xaac] ss:$16 sps:$4 sm:$0xff]  }
 0x150   :  { %4907 = vmatpush1.bf16.msra.mxu0 %v7112_v44  ;;  %5399 = vmatpush1.bf16.msra.mxu1 %v7115_v45  ;;  %v7202_v44 = vld [vmem:[#allocation5 + $0xaa0] ss:$16 sps:$4 sm:$0xff]   ;;  %v7205_v45 = vld [vmem:[#allocation5 + $0xaa8] ss:$16 sps:$4 sm:$0xff]  }
 0x151   :  { %4908 = vmatprep.subr.bf16.mxu0 %v7120_v46  ;;  %5400 = vmatprep.subr.bf16.mxu1 %v7123_v47  ;;  %v7210_v46 = vld [vmem:[#allocation5 + $0xac4] ss:$16 sps:$4 sm:$0xff]   ;;  %v7213_v47 = vld [vmem:[#allocation5 + $0xacc] ss:$16 sps:$4 sm:$0xff]  }
 0x154   :  { %4909 = vmatpush1.bf16.msra.mxu0 %v7118_v48  ;;  %5401 = vmatpush1.bf16.msra.mxu1 %v7121_v49  ;;  %v7208_v48 = vld [vmem:[#allocation5 + $0xac0] ss:$16 sps:$4 sm:$0xff]   ;;  %v7211_v49 = vld [vmem:[#allocation5 + $0xac8] ss:$16 sps:$4 sm:$0xff]  }
 0x155   :  { %4910 = vmatprep.subr.bf16.mxu0 %v7126_v50  ;;  %5402 = vmatprep.subr.bf16.mxu1 %v7129_v51  ;;  %v7216_v50 = vld [vmem:[#allocation5 + $0xae4] ss:$16 sps:$4 sm:$0xff]   ;;  %v7219_v51 = vld [vmem:[#allocation5 + $0xaec] ss:$16 sps:$4 sm:$0xff]  }
 0x158   :  { %4911 = vmatpush1.bf16.msra.mxu0 %v7124_v52  ;;  %5403 = vmatpush1.bf16.msra.mxu1 %v7127_v53  ;;  %v7214_v52 = vld [vmem:[#allocation5 + $0xae0] ss:$16 sps:$4 sm:$0xff]   ;;  %v7217_v53 = vld [vmem:[#allocation5 + $0xae8] ss:$16 sps:$4 sm:$0xff]  }
 0x159   :  { %4912 = vmatprep.subr.bf16.mxu0 %v7132_v54  ;;  %5404 = vmatprep.subr.bf16.mxu1 %v7135_v55  ;;  %v7222_v54 = vld [vmem:[#allocation5 + $0xb04] ss:$16 sps:$4 sm:$0xff]   ;;  %v7225_v55 = vld [vmem:[#allocation5 + $0xb0c] ss:$16 sps:$4 sm:$0xff]  }
 0x15c   :  { %4913 = vmatpush1.bf16.msra.mxu0 %v7130_v56  ;;  %5405 = vmatpush1.bf16.msra.mxu1 %v7133_v57  ;;  %v7220_v56 = vld [vmem:[#allocation5 + $0xb00] ss:$16 sps:$4 sm:$0xff]   ;;  %v7223_v57 = vld [vmem:[#allocation5 + $0xb08] ss:$16 sps:$4 sm:$0xff]  }
 0x15d   :  { %4914 = vmatprep.subr.bf16.mxu0 %v7138_v58  ;;  %5406 = vmatprep.subr.bf16.mxu1 %v7141_v59  ;;  %v7228_v58 = vld [vmem:[#allocation5 + $0xb24] ss:$16 sps:$4 sm:$0xff]   ;;  %v7231_v59 = vld [vmem:[#allocation5 + $0xb2c] ss:$16 sps:$4 sm:$0xff]  }
 0x160   :  { %4915 = vmatpush1.bf16.msra.mxu0 %v7136_v60  ;;  %5407 = vmatpush1.bf16.msra.mxu1 %v7139_v61  ;;  %v7226_v60 = vld [vmem:[#allocation5 + $0xb20] ss:$16 sps:$4 sm:$0xff]   ;;  %v7229_v61 = vld [vmem:[#allocation5 + $0xb28] ss:$16 sps:$4 sm:$0xff]  }
 0x161   :  { %4916 = vmatprep.subr.bf16.mxu0 %v7144_v62  ;;  %5408 = vmatprep.subr.bf16.mxu1 %v7147_v63  ;;  %v7234_v62 = vld [vmem:[#allocation5 + $0xb44] ss:$16 sps:$4 sm:$0xff]   ;;  %v7237_v63 = vld [vmem:[#allocation5 + $0xb4c] ss:$16 sps:$4 sm:$0xff]  }
 0x164   :  { %4917 = vmatpush1.bf16.msra.mxu0 %v7142_v0  ;;  %5409 = vmatpush1.bf16.msra.mxu1 %v7145_v1  ;;  %v7232_v0 = vld [vmem:[#allocation5 + $0xb40] ss:$16 sps:$4 sm:$0xff]   ;;  %v7235_v1 = vld [vmem:[#allocation5 + $0xb48] ss:$16 sps:$4 sm:$0xff]  }
 0x165   :  { %4918 = vmatprep.subr.bf16.mxu0 %v7150_v2  ;;  %5410 = vmatprep.subr.bf16.mxu1 %v7153_v3  ;;  %v7240_v2 = vld [vmem:[#allocation5 + $0xb64] ss:$16 sps:$4 sm:$0xff]   ;;  %v7243_v3 = vld [vmem:[#allocation5 + $0xb6c] ss:$16 sps:$4 sm:$0xff]  }
 0x168   :  { %4919 = vmatpush1.bf16.msra.mxu0 %v7148_v4  ;;  %5411 = vmatpush1.bf16.msra.mxu1 %v7151_v5  ;;  %v7238_v4 = vld [vmem:[#allocation5 + $0xb60] ss:$16 sps:$4 sm:$0xff]   ;;  %v7241_v5 = vld [vmem:[#allocation5 + $0xb68] ss:$16 sps:$4 sm:$0xff]  }
 0x169   :  { %4920 = vmatprep.subr.bf16.mxu0 %v7156_v6  ;;  %5412 = vmatprep.subr.bf16.mxu1 %v7159_v7  ;;  %v7246_v6 = vld [vmem:[#allocation5 + $0xb84] ss:$16 sps:$4 sm:$0xff]   ;;  %v7249_v7 = vld [vmem:[#allocation5 + $0xb8c] ss:$16 sps:$4 sm:$0xff]  }
 0x16c   :  { %4921 = vmatpush1.bf16.msra.mxu0 %v7154_v8  ;;  %5413 = vmatpush1.bf16.msra.mxu1 %v7157_v9  ;;  %v7244_v8 = vld [vmem:[#allocation5 + $0xb80] ss:$16 sps:$4 sm:$0xff]   ;;  %v7247_v9 = vld [vmem:[#allocation5 + $0xb88] ss:$16 sps:$4 sm:$0xff]  }
 0x16d   :  { %4922 = vmatprep.subr.bf16.mxu0 %v7162_v10  ;;  %5414 = vmatprep.subr.bf16.mxu1 %v7165_v11  ;;  %v7252_v10 = vld [vmem:[#allocation5 + $0xba4] ss:$16 sps:$4 sm:$0xff]   ;;  %v7255_v11 = vld [vmem:[#allocation5 + $0xbac] ss:$16 sps:$4 sm:$0xff]  }
 0x170   :  { %4923 = vmatpush1.bf16.msra.mxu0 %v7160_v12  ;;  %5415 = vmatpush1.bf16.msra.mxu1 %v7163_v13  ;;  %v7250_v12 = vld [vmem:[#allocation5 + $0xba0] ss:$16 sps:$4 sm:$0xff]   ;;  %v7253_v13 = vld [vmem:[#allocation5 + $0xba8] ss:$16 sps:$4 sm:$0xff]  }
 0x171   :  { %4924 = vmatprep.subr.bf16.mxu0 %v7168_v14  ;;  %5416 = vmatprep.subr.bf16.mxu1 %v7171_v15  ;;  %v7258_v14 = vld [vmem:[#allocation5 + $0xbc4] ss:$16 sps:$4 sm:$0xff]   ;;  %v7261_v15 = vld [vmem:[#allocation5 + $0xbcc] ss:$16 sps:$4 sm:$0xff]  }
 0x174   :  { %4925 = vmatpush1.bf16.msra.mxu0 %v7166_v16  ;;  %5417 = vmatpush1.bf16.msra.mxu1 %v7169_v17  ;;  %v7256_v16 = vld [vmem:[#allocation5 + $0xbc0] ss:$16 sps:$4 sm:$0xff]   ;;  %v7259_v17 = vld [vmem:[#allocation5 + $0xbc8] ss:$16 sps:$4 sm:$0xff]  }
 0x175   :  { %4935 = vmatprep.subr.bf16.mxu0 %v7174_v18  ;;  %5427 = vmatprep.subr.bf16.mxu1 %v7177_v20  ;;  %v7264_v18 = vld [vmem:[#allocation5 + $0xbe4] ss:$16 sps:$4 sm:$0xff]   ;;  %v7262_v20 = vld [vmem:[#allocation5 + $0xbe0] ss:$16 sps:$4 sm:$0xff]  }
 0x177   :  { %4927 = vmatmul.mubr.bf16.vlgmr.msra.gmra.mrb[0].mxu0 %v84_v22  ;;  %5419 = vmatmul.mubr.bf16.vlgmr.msra.gmra.mrb[0].mxu1 %v84_v22  ;;  %v7270_v22 = vld [vmem:[#allocation5 + $0xc04] ss:$16 sps:$4 sm:$0xff]  }
 0x178   :  { %4936 = vmatpush1.bf16.msra.mxu0 %v7172_v23  ;;  %5428 = vmatpush1.bf16.msra.mxu1 %v7175_v24  ;;  %v62_v23 = vld [vmem:[#allocation2 + $0x50] sm:$0xff]  ;;  %v7273_v24 = vld [vmem:[#allocation5 + $0xc0c] ss:$16 sps:$4 sm:$0xff]  }
 0x179   :  { %4937 = vmatprep.subr.bf16.mxu0 %v7180_v25  ;;  %5429 = vmatprep.subr.bf16.mxu1 %v7183_v26  ;;  %v65_v25 = vld [vmem:[#allocation2 + $0x68] sm:$0xff]  ;;  %v86_v26 = vpack.c.bf16 %v62_v23, %v62_v23 }
 0x17a   :  { %4967 = vmatprep.mubr.bf16.mxu0 %v87_v27  ;;  %5459 = vmatprep.mubr.bf16.mxu1 %v87_v27  ;;  %v7268_v27 = vld [vmem:[#allocation5 + $0xc00] ss:$16 sps:$4 sm:$0xff]   ;;  %v7363_v23 = vld [vmem:[#allocation5 + $0xdec] ss:$16 sps:$4 sm:$0xff]  }
 0x17c   :  { %4938 = vmatpush1.bf16.msra.mxu0 %v7178_v28  ;;  %5430 = vmatpush1.bf16.msra.mxu1 %v7181_v29  ;;  %v7271_v28 = vld [vmem:[#allocation5 + $0xc08] ss:$16 sps:$4 sm:$0xff]   ;;  %v7276_v29 = vld [vmem:[#allocation5 + $0xc24] ss:$16 sps:$4 sm:$0xff]  }
 0x17d   :  { %4939 = vmatprep.subr.bf16.mxu0 %v7186_v30  ;;  %5431 = vmatprep.subr.bf16.mxu1 %v7189_v31  ;;  %v7279_v30 = vld [vmem:[#allocation5 + $0xc2c] ss:$16 sps:$4 sm:$0xff]   ;;  %v89_v31 = vpack.c.bf16 %v65_v25, %v65_v25  ;;  %v7361_v25 = vld [vmem:[#allocation5 + $0xde8] ss:$16 sps:$4 sm:$0xff]  }
 0x180   :  { %4940 = vmatpush1.bf16.msra.mxu0 %v7184_v32  ;;  %5432 = vmatpush1.bf16.msra.mxu1 %v7187_v33  ;;  %v7274_v32 = vld [vmem:[#allocation5 + $0xc20] ss:$16 sps:$4 sm:$0xff]   ;;  %v7277_v33 = vld [vmem:[#allocation5 + $0xc28] ss:$16 sps:$4 sm:$0xff]  }
 0x181   :  { %4941 = vmatprep.subr.bf16.mxu0 %v7192_v34  ;;  %5433 = vmatprep.subr.bf16.mxu1 %v7195_v35  ;;  %v7282_v34 = vld [vmem:[#allocation5 + $0xc44] ss:$16 sps:$4 sm:$0xff]   ;;  %v7285_v35 = vld [vmem:[#allocation5 + $0xc4c] ss:$16 sps:$4 sm:$0xff]  }
 0x184   :  { %4942 = vmatpush1.bf16.msra.mxu0 %v7190_v36  ;;  %5434 = vmatpush1.bf16.msra.mxu1 %v7193_v37  ;;  %v7280_v36 = vld [vmem:[#allocation5 + $0xc40] ss:$16 sps:$4 sm:$0xff]   ;;  %v7283_v37 = vld [vmem:[#allocation5 + $0xc48] ss:$16 sps:$4 sm:$0xff]  }
 0x185   :  { %4943 = vmatprep.subr.bf16.mxu0 %v7198_v38  ;;  %5435 = vmatprep.subr.bf16.mxu1 %v7201_v39  ;;  %v7288_v38 = vld [vmem:[#allocation5 + $0xc64] ss:$16 sps:$4 sm:$0xff]   ;;  %v7291_v39 = vld [vmem:[#allocation5 + $0xc6c] ss:$16 sps:$4 sm:$0xff]  }
 0x188   :  { %4944 = vmatpush1.bf16.msra.mxu0 %v7196_v40  ;;  %5436 = vmatpush1.bf16.msra.mxu1 %v7199_v41  ;;  %v7286_v40 = vld [vmem:[#allocation5 + $0xc60] ss:$16 sps:$4 sm:$0xff]   ;;  %v7289_v41 = vld [vmem:[#allocation5 + $0xc68] ss:$16 sps:$4 sm:$0xff]  }
 0x189   :  { %4945 = vmatprep.subr.bf16.mxu0 %v7204_v42  ;;  %5437 = vmatprep.subr.bf16.mxu1 %v7207_v43  ;;  %v7294_v42 = vld [vmem:[#allocation5 + $0xc84] ss:$16 sps:$4 sm:$0xff]   ;;  %v7297_v43 = vld [vmem:[#allocation5 + $0xc8c] ss:$16 sps:$4 sm:$0xff]  }
 0x18c   :  { %4946 = vmatpush1.bf16.msra.mxu0 %v7202_v44  ;;  %5438 = vmatpush1.bf16.msra.mxu1 %v7205_v45  ;;  %v7292_v44 = vld [vmem:[#allocation5 + $0xc80] ss:$16 sps:$4 sm:$0xff]   ;;  %v7295_v45 = vld [vmem:[#allocation5 + $0xc88] ss:$16 sps:$4 sm:$0xff]  }
 0x18d   :  { %4947 = vmatprep.subr.bf16.mxu0 %v7210_v46  ;;  %5439 = vmatprep.subr.bf16.mxu1 %v7213_v47  ;;  %v7300_v46 = vld [vmem:[#allocation5 + $0xca4] ss:$16 sps:$4 sm:$0xff]   ;;  %v7303_v47 = vld [vmem:[#allocation5 + $0xcac] ss:$16 sps:$4 sm:$0xff]  }
 0x190   :  { %4948 = vmatpush1.bf16.msra.mxu0 %v7208_v48  ;;  %5440 = vmatpush1.bf16.msra.mxu1 %v7211_v49  ;;  %v7298_v48 = vld [vmem:[#allocation5 + $0xca0] ss:$16 sps:$4 sm:$0xff]   ;;  %v7301_v49 = vld [vmem:[#allocation5 + $0xca8] ss:$16 sps:$4 sm:$0xff]  }
 0x191   :  { %4949 = vmatprep.subr.bf16.mxu0 %v7216_v50  ;;  %5441 = vmatprep.subr.bf16.mxu1 %v7219_v51  ;;  %v7306_v50 = vld [vmem:[#allocation5 + $0xcc4] ss:$16 sps:$4 sm:$0xff]   ;;  %v7309_v51 = vld [vmem:[#allocation5 + $0xccc] ss:$16 sps:$4 sm:$0xff]  }
 0x194   :  { %4950 = vmatpush1.bf16.msra.mxu0 %v7214_v52  ;;  %5442 = vmatpush1.bf16.msra.mxu1 %v7217_v53  ;;  %v7304_v52 = vld [vmem:[#allocation5 + $0xcc0] ss:$16 sps:$4 sm:$0xff]   ;;  %v7307_v53 = vld [vmem:[#allocation5 + $0xcc8] ss:$16 sps:$4 sm:$0xff]  }
 0x195   :  { %4951 = vmatprep.subr.bf16.mxu0 %v7222_v54  ;;  %5443 = vmatprep.subr.bf16.mxu1 %v7225_v55  ;;  %v7312_v54 = vld [vmem:[#allocation5 + $0xce4] ss:$16 sps:$4 sm:$0xff]   ;;  %v7315_v55 = vld [vmem:[#allocation5 + $0xcec] ss:$16 sps:$4 sm:$0xff]  }
 0x198   :  { %4952 = vmatpush1.bf16.msra.mxu0 %v7220_v56  ;;  %5444 = vmatpush1.bf16.msra.mxu1 %v7223_v57  ;;  %v7310_v56 = vld [vmem:[#allocation5 + $0xce0] ss:$16 sps:$4 sm:$0xff]   ;;  %v7313_v57 = vld [vmem:[#allocation5 + $0xce8] ss:$16 sps:$4 sm:$0xff]  }
 0x199   :  { %4953 = vmatprep.subr.bf16.mxu0 %v7228_v58  ;;  %5445 = vmatprep.subr.bf16.mxu1 %v7231_v59  ;;  %v7318_v58 = vld [vmem:[#allocation5 + $0xd04] ss:$16 sps:$4 sm:$0xff]   ;;  %v7321_v59 = vld [vmem:[#allocation5 + $0xd0c] ss:$16 sps:$4 sm:$0xff]  }
 0x19c   :  { %4954 = vmatpush1.bf16.msra.mxu0 %v7226_v60  ;;  %5446 = vmatpush1.bf16.msra.mxu1 %v7229_v61  ;;  %v7316_v60 = vld [vmem:[#allocation5 + $0xd00] ss:$16 sps:$4 sm:$0xff]   ;;  %v7319_v61 = vld [vmem:[#allocation5 + $0xd08] ss:$16 sps:$4 sm:$0xff]  }
 0x19d   :  { %4955 = vmatprep.subr.bf16.mxu0 %v7234_v62  ;;  %5447 = vmatprep.subr.bf16.mxu1 %v7237_v63  ;;  %v7324_v62 = vld [vmem:[#allocation5 + $0xd24] ss:$16 sps:$4 sm:$0xff]   ;;  %v7327_v63 = vld [vmem:[#allocation5 + $0xd2c] ss:$16 sps:$4 sm:$0xff]  }
 0x1a0   :  { %4956 = vmatpush1.bf16.msra.mxu0 %v7232_v0  ;;  %5448 = vmatpush1.bf16.msra.mxu1 %v7235_v1  ;;  %v7322_v0 = vld [vmem:[#allocation5 + $0xd20] ss:$16 sps:$4 sm:$0xff]   ;;  %v7325_v1 = vld [vmem:[#allocation5 + $0xd28] ss:$16 sps:$4 sm:$0xff]  }
 0x1a1   :  { %4957 = vmatprep.subr.bf16.mxu0 %v7240_v2  ;;  %5449 = vmatprep.subr.bf16.mxu1 %v7243_v3  ;;  %v7330_v2 = vld [vmem:[#allocation5 + $0xd44] ss:$16 sps:$4 sm:$0xff]   ;;  %v7333_v3 = vld [vmem:[#allocation5 + $0xd4c] ss:$16 sps:$4 sm:$0xff]  }
 0x1a4   :  { %4958 = vmatpush1.bf16.msra.mxu0 %v7238_v4  ;;  %5450 = vmatpush1.bf16.msra.mxu1 %v7241_v5  ;;  %v7328_v4 = vld [vmem:[#allocation5 + $0xd40] ss:$16 sps:$4 sm:$0xff]   ;;  %v7331_v5 = vld [vmem:[#allocation5 + $0xd48] ss:$16 sps:$4 sm:$0xff]  }
 0x1a5   :  { %4959 = vmatprep.subr.bf16.mxu0 %v7246_v6  ;;  %5451 = vmatprep.subr.bf16.mxu1 %v7249_v7  ;;  %v7336_v6 = vld [vmem:[#allocation5 + $0xd64] ss:$16 sps:$4 sm:$0xff]   ;;  %v7339_v7 = vld [vmem:[#allocation5 + $0xd6c] ss:$16 sps:$4 sm:$0xff]  }
 0x1a8   :  { %4960 = vmatpush1.bf16.msra.mxu0 %v7244_v8  ;;  %5452 = vmatpush1.bf16.msra.mxu1 %v7247_v9  ;;  %v7334_v8 = vld [vmem:[#allocation5 + $0xd60] ss:$16 sps:$4 sm:$0xff]   ;;  %v7337_v9 = vld [vmem:[#allocation5 + $0xd68] ss:$16 sps:$4 sm:$0xff]  }
 0x1a9   :  { %4961 = vmatprep.subr.bf16.mxu0 %v7252_v10  ;;  %5453 = vmatprep.subr.bf16.mxu1 %v7255_v11  ;;  %v7342_v10 = vld [vmem:[#allocation5 + $0xd84] ss:$16 sps:$4 sm:$0xff]   ;;  %v7345_v11 = vld [vmem:[#allocation5 + $0xd8c] ss:$16 sps:$4 sm:$0xff]  }
 0x1ac   :  { %4962 = vmatpush1.bf16.msra.mxu0 %v7250_v12  ;;  %5454 = vmatpush1.bf16.msra.mxu1 %v7253_v13  ;;  %v7340_v12 = vld [vmem:[#allocation5 + $0xd80] ss:$16 sps:$4 sm:$0xff]   ;;  %v7343_v13 = vld [vmem:[#allocation5 + $0xd88] ss:$16 sps:$4 sm:$0xff]  }
 0x1ad   :  { %4963 = vmatprep.subr.bf16.mxu0 %v7258_v14  ;;  %5455 = vmatprep.subr.bf16.mxu1 %v7261_v15  ;;  %v7348_v14 = vld [vmem:[#allocation5 + $0xda4] ss:$16 sps:$4 sm:$0xff]   ;;  %v7351_v15 = vld [vmem:[#allocation5 + $0xdac] ss:$16 sps:$4 sm:$0xff]  }
 0x1b0   :  { %4964 = vmatpush1.bf16.msra.mxu0 %v7256_v16  ;;  %5456 = vmatpush1.bf16.msra.mxu1 %v7259_v17  ;;  %v7346_v16 = vld [vmem:[#allocation5 + $0xda0] ss:$16 sps:$4 sm:$0xff]   ;;  %v7349_v17 = vld [vmem:[#allocation5 + $0xda8] ss:$16 sps:$4 sm:$0xff]  }
 0x1b1   :  { %4965 = vmatprep.subr.bf16.mxu0 %v7264_v18  ;;  %5457 = vmatprep.subr.bf16.mxu1 %v7267_v19  ;;  %v7354_v18 = vld [vmem:[#allocation5 + $0xdc4] ss:$16 sps:$4 sm:$0xff]   ;;  %v7357_v19 = vld [vmem:[#allocation5 + $0xdcc] ss:$16 sps:$4 sm:$0xff]  }
 0x1b4   :  { %4966 = vmatpush1.bf16.msra.mxu0 %v7262_v20  ;;  %5458 = vmatpush1.bf16.msra.mxu1 %v7265_v21  ;;  %v7352_v20 = vld [vmem:[#allocation5 + $0xdc0] ss:$16 sps:$4 sm:$0xff]   ;;  %v7355_v21 = vld [vmem:[#allocation5 + $0xdc8] ss:$16 sps:$4 sm:$0xff]  }
 0x1b5   :  { %4976 = vmatprep.subr.bf16.mxu0 %v7270_v22  ;;  %5468 = vmatprep.subr.bf16.mxu1 %v7273_v24  ;;  %v7360_v22 = vld [vmem:[#allocation5 + $0xde4] ss:$16 sps:$4 sm:$0xff]   ;;  %v7358_v24 = vld [vmem:[#allocation5 + $0xde0] ss:$16 sps:$4 sm:$0xff]  }
 0x1b7   :  { %4968 = vmatmul.mubr.bf16.vlgmr.msra.gmra.mrb[0].mxu0 %v86_v26  ;;  %5460 = vmatmul.mubr.bf16.vlgmr.msra.gmra.mrb[0].mxu1 %v86_v26  ;;  %v7366_v26 = vld [vmem:[#allocation5 + $0xe04] ss:$16 sps:$4 sm:$0xff]  }
 0x1b8   :  { %4977 = vmatpush1.bf16.msra.mxu0 %v7268_v27  ;;  %5469 = vmatpush1.bf16.msra.mxu1 %v7271_v28  ;;  %v64_v27 = vld [vmem:[#allocation2 + $0x60] sm:$0xff]  ;;  %v7369_v28 = vld [vmem:[#allocation5 + $0xe0c] ss:$16 sps:$4 sm:$0xff]  }
 0x1b9   :  { %4978 = vmatprep.subr.bf16.mxu0 %v7276_v29  ;;  %5470 = vmatprep.subr.bf16.mxu1 %v7279_v30  ;;  %v67_v29 = vld [vmem:[#allocation2 + $0x78] sm:$0xff]  ;;  %v88_v30 = vpack.c.bf16 %v64_v27, %v64_v27 }
 0x1ba   :  { %5008 = vmatprep.mubr.bf16.mxu0 %v89_v31  ;;  %5500 = vmatprep.mubr.bf16.mxu1 %v89_v31  ;;  %v7364_v31 = vld [vmem:[#allocation5 + $0xe00] ss:$16 sps:$4 sm:$0xff]   ;;  %v7459_v27 = vld [vmem:[#allocation5 + $0xfec] ss:$16 sps:$4 sm:$0xff]  }
 0x1bc   :  { %4979 = vmatpush1.bf16.msra.mxu0 %v7274_v32  ;;  %5471 = vmatpush1.bf16.msra.mxu1 %v7277_v33  ;;  %v7367_v32 = vld [vmem:[#allocation5 + $0xe08] ss:$16 sps:$4 sm:$0xff]   ;;  %v7372_v33 = vld [vmem:[#allocation5 + $0xe24] ss:$16 sps:$4 sm:$0xff]  }
 0x1bd   :  { %4980 = vmatprep.subr.bf16.mxu0 %v7282_v34  ;;  %5472 = vmatprep.subr.bf16.mxu1 %v7285_v35  ;;  %v7375_v34 = vld [vmem:[#allocation5 + $0xe2c] ss:$16 sps:$4 sm:$0xff]   ;;  %v91_v35 = vpack.c.bf16 %v67_v29, %v67_v29  ;;  %v7457_v29 = vld [vmem:[#allocation5 + $0xfe8] ss:$16 sps:$4 sm:$0xff]  }
 0x1c0   :  { %4981 = vmatpush1.bf16.msra.mxu0 %v7280_v36  ;;  %5473 = vmatpush1.bf16.msra.mxu1 %v7283_v37  ;;  %v7370_v36 = vld [vmem:[#allocation5 + $0xe20] ss:$16 sps:$4 sm:$0xff]   ;;  %v7373_v37 = vld [vmem:[#allocation5 + $0xe28] ss:$16 sps:$4 sm:$0xff]  }
 0x1c1   :  { %4982 = vmatprep.subr.bf16.mxu0 %v7288_v38  ;;  %5474 = vmatprep.subr.bf16.mxu1 %v7291_v39  ;;  %v7378_v38 = vld [vmem:[#allocation5 + $0xe44] ss:$16 sps:$4 sm:$0xff]   ;;  %v7381_v39 = vld [vmem:[#allocation5 + $0xe4c] ss:$16 sps:$4 sm:$0xff]  }
 0x1c4   :  { %4983 = vmatpush1.bf16.msra.mxu0 %v7286_v40  ;;  %5475 = vmatpush1.bf16.msra.mxu1 %v7289_v41  ;;  %v7376_v40 = vld [vmem:[#allocation5 + $0xe40] ss:$16 sps:$4 sm:$0xff]   ;;  %v7379_v41 = vld [vmem:[#allocation5 + $0xe48] ss:$16 sps:$4 sm:$0xff]  }
 0x1c5   :  { %4984 = vmatprep.subr.bf16.mxu0 %v7294_v42  ;;  %5476 = vmatprep.subr.bf16.mxu1 %v7297_v43  ;;  %v7384_v42 = vld [vmem:[#allocation5 + $0xe64] ss:$16 sps:$4 sm:$0xff]   ;;  %v7387_v43 = vld [vmem:[#allocation5 + $0xe6c] ss:$16 sps:$4 sm:$0xff]  }
 0x1c8   :  { %4985 = vmatpush1.bf16.msra.mxu0 %v7292_v44  ;;  %5477 = vmatpush1.bf16.msra.mxu1 %v7295_v45  ;;  %v7382_v44 = vld [vmem:[#allocation5 + $0xe60] ss:$16 sps:$4 sm:$0xff]   ;;  %v7385_v45 = vld [vmem:[#allocation5 + $0xe68] ss:$16 sps:$4 sm:$0xff]  }
 0x1c9   :  { %4986 = vmatprep.subr.bf16.mxu0 %v7300_v46  ;;  %5478 = vmatprep.subr.bf16.mxu1 %v7303_v47  ;;  %v7390_v46 = vld [vmem:[#allocation5 + $0xe84] ss:$16 sps:$4 sm:$0xff]   ;;  %v7393_v47 = vld [vmem:[#allocation5 + $0xe8c] ss:$16 sps:$4 sm:$0xff]  }
 0x1cc   :  { %4987 = vmatpush1.bf16.msra.mxu0 %v7298_v48  ;;  %5479 = vmatpush1.bf16.msra.mxu1 %v7301_v49  ;;  %v7388_v48 = vld [vmem:[#allocation5 + $0xe80] ss:$16 sps:$4 sm:$0xff]   ;;  %v7391_v49 = vld [vmem:[#allocation5 + $0xe88] ss:$16 sps:$4 sm:$0xff]  }
 0x1cd   :  { %4988 = vmatprep.subr.bf16.mxu0 %v7306_v50  ;;  %5480 = vmatprep.subr.bf16.mxu1 %v7309_v51  ;;  %v7396_v50 = vld [vmem:[#allocation5 + $0xea4] ss:$16 sps:$4 sm:$0xff]   ;;  %v7399_v51 = vld [vmem:[#allocation5 + $0xeac] ss:$16 sps:$4 sm:$0xff]  }
 0x1d0   :  { %4989 = vmatpush1.bf16.msra.mxu0 %v7304_v52  ;;  %5481 = vmatpush1.bf16.msra.mxu1 %v7307_v53  ;;  %v7394_v52 = vld [vmem:[#allocation5 + $0xea0] ss:$16 sps:$4 sm:$0xff]   ;;  %v7397_v53 = vld [vmem:[#allocation5 + $0xea8] ss:$16 sps:$4 sm:$0xff]  }
 0x1d1   :  { %4990 = vmatprep.subr.bf16.mxu0 %v7312_v54  ;;  %5482 = vmatprep.subr.bf16.mxu1 %v7315_v55  ;;  %v7402_v54 = vld [vmem:[#allocation5 + $0xec4] ss:$16 sps:$4 sm:$0xff]   ;;  %v7405_v55 = vld [vmem:[#allocation5 + $0xecc] ss:$16 sps:$4 sm:$0xff]  }
 0x1d4   :  { %4991 = vmatpush1.bf16.msra.mxu0 %v7310_v56  ;;  %5483 = vmatpush1.bf16.msra.mxu1 %v7313_v57  ;;  %v7400_v56 = vld [vmem:[#allocation5 + $0xec0] ss:$16 sps:$4 sm:$0xff]   ;;  %v7403_v57 = vld [vmem:[#allocation5 + $0xec8] ss:$16 sps:$4 sm:$0xff]  }
 0x1d5   :  { %4992 = vmatprep.subr.bf16.mxu0 %v7318_v58  ;;  %5484 = vmatprep.subr.bf16.mxu1 %v7321_v59  ;;  %v7408_v58 = vld [vmem:[#allocation5 + $0xee4] ss:$16 sps:$4 sm:$0xff]   ;;  %v7411_v59 = vld [vmem:[#allocation5 + $0xeec] ss:$16 sps:$4 sm:$0xff]  }
 0x1d8   :  { %4993 = vmatpush1.bf16.msra.mxu0 %v7316_v60  ;;  %5485 = vmatpush1.bf16.msra.mxu1 %v7319_v61  ;;  %v7406_v60 = vld [vmem:[#allocation5 + $0xee0] ss:$16 sps:$4 sm:$0xff]   ;;  %v7409_v61 = vld [vmem:[#allocation5 + $0xee8] ss:$16 sps:$4 sm:$0xff]  }
 0x1d9   :  { %4994 = vmatprep.subr.bf16.mxu0 %v7324_v62  ;;  %5486 = vmatprep.subr.bf16.mxu1 %v7327_v63  ;;  %v7414_v62 = vld [vmem:[#allocation5 + $0xf04] ss:$16 sps:$4 sm:$0xff]   ;;  %v7417_v63 = vld [vmem:[#allocation5 + $0xf0c] ss:$16 sps:$4 sm:$0xff]  }
 0x1dc   :  { %4995 = vmatpush1.bf16.msra.mxu0 %v7322_v0  ;;  %5487 = vmatpush1.bf16.msra.mxu1 %v7325_v1  ;;  %v7412_v0 = vld [vmem:[#allocation5 + $0xf00] ss:$16 sps:$4 sm:$0xff]   ;;  %v7415_v1 = vld [vmem:[#allocation5 + $0xf08] ss:$16 sps:$4 sm:$0xff]  }
 0x1dd   :  { %4996 = vmatprep.subr.bf16.mxu0 %v7330_v2  ;;  %5488 = vmatprep.subr.bf16.mxu1 %v7333_v3  ;;  %v7420_v2 = vld [vmem:[#allocation5 + $0xf24] ss:$16 sps:$4 sm:$0xff]   ;;  %v7423_v3 = vld [vmem:[#allocation5 + $0xf2c] ss:$16 sps:$4 sm:$0xff]  }
 0x1e0   :  { %4997 = vmatpush1.bf16.msra.mxu0 %v7328_v4  ;;  %5489 = vmatpush1.bf16.msra.mxu1 %v7331_v5  ;;  %v7418_v4 = vld [vmem:[#allocation5 + $0xf20] ss:$16 sps:$4 sm:$0xff]   ;;  %v7421_v5 = vld [vmem:[#allocation5 + $0xf28] ss:$16 sps:$4 sm:$0xff]  }
 0x1e1   :  { %4998 = vmatprep.subr.bf16.mxu0 %v7336_v6  ;;  %5490 = vmatprep.subr.bf16.mxu1 %v7339_v7  ;;  %v7426_v6 = vld [vmem:[#allocation5 + $0xf44] ss:$16 sps:$4 sm:$0xff]   ;;  %v7429_v7 = vld [vmem:[#allocation5 + $0xf4c] ss:$16 sps:$4 sm:$0xff]  }
 0x1e4   :  { %4999 = vmatpush1.bf16.msra.mxu0 %v7334_v8  ;;  %5491 = vmatpush1.bf16.msra.mxu1 %v7337_v9  ;;  %v7424_v8 = vld [vmem:[#allocation5 + $0xf40] ss:$16 sps:$4 sm:$0xff]   ;;  %v7427_v9 = vld [vmem:[#allocation5 + $0xf48] ss:$16 sps:$4 sm:$0xff]  }
 0x1e5   :  { %5000 = vmatprep.subr.bf16.mxu0 %v7342_v10  ;;  %5492 = vmatprep.subr.bf16.mxu1 %v7345_v11  ;;  %v7432_v10 = vld [vmem:[#allocation5 + $0xf64] ss:$16 sps:$4 sm:$0xff]   ;;  %v7435_v11 = vld [vmem:[#allocation5 + $0xf6c] ss:$16 sps:$4 sm:$0xff]  }
 0x1e8   :  { %5001 = vmatpush1.bf16.msra.mxu0 %v7340_v12  ;;  %5493 = vmatpush1.bf16.msra.mxu1 %v7343_v13  ;;  %v7430_v12 = vld [vmem:[#allocation5 + $0xf60] ss:$16 sps:$4 sm:$0xff]   ;;  %v7433_v13 = vld [vmem:[#allocation5 + $0xf68] ss:$16 sps:$4 sm:$0xff]  }
 0x1e9   :  { %5002 = vmatprep.subr.bf16.mxu0 %v7348_v14  ;;  %5494 = vmatprep.subr.bf16.mxu1 %v7351_v15  ;;  %v7438_v14 = vld [vmem:[#allocation5 + $0xf84] ss:$16 sps:$4 sm:$0xff]   ;;  %v7441_v15 = vld [vmem:[#allocation5 + $0xf8c] ss:$16 sps:$4 sm:$0xff]  }
 0x1ec   :  { %5003 = vmatpush1.bf16.msra.mxu0 %v7346_v16  ;;  %5495 = vmatpush1.bf16.msra.mxu1 %v7349_v17  ;;  %v7436_v16 = vld [vmem:[#allocation5 + $0xf80] ss:$16 sps:$4 sm:$0xff]   ;;  %v7439_v17 = vld [vmem:[#allocation5 + $0xf88] ss:$16 sps:$4 sm:$0xff]  }
 0x1ed   :  { %5004 = vmatprep.subr.bf16.mxu0 %v7354_v18  ;;  %5496 = vmatprep.subr.bf16.mxu1 %v7357_v19  ;;  %v7444_v18 = vld [vmem:[#allocation5 + $0xfa4] ss:$16 sps:$4 sm:$0xff]   ;;  %v7447_v19 = vld [vmem:[#allocation5 + $0xfac] ss:$16 sps:$4 sm:$0xff]  }
 0x1f0   :  { %5005 = vmatpush1.bf16.msra.mxu0 %v7352_v20  ;;  %5497 = vmatpush1.bf16.msra.mxu1 %v7355_v21  ;;  %v7442_v20 = vld [vmem:[#allocation5 + $0xfa0] ss:$16 sps:$4 sm:$0xff]   ;;  %v7445_v21 = vld [vmem:[#allocation5 + $0xfa8] ss:$16 sps:$4 sm:$0xff]  }
 0x1f1   :  { %5006 = vmatprep.subr.bf16.mxu0 %v7360_v22  ;;  %5498 = vmatprep.subr.bf16.mxu1 %v7363_v23  ;;  %v7450_v22 = vld [vmem:[#allocation5 + $0xfc4] ss:$16 sps:$4 sm:$0xff]   ;;  %v7453_v23 = vld [vmem:[#allocation5 + $0xfcc] ss:$16 sps:$4 sm:$0xff]  }
 0x1f4   :  { %5007 = vmatpush1.bf16.msra.mxu0 %v7358_v24  ;;  %5499 = vmatpush1.bf16.msra.mxu1 %v7361_v25  ;;  %v7448_v24 = vld [vmem:[#allocation5 + $0xfc0] ss:$16 sps:$4 sm:$0xff]   ;;  %v7451_v25 = vld [vmem:[#allocation5 + $0xfc8] ss:$16 sps:$4 sm:$0xff]  }
 0x1f5   :  { %5017 = vmatprep.subr.bf16.mxu0 %v7366_v26  ;;  %5509 = vmatprep.subr.bf16.mxu1 %v7369_v28  ;;  %v7456_v26 = vld [vmem:[#allocation5 + $0xfe4] ss:$16 sps:$4 sm:$0xff]   ;;  %v7454_v28 = vld [vmem:[#allocation5 + $0xfe0] ss:$16 sps:$4 sm:$0xff]  }
 0x1f7   :  { %5009 = vmatmul.mubr.bf16.vlgmr.msra.gmra.mrb[0].mxu0 %v88_v30  ;;  %5501 = vmatmul.mubr.bf16.vlgmr.msra.gmra.mrb[0].mxu1 %v88_v30  ;;  %v66_v30 = vld [vmem:[#allocation2 + $0x70] sm:$0xff] }
 0x1f8   :  { %5018 = vmatpush1.bf16.msra.mxu0 %v7364_v31  ;;  %5510 = vmatpush1.bf16.msra.mxu1 %v7367_v32  ;;  %v7462_v31 = vld [vmem:[#allocation5 + $0x1004] ss:$16 sps:$4 sm:$0xff]   ;;  %v7465_v32 = vld [vmem:[#allocation5 + $0x100c] ss:$16 sps:$4 sm:$0xff]  }
 0x1f9   :  { %5019 = vmatprep.subr.bf16.mxu0 %v7372_v33  ;;  %5511 = vmatprep.subr.bf16.mxu1 %v7375_v34  ;;  %v90_v33 = vpack.c.bf16 %v66_v30, %v66_v30  ;;  %v69_v34 = vld [vmem:[#allocation2 + $0x88] sm:$0xff]  ;;  %v7552_v30 = vld [vmem:[#allocation5 + $0x11e4] ss:$16 sps:$4 sm:$0xff]  }
 0x1fa   :  { %5049 = vmatprep.mubr.bf16.mxu0 %v91_v35  ;;  %5541 = vmatprep.mubr.bf16.mxu1 %v91_v35  ;;  %v7460_v35 = vld [vmem:[#allocation5 + $0x1000] ss:$16 sps:$4 sm:$0xff]  }
 0x1fc   :  { %5020 = vmatpush1.bf16.msra.mxu0 %v7370_v36  ;;  %5512 = vmatpush1.bf16.msra.mxu1 %v7373_v37  ;;  %v7463_v36 = vld [vmem:[#allocation5 + $0x1008] ss:$16 sps:$4 sm:$0xff]   ;;  %v7468_v37 = vld [vmem:[#allocation5 + $0x1024] ss:$16 sps:$4 sm:$0xff]  }
 0x1fd   :  { %5021 = vmatprep.subr.bf16.mxu0 %v7378_v38  ;;  %5513 = vmatprep.subr.bf16.mxu1 %v7381_v39  ;;  %v7471_v38 = vld [vmem:[#allocation5 + $0x102c] ss:$16 sps:$4 sm:$0xff]   ;;  %v93_v39 = vpack.c.bf16 %v69_v34, %v69_v34  ;;  %v68_v34 = vld [vmem:[#allocation2 + $0x80] sm:$0xff] }
 0x200   :  { %5022 = vmatpush1.bf16.msra.mxu0 %v7376_v40  ;;  %5514 = vmatpush1.bf16.msra.mxu1 %v7379_v41  ;;  %v7466_v40 = vld [vmem:[#allocation5 + $0x1020] ss:$16 sps:$4 sm:$0xff]   ;;  %v7469_v41 = vld [vmem:[#allocation5 + $0x1028] ss:$16 sps:$4 sm:$0xff]  }
 0x201   :  { %5023 = vmatprep.subr.bf16.mxu0 %v7384_v42  ;;  %5515 = vmatprep.subr.bf16.mxu1 %v7387_v43  ;;  %v7474_v42 = vld [vmem:[#allocation5 + $0x1044] ss:$16 sps:$4 sm:$0xff]   ;;  %v7477_v43 = vld [vmem:[#allocation5 + $0x104c] ss:$16 sps:$4 sm:$0xff]  }
 0x204   :  { %5024 = vmatpush1.bf16.msra.mxu0 %v7382_v44  ;;  %5516 = vmatpush1.bf16.msra.mxu1 %v7385_v45  ;;  %v7472_v44 = vld [vmem:[#allocation5 + $0x1040] ss:$16 sps:$4 sm:$0xff]   ;;  %v7475_v45 = vld [vmem:[#allocation5 + $0x1048] ss:$16 sps:$4 sm:$0xff]  }
 0x205   :  { %5025 = vmatprep.subr.bf16.mxu0 %v7390_v46  ;;  %5517 = vmatprep.subr.bf16.mxu1 %v7393_v47  ;;  %v7480_v46 = vld [vmem:[#allocation5 + $0x1064] ss:$16 sps:$4 sm:$0xff]   ;;  %v7483_v47 = vld [vmem:[#allocation5 + $0x106c] ss:$16 sps:$4 sm:$0xff]  }
 0x208   :  { %5026 = vmatpush1.bf16.msra.mxu0 %v7388_v48  ;;  %5518 = vmatpush1.bf16.msra.mxu1 %v7391_v49  ;;  %v7478_v48 = vld [vmem:[#allocation5 + $0x1060] ss:$16 sps:$4 sm:$0xff]   ;;  %v7481_v49 = vld [vmem:[#allocation5 + $0x1068] ss:$16 sps:$4 sm:$0xff]  }
 0x209   :  { %5027 = vmatprep.subr.bf16.mxu0 %v7396_v50  ;;  %5519 = vmatprep.subr.bf16.mxu1 %v7399_v51  ;;  %v7486_v50 = vld [vmem:[#allocation5 + $0x1084] ss:$16 sps:$4 sm:$0xff]   ;;  %v7489_v51 = vld [vmem:[#allocation5 + $0x108c] ss:$16 sps:$4 sm:$0xff]  }
 0x20c   :  { %5028 = vmatpush1.bf16.msra.mxu0 %v7394_v52  ;;  %5520 = vmatpush1.bf16.msra.mxu1 %v7397_v53  ;;  %v7484_v52 = vld [vmem:[#allocation5 + $0x1080] ss:$16 sps:$4 sm:$0xff]   ;;  %v7487_v53 = vld [vmem:[#allocation5 + $0x1088] ss:$16 sps:$4 sm:$0xff]  }
 0x20d   :  { %5029 = vmatprep.subr.bf16.mxu0 %v7402_v54  ;;  %5521 = vmatprep.subr.bf16.mxu1 %v7405_v55  ;;  %v7492_v54 = vld [vmem:[#allocation5 + $0x10a4] ss:$16 sps:$4 sm:$0xff]   ;;  %v7495_v55 = vld [vmem:[#allocation5 + $0x10ac] ss:$16 sps:$4 sm:$0xff]  }
 0x210   :  { %5030 = vmatpush1.bf16.msra.mxu0 %v7400_v56  ;;  %5522 = vmatpush1.bf16.msra.mxu1 %v7403_v57  ;;  %v7490_v56 = vld [vmem:[#allocation5 + $0x10a0] ss:$16 sps:$4 sm:$0xff]   ;;  %v7493_v57 = vld [vmem:[#allocation5 + $0x10a8] ss:$16 sps:$4 sm:$0xff]  }
 0x211   :  { %5031 = vmatprep.subr.bf16.mxu0 %v7408_v58  ;;  %5523 = vmatprep.subr.bf16.mxu1 %v7411_v59  ;;  %v7498_v58 = vld [vmem:[#allocation5 + $0x10c4] ss:$16 sps:$4 sm:$0xff]   ;;  %v7501_v59 = vld [vmem:[#allocation5 + $0x10cc] ss:$16 sps:$4 sm:$0xff]  }
 0x214   :  { %5032 = vmatpush1.bf16.msra.mxu0 %v7406_v60  ;;  %5524 = vmatpush1.bf16.msra.mxu1 %v7409_v61  ;;  %v7496_v60 = vld [vmem:[#allocation5 + $0x10c0] ss:$16 sps:$4 sm:$0xff]   ;;  %v7499_v61 = vld [vmem:[#allocation5 + $0x10c8] ss:$16 sps:$4 sm:$0xff]  }
 0x215   :  { %5033 = vmatprep.subr.bf16.mxu0 %v7414_v62  ;;  %5525 = vmatprep.subr.bf16.mxu1 %v7417_v63  ;;  %v7504_v62 = vld [vmem:[#allocation5 + $0x10e4] ss:$16 sps:$4 sm:$0xff]   ;;  %v7507_v63 = vld [vmem:[#allocation5 + $0x10ec] ss:$16 sps:$4 sm:$0xff]  }
 0x218   :  { %5034 = vmatpush1.bf16.msra.mxu0 %v7412_v0  ;;  %5526 = vmatpush1.bf16.msra.mxu1 %v7415_v1  ;;  %v7502_v0 = vld [vmem:[#allocation5 + $0x10e0] ss:$16 sps:$4 sm:$0xff]   ;;  %v7505_v1 = vld [vmem:[#allocation5 + $0x10e8] ss:$16 sps:$4 sm:$0xff]  }
 0x219   :  { %5035 = vmatprep.subr.bf16.mxu0 %v7420_v2  ;;  %5527 = vmatprep.subr.bf16.mxu1 %v7423_v3  ;;  %v7510_v2 = vld [vmem:[#allocation5 + $0x1104] ss:$16 sps:$4 sm:$0xff]   ;;  %v7513_v3 = vld [vmem:[#allocation5 + $0x110c] ss:$16 sps:$4 sm:$0xff]  }
 0x21c   :  { %5036 = vmatpush1.bf16.msra.mxu0 %v7418_v4  ;;  %5528 = vmatpush1.bf16.msra.mxu1 %v7421_v5  ;;  %v7508_v4 = vld [vmem:[#allocation5 + $0x1100] ss:$16 sps:$4 sm:$0xff]   ;;  %v7511_v5 = vld [vmem:[#allocation5 + $0x1108] ss:$16 sps:$4 sm:$0xff]  }
 0x21d   :  { %5037 = vmatprep.subr.bf16.mxu0 %v7426_v6  ;;  %5529 = vmatprep.subr.bf16.mxu1 %v7429_v7  ;;  %v7516_v6 = vld [vmem:[#allocation5 + $0x1124] ss:$16 sps:$4 sm:$0xff]   ;;  %v7519_v7 = vld [vmem:[#allocation5 + $0x112c] ss:$16 sps:$4 sm:$0xff]  }
 0x220   :  { %5038 = vmatpush1.bf16.msra.mxu0 %v7424_v8  ;;  %5530 = vmatpush1.bf16.msra.mxu1 %v7427_v9  ;;  %v7514_v8 = vld [vmem:[#allocation5 + $0x1120] ss:$16 sps:$4 sm:$0xff]   ;;  %v7517_v9 = vld [vmem:[#allocation5 + $0x1128] ss:$16 sps:$4 sm:$0xff]  }
 0x221   :  { %5039 = vmatprep.subr.bf16.mxu0 %v7432_v10  ;;  %5531 = vmatprep.subr.bf16.mxu1 %v7435_v11  ;;  %v7522_v10 = vld [vmem:[#allocation5 + $0x1144] ss:$16 sps:$4 sm:$0xff]   ;;  %v7525_v11 = vld [vmem:[#allocation5 + $0x114c] ss:$16 sps:$4 sm:$0xff]  }
 0x224   :  { %5040 = vmatpush1.bf16.msra.mxu0 %v7430_v12  ;;  %5532 = vmatpush1.bf16.msra.mxu1 %v7433_v13  ;;  %v7520_v12 = vld [vmem:[#allocation5 + $0x1140] ss:$16 sps:$4 sm:$0xff]   ;;  %v7523_v13 = vld [vmem:[#allocation5 + $0x1148] ss:$16 sps:$4 sm:$0xff]  }
 0x225   :  { %5041 = vmatprep.subr.bf16.mxu0 %v7438_v14  ;;  %5533 = vmatprep.subr.bf16.mxu1 %v7441_v15  ;;  %v7528_v14 = vld [vmem:[#allocation5 + $0x1164] ss:$16 sps:$4 sm:$0xff]   ;;  %v7531_v15 = vld [vmem:[#allocation5 + $0x116c] ss:$16 sps:$4 sm:$0xff]  }
 0x228   :  { %5042 = vmatpush1.bf16.msra.mxu0 %v7436_v16  ;;  %5534 = vmatpush1.bf16.msra.mxu1 %v7439_v17  ;;  %v7526_v16 = vld [vmem:[#allocation5 + $0x1160] ss:$16 sps:$4 sm:$0xff]   ;;  %v7529_v17 = vld [vmem:[#allocation5 + $0x1168] ss:$16 sps:$4 sm:$0xff]  }
 0x229   :  { %5043 = vmatprep.subr.bf16.mxu0 %v7444_v18  ;;  %5535 = vmatprep.subr.bf16.mxu1 %v7447_v19  ;;  %v7534_v18 = vld [vmem:[#allocation5 + $0x1184] ss:$16 sps:$4 sm:$0xff]   ;;  %v7537_v19 = vld [vmem:[#allocation5 + $0x118c] ss:$16 sps:$4 sm:$0xff]  }
 0x22c   :  { %5044 = vmatpush1.bf16.msra.mxu0 %v7442_v20  ;;  %5536 = vmatpush1.bf16.msra.mxu1 %v7445_v21  ;;  %v7532_v20 = vld [vmem:[#allocation5 + $0x1180] ss:$16 sps:$4 sm:$0xff]   ;;  %v7535_v21 = vld [vmem:[#allocation5 + $0x1188] ss:$16 sps:$4 sm:$0xff]  }
 0x22d   :  { %5045 = vmatprep.subr.bf16.mxu0 %v7450_v22  ;;  %5537 = vmatprep.subr.bf16.mxu1 %v7453_v23  ;;  %v7540_v22 = vld [vmem:[#allocation5 + $0x11a4] ss:$16 sps:$4 sm:$0xff]   ;;  %v7543_v23 = vld [vmem:[#allocation5 + $0x11ac] ss:$16 sps:$4 sm:$0xff]  }
 0x230   :  { %5046 = vmatpush1.bf16.msra.mxu0 %v7448_v24  ;;  %5538 = vmatpush1.bf16.msra.mxu1 %v7451_v25  ;;  %v7538_v24 = vld [vmem:[#allocation5 + $0x11a0] ss:$16 sps:$4 sm:$0xff]   ;;  %v7541_v25 = vld [vmem:[#allocation5 + $0x11a8] ss:$16 sps:$4 sm:$0xff]  }
 0x231   :  { %5047 = vmatprep.subr.bf16.mxu0 %v7456_v26  ;;  %5539 = vmatprep.subr.bf16.mxu1 %v7459_v27  ;;  %v7546_v26 = vld [vmem:[#allocation5 + $0x11c4] ss:$16 sps:$4 sm:$0xff]   ;;  %v7549_v27 = vld [vmem:[#allocation5 + $0x11cc] ss:$16 sps:$4 sm:$0xff]  }
 0x234   :  { %5048 = vmatpush1.bf16.msra.mxu0 %v7454_v28  ;;  %5540 = vmatpush1.bf16.msra.mxu1 %v7457_v29  ;;  %v7544_v28 = vld [vmem:[#allocation5 + $0x11c0] ss:$16 sps:$4 sm:$0xff]   ;;  %v7547_v29 = vld [vmem:[#allocation5 + $0x11c8] ss:$16 sps:$4 sm:$0xff]  }
 0x235   :  { %5058 = vmatprep.subr.bf16.mxu0 %v7462_v31  ;;  %5550 = vmatprep.subr.bf16.mxu1 %v7465_v32  ;;  %v7555_v31 = vld [vmem:[#allocation5 + $0x11ec] ss:$16 sps:$4 sm:$0xff]   ;;  %v7550_v32 = vld [vmem:[#allocation5 + $0x11e0] ss:$16 sps:$4 sm:$0xff]  }
 0x237   :  { %5050 = vmatmul.mubr.bf16.vlgmr.msra.gmra.mrb[0].mxu0 %v90_v33  ;;  %5542 = vmatmul.mubr.bf16.vlgmr.msra.gmra.mrb[0].mxu1 %v90_v33  ;;  %v7553_v33 = vld [vmem:[#allocation5 + $0x11e8] ss:$16 sps:$4 sm:$0xff]  }
 0x238   :  { %5059 = vmatpush1.bf16.msra.mxu0 %v7460_v35  ;;  %5551 = vmatpush1.bf16.msra.mxu1 %v7463_v36  ;;  %v7558_v35 = vld [vmem:[#allocation5 + $0x1204] ss:$16 sps:$4 sm:$0xff]   ;;  %v7561_v36 = vld [vmem:[#allocation5 + $0x120c] ss:$16 sps:$4 sm:$0xff]  }
 0x239   :  { %5060 = vmatprep.subr.bf16.mxu0 %v7468_v37  ;;  %5552 = vmatprep.subr.bf16.mxu1 %v7471_v38  ;;  %v92_v37 = vpack.c.bf16 %v68_v34, %v68_v34  ;;  %v71_v38 = vld [vmem:[#allocation2 + $0x98] sm:$0xff]  ;;  %v7648_v34 = vld [vmem:[#allocation5 + $0x13e4] ss:$16 sps:$4 sm:$0xff]  }
 0x23a   :  { %5090 = vmatprep.mubr.bf16.mxu0 %v93_v39  ;;  %5582 = vmatprep.mubr.bf16.mxu1 %v93_v39  ;;  %v7556_v39 = vld [vmem:[#allocation5 + $0x1200] ss:$16 sps:$4 sm:$0xff]  }
 0x23c   :  { %5061 = vmatpush1.bf16.msra.mxu0 %v7466_v40  ;;  %5553 = vmatpush1.bf16.msra.mxu1 %v7469_v41  ;;  %v7559_v40 = vld [vmem:[#allocation5 + $0x1208] ss:$16 sps:$4 sm:$0xff]   ;;  %v7564_v41 = vld [vmem:[#allocation5 + $0x1224] ss:$16 sps:$4 sm:$0xff]  }
 0x23d   :  { %5062 = vmatprep.subr.bf16.mxu0 %v7474_v42  ;;  %5554 = vmatprep.subr.bf16.mxu1 %v7477_v43  ;;  %v7567_v42 = vld [vmem:[#allocation5 + $0x122c] ss:$16 sps:$4 sm:$0xff]   ;;  %v95_v43 = vpack.c.bf16 %v71_v38, %v71_v38  ;;  %v70_v38 = vld [vmem:[#allocation2 + $0x90] sm:$0xff] }
 0x240   :  { %5063 = vmatpush1.bf16.msra.mxu0 %v7472_v44  ;;  %5555 = vmatpush1.bf16.msra.mxu1 %v7475_v45  ;;  %v7562_v44 = vld [vmem:[#allocation5 + $0x1220] ss:$16 sps:$4 sm:$0xff]   ;;  %v7565_v45 = vld [vmem:[#allocation5 + $0x1228] ss:$16 sps:$4 sm:$0xff]  }
 0x241   :  { %5064 = vmatprep.subr.bf16.mxu0 %v7480_v46  ;;  %5556 = vmatprep.subr.bf16.mxu1 %v7483_v47  ;;  %v7570_v46 = vld [vmem:[#allocation5 + $0x1244] ss:$16 sps:$4 sm:$0xff]   ;;  %v7573_v47 = vld [vmem:[#allocation5 + $0x124c] ss:$16 sps:$4 sm:$0xff]  }
 0x244   :  { %5065 = vmatpush1.bf16.msra.mxu0 %v7478_v48  ;;  %5557 = vmatpush1.bf16.msra.mxu1 %v7481_v49  ;;  %v7568_v48 = vld [vmem:[#allocation5 + $0x1240] ss:$16 sps:$4 sm:$0xff]   ;;  %v7571_v49 = vld [vmem:[#allocation5 + $0x1248] ss:$16 sps:$4 sm:$0xff]  }
 0x245   :  { %5066 = vmatprep.subr.bf16.mxu0 %v7486_v50  ;;  %5558 = vmatprep.subr.bf16.mxu1 %v7489_v51  ;;  %v7576_v50 = vld [vmem:[#allocation5 + $0x1264] ss:$16 sps:$4 sm:$0xff]   ;;  %v7579_v51 = vld [vmem:[#allocation5 + $0x126c] ss:$16 sps:$4 sm:$0xff]  }
 0x248   :  { %5067 = vmatpush1.bf16.msra.mxu0 %v7484_v52  ;;  %5559 = vmatpush1.bf16.msra.mxu1 %v7487_v53  ;;  %v7574_v52 = vld [vmem:[#allocation5 + $0x1260] ss:$16 sps:$4 sm:$0xff]   ;;  %v7577_v53 = vld [vmem:[#allocation5 + $0x1268] ss:$16 sps:$4 sm:$0xff]  }
 0x249   :  { %5068 = vmatprep.subr.bf16.mxu0 %v7492_v54  ;;  %5560 = vmatprep.subr.bf16.mxu1 %v7495_v55  ;;  %v7582_v54 = vld [vmem:[#allocation5 + $0x1284] ss:$16 sps:$4 sm:$0xff]   ;;  %v7585_v55 = vld [vmem:[#allocation5 + $0x128c] ss:$16 sps:$4 sm:$0xff]  }
 0x24c   :  { %5069 = vmatpush1.bf16.msra.mxu0 %v7490_v56  ;;  %5561 = vmatpush1.bf16.msra.mxu1 %v7493_v57  ;;  %v7580_v56 = vld [vmem:[#allocation5 + $0x1280] ss:$16 sps:$4 sm:$0xff]   ;;  %v7583_v57 = vld [vmem:[#allocation5 + $0x1288] ss:$16 sps:$4 sm:$0xff]  }
 0x24d   :  { %5070 = vmatprep.subr.bf16.mxu0 %v7498_v58  ;;  %5562 = vmatprep.subr.bf16.mxu1 %v7501_v59  ;;  %v7588_v58 = vld [vmem:[#allocation5 + $0x12a4] ss:$16 sps:$4 sm:$0xff]   ;;  %v7591_v59 = vld [vmem:[#allocation5 + $0x12ac] ss:$16 sps:$4 sm:$0xff]  }
 0x250   :  { %5071 = vmatpush1.bf16.msra.mxu0 %v7496_v60  ;;  %5563 = vmatpush1.bf16.msra.mxu1 %v7499_v61  ;;  %v7586_v60 = vld [vmem:[#allocation5 + $0x12a0] ss:$16 sps:$4 sm:$0xff]   ;;  %v7589_v61 = vld [vmem:[#allocation5 + $0x12a8] ss:$16 sps:$4 sm:$0xff]  }
 0x251   :  { %5072 = vmatprep.subr.bf16.mxu0 %v7504_v62  ;;  %5564 = vmatprep.subr.bf16.mxu1 %v7507_v63  ;;  %v7594_v62 = vld [vmem:[#allocation5 + $0x12c4] ss:$16 sps:$4 sm:$0xff]   ;;  %v7597_v63 = vld [vmem:[#allocation5 + $0x12cc] ss:$16 sps:$4 sm:$0xff]  }
 0x254   :  { %5073 = vmatpush1.bf16.msra.mxu0 %v7502_v0  ;;  %5565 = vmatpush1.bf16.msra.mxu1 %v7505_v1  ;;  %v7592_v0 = vld [vmem:[#allocation5 + $0x12c0] ss:$16 sps:$4 sm:$0xff]   ;;  %v7595_v1 = vld [vmem:[#allocation5 + $0x12c8] ss:$16 sps:$4 sm:$0xff]  }
 0x255   :  { %5074 = vmatprep.subr.bf16.mxu0 %v7510_v2  ;;  %5566 = vmatprep.subr.bf16.mxu1 %v7513_v3  ;;  %v7600_v2 = vld [vmem:[#allocation5 + $0x12e4] ss:$16 sps:$4 sm:$0xff]   ;;  %v7603_v3 = vld [vmem:[#allocation5 + $0x12ec] ss:$16 sps:$4 sm:$0xff]  }
 0x258   :  { %5075 = vmatpush1.bf16.msra.mxu0 %v7508_v4  ;;  %5567 = vmatpush1.bf16.msra.mxu1 %v7511_v5  ;;  %v7598_v4 = vld [vmem:[#allocation5 + $0x12e0] ss:$16 sps:$4 sm:$0xff]   ;;  %v7601_v5 = vld [vmem:[#allocation5 + $0x12e8] ss:$16 sps:$4 sm:$0xff]  }
 0x259   :  { %5076 = vmatprep.subr.bf16.mxu0 %v7516_v6  ;;  %5568 = vmatprep.subr.bf16.mxu1 %v7519_v7  ;;  %v7606_v6 = vld [vmem:[#allocation5 + $0x1304] ss:$16 sps:$4 sm:$0xff]   ;;  %v7609_v7 = vld [vmem:[#allocation5 + $0x130c] ss:$16 sps:$4 sm:$0xff]  }
 0x25c   :  { %5077 = vmatpush1.bf16.msra.mxu0 %v7514_v8  ;;  %5569 = vmatpush1.bf16.msra.mxu1 %v7517_v9  ;;  %v7604_v8 = vld [vmem:[#allocation5 + $0x1300] ss:$16 sps:$4 sm:$0xff]   ;;  %v7607_v9 = vld [vmem:[#allocation5 + $0x1308] ss:$16 sps:$4 sm:$0xff]  }
 0x25d   :  { %5078 = vmatprep.subr.bf16.mxu0 %v7522_v10  ;;  %5570 = vmatprep.subr.bf16.mxu1 %v7525_v11  ;;  %v7612_v10 = vld [vmem:[#allocation5 + $0x1324] ss:$16 sps:$4 sm:$0xff]   ;;  %v7615_v11 = vld [vmem:[#allocation5 + $0x132c] ss:$16 sps:$4 sm:$0xff]  }
 0x260   :  { %5079 = vmatpush1.bf16.msra.mxu0 %v7520_v12  ;;  %5571 = vmatpush1.bf16.msra.mxu1 %v7523_v13  ;;  %v7610_v12 = vld [vmem:[#allocation5 + $0x1320] ss:$16 sps:$4 sm:$0xff]   ;;  %v7613_v13 = vld [vmem:[#allocation5 + $0x1328] ss:$16 sps:$4 sm:$0xff]  }
 0x261   :  { %5080 = vmatprep.subr.bf16.mxu0 %v7528_v14  ;;  %5572 = vmatprep.subr.bf16.mxu1 %v7531_v15  ;;  %v7618_v14 = vld [vmem:[#allocation5 + $0x1344] ss:$16 sps:$4 sm:$0xff]   ;;  %v7621_v15 = vld [vmem:[#allocation5 + $0x134c] ss:$16 sps:$4 sm:$0xff]  }
 0x264   :  { %5081 = vmatpush1.bf16.msra.mxu0 %v7526_v16  ;;  %5573 = vmatpush1.bf16.msra.mxu1 %v7529_v17  ;;  %v7616_v16 = vld [vmem:[#allocation5 + $0x1340] ss:$16 sps:$4 sm:$0xff]   ;;  %v7619_v17 = vld [vmem:[#allocation5 + $0x1348] ss:$16 sps:$4 sm:$0xff]  }
 0x265   :  { %5082 = vmatprep.subr.bf16.mxu0 %v7534_v18  ;;  %5574 = vmatprep.subr.bf16.mxu1 %v7537_v19  ;;  %v7624_v18 = vld [vmem:[#allocation5 + $0x1364] ss:$16 sps:$4 sm:$0xff]   ;;  %v7627_v19 = vld [vmem:[#allocation5 + $0x136c] ss:$16 sps:$4 sm:$0xff]  }
 0x268   :  { %5083 = vmatpush1.bf16.msra.mxu0 %v7532_v20  ;;  %5575 = vmatpush1.bf16.msra.mxu1 %v7535_v21  ;;  %v7622_v20 = vld [vmem:[#allocation5 + $0x1360] ss:$16 sps:$4 sm:$0xff]   ;;  %v7625_v21 = vld [vmem:[#allocation5 + $0x1368] ss:$16 sps:$4 sm:$0xff]  }
 0x269   :  { %5084 = vmatprep.subr.bf16.mxu0 %v7540_v22  ;;  %5576 = vmatprep.subr.bf16.mxu1 %v7543_v23  ;;  %v7630_v22 = vld [vmem:[#allocation5 + $0x1384] ss:$16 sps:$4 sm:$0xff]   ;;  %v7633_v23 = vld [vmem:[#allocation5 + $0x138c] ss:$16 sps:$4 sm:$0xff]  }
 0x26c   :  { %5085 = vmatpush1.bf16.msra.mxu0 %v7538_v24  ;;  %5577 = vmatpush1.bf16.msra.mxu1 %v7541_v25  ;;  %v7628_v24 = vld [vmem:[#allocation5 + $0x1380] ss:$16 sps:$4 sm:$0xff]   ;;  %v7631_v25 = vld [vmem:[#allocation5 + $0x1388] ss:$16 sps:$4 sm:$0xff]  }
 0x26d   :  { %5086 = vmatprep.subr.bf16.mxu0 %v7546_v26  ;;  %5578 = vmatprep.subr.bf16.mxu1 %v7549_v27  ;;  %v7636_v26 = vld [vmem:[#allocation5 + $0x13a4] ss:$16 sps:$4 sm:$0xff]   ;;  %v7639_v27 = vld [vmem:[#allocation5 + $0x13ac] ss:$16 sps:$4 sm:$0xff]  }
 0x270   :  { %5087 = vmatpush1.bf16.msra.mxu0 %v7544_v28  ;;  %5579 = vmatpush1.bf16.msra.mxu1 %v7547_v29  ;;  %v7634_v28 = vld [vmem:[#allocation5 + $0x13a0] ss:$16 sps:$4 sm:$0xff]   ;;  %v7637_v29 = vld [vmem:[#allocation5 + $0x13a8] ss:$16 sps:$4 sm:$0xff]  }
 0x271   :  { %5088 = vmatprep.subr.bf16.mxu0 %v7552_v30  ;;  %5580 = vmatprep.subr.bf16.mxu1 %v7555_v31  ;;  %v7642_v30 = vld [vmem:[#allocation5 + $0x13c4] ss:$16 sps:$4 sm:$0xff]   ;;  %v7645_v31 = vld [vmem:[#allocation5 + $0x13cc] ss:$16 sps:$4 sm:$0xff]  }
 0x274   :  { %5089 = vmatpush1.bf16.msra.mxu0 %v7550_v32  ;;  %5581 = vmatpush1.bf16.msra.mxu1 %v7553_v33  ;;  %v7640_v32 = vld [vmem:[#allocation5 + $0x13c0] ss:$16 sps:$4 sm:$0xff]   ;;  %v7643_v33 = vld [vmem:[#allocation5 + $0x13c8] ss:$16 sps:$4 sm:$0xff]  }
 0x275   :  { %5099 = vmatprep.subr.bf16.mxu0 %v7558_v35  ;;  %5591 = vmatprep.subr.bf16.mxu1 %v7561_v36  ;;  %v7651_v35 = vld [vmem:[#allocation5 + $0x13ec] ss:$16 sps:$4 sm:$0xff]   ;;  %v7646_v36 = vld [vmem:[#allocation5 + $0x13e0] ss:$16 sps:$4 sm:$0xff]  }
 0x277   :  { %5091 = vmatmul.mubr.bf16.vlgmr.msra.gmra.mrb[0].mxu0 %v92_v37  ;;  %5583 = vmatmul.mubr.bf16.vlgmr.msra.gmra.mrb[0].mxu1 %v92_v37  ;;  %v7649_v37 = vld [vmem:[#allocation5 + $0x13e8] ss:$16 sps:$4 sm:$0xff]  }
 0x278   :  { %5100 = vmatpush1.bf16.msra.mxu0 %v7556_v39  ;;  %5592 = vmatpush1.bf16.msra.mxu1 %v7559_v40  ;;  %v7654_v39 = vld [vmem:[#allocation5 + $0x1404] ss:$16 sps:$4 sm:$0xff]   ;;  %v7657_v40 = vld [vmem:[#allocation5 + $0x140c] ss:$16 sps:$4 sm:$0xff]  }
 0x279   :  { %5101 = vmatprep.subr.bf16.mxu0 %v7564_v41  ;;  %5593 = vmatprep.subr.bf16.mxu1 %v7567_v42  ;;  %v94_v41 = vpack.c.bf16 %v70_v38, %v70_v38  ;;  %v73_v42 = vld [vmem:[#allocation2 + $0xa8] sm:$0xff]  ;;  %v7744_v38 = vld [vmem:[#allocation5 + $0x15e4] ss:$16 sps:$4 sm:$0xff]  }
 0x27a   :  { %5131 = vmatprep.mubr.bf16.mxu0 %v95_v43  ;;  %5623 = vmatprep.mubr.bf16.mxu1 %v95_v43  ;;  %v7652_v43 = vld [vmem:[#allocation5 + $0x1400] ss:$16 sps:$4 sm:$0xff]  }
 0x27c   :  { %5102 = vmatpush1.bf16.msra.mxu0 %v7562_v44  ;;  %5594 = vmatpush1.bf16.msra.mxu1 %v7565_v45  ;;  %v7655_v44 = vld [vmem:[#allocation5 + $0x1408] ss:$16 sps:$4 sm:$0xff]   ;;  %v7660_v45 = vld [vmem:[#allocation5 + $0x1424] ss:$16 sps:$4 sm:$0xff]  }
 0x27d   :  { %5103 = vmatprep.subr.bf16.mxu0 %v7570_v46  ;;  %5595 = vmatprep.subr.bf16.mxu1 %v7573_v47  ;;  %v7663_v46 = vld [vmem:[#allocation5 + $0x142c] ss:$16 sps:$4 sm:$0xff]   ;;  %v97_v47 = vpack.c.bf16 %v73_v42, %v73_v42  ;;  %v72_v42 = vld [vmem:[#allocation2 + $0xa0] sm:$0xff] }
 0x280   :  { %5104 = vmatpush1.bf16.msra.mxu0 %v7568_v48  ;;  %5596 = vmatpush1.bf16.msra.mxu1 %v7571_v49  ;;  %v7658_v48 = vld [vmem:[#allocation5 + $0x1420] ss:$16 sps:$4 sm:$0xff]   ;;  %v7661_v49 = vld [vmem:[#allocation5 + $0x1428] ss:$16 sps:$4 sm:$0xff]  }
 0x281   :  { %5105 = vmatprep.subr.bf16.mxu0 %v7576_v50  ;;  %5597 = vmatprep.subr.bf16.mxu1 %v7579_v51  ;;  %v7666_v50 = vld [vmem:[#allocation5 + $0x1444] ss:$16 sps:$4 sm:$0xff]   ;;  %v7669_v51 = vld [vmem:[#allocation5 + $0x144c] ss:$16 sps:$4 sm:$0xff]  }
 0x284   :  { %5106 = vmatpush1.bf16.msra.mxu0 %v7574_v52  ;;  %5598 = vmatpush1.bf16.msra.mxu1 %v7577_v53  ;;  %v7664_v52 = vld [vmem:[#allocation5 + $0x1440] ss:$16 sps:$4 sm:$0xff]   ;;  %v7667_v53 = vld [vmem:[#allocation5 + $0x1448] ss:$16 sps:$4 sm:$0xff]  }
 0x285   :  { %5107 = vmatprep.subr.bf16.mxu0 %v7582_v54  ;;  %5599 = vmatprep.subr.bf16.mxu1 %v7585_v55  ;;  %v7672_v54 = vld [vmem:[#allocation5 + $0x1464] ss:$16 sps:$4 sm:$0xff]   ;;  %v7675_v55 = vld [vmem:[#allocation5 + $0x146c] ss:$16 sps:$4 sm:$0xff]  }
 0x288   :  { %5108 = vmatpush1.bf16.msra.mxu0 %v7580_v56  ;;  %5600 = vmatpush1.bf16.msra.mxu1 %v7583_v57  ;;  %v7670_v56 = vld [vmem:[#allocation5 + $0x1460] ss:$16 sps:$4 sm:$0xff]   ;;  %v7673_v57 = vld [vmem:[#allocation5 + $0x1468] ss:$16 sps:$4 sm:$0xff]  }
 0x289   :  { %5109 = vmatprep.subr.bf16.mxu0 %v7588_v58  ;;  %5601 = vmatprep.subr.bf16.mxu1 %v7591_v59  ;;  %v7678_v58 = vld [vmem:[#allocation5 + $0x1484] ss:$16 sps:$4 sm:$0xff]   ;;  %v7681_v59 = vld [vmem:[#allocation5 + $0x148c] ss:$16 sps:$4 sm:$0xff]  }
 0x28c   :  { %5110 = vmatpush1.bf16.msra.mxu0 %v7586_v60  ;;  %5602 = vmatpush1.bf16.msra.mxu1 %v7589_v61  ;;  %v7676_v60 = vld [vmem:[#allocation5 + $0x1480] ss:$16 sps:$4 sm:$0xff]   ;;  %v7679_v61 = vld [vmem:[#allocation5 + $0x1488] ss:$16 sps:$4 sm:$0xff]  }
 0x28d   :  { %5111 = vmatprep.subr.bf16.mxu0 %v7594_v62  ;;  %5603 = vmatprep.subr.bf16.mxu1 %v7597_v63  ;;  %v7684_v62 = vld [vmem:[#allocation5 + $0x14a4] ss:$16 sps:$4 sm:$0xff]   ;;  %v7687_v63 = vld [vmem:[#allocation5 + $0x14ac] ss:$16 sps:$4 sm:$0xff]  }
 0x290   :  { %5112 = vmatpush1.bf16.msra.mxu0 %v7592_v0  ;;  %5604 = vmatpush1.bf16.msra.mxu1 %v7595_v1  ;;  %v7682_v0 = vld [vmem:[#allocation5 + $0x14a0] ss:$16 sps:$4 sm:$0xff]   ;;  %v7685_v1 = vld [vmem:[#allocation5 + $0x14a8] ss:$16 sps:$4 sm:$0xff]  }
 0x291   :  { %5113 = vmatprep.subr.bf16.mxu0 %v7600_v2  ;;  %5605 = vmatprep.subr.bf16.mxu1 %v7603_v3  ;;  %v7690_v2 = vld [vmem:[#allocation5 + $0x14c4] ss:$16 sps:$4 sm:$0xff]   ;;  %v7693_v3 = vld [vmem:[#allocation5 + $0x14cc] ss:$16 sps:$4 sm:$0xff]  }
 0x294   :  { %5114 = vmatpush1.bf16.msra.mxu0 %v7598_v4  ;;  %5606 = vmatpush1.bf16.msra.mxu1 %v7601_v5  ;;  %v7688_v4 = vld [vmem:[#allocation5 + $0x14c0] ss:$16 sps:$4 sm:$0xff]   ;;  %v7691_v5 = vld [vmem:[#allocation5 + $0x14c8] ss:$16 sps:$4 sm:$0xff]  }
 0x295   :  { %5115 = vmatprep.subr.bf16.mxu0 %v7606_v6  ;;  %5607 = vmatprep.subr.bf16.mxu1 %v7609_v7  ;;  %v7696_v6 = vld [vmem:[#allocation5 + $0x14e4] ss:$16 sps:$4 sm:$0xff]   ;;  %v7699_v7 = vld [vmem:[#allocation5 + $0x14ec] ss:$16 sps:$4 sm:$0xff]  }
 0x298   :  { %5116 = vmatpush1.bf16.msra.mxu0 %v7604_v8  ;;  %5608 = vmatpush1.bf16.msra.mxu1 %v7607_v9  ;;  %v7694_v8 = vld [vmem:[#allocation5 + $0x14e0] ss:$16 sps:$4 sm:$0xff]   ;;  %v7697_v9 = vld [vmem:[#allocation5 + $0x14e8] ss:$16 sps:$4 sm:$0xff]  }
 0x299   :  { %5117 = vmatprep.subr.bf16.mxu0 %v7612_v10  ;;  %5609 = vmatprep.subr.bf16.mxu1 %v7615_v11  ;;  %v7702_v10 = vld [vmem:[#allocation5 + $0x1504] ss:$16 sps:$4 sm:$0xff]   ;;  %v7705_v11 = vld [vmem:[#allocation5 + $0x150c] ss:$16 sps:$4 sm:$0xff]  }
 0x29c   :  { %5118 = vmatpush1.bf16.msra.mxu0 %v7610_v12  ;;  %5610 = vmatpush1.bf16.msra.mxu1 %v7613_v13  ;;  %v7700_v12 = vld [vmem:[#allocation5 + $0x1500] ss:$16 sps:$4 sm:$0xff]   ;;  %v7703_v13 = vld [vmem:[#allocation5 + $0x1508] ss:$16 sps:$4 sm:$0xff]  }
 0x29d   :  { %5119 = vmatprep.subr.bf16.mxu0 %v7618_v14  ;;  %5611 = vmatprep.subr.bf16.mxu1 %v7621_v15  ;;  %v7708_v14 = vld [vmem:[#allocation5 + $0x1524] ss:$16 sps:$4 sm:$0xff]   ;;  %v7711_v15 = vld [vmem:[#allocation5 + $0x152c] ss:$16 sps:$4 sm:$0xff]  }
 0x2a0   :  { %5120 = vmatpush1.bf16.msra.mxu0 %v7616_v16  ;;  %5612 = vmatpush1.bf16.msra.mxu1 %v7619_v17  ;;  %v7706_v16 = vld [vmem:[#allocation5 + $0x1520] ss:$16 sps:$4 sm:$0xff]   ;;  %v7709_v17 = vld [vmem:[#allocation5 + $0x1528] ss:$16 sps:$4 sm:$0xff]  }
 0x2a1   :  { %5121 = vmatprep.subr.bf16.mxu0 %v7624_v18  ;;  %5613 = vmatprep.subr.bf16.mxu1 %v7627_v19  ;;  %v7714_v18 = vld [vmem:[#allocation5 + $0x1544] ss:$16 sps:$4 sm:$0xff]   ;;  %v7717_v19 = vld [vmem:[#allocation5 + $0x154c] ss:$16 sps:$4 sm:$0xff]  }
 0x2a4   :  { %5122 = vmatpush1.bf16.msra.mxu0 %v7622_v20  ;;  %5614 = vmatpush1.bf16.msra.mxu1 %v7625_v21  ;;  %v7712_v20 = vld [vmem:[#allocation5 + $0x1540] ss:$16 sps:$4 sm:$0xff]   ;;  %v7715_v21 = vld [vmem:[#allocation5 + $0x1548] ss:$16 sps:$4 sm:$0xff]  }
 0x2a5   :  { %5123 = vmatprep.subr.bf16.mxu0 %v7630_v22  ;;  %5615 = vmatprep.subr.bf16.mxu1 %v7633_v23  ;;  %v7720_v22 = vld [vmem:[#allocation5 + $0x1564] ss:$16 sps:$4 sm:$0xff]   ;;  %v7723_v23 = vld [vmem:[#allocation5 + $0x156c] ss:$16 sps:$4 sm:$0xff]  }
 0x2a8   :  { %5124 = vmatpush1.bf16.msra.mxu0 %v7628_v24  ;;  %5616 = vmatpush1.bf16.msra.mxu1 %v7631_v25  ;;  %v7718_v24 = vld [vmem:[#allocation5 + $0x1560] ss:$16 sps:$4 sm:$0xff]   ;;  %v7721_v25 = vld [vmem:[#allocation5 + $0x1568] ss:$16 sps:$4 sm:$0xff]  }
 0x2a9   :  { %5125 = vmatprep.subr.bf16.mxu0 %v7636_v26  ;;  %5617 = vmatprep.subr.bf16.mxu1 %v7639_v27  ;;  %v7726_v26 = vld [vmem:[#allocation5 + $0x1584] ss:$16 sps:$4 sm:$0xff]   ;;  %v7729_v27 = vld [vmem:[#allocation5 + $0x158c] ss:$16 sps:$4 sm:$0xff]  }
 0x2ac   :  { %5126 = vmatpush1.bf16.msra.mxu0 %v7634_v28  ;;  %5618 = vmatpush1.bf16.msra.mxu1 %v7637_v29  ;;  %v7724_v28 = vld [vmem:[#allocation5 + $0x1580] ss:$16 sps:$4 sm:$0xff]   ;;  %v7727_v29 = vld [vmem:[#allocation5 + $0x1588] ss:$16 sps:$4 sm:$0xff]  }
 0x2ad   :  { %5127 = vmatprep.subr.bf16.mxu0 %v7642_v30  ;;  %5619 = vmatprep.subr.bf16.mxu1 %v7645_v31  ;;  %v7732_v30 = vld [vmem:[#allocation5 + $0x15a4] ss:$16 sps:$4 sm:$0xff]   ;;  %v7735_v31 = vld [vmem:[#allocation5 + $0x15ac] ss:$16 sps:$4 sm:$0xff]  }
 0x2b0   :  { %5128 = vmatpush1.bf16.msra.mxu0 %v7640_v32  ;;  %5620 = vmatpush1.bf16.msra.mxu1 %v7643_v33  ;;  %v7730_v32 = vld [vmem:[#allocation5 + $0x15a0] ss:$16 sps:$4 sm:$0xff]   ;;  %v7733_v33 = vld [vmem:[#allocation5 + $0x15a8] ss:$16 sps:$4 sm:$0xff]  }
 0x2b1   :  { %5129 = vmatprep.subr.bf16.mxu0 %v7648_v34  ;;  %5621 = vmatprep.subr.bf16.mxu1 %v7651_v35  ;;  %v7738_v34 = vld [vmem:[#allocation5 + $0x15c4] ss:$16 sps:$4 sm:$0xff]   ;;  %v7741_v35 = vld [vmem:[#allocation5 + $0x15cc] ss:$16 sps:$4 sm:$0xff]  }
 0x2b4   :  { %5130 = vmatpush1.bf16.msra.mxu0 %v7646_v36  ;;  %5622 = vmatpush1.bf16.msra.mxu1 %v7649_v37  ;;  %v7736_v36 = vld [vmem:[#allocation5 + $0x15c0] ss:$16 sps:$4 sm:$0xff]   ;;  %v7739_v37 = vld [vmem:[#allocation5 + $0x15c8] ss:$16 sps:$4 sm:$0xff]  }
 0x2b5   :  { %5140 = vmatprep.subr.bf16.mxu0 %v7654_v39  ;;  %5632 = vmatprep.subr.bf16.mxu1 %v7657_v40  ;;  %v7747_v39 = vld [vmem:[#allocation5 + $0x15ec] ss:$16 sps:$4 sm:$0xff]   ;;  %v7742_v40 = vld [vmem:[#allocation5 + $0x15e0] ss:$16 sps:$4 sm:$0xff]  }
 0x2b7   :  { %5132 = vmatmul.mubr.bf16.vlgmr.msra.gmra.mrb[0].mxu0 %v94_v41  ;;  %5624 = vmatmul.mubr.bf16.vlgmr.msra.gmra.mrb[0].mxu1 %v94_v41  ;;  %v7745_v41 = vld [vmem:[#allocation5 + $0x15e8] ss:$16 sps:$4 sm:$0xff]  }
 0x2b8   :  { %5141 = vmatpush1.bf16.msra.mxu0 %v7652_v43  ;;  %5633 = vmatpush1.bf16.msra.mxu1 %v7655_v44  ;;  %v7750_v43 = vld [vmem:[#allocation5 + $0x1604] ss:$16 sps:$4 sm:$0xff]   ;;  %v7753_v44 = vld [vmem:[#allocation5 + $0x160c] ss:$16 sps:$4 sm:$0xff]  }
 0x2b9   :  { %5142 = vmatprep.subr.bf16.mxu0 %v7660_v45  ;;  %5634 = vmatprep.subr.bf16.mxu1 %v7663_v46  ;;  %v96_v45 = vpack.c.bf16 %v72_v42, %v72_v42  ;;  %v75_v46 = vld [vmem:[#allocation2 + $0xb8] sm:$0xff]  ;;  %v7840_v42 = vld [vmem:[#allocation5 + $0x17e4] ss:$16 sps:$4 sm:$0xff]  }
 0x2ba   :  { %5172 = vmatprep.mubr.bf16.mxu0 %v97_v47  ;;  %5664 = vmatprep.mubr.bf16.mxu1 %v97_v47  ;;  %v7748_v47 = vld [vmem:[#allocation5 + $0x1600] ss:$16 sps:$4 sm:$0xff]  }
 0x2bc   :  { %5143 = vmatpush1.bf16.msra.mxu0 %v7658_v48  ;;  %5635 = vmatpush1.bf16.msra.mxu1 %v7661_v49  ;;  %v7751_v48 = vld [vmem:[#allocation5 + $0x1608] ss:$16 sps:$4 sm:$0xff]   ;;  %v7756_v49 = vld [vmem:[#allocation5 + $0x1624] ss:$16 sps:$4 sm:$0xff]  }
 0x2bd   :  { %5144 = vmatprep.subr.bf16.mxu0 %v7666_v50  ;;  %5636 = vmatprep.subr.bf16.mxu1 %v7669_v51  ;;  %v7759_v50 = vld [vmem:[#allocation5 + $0x162c] ss:$16 sps:$4 sm:$0xff]   ;;  %v99_v51 = vpack.c.bf16 %v75_v46, %v75_v46  ;;  %v74_v46 = vld [vmem:[#allocation2 + $0xb0] sm:$0xff] }
 0x2c0   :  { %5145 = vmatpush1.bf16.msra.mxu0 %v7664_v52  ;;  %5637 = vmatpush1.bf16.msra.mxu1 %v7667_v53  ;;  %v7754_v52 = vld [vmem:[#allocation5 + $0x1620] ss:$16 sps:$4 sm:$0xff]   ;;  %v7757_v53 = vld [vmem:[#allocation5 + $0x1628] ss:$16 sps:$4 sm:$0xff]  }
 0x2c1   :  { %5146 = vmatprep.subr.bf16.mxu0 %v7672_v54  ;;  %5638 = vmatprep.subr.bf16.mxu1 %v7675_v55  ;;  %v7762_v54 = vld [vmem:[#allocation5 + $0x1644] ss:$16 sps:$4 sm:$0xff]   ;;  %v7765_v55 = vld [vmem:[#allocation5 + $0x164c] ss:$16 sps:$4 sm:$0xff]  }
 0x2c4   :  { %5147 = vmatpush1.bf16.msra.mxu0 %v7670_v56  ;;  %5639 = vmatpush1.bf16.msra.mxu1 %v7673_v57  ;;  %v7760_v56 = vld [vmem:[#allocation5 + $0x1640] ss:$16 sps:$4 sm:$0xff]   ;;  %v7763_v57 = vld [vmem:[#allocation5 + $0x1648] ss:$16 sps:$4 sm:$0xff]  }
 0x2c5   :  { %5148 = vmatprep.subr.bf16.mxu0 %v7678_v58  ;;  %5640 = vmatprep.subr.bf16.mxu1 %v7681_v59  ;;  %v7768_v58 = vld [vmem:[#allocation5 + $0x1664] ss:$16 sps:$4 sm:$0xff]   ;;  %v7771_v59 = vld [vmem:[#allocation5 + $0x166c] ss:$16 sps:$4 sm:$0xff]  }
 0x2c8   :  { %5149 = vmatpush1.bf16.msra.mxu0 %v7676_v60  ;;  %5641 = vmatpush1.bf16.msra.mxu1 %v7679_v61  ;;  %v7766_v60 = vld [vmem:[#allocation5 + $0x1660] ss:$16 sps:$4 sm:$0xff]   ;;  %v7769_v61 = vld [vmem:[#allocation5 + $0x1668] ss:$16 sps:$4 sm:$0xff]  }
 0x2c9   :  { %5150 = vmatprep.subr.bf16.mxu0 %v7684_v62  ;;  %5642 = vmatprep.subr.bf16.mxu1 %v7687_v63  ;;  %v7774_v62 = vld [vmem:[#allocation5 + $0x1684] ss:$16 sps:$4 sm:$0xff]   ;;  %v7777_v63 = vld [vmem:[#allocation5 + $0x168c] ss:$16 sps:$4 sm:$0xff]  }
 0x2cc   :  { %5151 = vmatpush1.bf16.msra.mxu0 %v7682_v0  ;;  %5643 = vmatpush1.bf16.msra.mxu1 %v7685_v1  ;;  %v7772_v0 = vld [vmem:[#allocation5 + $0x1680] ss:$16 sps:$4 sm:$0xff]   ;;  %v7775_v1 = vld [vmem:[#allocation5 + $0x1688] ss:$16 sps:$4 sm:$0xff]  }
 0x2cd   :  { %5152 = vmatprep.subr.bf16.mxu0 %v7690_v2  ;;  %5644 = vmatprep.subr.bf16.mxu1 %v7693_v3  ;;  %v7780_v2 = vld [vmem:[#allocation5 + $0x16a4] ss:$16 sps:$4 sm:$0xff]   ;;  %v7783_v3 = vld [vmem:[#allocation5 + $0x16ac] ss:$16 sps:$4 sm:$0xff]  }
 0x2d0   :  { %5153 = vmatpush1.bf16.msra.mxu0 %v7688_v4  ;;  %5645 = vmatpush1.bf16.msra.mxu1 %v7691_v5  ;;  %v7778_v4 = vld [vmem:[#allocation5 + $0x16a0] ss:$16 sps:$4 sm:$0xff]   ;;  %v7781_v5 = vld [vmem:[#allocation5 + $0x16a8] ss:$16 sps:$4 sm:$0xff]  }
 0x2d1   :  { %5154 = vmatprep.subr.bf16.mxu0 %v7696_v6  ;;  %5646 = vmatprep.subr.bf16.mxu1 %v7699_v7  ;;  %v7786_v6 = vld [vmem:[#allocation5 + $0x16c4] ss:$16 sps:$4 sm:$0xff]   ;;  %v7789_v7 = vld [vmem:[#allocation5 + $0x16cc] ss:$16 sps:$4 sm:$0xff]  }
 0x2d4   :  { %5155 = vmatpush1.bf16.msra.mxu0 %v7694_v8  ;;  %5647 = vmatpush1.bf16.msra.mxu1 %v7697_v9  ;;  %v7784_v8 = vld [vmem:[#allocation5 + $0x16c0] ss:$16 sps:$4 sm:$0xff]   ;;  %v7787_v9 = vld [vmem:[#allocation5 + $0x16c8] ss:$16 sps:$4 sm:$0xff]  }
 0x2d5   :  { %5156 = vmatprep.subr.bf16.mxu0 %v7702_v10  ;;  %5648 = vmatprep.subr.bf16.mxu1 %v7705_v11  ;;  %v7792_v10 = vld [vmem:[#allocation5 + $0x16e4] ss:$16 sps:$4 sm:$0xff]   ;;  %v7795_v11 = vld [vmem:[#allocation5 + $0x16ec] ss:$16 sps:$4 sm:$0xff]  }
 0x2d8   :  { %5157 = vmatpush1.bf16.msra.mxu0 %v7700_v12  ;;  %5649 = vmatpush1.bf16.msra.mxu1 %v7703_v13  ;;  %v7790_v12 = vld [vmem:[#allocation5 + $0x16e0] ss:$16 sps:$4 sm:$0xff]   ;;  %v7793_v13 = vld [vmem:[#allocation5 + $0x16e8] ss:$16 sps:$4 sm:$0xff]  }
 0x2d9   :  { %5158 = vmatprep.subr.bf16.mxu0 %v7708_v14  ;;  %5650 = vmatprep.subr.bf16.mxu1 %v7711_v15  ;;  %v7798_v14 = vld [vmem:[#allocation5 + $0x1704] ss:$16 sps:$4 sm:$0xff]   ;;  %v7801_v15 = vld [vmem:[#allocation5 + $0x170c] ss:$16 sps:$4 sm:$0xff]  }
 0x2dc   :  { %5159 = vmatpush1.bf16.msra.mxu0 %v7706_v16  ;;  %5651 = vmatpush1.bf16.msra.mxu1 %v7709_v17  ;;  %v7796_v16 = vld [vmem:[#allocation5 + $0x1700] ss:$16 sps:$4 sm:$0xff]   ;;  %v7799_v17 = vld [vmem:[#allocation5 + $0x1708] ss:$16 sps:$4 sm:$0xff]  }
 0x2dd   :  { %5160 = vmatprep.subr.bf16.mxu0 %v7714_v18  ;;  %5652 = vmatprep.subr.bf16.mxu1 %v7717_v19  ;;  %v7804_v18 = vld [vmem:[#allocation5 + $0x1724] ss:$16 sps:$4 sm:$0xff]   ;;  %v7807_v19 = vld [vmem:[#allocation5 + $0x172c] ss:$16 sps:$4 sm:$0xff]  }
 0x2e0   :  { %5161 = vmatpush1.bf16.msra.mxu0 %v7712_v20  ;;  %5653 = vmatpush1.bf16.msra.mxu1 %v7715_v21  ;;  %v7802_v20 = vld [vmem:[#allocation5 + $0x1720] ss:$16 sps:$4 sm:$0xff]   ;;  %v7805_v21 = vld [vmem:[#allocation5 + $0x1728] ss:$16 sps:$4 sm:$0xff]  }
 0x2e1   :  { %5162 = vmatprep.subr.bf16.mxu0 %v7720_v22  ;;  %5654 = vmatprep.subr.bf16.mxu1 %v7723_v23  ;;  %v7810_v22 = vld [vmem:[#allocation5 + $0x1744] ss:$16 sps:$4 sm:$0xff]   ;;  %v7813_v23 = vld [vmem:[#allocation5 + $0x174c] ss:$16 sps:$4 sm:$0xff]  }
 0x2e4   :  { %5163 = vmatpush1.bf16.msra.mxu0 %v7718_v24  ;;  %5655 = vmatpush1.bf16.msra.mxu1 %v7721_v25  ;;  %v7808_v24 = vld [vmem:[#allocation5 + $0x1740] ss:$16 sps:$4 sm:$0xff]   ;;  %v7811_v25 = vld [vmem:[#allocation5 + $0x1748] ss:$16 sps:$4 sm:$0xff]  }
 0x2e5   :  { %5164 = vmatprep.subr.bf16.mxu0 %v7726_v26  ;;  %5656 = vmatprep.subr.bf16.mxu1 %v7729_v27  ;;  %v7816_v26 = vld [vmem:[#allocation5 + $0x1764] ss:$16 sps:$4 sm:$0xff]   ;;  %v7819_v27 = vld [vmem:[#allocation5 + $0x176c] ss:$16 sps:$4 sm:$0xff]  }
 0x2e8   :  { %5165 = vmatpush1.bf16.msra.mxu0 %v7724_v28  ;;  %5657 = vmatpush1.bf16.msra.mxu1 %v7727_v29  ;;  %v7814_v28 = vld [vmem:[#allocation5 + $0x1760] ss:$16 sps:$4 sm:$0xff]   ;;  %v7817_v29 = vld [vmem:[#allocation5 + $0x1768] ss:$16 sps:$4 sm:$0xff]  }
 0x2e9   :  { %5166 = vmatprep.subr.bf16.mxu0 %v7732_v30  ;;  %5658 = vmatprep.subr.bf16.mxu1 %v7735_v31  ;;  %v7822_v30 = vld [vmem:[#allocation5 + $0x1784] ss:$16 sps:$4 sm:$0xff]   ;;  %v7825_v31 = vld [vmem:[#allocation5 + $0x178c] ss:$16 sps:$4 sm:$0xff]  }
 0x2ec   :  { %5167 = vmatpush1.bf16.msra.mxu0 %v7730_v32  ;;  %5659 = vmatpush1.bf16.msra.mxu1 %v7733_v33  ;;  %v7820_v32 = vld [vmem:[#allocation5 + $0x1780] ss:$16 sps:$4 sm:$0xff]   ;;  %v7823_v33 = vld [vmem:[#allocation5 + $0x1788] ss:$16 sps:$4 sm:$0xff]  }
 0x2ed   :  { %5168 = vmatprep.subr.bf16.mxu0 %v7738_v34  ;;  %5660 = vmatprep.subr.bf16.mxu1 %v7741_v35  ;;  %v7828_v34 = vld [vmem:[#allocation5 + $0x17a4] ss:$16 sps:$4 sm:$0xff]   ;;  %v7831_v35 = vld [vmem:[#allocation5 + $0x17ac] ss:$16 sps:$4 sm:$0xff]  }
 0x2f0   :  { %5169 = vmatpush1.bf16.msra.mxu0 %v7736_v36  ;;  %5661 = vmatpush1.bf16.msra.mxu1 %v7739_v37  ;;  %v7826_v36 = vld [vmem:[#allocation5 + $0x17a0] ss:$16 sps:$4 sm:$0xff]   ;;  %v7829_v37 = vld [vmem:[#allocation5 + $0x17a8] ss:$16 sps:$4 sm:$0xff]  }
 0x2f1   :  { %5170 = vmatprep.subr.bf16.mxu0 %v7744_v38  ;;  %5662 = vmatprep.subr.bf16.mxu1 %v7747_v39  ;;  %v7834_v38 = vld [vmem:[#allocation5 + $0x17c4] ss:$16 sps:$4 sm:$0xff]   ;;  %v7837_v39 = vld [vmem:[#allocation5 + $0x17cc] ss:$16 sps:$4 sm:$0xff]  }
 0x2f4   :  { %5171 = vmatpush1.bf16.msra.mxu0 %v7742_v40  ;;  %5663 = vmatpush1.bf16.msra.mxu1 %v7745_v41  ;;  %v7832_v40 = vld [vmem:[#allocation5 + $0x17c0] ss:$16 sps:$4 sm:$0xff]   ;;  %v7835_v41 = vld [vmem:[#allocation5 + $0x17c8] ss:$16 sps:$4 sm:$0xff]  }
 0x2f5   :  { %5181 = vmatprep.subr.bf16.mxu0 %v7750_v43  ;;  %5673 = vmatprep.subr.bf16.mxu1 %v7753_v44  ;;  %v7843_v43 = vld [vmem:[#allocation5 + $0x17ec] ss:$16 sps:$4 sm:$0xff]   ;;  %v7838_v44 = vld [vmem:[#allocation5 + $0x17e0] ss:$16 sps:$4 sm:$0xff]  }
 0x2f7   :  { %5173 = vmatmul.mubr.bf16.vlgmr.msra.gmra.mrb[0].mxu0 %v96_v45  ;;  %5665 = vmatmul.mubr.bf16.vlgmr.msra.gmra.mrb[0].mxu1 %v96_v45  ;;  %v7841_v45 = vld [vmem:[#allocation5 + $0x17e8] ss:$16 sps:$4 sm:$0xff]  }
 0x2f8   :  { %5182 = vmatpush1.bf16.msra.mxu0 %v7748_v47  ;;  %5674 = vmatpush1.bf16.msra.mxu1 %v7751_v48  ;;  %v98_v47 = vpack.c.bf16 %v74_v46, %v74_v46  ;;  %v7963_v48 = vmov 0  }
 0x2f9   :  { %5183 = vmatprep.subr.bf16.mxu0 %v7756_v49  ;;  %5675 = vmatprep.subr.bf16.mxu1 %v7759_v50  ;;  %v870_v49 = vlaneseq }
 0x2fa   :  { %5213 = vmatprep.mubr.bf16.mxu0 %v99_v51  ;;  %5705 = vmatprep.mubr.bf16.mxu1 %v99_v51 }
 0x2fb   :  { %6690 = vset.pattern.permute.xlu0 %v7963_v48  ;;  %6691 = vset.pattern.permute.xlu1 %v7963_v48  ;;  %v8023_v50 = vshrl.u32 %v870_v49, 7 }
 0x2fc   :  { %5184 = vmatpush1.bf16.msra.mxu0 %v7754_v52  ;;  %5676 = vmatpush1.bf16.msra.mxu1 %v7757_v53  ;;  %v868_v53 = vld [vmem:[#allocation7] ss:$4 sm:$0xf] }
 0x2fd   :  { %5185 = vmatprep.subr.bf16.mxu0 %v7762_v54  ;;  %5677 = vmatprep.subr.bf16.mxu1 %v7765_v55  ;;  %v8026_v51 = vsub.s32 0, %v8023_v50  ;;  %v880_v52 = vsub.s32 2, %v8023_v50  ;;  %v876_v54 = vsub.s32 1, %v8023_v50  ;;  %v884_v55 = vsub.s32 3, %v8023_v50 }
 0x300   :  { %5186 = vmatpush1.bf16.msra.mxu0 %v7760_v56  ;;  %5678 = vmatpush1.bf16.msra.mxu1 %v7763_v57  ;;  %v873_v56 = vrot.slane %v868_v53, %v8026_v51  ;;  %v881_v57 = vrot.slane %v868_v53, %v880_v52 }
 0x301   :  { %5187 = vmatprep.subr.bf16.mxu0 %v7768_v58  ;;  %5679 = vmatprep.subr.bf16.mxu1 %v7771_v59  ;;  %v877_v58 = vrot.slane %v868_v53, %v876_v54  ;;  %v885_v59 = vrot.slane %v868_v53, %v884_v55 }
 0x304   :  { %5188 = vmatpush1.bf16.msra.mxu0 %v7766_v60  ;;  %5680 = vmatpush1.bf16.msra.mxu1 %v7769_v61 }
 0x305   :  { %5189 = vmatprep.subr.bf16.mxu0 %v7774_v62  ;;  %5681 = vmatprep.subr.bf16.mxu1 %v7777_v63 }
 0x308   :  { %5190 = vmatpush1.bf16.msra.mxu0 %v7772_v0  ;;  %5682 = vmatpush1.bf16.msra.mxu1 %v7775_v1 }
 0x309   :  { %5191 = vmatprep.subr.bf16.mxu0 %v7780_v2  ;;  %5683 = vmatprep.subr.bf16.mxu1 %v7783_v3 }
 0x30c   :  { %5192 = vmatpush1.bf16.msra.mxu0 %v7778_v4  ;;  %5684 = vmatpush1.bf16.msra.mxu1 %v7781_v5 }
 0x30d   :  { %5193 = vmatprep.subr.bf16.mxu0 %v7786_v6  ;;  %5685 = vmatprep.subr.bf16.mxu1 %v7789_v7 }
 0x310   :  { %5194 = vmatpush1.bf16.msra.mxu0 %v7784_v8  ;;  %5686 = vmatpush1.bf16.msra.mxu1 %v7787_v9 }
 0x311   :  { %5195 = vmatprep.subr.bf16.mxu0 %v7792_v10  ;;  %5687 = vmatprep.subr.bf16.mxu1 %v7795_v11 }
 0x314   :  { %5196 = vmatpush1.bf16.msra.mxu0 %v7790_v12  ;;  %5688 = vmatpush1.bf16.msra.mxu1 %v7793_v13 }
 0x315   :  { %5197 = vmatprep.subr.bf16.mxu0 %v7798_v14  ;;  %5689 = vmatprep.subr.bf16.mxu1 %v7801_v15 }
 0x318   :  { %5198 = vmatpush1.bf16.msra.mxu0 %v7796_v16  ;;  %5690 = vmatpush1.bf16.msra.mxu1 %v7799_v17 }
 0x319   :  { %5199 = vmatprep.subr.bf16.mxu0 %v7804_v18  ;;  %5691 = vmatprep.subr.bf16.mxu1 %v7807_v19 }
 0x31c   :  { %5200 = vmatpush1.bf16.msra.mxu0 %v7802_v20  ;;  %5692 = vmatpush1.bf16.msra.mxu1 %v7805_v21 }
 0x31d   :  { %5201 = vmatprep.subr.bf16.mxu0 %v7810_v22  ;;  %5693 = vmatprep.subr.bf16.mxu1 %v7813_v23 }
 0x320   :  { %5202 = vmatpush1.bf16.msra.mxu0 %v7808_v24  ;;  %5694 = vmatpush1.bf16.msra.mxu1 %v7811_v25  ;;  %v5735_v24 = vld [vmem:[#allocation7 + $0x1] ss:$4 sm:$0xf] }
 0x321   :  { %5203 = vmatprep.subr.bf16.mxu0 %v7816_v26  ;;  %5695 = vmatprep.subr.bf16.mxu1 %v7819_v27  ;;  %v5740_v25 = vrot.slane %v5735_v24, %v8026_v51  ;;  %v5744_v26 = vrot.slane %v5735_v24, %v876_v54 }
 0x324   :  { %5204 = vmatpush1.bf16.msra.mxu0 %v7814_v28  ;;  %5696 = vmatpush1.bf16.msra.mxu1 %v7817_v29  ;;  %v5748_v29 = vrot.slane %v5735_v24, %v880_v52 }
 0x325   :  { %5205 = vmatprep.subr.bf16.mxu0 %v7822_v30  ;;  %5697 = vmatprep.subr.bf16.mxu1 %v7825_v31 }
 0x328   :  { %5206 = vmatpush1.bf16.msra.mxu0 %v7820_v32  ;;  %5698 = vmatpush1.bf16.msra.mxu1 %v7823_v33  ;;  %v5752_v32 = vrot.slane %v5735_v24, %v884_v55 }
 0x329   :  { %5207 = vmatprep.subr.bf16.mxu0 %v7828_v34  ;;  %5699 = vmatprep.subr.bf16.mxu1 %v7831_v35 }
 0x32c   :  { %5208 = vmatpush1.bf16.msra.mxu0 %v7826_v36  ;;  %5700 = vmatpush1.bf16.msra.mxu1 %v7829_v37 }
 0x32d   :  { %5209 = vmatprep.subr.bf16.mxu0 %v7834_v38  ;;  %5701 = vmatprep.subr.bf16.mxu1 %v7837_v39 }
 0x330   :  { %5210 = vmatpush1.bf16.msra.mxu0 %v7832_v40  ;;  %5702 = vmatpush1.bf16.msra.mxu1 %v7835_v41  ;;  %v5766_v40 = vld [vmem:[#allocation7 + $0x2] sm:$0x1]  ;;  %v7964_v41 = vmov 839922192  }
 0x331   :  { %5211 = vmatprep.subr.bf16.mxu0 %v7840_v42  ;;  %5703 = vmatprep.subr.bf16.mxu1 %v7843_v43  ;;  %v5773_v42 = vunpack.c.l.s4 %v7964_v41 }
 0x333   :  { %v5774_v43 = vunpack.c.0.s8 %v5773_v42 }
 0x334   :  { %5212 = vmatpush1.bf16.msra.mxu0 %v7838_v44  ;;  %5704 = vmatpush1.bf16.msra.mxu1 %v7841_v45 }
 0x335   :  { %v5777_v45 = vsub.s32 %v5774_v43, %v8023_v50 }
 0x337   :  { %5214 = vmatmul.mubr.bf16.vlgmr.msra.gmra.mrb[0].mxu0 %v98_v47  ;;  %5706 = vmatmul.mubr.bf16.vlgmr.msra.gmra.mrb[0].mxu1 %v98_v47 }
 0x40a   :  { %v5215_v60 = vpop.f32.mrb[0].mxu0  ;;  %v5707_v61 = vpop.f32.mrb[0].mxu1 }
 0x40b   :  { %v6590_v62 = vadd.f32 %v5215_v60, %v873_v56  ;;  %v6592_v63 = vadd.f32 %v5707_v61, %v881_v57  ;;  %v5217_v0 = vpop.f32.mrb[1].mxu0  ;;  %v5709_v1 = vpop.f32.mrb[1].mxu1  ;;  %v5797_v57 = vand.u32 127, %v870_v49 }
 0x40c   :  { %v6591_v2 = vadd.f32 %v5217_v0, %v877_v58  ;;  %v6593_v3 = vadd.f32 %v5709_v1, %v885_v59  ;;  %v5219_v4 = vpop.f32.mrb[2].mxu0  ;;  %v5711_v5 = vpop.f32.mrb[2].mxu1 }
 0x40d   :  { %v5714_v6 = vsub.f32 0.0, %v6590_v62  ;;  %v5716_v7 = vsub.f32 0.0, %v6592_v63  ;;  %v5220_v8 = vpop.f32.mrb[3].mxu0  ;;  %v5712_v9 = vpop.f32.mrb[3].mxu1  ;;  %v5800_v58 = vsub.s32 %v5797_v57, %v8023_v50 }
 0x40e   :  { %v5715_v10 = vsub.f32 0.0, %v6591_v2  ;;  %v5717_v11 = vsub.f32 0.0, %v6593_v3 }
 0x40f   :  { %v5718_v12 = vmul.f32 1.442695, %v5714_v6  ;;  %v5722_v13 = vmul.f32 1.442695, %v5716_v7 }
 0x410   :  { %v5720_v14 = vmul.f32 1.442695, %v5715_v10  ;;  %v5724_v15 = vmul.f32 1.442695, %v5717_v11 }
 0x411   :  { %7844 = vpow2.f32 %v5718_v12 }
 0x412   :  { %7846 = vpow2.f32 %v5722_v13 }
 0x413   :  { %7848 = vpow2.f32 %v5720_v14 }
 0x414   :  { %7850 = vpow2.f32 %v5724_v15 }
 0x41b   :  { %v7845_v16 = vpop.eup %7844 }
 0x41c   :  { %v7847_v17 = vpop.eup %7846  ;;  %v5726_v18 = vadd.f32 1.0, %v7845_v16 }
 0x41d   :  { %v7849_v19 = vpop.eup %7848  ;;  %v5728_v20 = vadd.f32 1.0, %v7847_v17 }
 0x41e   :  { %v7851_v21 = vpop.eup %7850  ;;  %7852 = vrcp.f32 %v5726_v18  ;;  %v5727_v22 = vadd.f32 1.0, %v7849_v19 }
 0x41f   :  { %7854 = vrcp.f32 %v5728_v20  ;;  %v5729_v23 = vadd.f32 1.0, %v7851_v21 }
 0x420   :  { %7856 = vrcp.f32 %v5727_v22 }
 0x421   :  { %7858 = vrcp.f32 %v5729_v23 }
 0x428   :  { %v7853_v27 = vpop.eup %7852 }
 0x429   :  { %v7855_v28 = vpop.eup %7854  ;;  %v5757_v30 = vmul.f32 %v7853_v27, %v5740_v25 }
 0x42a   :  { %v7857_v31 = vpop.eup %7856  ;;  %v5759_v35 = vmul.f32 %v7855_v28, %v5748_v29 }
 0x42b   :  { %v5758_v33 = vmul.f32 %v7857_v31, %v5744_v26  ;;  %v7859_v34 = vpop.eup %7858 }
 0x42c   :  { %v5760_v37 = vmul.f32 %v7859_v34, %v5752_v32 }
 0x42d   :  { %v5761_v36 = vadd.f32 %v5758_v33, %v5757_v30 }
 0x42f   :  { %v5762_v38 = vadd.f32 %v5761_v36, %v5759_v35 }
 0x431   :  { %v5763_v39 = vadd.f32 %v5762_v38, %v5760_v37 }
 0x433   :  { %5764 = vadd.xlane.f32.xlu0 %v5763_v39 }
 0x449   :  { %5769 = vperm.xlu0 %6690, %v5766_v40  }
 0x4c0   :  { %v5765_v44 = vpop.xlane.xlu0 %5764 }
 0x4c8   :  { %v5770_v46 = vpop.permute.xlu0 %5769 }
 0x4c9   :  { %v5778_v47 = vrot.slane %v5770_v46, %v5777_v45 }
 0x4cb   :  { %v5783_v48 = vrot.slane %v5778_v47, %v8026_v51 }
 0x4cd   :  { %v5785_v52 = vadd.f32 %v5783_v48, %v5765_v44 }
 0x4cf   :  { %v6589_v53 = vmul.f32 -1.442695, %v5785_v52 }
 0x4d1   :  { %7860 = vpow2.f32 %v6589_v53 }
 0x4db   :  { %v7861_v54 = vpop.eup %7860 }
 0x4dc   :  { %v5789_v55 = vadd.f32 1.0, %v7861_v54 }
 0x4de   :  { %7862 = vrcp.f32 %v5789_v55 }
 0x4e8   :  { %v7863_v56 = vpop.eup %7862 }
 0x4e9   :  { %5794 = vperm.xlu1 %6691, %v7863_v56  }
 0x568   :  { %v5795_v59 = vpop.permute.xlu1 %5794 }
 0x569   :  { %v5801_v60 = vrot.slane %v5795_v59, %v5800_v58 }
 0x56b   :  { %5804 = vst.msk [vmem:[#allocation8] sm:$0x1] %vm5803_vm0, %v5801_v60 }
 0x56c   :  { %7941 = shalt.err (!%p7938_p0)
}
 0x56d   :  { %s7942_s26 = scalar_lea.hbm %s8052_s3, 16 }
 0x56e   :  { %p7943_p1 = scmp.ne.s32.totalorder %s8052_s3, %s7942_s26  ;;  %p7946_p2 = scmp.lt.u32.totalorder %s7942_s26, %s8052_s3 }
 0x570   :  { %p7948_p3 = pnand %p7946_p2, %p7943_p1 }
 0x572   :  { %7951 = shalt.err (!%p7948_p3)
}
 0x573   :  { %5814 = dma.vmem_to_hbm [thread:$0]  %s5812_s21, 16, %s8052_s3, [#allocation4]  }
 0x574   :  { %7956 = dma.done.wait [#allocation4], 16  }
 0x575   :  { %7957 = vsyncadd [#allocation4], 4294967280 }
 0x576   :  { %5818 = vsyncpa [#allocation3], 1 }
 0x577   :  { %5819 = vsyncpa [#allocation6], 1 }
 0x578   :  { %5820 = vsyncpa [#allocation4], 1 }

// kernel: tpu_custom_call.1
= control target key start
LH: loop header
LB: loop body
LE: loop exit
PB: predicated region body
PF: predicated region fallthrough
CT: control target
= control target key end

     0   :  { %8 = vsyncpa [#allocation3], 0  ;;  %s8049_s0 = inlined_call_operand.hbm [shape: f32[8,3072], index: 0, kind: input, shape index: {}]   ;;  %s8050_s1 = inlined_call_operand.hbm [shape: bf16[3072,512], index: 1, kind: input, shape index: {}]   ;;  %s8051_s2 = inlined_call_operand.hbm [shape: f32[3,512], index: 2, kind: input, shape index: {}]   ;;  %s8052_s3 = inlined_call_operand.hbm [shape: f32[1,8], index: 3, kind: output, shape index: {}]  }
   0x1   :  { %9 = vsyncpa [#allocation6], 0 }
   0x2   :  { %10 = vsyncpa [#allocation4], 0  ;;  %s7958_s12 = smov [#allocation5]   ;;  %s7864_s16 = scalar_lea.hbm %s8050_s1, 98304 }
   0x3   :  { %s26_s13 = sshll.u32 %s7958_s12, 4  ;;  %p7865_p0 = scmp.ne.s32.totalorder %s8050_s1, %s7864_s16  ;;  %s27_s13 = int_to_ptr.vmem [resolvable:$true] %s26_s13 }
   0x4   :  { %p7868_p1 = scmp.lt.u32.totalorder %s7864_s16, %s8050_s1 }
   0x6   :  { %p7870_p2 = pnand %p7868_p1, %p7865_p0 }
   0x8   :  { %7873 = shalt.err (!%p7870_p2)
}
   0x9   :  { %s7874_s21 = scalar_lea.vmem %s27_s13, 98304  ;;  %p7879_p4 = scmp.lt.s32.totalorder %s27_s13, %s27_s13 }
   0xa   :  { %p7875_p3 = scmp.ne.s32.totalorder %s27_s13, %s7874_s21  ;;  %p7880_p5 = scmp.lt.s32.totalorder %s7874_s21, %s7874_s21 }
   0xc   :  { %p7881_p6 = por %p7880_p5, %p7879_p4 }
   0xe   :  { %p7882_p7 = pnand %p7881_p6, %p7875_p3 }
  0x10   :  { %7885 = shalt.err (!%p7882_p7)
}
  0x11   :  { %s7959_s22 = smov 256   ;;  %s7960_s23 = smov 16  }
  0x12   :  { %32 = dma.hbm_to_vmem [thread:$0]  %s8050_s1, 98304, %s27_s13, [#allocation6], %s7959_s22, %s7959_s22, %s7960_s23  }
  0x13   :  { %s7961_s26 = smov [#allocation2]   ;;  %s7962_s28 = smov [#allocation7]  }
  0x14   :  { %s17_s27 = sshll.u32 %s7961_s26, 4  ;;  %s39_s29 = sshll.u32 %s7962_s28, 4  ;;  %s18_s27 = int_to_ptr.vmem [resolvable:$true] %s17_s27  ;;  %s40_s29 = int_to_ptr.vmem [resolvable:$true] %s39_s29 }
  0x15   :  { %s7886_s5 = scalar_lea.hbm %s8049_s0, 3072 }
  0x16   :  { %p7887_p8 = scmp.ne.s32.totalorder %s8049_s0, %s7886_s5  ;;  %p7890_p9 = scmp.lt.u32.totalorder %s7886_s5, %s8049_s0 }
  0x18   :  { %p7892_p10 = pnand %p7890_p9, %p7887_p8 }
  0x1a   :  { %7895 = shalt.err (!%p7892_p10)
}
  0x1b   :  { %s7896_s1 = scalar_lea.vmem %s18_s27, 3072  ;;  %p7901_p12 = scmp.lt.s32.totalorder %s18_s27, %s18_s27 }
  0x1c   :  { %p7897_p11 = scmp.ne.s32.totalorder %s18_s27, %s7896_s1  ;;  %p7902_p13 = scmp.lt.s32.totalorder %s7896_s1, %s7896_s1 }
  0x1e   :  { %p7903_p0 = por %p7902_p13, %p7901_p12 }
  0x20   :  { %p7904_p1 = pnand %p7903_p0, %p7897_p11 }
  0x22   :  { %7907 = shalt.err (!%p7904_p1)
}
  0x23   :  { %20 = dma.hbm_to_vmem [thread:$0]  %s8049_s0, 3072, %s18_s27, [#allocation3]  }
  0x24   :  { %s7908_s14 = scalar_lea.hbm %s8051_s2, 256 }
  0x25   :  { %p7909_p2 = scmp.ne.s32.totalorder %s8051_s2, %s7908_s14  ;;  %p7912_p3 = scmp.lt.u32.totalorder %s7908_s14, %s8051_s2 }
  0x27   :  { %p7914_p4 = pnand %p7912_p3, %p7909_p2 }
  0x29   :  { %7917 = shalt.err (!%p7914_p4)
}
  0x2a   :  { %s7918_s19 = scalar_lea.vmem %s40_s29, 256  ;;  %p7923_p6 = scmp.lt.s32.totalorder %s40_s29, %s40_s29 }
  0x2b   :  { %p7919_p5 = scmp.ne.s32.totalorder %s40_s29, %s7918_s19  ;;  %p7924_p7 = scmp.lt.s32.totalorder %s7918_s19, %s7918_s19 }
  0x2d   :  { %p7925_p8 = por %p7924_p7, %p7923_p6 }
  0x2f   :  { %p7926_p9 = pnand %p7925_p8, %p7919_p5 }
  0x31   :  { %7929 = shalt.err (!%p7926_p9)
}
  0x32   :  { %42 = dma.hbm_to_vmem [thread:$0]  %s8051_s2, 256, %s40_s29, [#allocation6]  }
  0x33   :  { %7952 = dma.done.wait [#allocation3], 3072  }
  0x34   :  { %7953 = vsyncadd [#allocation3], 4294964224 }
  0x35   :  { %7954 = dma.done.wait [#allocation6], 98560  }
  0x36   :  { %7955 = vsyncadd [#allocation6], 4294868736  ;;  %v6692_v0 = vld [vmem:[#allocation5 + $0x4] ss:$16 sps:$4 sm:$0xff]   ;;  %v6694_v1 = vld [vmem:[#allocation5 + $0xc] ss:$16 sps:$4 sm:$0xff]  }
  0x37   :  { %4730 = vmatprep.subr.bf16.mxu0 %v6692_v0  ;;  %v6696_v2 = vld [vmem:[#allocation5] ss:$16 sps:$4 sm:$0xff]   ;;  %v6697_v3 = vld [vmem:[#allocation5 + $0x8] ss:$16 sps:$4 sm:$0xff]   ;;  %5222 = vmatprep.subr.bf16.mxu1 %v6694_v1  ;;  %v6698_v4 = vld [vmem:[#allocation5 + $0x24] ss:$16 sps:$4 sm:$0xff]  }
  0x38   :  { %4731 = vmatpush1.bf16.msra.mxu0 %v6696_v2  ;;  %5223 = vmatpush1.bf16.msra.mxu1 %v6697_v3  ;;  %v6700_v5 = vld [vmem:[#allocation5 + $0x2c] ss:$16 sps:$4 sm:$0xff]   ;;  %v6702_v6 = vld [vmem:[#allocation5 + $0x20] ss:$16 sps:$4 sm:$0xff]   ;;  %v6703_v7 = vld [vmem:[#allocation5 + $0x28] ss:$16 sps:$4 sm:$0xff]  }
  0x39   :  { %4732 = vmatprep.subr.bf16.mxu0 %v6698_v4  ;;  %5224 = vmatprep.subr.bf16.mxu1 %v6700_v5  ;;  %v6704_v8 = vld [vmem:[#allocation5 + $0x44] ss:$16 sps:$4 sm:$0xff]   ;;  %v6706_v9 = vld [vmem:[#allocation5 + $0x4c] ss:$16 sps:$4 sm:$0xff]   ;;  %v6708_v10 = vld [vmem:[#allocation5 + $0x40] ss:$16 sps:$4 sm:$0xff]  }
  0x3a   :  { %v6709_v11 = vld [vmem:[#allocation5 + $0x48] ss:$16 sps:$4 sm:$0xff]   ;;  %v6710_v12 = vld [vmem:[#allocation5 + $0x64] ss:$16 sps:$4 sm:$0xff]   ;;  %v6712_v13 = vld [vmem:[#allocation5 + $0x6c] ss:$16 sps:$4 sm:$0xff]  }
  0x3b   :  { %v6714_v14 = vld [vmem:[#allocation5 + $0x60] ss:$16 sps:$4 sm:$0xff]   ;;  %v6715_v15 = vld [vmem:[#allocation5 + $0x68] ss:$16 sps:$4 sm:$0xff]   ;;  %v6716_v16 = vld [vmem:[#allocation5 + $0x84] ss:$16 sps:$4 sm:$0xff]  }
  0x3c   :  { %4733 = vmatpush1.bf16.msra.mxu0 %v6702_v6  ;;  %5225 = vmatpush1.bf16.msra.mxu1 %v6703_v7  ;;  %v6718_v17 = vld [vmem:[#allocation5 + $0x8c] ss:$16 sps:$4 sm:$0xff]   ;;  %v6720_v18 = vld [vmem:[#allocation5 + $0x80] ss:$16 sps:$4 sm:$0xff]   ;;  %v6721_v19 = vld [vmem:[#allocation5 + $0x88] ss:$16 sps:$4 sm:$0xff]  }
  0x3d   :  { %4734 = vmatprep.subr.bf16.mxu0 %v6704_v8  ;;  %5226 = vmatprep.subr.bf16.mxu1 %v6706_v9  ;;  %v6722_v20 = vld [vmem:[#allocation5 + $0xa4] ss:$16 sps:$4 sm:$0xff]   ;;  %v6724_v21 = vld [vmem:[#allocation5 + $0xac] ss:$16 sps:$4 sm:$0xff]   ;;  %v6726_v22 = vld [vmem:[#allocation5 + $0xa0] ss:$16 sps:$4 sm:$0xff]  }
  0x3e   :  { %v6727_v23 = vld [vmem:[#allocation5 + $0xa8] ss:$16 sps:$4 sm:$0xff]   ;;  %v6728_v24 = vld [vmem:[#allocation5 + $0xc4] ss:$16 sps:$4 sm:$0xff]   ;;  %v6730_v25 = vld [vmem:[#allocation5 + $0xcc] ss:$16 sps:$4 sm:$0xff]  }
  0x3f   :  { %v6732_v26 = vld [vmem:[#allocation5 + $0xc0] ss:$16 sps:$4 sm:$0xff]   ;;  %v6733_v27 = vld [vmem:[#allocation5 + $0xc8] ss:$16 sps:$4 sm:$0xff]   ;;  %v6734_v28 = vld [vmem:[#allocation5 + $0xe4] ss:$16 sps:$4 sm:$0xff]  }
  0x40   :  { %4735 = vmatpush1.bf16.msra.mxu0 %v6708_v10  ;;  %5227 = vmatpush1.bf16.msra.mxu1 %v6709_v11  ;;  %v6736_v29 = vld [vmem:[#allocation5 + $0xec] ss:$16 sps:$4 sm:$0xff]   ;;  %v6738_v30 = vld [vmem:[#allocation5 + $0xe0] ss:$16 sps:$4 sm:$0xff]   ;;  %v6739_v31 = vld [vmem:[#allocation5 + $0xe8] ss:$16 sps:$4 sm:$0xff]  }
  0x41   :  { %4736 = vmatprep.subr.bf16.mxu0 %v6710_v12  ;;  %5228 = vmatprep.subr.bf16.mxu1 %v6712_v13  ;;  %v6740_v32 = vld [vmem:[#allocation5 + $0x104] ss:$16 sps:$4 sm:$0xff]   ;;  %v6742_v33 = vld [vmem:[#allocation5 + $0x10c] ss:$16 sps:$4 sm:$0xff]   ;;  %v6744_v34 = vld [vmem:[#allocation5 + $0x100] ss:$16 sps:$4 sm:$0xff]  }
  0x42   :  { %v6745_v35 = vld [vmem:[#allocation5 + $0x108] ss:$16 sps:$4 sm:$0xff]   ;;  %v6746_v36 = vld [vmem:[#allocation5 + $0x124] ss:$16 sps:$4 sm:$0xff]   ;;  %v6748_v37 = vld [vmem:[#allocation5 + $0x12c] ss:$16 sps:$4 sm:$0xff]  }
  0x43   :  { %v6750_v38 = vld [vmem:[#allocation5 + $0x120] ss:$16 sps:$4 sm:$0xff]   ;;  %v6751_v39 = vld [vmem:[#allocation5 + $0x128] ss:$16 sps:$4 sm:$0xff]   ;;  %v6752_v40 = vld [vmem:[#allocation5 + $0x144] ss:$16 sps:$4 sm:$0xff]  }
  0x44   :  { %4737 = vmatpush1.bf16.msra.mxu0 %v6714_v14  ;;  %5229 = vmatpush1.bf16.msra.mxu1 %v6715_v15  ;;  %v6754_v41 = vld [vmem:[#allocation5 + $0x14c] ss:$16 sps:$4 sm:$0xff]   ;;  %v6756_v42 = vld [vmem:[#allocation5 + $0x140] ss:$16 sps:$4 sm:$0xff]   ;;  %v6757_v43 = vld [vmem:[#allocation5 + $0x148] ss:$16 sps:$4 sm:$0xff]  }
  0x45   :  { %4738 = vmatprep.subr.bf16.mxu0 %v6716_v16  ;;  %5230 = vmatprep.subr.bf16.mxu1 %v6718_v17  ;;  %v6758_v44 = vld [vmem:[#allocation5 + $0x164] ss:$16 sps:$4 sm:$0xff]   ;;  %v6760_v45 = vld [vmem:[#allocation5 + $0x16c] ss:$16 sps:$4 sm:$0xff]   ;;  %v6762_v47 = vld [vmem:[#allocation5 + $0x160] ss:$16 sps:$4 sm:$0xff]  }
  0x46   :  { %v53_v46 = vld [vmem:[#allocation2 + $0x8] sm:$0xff]  ;;  %v6764_v50 = vld [vmem:[#allocation5 + $0x184] ss:$16 sps:$4 sm:$0xff]   ;;  %v6768_v52 = vld [vmem:[#allocation5 + $0x180] ss:$16 sps:$4 sm:$0xff]   ;;  %s7965_s2 = smov [#allocation8]  }
  0x47   :  { %v77_v48 = vpack.c.bf16 %v53_v46, %v53_v46  ;;  %v6763_v49 = vld [vmem:[#allocation5 + $0x168] ss:$16 sps:$4 sm:$0xff]   ;;  %v6766_v51 = vld [vmem:[#allocation5 + $0x18c] ss:$16 sps:$4 sm:$0xff]   ;;  %v6770_v54 = vld [vmem:[#allocation5 + $0x1a4] ss:$16 sps:$4 sm:$0xff]  }
  0x48   :  { %4739 = vmatpush1.bf16.msra.mxu0 %v6720_v18  ;;  %5231 = vmatpush1.bf16.msra.mxu1 %v6721_v19  ;;  %v6769_v53 = vld [vmem:[#allocation5 + $0x188] ss:$16 sps:$4 sm:$0xff]   ;;  %v6772_v55 = vld [vmem:[#allocation5 + $0x1ac] ss:$16 sps:$4 sm:$0xff]   ;;  %v6774_v56 = vld [vmem:[#allocation5 + $0x1a0] ss:$16 sps:$4 sm:$0xff]  }
  0x49   :  { %4740 = vmatprep.subr.bf16.mxu0 %v6722_v20  ;;  %5232 = vmatprep.subr.bf16.mxu1 %v6724_v21  ;;  %v6775_v57 = vld [vmem:[#allocation5 + $0x1a8] ss:$16 sps:$4 sm:$0xff]   ;;  %v6776_v58 = vld [vmem:[#allocation5 + $0x1c4] ss:$16 sps:$4 sm:$0xff]   ;;  %v6778_v59 = vld [vmem:[#allocation5 + $0x1cc] ss:$16 sps:$4 sm:$0xff]  }
  0x4a   :  { %4762 = vmatprep.mubr.bf16.mxu0 %v77_v48  ;;  %5254 = vmatprep.mubr.bf16.mxu1 %v77_v48  ;;  %v6780_v60 = vld [vmem:[#allocation5 + $0x1c0] ss:$16 sps:$4 sm:$0xff]   ;;  %v6781_v61 = vld [vmem:[#allocation5 + $0x1c8] ss:$16 sps:$4 sm:$0xff]   ;;  %v6782_v62 = vld [vmem:[#allocation5 + $0x1e4] ss:$16 sps:$4 sm:$0xff]  }
  0x4b   :  { %v6784_v63 = vld [vmem:[#allocation5 + $0x1ec] ss:$16 sps:$4 sm:$0xff]   ;;  %v6786_v0 = vld [vmem:[#allocation5 + $0x1e0] ss:$16 sps:$4 sm:$0xff]   ;;  %v6787_v1 = vld [vmem:[#allocation5 + $0x1e8] ss:$16 sps:$4 sm:$0xff]  }
  0x4c   :  { %4741 = vmatpush1.bf16.msra.mxu0 %v6726_v22  ;;  %5233 = vmatpush1.bf16.msra.mxu1 %v6727_v23  ;;  %v52_v2 = vld [vmem:[#allocation2] sm:$0xff]  ;;  %v6793_v4 = vld [vmem:[#allocation5 + $0x20c] ss:$16 sps:$4 sm:$0xff]   ;;  %v6791_v7 = vld [vmem:[#allocation5 + $0x208] ss:$16 sps:$4 sm:$0xff]   ;;  %s5811_s21 = sshll.u32 %s7965_s2, 4  ;;  %s5812_s21 = int_to_ptr.vmem [resolvable:$true] %s5811_s21 }
  0x4d   :  { %4742 = vmatprep.subr.bf16.mxu0 %v6728_v24  ;;  %5234 = vmatprep.subr.bf16.mxu1 %v6730_v25  ;;  %v6790_v3 = vld [vmem:[#allocation5 + $0x204] ss:$16 sps:$4 sm:$0xff]   ;;  %v76_v5 = vpack.c.bf16 %v52_v2, %v52_v2  ;;  %v6788_v6 = vld [vmem:[#allocation5 + $0x200] ss:$16 sps:$4 sm:$0xff]   ;;  %v6799_v9 = vld [vmem:[#allocation5 + $0x22c] ss:$16 sps:$4 sm:$0xff]   ;;  %p7935_p11 = scmp.lt.s32.totalorder %s5812_s21, %s5812_s21 }
  0x4e   :  { %v6796_v8 = vld [vmem:[#allocation5 + $0x224] ss:$16 sps:$4 sm:$0xff]   ;;  %v6794_v10 = vld [vmem:[#allocation5 + $0x220] ss:$16 sps:$4 sm:$0xff]   ;;  %v6797_v11 = vld [vmem:[#allocation5 + $0x228] ss:$16 sps:$4 sm:$0xff]  }
  0x4f   :  { %v6802_v12 = vld [vmem:[#allocation5 + $0x244] ss:$16 sps:$4 sm:$0xff]   ;;  %v6805_v13 = vld [vmem:[#allocation5 + $0x24c] ss:$16 sps:$4 sm:$0xff]   ;;  %v6800_v14 = vld [vmem:[#allocation5 + $0x240] ss:$16 sps:$4 sm:$0xff]  }
  0x50   :  { %4743 = vmatpush1.bf16.msra.mxu0 %v6732_v26  ;;  %5235 = vmatpush1.bf16.msra.mxu1 %v6733_v27  ;;  %v6803_v15 = vld [vmem:[#allocation5 + $0x248] ss:$16 sps:$4 sm:$0xff]   ;;  %v6808_v16 = vld [vmem:[#allocation5 + $0x264] ss:$16 sps:$4 sm:$0xff]   ;;  %v6811_v17 = vld [vmem:[#allocation5 + $0x26c] ss:$16 sps:$4 sm:$0xff]  }
  0x51   :  { %4744 = vmatprep.subr.bf16.mxu0 %v6734_v28  ;;  %5236 = vmatprep.subr.bf16.mxu1 %v6736_v29  ;;  %v6806_v18 = vld [vmem:[#allocation5 + $0x260] ss:$16 sps:$4 sm:$0xff]   ;;  %v6809_v19 = vld [vmem:[#allocation5 + $0x268] ss:$16 sps:$4 sm:$0xff]   ;;  %v6814_v20 = vld [vmem:[#allocation5 + $0x284] ss:$16 sps:$4 sm:$0xff]  }
  0x52   :  { %v6817_v21 = vld [vmem:[#allocation5 + $0x28c] ss:$16 sps:$4 sm:$0xff]   ;;  %v6812_v22 = vld [vmem:[#allocation5 + $0x280] ss:$16 sps:$4 sm:$0xff]   ;;  %v6815_v23 = vld [vmem:[#allocation5 + $0x288] ss:$16 sps:$4 sm:$0xff]  }
  0x53   :  { %v6820_v24 = vld [vmem:[#allocation5 + $0x2a4] ss:$16 sps:$4 sm:$0xff]   ;;  %v6823_v25 = vld [vmem:[#allocation5 + $0x2ac] ss:$16 sps:$4 sm:$0xff]   ;;  %v6818_v26 = vld [vmem:[#allocation5 + $0x2a0] ss:$16 sps:$4 sm:$0xff]  }
  0x54   :  { %4745 = vmatpush1.bf16.msra.mxu0 %v6738_v30  ;;  %5237 = vmatpush1.bf16.msra.mxu1 %v6739_v31  ;;  %v6821_v27 = vld [vmem:[#allocation5 + $0x2a8] ss:$16 sps:$4 sm:$0xff]   ;;  %v6826_v28 = vld [vmem:[#allocation5 + $0x2c4] ss:$16 sps:$4 sm:$0xff]   ;;  %v6829_v29 = vld [vmem:[#allocation5 + $0x2cc] ss:$16 sps:$4 sm:$0xff]  }
  0x55   :  { %4746 = vmatprep.subr.bf16.mxu0 %v6740_v32  ;;  %5238 = vmatprep.subr.bf16.mxu1 %v6742_v33  ;;  %v55_v30 = vld [vmem:[#allocation2 + $0x18] sm:$0xff]  ;;  %v6824_v31 = vld [vmem:[#allocation5 + $0x2c0] ss:$16 sps:$4 sm:$0xff]   ;;  %v6850_v46 = vld [vmem:[#allocation5 + $0x344] ss:$16 sps:$4 sm:$0xff]   ;;  %vm5803_vm0 = vcmask 57344  }
  0x56   :  { %v79_v32 = vpack.c.bf16 %v55_v30, %v55_v30  ;;  %v6827_v33 = vld [vmem:[#allocation5 + $0x2c8] ss:$16 sps:$4 sm:$0xff]   ;;  %v6848_v48 = vld [vmem:[#allocation5 + $0x340] ss:$16 sps:$4 sm:$0xff]   ;;  %v6880_v2 = vld [vmem:[#allocation5 + $0x3e4] ss:$16 sps:$4 sm:$0xff]  }
  0x57   :  { %v6916_v30 = vld [vmem:[#allocation5 + $0x4a4] ss:$16 sps:$4 sm:$0xff]   ;;  %s7930_s22 = scalar_lea.vmem %s5812_s21, 16  ;;  %s7934_s23 = scalar_lea.vmem %s5812_s21, 32 }
  0x58   :  { %4747 = vmatpush1.bf16.msra.mxu0 %v6744_v34  ;;  %5239 = vmatpush1.bf16.msra.mxu1 %v6745_v35  ;;  %v6832_v34 = vld [vmem:[#allocation5 + $0x2e4] ss:$16 sps:$4 sm:$0xff]   ;;  %v6835_v35 = vld [vmem:[#allocation5 + $0x2ec] ss:$16 sps:$4 sm:$0xff]   ;;  %p7931_p10 = scmp.ne.s32.totalorder %s5812_s21, %s7930_s22  ;;  %p7936_p12 = scmp.lt.s32.totalorder %s7934_s23, %s7930_s22 }
  0x59   :  { %4748 = vmatprep.subr.bf16.mxu0 %v6746_v36  ;;  %5240 = vmatprep.subr.bf16.mxu1 %v6748_v37  ;;  %v6830_v36 = vld [vmem:[#allocation5 + $0x2e0] ss:$16 sps:$4 sm:$0xff]   ;;  %v6833_v37 = vld [vmem:[#allocation5 + $0x2e8] ss:$16 sps:$4 sm:$0xff]  }
  0x5a   :  { %p7937_p13 = por %p7936_p12, %p7935_p11 }
  0x5c   :  { %4749 = vmatpush1.bf16.msra.mxu0 %v6750_v38  ;;  %5241 = vmatpush1.bf16.msra.mxu1 %v6751_v39  ;;  %v6838_v38 = vld [vmem:[#allocation5 + $0x304] ss:$16 sps:$4 sm:$0xff]   ;;  %v6841_v39 = vld [vmem:[#allocation5 + $0x30c] ss:$16 sps:$4 sm:$0xff]   ;;  %p7938_p0 = pnand %p7937_p13, %p7931_p10 }
  0x5d   :  { %4750 = vmatprep.subr.bf16.mxu0 %v6752_v40  ;;  %5242 = vmatprep.subr.bf16.mxu1 %v6754_v41  ;;  %v6836_v40 = vld [vmem:[#allocation5 + $0x300] ss:$16 sps:$4 sm:$0xff]   ;;  %v6839_v41 = vld [vmem:[#allocation5 + $0x308] ss:$16 sps:$4 sm:$0xff]  }
  0x60   :  { %4751 = vmatpush1.bf16.msra.mxu0 %v6756_v42  ;;  %5243 = vmatpush1.bf16.msra.mxu1 %v6757_v43  ;;  %v6844_v42 = vld [vmem:[#allocation5 + $0x324] ss:$16 sps:$4 sm:$0xff]   ;;  %v6847_v43 = vld [vmem:[#allocation5 + $0x32c] ss:$16 sps:$4 sm:$0xff]  }
  0x61   :  { %4752 = vmatprep.subr.bf16.mxu0 %v6758_v44  ;;  %5244 = vmatprep.subr.bf16.mxu1 %v6760_v45  ;;  %v6842_v44 = vld [vmem:[#allocation5 + $0x320] ss:$16 sps:$4 sm:$0xff]   ;;  %v6845_v45 = vld [vmem:[#allocation5 + $0x328] ss:$16 sps:$4 sm:$0xff]  }
  0x64   :  { %4753 = vmatpush1.bf16.msra.mxu0 %v6762_v47  ;;  %5245 = vmatpush1.bf16.msra.mxu1 %v6763_v49  ;;  %v6853_v47 = vld [vmem:[#allocation5 + $0x34c] ss:$16 sps:$4 sm:$0xff]   ;;  %v6851_v49 = vld [vmem:[#allocation5 + $0x348] ss:$16 sps:$4 sm:$0xff]  }
  0x65   :  { %4754 = vmatprep.subr.bf16.mxu0 %v6764_v50  ;;  %5246 = vmatprep.subr.bf16.mxu1 %v6766_v51  ;;  %v6856_v50 = vld [vmem:[#allocation5 + $0x364] ss:$16 sps:$4 sm:$0xff]   ;;  %v6859_v51 = vld [vmem:[#allocation5 + $0x36c] ss:$16 sps:$4 sm:$0xff]  }
  0x68   :  { %4755 = vmatpush1.bf16.msra.mxu0 %v6768_v52  ;;  %5247 = vmatpush1.bf16.msra.mxu1 %v6769_v53  ;;  %v6854_v52 = vld [vmem:[#allocation5 + $0x360] ss:$16 sps:$4 sm:$0xff]   ;;  %v6857_v53 = vld [vmem:[#allocation5 + $0x368] ss:$16 sps:$4 sm:$0xff]  }
  0x69   :  { %4756 = vmatprep.subr.bf16.mxu0 %v6770_v54  ;;  %5248 = vmatprep.subr.bf16.mxu1 %v6772_v55  ;;  %v6862_v54 = vld [vmem:[#allocation5 + $0x384] ss:$16 sps:$4 sm:$0xff]   ;;  %v6865_v55 = vld [vmem:[#allocation5 + $0x38c] ss:$16 sps:$4 sm:$0xff]  }
  0x6c   :  { %4757 = vmatpush1.bf16.msra.mxu0 %v6774_v56  ;;  %5249 = vmatpush1.bf16.msra.mxu1 %v6775_v57  ;;  %v6860_v56 = vld [vmem:[#allocation5 + $0x380] ss:$16 sps:$4 sm:$0xff]   ;;  %v6863_v57 = vld [vmem:[#allocation5 + $0x388] ss:$16 sps:$4 sm:$0xff]  }
  0x6d   :  { %4758 = vmatprep.subr.bf16.mxu0 %v6776_v58  ;;  %5250 = vmatprep.subr.bf16.mxu1 %v6778_v59  ;;  %v6868_v58 = vld [vmem:[#allocation5 + $0x3a4] ss:$16 sps:$4 sm:$0xff]   ;;  %v6871_v59 = vld [vmem:[#allocation5 + $0x3ac] ss:$16 sps:$4 sm:$0xff]  }
  0x70   :  { %4759 = vmatpush1.bf16.msra.mxu0 %v6780_v60  ;;  %5251 = vmatpush1.bf16.msra.mxu1 %v6781_v61  ;;  %v6866_v60 = vld [vmem:[#allocation5 + $0x3a0] ss:$16 sps:$4 sm:$0xff]   ;;  %v6869_v61 = vld [vmem:[#allocation5 + $0x3a8] ss:$16 sps:$4 sm:$0xff]  }
  0x71   :  { %4760 = vmatprep.subr.bf16.mxu0 %v6782_v62  ;;  %5252 = vmatprep.subr.bf16.mxu1 %v6784_v63  ;;  %v6874_v62 = vld [vmem:[#allocation5 + $0x3c4] ss:$16 sps:$4 sm:$0xff]   ;;  %v6877_v63 = vld [vmem:[#allocation5 + $0x3cc] ss:$16 sps:$4 sm:$0xff]  }
  0x74   :  { %4761 = vmatpush1.bf16.msra.mxu0 %v6786_v0  ;;  %5253 = vmatpush1.bf16.msra.mxu1 %v6787_v1  ;;  %v6872_v0 = vld [vmem:[#allocation5 + $0x3c0] ss:$16 sps:$4 sm:$0xff]   ;;  %v6875_v1 = vld [vmem:[#allocation5 + $0x3c8] ss:$16 sps:$4 sm:$0xff]  }
  0x75   :  { %4771 = vmatprep.subr.bf16.mxu0 %v6790_v3  ;;  %5263 = vmatprep.subr.bf16.mxu1 %v6793_v4  ;;  %v6883_v3 = vld [vmem:[#allocation5 + $0x3ec] ss:$16 sps:$4 sm:$0xff]   ;;  %v6878_v4 = vld [vmem:[#allocation5 + $0x3e0] ss:$16 sps:$4 sm:$0xff]  }
  0x77   :  { %4763 = vmatmul.mubr.bf16.vlgmr.msra.gmra.mrb[0].mxu0 %v76_v5  ;;  %5255 = vmatmul.mubr.bf16.vlgmr.msra.gmra.mrb[0].mxu1 %v76_v5  ;;  %v6881_v5 = vld [vmem:[#allocation5 + $0x3e8] ss:$16 sps:$4 sm:$0xff]  }
  0x78   :  { %4772 = vmatpush1.bf16.msra.mxu0 %v6788_v6  ;;  %5264 = vmatpush1.bf16.msra.mxu1 %v6791_v7  ;;  %v6886_v6 = vld [vmem:[#allocation5 + $0x404] ss:$16 sps:$4 sm:$0xff]  }
  0x79   :  { %4773 = vmatprep.subr.bf16.mxu0 %v6796_v8  ;;  %5265 = vmatprep.subr.bf16.mxu1 %v6799_v9  ;;  %v54_v7 = vld [vmem:[#allocation2 + $0x10] sm:$0xff]  ;;  %v6889_v8 = vld [vmem:[#allocation5 + $0x40c] ss:$16 sps:$4 sm:$0xff]  }
  0x7a   :  { %4803 = vmatprep.mubr.bf16.mxu0 %v79_v32  ;;  %5295 = vmatprep.mubr.bf16.mxu1 %v79_v32  ;;  %v6884_v9 = vld [vmem:[#allocation5 + $0x400] ss:$16 sps:$4 sm:$0xff]  }
  0x7b   :  { %v6914_v32 = vld [vmem:[#allocation5 + $0x4a0] ss:$16 sps:$4 sm:$0xff]  }
  0x7c   :  { %4774 = vmatpush1.bf16.msra.mxu0 %v6794_v10  ;;  %5266 = vmatpush1.bf16.msra.mxu1 %v6797_v11  ;;  %v6887_v10 = vld [vmem:[#allocation5 + $0x408] ss:$16 sps:$4 sm:$0xff]   ;;  %v78_v11 = vpack.c.bf16 %v54_v7, %v54_v7  ;;  %v6979_v7 = vld [vmem:[#allocation5 + $0x5ec] ss:$16 sps:$4 sm:$0xff]  }
  0x7d   :  { %4775 = vmatprep.subr.bf16.mxu0 %v6802_v12  ;;  %5267 = vmatprep.subr.bf16.mxu1 %v6805_v13  ;;  %v6892_v12 = vld [vmem:[#allocation5 + $0x424] ss:$16 sps:$4 sm:$0xff]   ;;  %v6895_v13 = vld [vmem:[#allocation5 + $0x42c] ss:$16 sps:$4 sm:$0xff]  }
  0x80   :  { %4776 = vmatpush1.bf16.msra.mxu0 %v6800_v14  ;;  %5268 = vmatpush1.bf16.msra.mxu1 %v6803_v15  ;;  %v57_v14 = vld [vmem:[#allocation2 + $0x28] sm:$0xff] }
  0x81   :  { %4777 = vmatprep.subr.bf16.mxu0 %v6808_v16  ;;  %5269 = vmatprep.subr.bf16.mxu1 %v6811_v17  ;;  %v81_v15 = vpack.c.bf16 %v57_v14, %v57_v14  ;;  %v6890_v16 = vld [vmem:[#allocation5 + $0x420] ss:$16 sps:$4 sm:$0xff]   ;;  %v6893_v17 = vld [vmem:[#allocation5 + $0x428] ss:$16 sps:$4 sm:$0xff]  }
  0x82   :  { %v6983_v14 = vld [vmem:[#allocation5 + $0x608] ss:$16 sps:$4 sm:$0xff]  }
  0x84   :  { %4778 = vmatpush1.bf16.msra.mxu0 %v6806_v18  ;;  %5270 = vmatpush1.bf16.msra.mxu1 %v6809_v19  ;;  %v6898_v18 = vld [vmem:[#allocation5 + $0x444] ss:$16 sps:$4 sm:$0xff]   ;;  %v6901_v19 = vld [vmem:[#allocation5 + $0x44c] ss:$16 sps:$4 sm:$0xff]  }
  0x85   :  { %4779 = vmatprep.subr.bf16.mxu0 %v6814_v20  ;;  %5271 = vmatprep.subr.bf16.mxu1 %v6817_v21  ;;  %v6896_v20 = vld [vmem:[#allocation5 + $0x440] ss:$16 sps:$4 sm:$0xff]   ;;  %v6899_v21 = vld [vmem:[#allocation5 + $0x448] ss:$16 sps:$4 sm:$0xff]  }
  0x88   :  { %4780 = vmatpush1.bf16.msra.mxu0 %v6812_v22  ;;  %5272 = vmatpush1.bf16.msra.mxu1 %v6815_v23  ;;  %v6904_v22 = vld [vmem:[#allocation5 + $0x464] ss:$16 sps:$4 sm:$0xff]   ;;  %v6907_v23 = vld [vmem:[#allocation5 + $0x46c] ss:$16 sps:$4 sm:$0xff]  }
  0x89   :  { %4781 = vmatprep.subr.bf16.mxu0 %v6820_v24  ;;  %5273 = vmatprep.subr.bf16.mxu1 %v6823_v25  ;;  %v6902_v24 = vld [vmem:[#allocation5 + $0x460] ss:$16 sps:$4 sm:$0xff]   ;;  %v6905_v25 = vld [vmem:[#allocation5 + $0x468] ss:$16 sps:$4 sm:$0xff]  }
  0x8c   :  { %4782 = vmatpush1.bf16.msra.mxu0 %v6818_v26  ;;  %5274 = vmatpush1.bf16.msra.mxu1 %v6821_v27  ;;  %v6910_v26 = vld [vmem:[#allocation5 + $0x484] ss:$16 sps:$4 sm:$0xff]   ;;  %v6913_v27 = vld [vmem:[#allocation5 + $0x48c] ss:$16 sps:$4 sm:$0xff]  }
  0x8d   :  { %4783 = vmatprep.subr.bf16.mxu0 %v6826_v28  ;;  %5275 = vmatprep.subr.bf16.mxu1 %v6829_v29  ;;  %v6908_v28 = vld [vmem:[#allocation5 + $0x480] ss:$16 sps:$4 sm:$0xff]   ;;  %v6911_v29 = vld [vmem:[#allocation5 + $0x488] ss:$16 sps:$4 sm:$0xff]  }
  0x90   :  { %4784 = vmatpush1.bf16.msra.mxu0 %v6824_v31  ;;  %5276 = vmatpush1.bf16.msra.mxu1 %v6827_v33  ;;  %v6919_v31 = vld [vmem:[#allocation5 + $0x4ac] ss:$16 sps:$4 sm:$0xff]   ;;  %v6917_v33 = vld [vmem:[#allocation5 + $0x4a8] ss:$16 sps:$4 sm:$0xff]  }
  0x91   :  { %4785 = vmatprep.subr.bf16.mxu0 %v6832_v34  ;;  %5277 = vmatprep.subr.bf16.mxu1 %v6835_v35  ;;  %v6922_v34 = vld [vmem:[#allocation5 + $0x4c4] ss:$16 sps:$4 sm:$0xff]   ;;  %v6925_v35 = vld [vmem:[#allocation5 + $0x4cc] ss:$16 sps:$4 sm:$0xff]  }
  0x94   :  { %4786 = vmatpush1.bf16.msra.mxu0 %v6830_v36  ;;  %5278 = vmatpush1.bf16.msra.mxu1 %v6833_v37  ;;  %v6920_v36 = vld [vmem:[#allocation5 + $0x4c0] ss:$16 sps:$4 sm:$0xff]   ;;  %v6923_v37 = vld [vmem:[#allocation5 + $0x4c8] ss:$16 sps:$4 sm:$0xff]  }
  0x95   :  { %4787 = vmatprep.subr.bf16.mxu0 %v6838_v38  ;;  %5279 = vmatprep.subr.bf16.mxu1 %v6841_v39  ;;  %v6928_v38 = vld [vmem:[#allocation5 + $0x4e4] ss:$16 sps:$4 sm:$0xff]   ;;  %v6931_v39 = vld [vmem:[#allocation5 + $0x4ec] ss:$16 sps:$4 sm:$0xff]  }
  0x98   :  { %4788 = vmatpush1.bf16.msra.mxu0 %v6836_v40  ;;  %5280 = vmatpush1.bf16.msra.mxu1 %v6839_v41  ;;  %v6926_v40 = vld [vmem:[#allocation5 + $0x4e0] ss:$16 sps:$4 sm:$0xff]   ;;  %v6929_v41 = vld [vmem:[#allocation5 + $0x4e8] ss:$16 sps:$4 sm:$0xff]  }
  0x99   :  { %4789 = vmatprep.subr.bf16.mxu0 %v6844_v42  ;;  %5281 = vmatprep.subr.bf16.mxu1 %v6847_v43  ;;  %v6934_v42 = vld [vmem:[#allocation5 + $0x504] ss:$16 sps:$4 sm:$0xff]   ;;  %v6937_v43 = vld [vmem:[#allocation5 + $0x50c] ss:$16 sps:$4 sm:$0xff]  }
  0x9c   :  { %4790 = vmatpush1.bf16.msra.mxu0 %v6842_v44  ;;  %5282 = vmatpush1.bf16.msra.mxu1 %v6845_v45  ;;  %v6932_v44 = vld [vmem:[#allocation5 + $0x500] ss:$16 sps:$4 sm:$0xff]   ;;  %v6935_v45 = vld [vmem:[#allocation5 + $0x508] ss:$16 sps:$4 sm:$0xff]  }
  0x9d   :  { %4791 = vmatprep.subr.bf16.mxu0 %v6850_v46  ;;  %5283 = vmatprep.subr.bf16.mxu1 %v6853_v47  ;;  %v6940_v46 = vld [vmem:[#allocation5 + $0x524] ss:$16 sps:$4 sm:$0xff]   ;;  %v6943_v47 = vld [vmem:[#allocation5 + $0x52c] ss:$16 sps:$4 sm:$0xff]  }
  0xa0   :  { %4792 = vmatpush1.bf16.msra.mxu0 %v6848_v48  ;;  %5284 = vmatpush1.bf16.msra.mxu1 %v6851_v49  ;;  %v6938_v48 = vld [vmem:[#allocation5 + $0x520] ss:$16 sps:$4 sm:$0xff]   ;;  %v6941_v49 = vld [vmem:[#allocation5 + $0x528] ss:$16 sps:$4 sm:$0xff]  }
  0xa1   :  { %4793 = vmatprep.subr.bf16.mxu0 %v6856_v50  ;;  %5285 = vmatprep.subr.bf16.mxu1 %v6859_v51  ;;  %v6946_v50 = vld [vmem:[#allocation5 + $0x544] ss:$16 sps:$4 sm:$0xff]   ;;  %v6949_v51 = vld [vmem:[#allocation5 + $0x54c] ss:$16 sps:$4 sm:$0xff]  }
  0xa4   :  { %4794 = vmatpush1.bf16.msra.mxu0 %v6854_v52  ;;  %5286 = vmatpush1.bf16.msra.mxu1 %v6857_v53  ;;  %v6944_v52 = vld [vmem:[#allocation5 + $0x540] ss:$16 sps:$4 sm:$0xff]   ;;  %v6947_v53 = vld [vmem:[#allocation5 + $0x548] ss:$16 sps:$4 sm:$0xff]  }
  0xa5   :  { %4795 = vmatprep.subr.bf16.mxu0 %v6862_v54  ;;  %5287 = vmatprep.subr.bf16.mxu1 %v6865_v55  ;;  %v6952_v54 = vld [vmem:[#allocation5 + $0x564] ss:$16 sps:$4 sm:$0xff]   ;;  %v6955_v55 = vld [vmem:[#allocation5 + $0x56c] ss:$16 sps:$4 sm:$0xff]  }
  0xa8   :  { %4796 = vmatpush1.bf16.msra.mxu0 %v6860_v56  ;;  %5288 = vmatpush1.bf16.msra.mxu1 %v6863_v57  ;;  %v6950_v56 = vld [vmem:[#allocation5 + $0x560] ss:$16 sps:$4 sm:$0xff]   ;;  %v6953_v57 = vld [vmem:[#allocation5 + $0x568] ss:$16 sps:$4 sm:$0xff]  }
  0xa9   :  { %4797 = vmatprep.subr.bf16.mxu0 %v6868_v58  ;;  %5289 = vmatprep.subr.bf16.mxu1 %v6871_v59  ;;  %v6958_v58 = vld [vmem:[#allocation5 + $0x584] ss:$16 sps:$4 sm:$0xff]   ;;  %v6961_v59 = vld [vmem:[#allocation5 + $0x58c] ss:$16 sps:$4 sm:$0xff]  }
  0xac   :  { %4798 = vmatpush1.bf16.msra.mxu0 %v6866_v60  ;;  %5290 = vmatpush1.bf16.msra.mxu1 %v6869_v61  ;;  %v6956_v60 = vld [vmem:[#allocation5 + $0x580] ss:$16 sps:$4 sm:$0xff]   ;;  %v6959_v61 = vld [vmem:[#allocation5 + $0x588] ss:$16 sps:$4 sm:$0xff]  }
  0xad   :  { %4799 = vmatprep.subr.bf16.mxu0 %v6874_v62  ;;  %5291 = vmatprep.subr.bf16.mxu1 %v6877_v63  ;;  %v6964_v62 = vld [vmem:[#allocation5 + $0x5a4] ss:$16 sps:$4 sm:$0xff]   ;;  %v6967_v63 = vld [vmem:[#allocation5 + $0x5ac] ss:$16 sps:$4 sm:$0xff]  }
  0xb0   :  { %4800 = vmatpush1.bf16.msra.mxu0 %v6872_v0  ;;  %5292 = vmatpush1.bf16.msra.mxu1 %v6875_v1  ;;  %v6962_v0 = vld [vmem:[#allocation5 + $0x5a0] ss:$16 sps:$4 sm:$0xff]   ;;  %v6965_v1 = vld [vmem:[#allocation5 + $0x5a8] ss:$16 sps:$4 sm:$0xff]  }
  0xb1   :  { %4801 = vmatprep.subr.bf16.mxu0 %v6880_v2  ;;  %5293 = vmatprep.subr.bf16.mxu1 %v6883_v3  ;;  %v6970_v2 = vld [vmem:[#allocation5 + $0x5c4] ss:$16 sps:$4 sm:$0xff]   ;;  %v6973_v3 = vld [vmem:[#allocation5 + $0x5cc] ss:$16 sps:$4 sm:$0xff]  }
  0xb4   :  { %4802 = vmatpush1.bf16.msra.mxu0 %v6878_v4  ;;  %5294 = vmatpush1.bf16.msra.mxu1 %v6881_v5  ;;  %v6968_v4 = vld [vmem:[#allocation5 + $0x5c0] ss:$16 sps:$4 sm:$0xff]   ;;  %v6971_v5 = vld [vmem:[#allocation5 + $0x5c8] ss:$16 sps:$4 sm:$0xff]  }
  0xb5   :  { %4812 = vmatprep.subr.bf16.mxu0 %v6886_v6  ;;  %5304 = vmatprep.subr.bf16.mxu1 %v6889_v8  ;;  %v6976_v6 = vld [vmem:[#allocation5 + $0x5e4] ss:$16 sps:$4 sm:$0xff]   ;;  %v6974_v8 = vld [vmem:[#allocation5 + $0x5e0] ss:$16 sps:$4 sm:$0xff]  }
  0xb7   :  { %4804 = vmatmul.mubr.bf16.vlgmr.msra.gmra.mrb[0].mxu0 %v78_v11  ;;  %5296 = vmatmul.mubr.bf16.vlgmr.msra.gmra.mrb[0].mxu1 %v78_v11  ;;  %v56_v11 = vld [vmem:[#allocation2 + $0x20] sm:$0xff] }
  0xb8   :  { %4813 = vmatpush1.bf16.msra.mxu0 %v6884_v9  ;;  %5305 = vmatpush1.bf16.msra.mxu1 %v6887_v10  ;;  %v6977_v9 = vld [vmem:[#allocation5 + $0x5e8] ss:$16 sps:$4 sm:$0xff]   ;;  %v6982_v10 = vld [vmem:[#allocation5 + $0x604] ss:$16 sps:$4 sm:$0xff]  }
  0xb9   :  { %4814 = vmatprep.subr.bf16.mxu0 %v6892_v12  ;;  %5306 = vmatprep.subr.bf16.mxu1 %v6895_v13  ;;  %v6985_v12 = vld [vmem:[#allocation5 + $0x60c] ss:$16 sps:$4 sm:$0xff]   ;;  %v6980_v13 = vld [vmem:[#allocation5 + $0x600] ss:$16 sps:$4 sm:$0xff]  }
  0xba   :  { %4844 = vmatprep.mubr.bf16.mxu0 %v81_v15  ;;  %5336 = vmatprep.mubr.bf16.mxu1 %v81_v15  ;;  %v80_v15 = vpack.c.bf16 %v56_v11, %v56_v11  ;;  %v7075_v11 = vld [vmem:[#allocation5 + $0x7ec] ss:$16 sps:$4 sm:$0xff]  }
  0xbc   :  { %4815 = vmatpush1.bf16.msra.mxu0 %v6890_v16  ;;  %5307 = vmatpush1.bf16.msra.mxu1 %v6893_v17  ;;  %v59_v16 = vld [vmem:[#allocation2 + $0x38] sm:$0xff]  ;;  %v6988_v17 = vld [vmem:[#allocation5 + $0x624] ss:$16 sps:$4 sm:$0xff]  }
  0xbd   :  { %4816 = vmatprep.subr.bf16.mxu0 %v6898_v18  ;;  %5308 = vmatprep.subr.bf16.mxu1 %v6901_v19  ;;  %v6991_v18 = vld [vmem:[#allocation5 + $0x62c] ss:$16 sps:$4 sm:$0xff]   ;;  %v83_v19 = vpack.c.bf16 %v59_v16, %v59_v16 }
  0xbe   :  { %v7081_v16 = vld [vmem:[#allocation5 + $0x80c] ss:$16 sps:$4 sm:$0xff]  }
  0xc0   :  { %4817 = vmatpush1.bf16.msra.mxu0 %v6896_v20  ;;  %5309 = vmatpush1.bf16.msra.mxu1 %v6899_v21  ;;  %v6986_v20 = vld [vmem:[#allocation5 + $0x620] ss:$16 sps:$4 sm:$0xff]   ;;  %v6989_v21 = vld [vmem:[#allocation5 + $0x628] ss:$16 sps:$4 sm:$0xff]  }
  0xc1   :  { %4818 = vmatprep.subr.bf16.mxu0 %v6904_v22  ;;  %5310 = vmatprep.subr.bf16.mxu1 %v6907_v23  ;;  %v6994_v22 = vld [vmem:[#allocation5 + $0x644] ss:$16 sps:$4 sm:$0xff]   ;;  %v6997_v23 = vld [vmem:[#allocation5 + $0x64c] ss:$16 sps:$4 sm:$0xff]  }
  0xc4   :  { %4819 = vmatpush1.bf16.msra.mxu0 %v6902_v24  ;;  %5311 = vmatpush1.bf16.msra.mxu1 %v6905_v25  ;;  %v6992_v24 = vld [vmem:[#allocation5 + $0x640] ss:$16 sps:$4 sm:$0xff]   ;;  %v6995_v25 = vld [vmem:[#allocation5 + $0x648] ss:$16 sps:$4 sm:$0xff]  }
  0xc5   :  { %4820 = vmatprep.subr.bf16.mxu0 %v6910_v26  ;;  %5312 = vmatprep.subr.bf16.mxu1 %v6913_v27  ;;  %v7000_v26 = vld [vmem:[#allocation5 + $0x664] ss:$16 sps:$4 sm:$0xff]   ;;  %v7003_v27 = vld [vmem:[#allocation5 + $0x66c] ss:$16 sps:$4 sm:$0xff]  }
  0xc8   :  { %4821 = vmatpush1.bf16.msra.mxu0 %v6908_v28  ;;  %5313 = vmatpush1.bf16.msra.mxu1 %v6911_v29  ;;  %v6998_v28 = vld [vmem:[#allocation5 + $0x660] ss:$16 sps:$4 sm:$0xff]   ;;  %v7001_v29 = vld [vmem:[#allocation5 + $0x668] ss:$16 sps:$4 sm:$0xff]  }
  0xc9   :  { %4822 = vmatprep.subr.bf16.mxu0 %v6916_v30  ;;  %5314 = vmatprep.subr.bf16.mxu1 %v6919_v31  ;;  %v7006_v30 = vld [vmem:[#allocation5 + $0x684] ss:$16 sps:$4 sm:$0xff]   ;;  %v7009_v31 = vld [vmem:[#allocation5 + $0x68c] ss:$16 sps:$4 sm:$0xff]  }
  0xcc   :  { %4823 = vmatpush1.bf16.msra.mxu0 %v6914_v32  ;;  %5315 = vmatpush1.bf16.msra.mxu1 %v6917_v33  ;;  %v7004_v32 = vld [vmem:[#allocation5 + $0x680] ss:$16 sps:$4 sm:$0xff]   ;;  %v7007_v33 = vld [vmem:[#allocation5 + $0x688] ss:$16 sps:$4 sm:$0xff]  }
  0xcd   :  { %4824 = vmatprep.subr.bf16.mxu0 %v6922_v34  ;;  %5316 = vmatprep.subr.bf16.mxu1 %v6925_v35  ;;  %v7012_v34 = vld [vmem:[#allocation5 + $0x6a4] ss:$16 sps:$4 sm:$0xff]   ;;  %v7015_v35 = vld [vmem:[#allocation5 + $0x6ac] ss:$16 sps:$4 sm:$0xff]  }
  0xd0   :  { %4825 = vmatpush1.bf16.msra.mxu0 %v6920_v36  ;;  %5317 = vmatpush1.bf16.msra.mxu1 %v6923_v37  ;;  %v7010_v36 = vld [vmem:[#allocation5 + $0x6a0] ss:$16 sps:$4 sm:$0xff]   ;;  %v7013_v37 = vld [vmem:[#allocation5 + $0x6a8] ss:$16 sps:$4 sm:$0xff]  }
  0xd1   :  { %4826 = vmatprep.subr.bf16.mxu0 %v6928_v38  ;;  %5318 = vmatprep.subr.bf16.mxu1 %v6931_v39  ;;  %v7018_v38 = vld [vmem:[#allocation5 + $0x6c4] ss:$16 sps:$4 sm:$0xff]   ;;  %v7021_v39 = vld [vmem:[#allocation5 + $0x6cc] ss:$16 sps:$4 sm:$0xff]  }
  0xd4   :  { %4827 = vmatpush1.bf16.msra.mxu0 %v6926_v40  ;;  %5319 = vmatpush1.bf16.msra.mxu1 %v6929_v41  ;;  %v7016_v40 = vld [vmem:[#allocation5 + $0x6c0] ss:$16 sps:$4 sm:$0xff]   ;;  %v7019_v41 = vld [vmem:[#allocation5 + $0x6c8] ss:$16 sps:$4 sm:$0xff]  }
  0xd5   :  { %4828 = vmatprep.subr.bf16.mxu0 %v6934_v42  ;;  %5320 = vmatprep.subr.bf16.mxu1 %v6937_v43  ;;  %v7024_v42 = vld [vmem:[#allocation5 + $0x6e4] ss:$16 sps:$4 sm:$0xff]   ;;  %v7027_v43 = vld [vmem:[#allocation5 + $0x6ec] ss:$16 sps:$4 sm:$0xff]  }
  0xd8   :  { %4829 = vmatpush1.bf16.msra.mxu0 %v6932_v44  ;;  %5321 = vmatpush1.bf16.msra.mxu1 %v6935_v45  ;;  %v7022_v44 = vld [vmem:[#allocation5 + $0x6e0] ss:$16 sps:$4 sm:$0xff]   ;;  %v7025_v45 = vld [vmem:[#allocation5 + $0x6e8] ss:$16 sps:$4 sm:$0xff]  }
  0xd9   :  { %4830 = vmatprep.subr.bf16.mxu0 %v6940_v46  ;;  %5322 = vmatprep.subr.bf16.mxu1 %v6943_v47  ;;  %v7030_v46 = vld [vmem:[#allocation5 + $0x704] ss:$16 sps:$4 sm:$0xff]   ;;  %v7033_v47 = vld [vmem:[#allocation5 + $0x70c] ss:$16 sps:$4 sm:$0xff]  }
  0xdc   :  { %4831 = vmatpush1.bf16.msra.mxu0 %v6938_v48  ;;  %5323 = vmatpush1.bf16.msra.mxu1 %v6941_v49  ;;  %v7028_v48 = vld [vmem:[#allocation5 + $0x700] ss:$16 sps:$4 sm:$0xff]   ;;  %v7031_v49 = vld [vmem:[#allocation5 + $0x708] ss:$16 sps:$4 sm:$0xff]  }
  0xdd   :  { %4832 = vmatprep.subr.bf16.mxu0 %v6946_v50  ;;  %5324 = vmatprep.subr.bf16.mxu1 %v6949_v51  ;;  %v7036_v50 = vld [vmem:[#allocation5 + $0x724] ss:$16 sps:$4 sm:$0xff]   ;;  %v7039_v51 = vld [vmem:[#allocation5 + $0x72c] ss:$16 sps:$4 sm:$0xff]  }
  0xe0   :  { %4833 = vmatpush1.bf16.msra.mxu0 %v6944_v52  ;;  %5325 = vmatpush1.bf16.msra.mxu1 %v6947_v53  ;;  %v7034_v52 = vld [vmem:[#allocation5 + $0x720] ss:$16 sps:$4 sm:$0xff]   ;;  %v7037_v53 = vld [vmem:[#allocation5 + $0x728] ss:$16 sps:$4 sm:$0xff]  }
  0xe1   :  { %4834 = vmatprep.subr.bf16.mxu0 %v6952_v54  ;;  %5326 = vmatprep.subr.bf16.mxu1 %v6955_v55  ;;  %v7042_v54 = vld [vmem:[#allocation5 + $0x744] ss:$16 sps:$4 sm:$0xff]   ;;  %v7045_v55 = vld [vmem:[#allocation5 + $0x74c] ss:$16 sps:$4 sm:$0xff]  }
  0xe4   :  { %4835 = vmatpush1.bf16.msra.mxu0 %v6950_v56  ;;  %5327 = vmatpush1.bf16.msra.mxu1 %v6953_v57  ;;  %v7040_v56 = vld [vmem:[#allocation5 + $0x740] ss:$16 sps:$4 sm:$0xff]   ;;  %v7043_v57 = vld [vmem:[#allocation5 + $0x748] ss:$16 sps:$4 sm:$0xff]  }
  0xe5   :  { %4836 = vmatprep.subr.bf16.mxu0 %v6958_v58  ;;  %5328 = vmatprep.subr.bf16.mxu1 %v6961_v59  ;;  %v7048_v58 = vld [vmem:[#allocation5 + $0x764] ss:$16 sps:$4 sm:$0xff]   ;;  %v7051_v59 = vld [vmem:[#allocation5 + $0x76c] ss:$16 sps:$4 sm:$0xff]  }
  0xe8   :  { %4837 = vmatpush1.bf16.msra.mxu0 %v6956_v60  ;;  %5329 = vmatpush1.bf16.msra.mxu1 %v6959_v61  ;;  %v7046_v60 = vld [vmem:[#allocation5 + $0x760] ss:$16 sps:$4 sm:$0xff]   ;;  %v7049_v61 = vld [vmem:[#allocation5 + $0x768] ss:$16 sps:$4 sm:$0xff]  }
  0xe9   :  { %4838 = vmatprep.subr.bf16.mxu0 %v6964_v62  ;;  %5330 = vmatprep.subr.bf16.mxu1 %v6967_v63  ;;  %v7054_v62 = vld [vmem:[#allocation5 + $0x784] ss:$16 sps:$4 sm:$0xff]   ;;  %v7057_v63 = vld [vmem:[#allocation5 + $0x78c] ss:$16 sps:$4 sm:$0xff]  }
  0xec   :  { %4839 = vmatpush1.bf16.msra.mxu0 %v6962_v0  ;;  %5331 = vmatpush1.bf16.msra.mxu1 %v6965_v1  ;;  %v7052_v0 = vld [vmem:[#allocation5 + $0x780] ss:$16 sps:$4 sm:$0xff]   ;;  %v7055_v1 = vld [vmem:[#allocation5 + $0x788] ss:$16 sps:$4 sm:$0xff]  }
  0xed   :  { %4840 = vmatprep.subr.bf16.mxu0 %v6970_v2  ;;  %5332 = vmatprep.subr.bf16.mxu1 %v6973_v3  ;;  %v7060_v2 = vld [vmem:[#allocation5 + $0x7a4] ss:$16 sps:$4 sm:$0xff]   ;;  %v7063_v3 = vld [vmem:[#allocation5 + $0x7ac] ss:$16 sps:$4 sm:$0xff]  }
  0xf0   :  { %4841 = vmatpush1.bf16.msra.mxu0 %v6968_v4  ;;  %5333 = vmatpush1.bf16.msra.mxu1 %v6971_v5  ;;  %v7058_v4 = vld [vmem:[#allocation5 + $0x7a0] ss:$16 sps:$4 sm:$0xff]   ;;  %v7061_v5 = vld [vmem:[#allocation5 + $0x7a8] ss:$16 sps:$4 sm:$0xff]  }
  0xf1   :  { %4842 = vmatprep.subr.bf16.mxu0 %v6976_v6  ;;  %5334 = vmatprep.subr.bf16.mxu1 %v6979_v7  ;;  %v7066_v6 = vld [vmem:[#allocation5 + $0x7c4] ss:$16 sps:$4 sm:$0xff]   ;;  %v7069_v7 = vld [vmem:[#allocation5 + $0x7cc] ss:$16 sps:$4 sm:$0xff]  }
  0xf4   :  { %4843 = vmatpush1.bf16.msra.mxu0 %v6974_v8  ;;  %5335 = vmatpush1.bf16.msra.mxu1 %v6977_v9  ;;  %v7064_v8 = vld [vmem:[#allocation5 + $0x7c0] ss:$16 sps:$4 sm:$0xff]   ;;  %v7067_v9 = vld [vmem:[#allocation5 + $0x7c8] ss:$16 sps:$4 sm:$0xff]  }
  0xf5   :  { %4853 = vmatprep.subr.bf16.mxu0 %v6982_v10  ;;  %5345 = vmatprep.subr.bf16.mxu1 %v6985_v12  ;;  %v7072_v10 = vld [vmem:[#allocation5 + $0x7e4] ss:$16 sps:$4 sm:$0xff]   ;;  %v7070_v12 = vld [vmem:[#allocation5 + $0x7e0] ss:$16 sps:$4 sm:$0xff]  }
  0xf7   :  { %4845 = vmatmul.mubr.bf16.vlgmr.msra.gmra.mrb[0].mxu0 %v80_v15  ;;  %5337 = vmatmul.mubr.bf16.vlgmr.msra.gmra.mrb[0].mxu1 %v80_v15  ;;  %v7078_v15 = vld [vmem:[#allocation5 + $0x804] ss:$16 sps:$4 sm:$0xff]  }
  0xf8   :  { %4854 = vmatpush1.bf16.msra.mxu0 %v6980_v13  ;;  %5346 = vmatpush1.bf16.msra.mxu1 %v6983_v14  ;;  %v7073_v13 = vld [vmem:[#allocation5 + $0x7e8] ss:$16 sps:$4 sm:$0xff]   ;;  %v58_v14 = vld [vmem:[#allocation2 + $0x30] sm:$0xff] }
  0xf9   :  { %4855 = vmatprep.subr.bf16.mxu0 %v6988_v17  ;;  %5347 = vmatprep.subr.bf16.mxu1 %v6991_v18  ;;  %v82_v17 = vpack.c.bf16 %v58_v14, %v58_v14  ;;  %v61_v18 = vld [vmem:[#allocation2 + $0x48] sm:$0xff]  ;;  %v7168_v14 = vld [vmem:[#allocation5 + $0x9e4] ss:$16 sps:$4 sm:$0xff]  }
  0xfa   :  { %4885 = vmatprep.mubr.bf16.mxu0 %v83_v19  ;;  %5377 = vmatprep.mubr.bf16.mxu1 %v83_v19  ;;  %v7076_v19 = vld [vmem:[#allocation5 + $0x800] ss:$16 sps:$4 sm:$0xff]  }
  0xfc   :  { %4856 = vmatpush1.bf16.msra.mxu0 %v6986_v20  ;;  %5348 = vmatpush1.bf16.msra.mxu1 %v6989_v21  ;;  %v7079_v20 = vld [vmem:[#allocation5 + $0x808] ss:$16 sps:$4 sm:$0xff]   ;;  %v7084_v21 = vld [vmem:[#allocation5 + $0x824] ss:$16 sps:$4 sm:$0xff]  }
  0xfd   :  { %4857 = vmatprep.subr.bf16.mxu0 %v6994_v22  ;;  %5349 = vmatprep.subr.bf16.mxu1 %v6997_v23  ;;  %v7087_v22 = vld [vmem:[#allocation5 + $0x82c] ss:$16 sps:$4 sm:$0xff]   ;;  %v85_v23 = vpack.c.bf16 %v61_v18, %v61_v18  ;;  %v7174_v18 = vld [vmem:[#allocation5 + $0xa04] ss:$16 sps:$4 sm:$0xff]  }
 0x100   :  { %4858 = vmatpush1.bf16.msra.mxu0 %v6992_v24  ;;  %5350 = vmatpush1.bf16.msra.mxu1 %v6995_v25  ;;  %v7082_v24 = vld [vmem:[#allocation5 + $0x820] ss:$16 sps:$4 sm:$0xff]   ;;  %v7085_v25 = vld [vmem:[#allocation5 + $0x828] ss:$16 sps:$4 sm:$0xff]  }
 0x101   :  { %4859 = vmatprep.subr.bf16.mxu0 %v7000_v26  ;;  %5351 = vmatprep.subr.bf16.mxu1 %v7003_v27  ;;  %v7090_v26 = vld [vmem:[#allocation5 + $0x844] ss:$16 sps:$4 sm:$0xff]   ;;  %v7093_v27 = vld [vmem:[#allocation5 + $0x84c] ss:$16 sps:$4 sm:$0xff]  }
 0x104   :  { %4860 = vmatpush1.bf16.msra.mxu0 %v6998_v28  ;;  %5352 = vmatpush1.bf16.msra.mxu1 %v7001_v29  ;;  %v7088_v28 = vld [vmem:[#allocation5 + $0x840] ss:$16 sps:$4 sm:$0xff]   ;;  %v7091_v29 = vld [vmem:[#allocation5 + $0x848] ss:$16 sps:$4 sm:$0xff]  }
 0x105   :  { %4861 = vmatprep.subr.bf16.mxu0 %v7006_v30  ;;  %5353 = vmatprep.subr.bf16.mxu1 %v7009_v31  ;;  %v7096_v30 = vld [vmem:[#allocation5 + $0x864] ss:$16 sps:$4 sm:$0xff]   ;;  %v7099_v31 = vld [vmem:[#allocation5 + $0x86c] ss:$16 sps:$4 sm:$0xff]  }
 0x108   :  { %4862 = vmatpush1.bf16.msra.mxu0 %v7004_v32  ;;  %5354 = vmatpush1.bf16.msra.mxu1 %v7007_v33  ;;  %v7094_v32 = vld [vmem:[#allocation5 + $0x860] ss:$16 sps:$4 sm:$0xff]   ;;  %v7097_v33 = vld [vmem:[#allocation5 + $0x868] ss:$16 sps:$4 sm:$0xff]  }
 0x109   :  { %4863 = vmatprep.subr.bf16.mxu0 %v7012_v34  ;;  %5355 = vmatprep.subr.bf16.mxu1 %v7015_v35  ;;  %v7102_v34 = vld [vmem:[#allocation5 + $0x884] ss:$16 sps:$4 sm:$0xff]   ;;  %v7105_v35 = vld [vmem:[#allocation5 + $0x88c] ss:$16 sps:$4 sm:$0xff]  }
 0x10c   :  { %4864 = vmatpush1.bf16.msra.mxu0 %v7010_v36  ;;  %5356 = vmatpush1.bf16.msra.mxu1 %v7013_v37  ;;  %v7100_v36 = vld [vmem:[#allocation5 + $0x880] ss:$16 sps:$4 sm:$0xff]   ;;  %v7103_v37 = vld [vmem:[#allocation5 + $0x888] ss:$16 sps:$4 sm:$0xff]  }
 0x10d   :  { %4865 = vmatprep.subr.bf16.mxu0 %v7018_v38  ;;  %5357 = vmatprep.subr.bf16.mxu1 %v7021_v39  ;;  %v7108_v38 = vld [vmem:[#allocation5 + $0x8a4] ss:$16 sps:$4 sm:$0xff]   ;;  %v7111_v39 = vld [vmem:[#allocation5 + $0x8ac] ss:$16 sps:$4 sm:$0xff]  }
 0x110   :  { %4866 = vmatpush1.bf16.msra.mxu0 %v7016_v40  ;;  %5358 = vmatpush1.bf16.msra.mxu1 %v7019_v41  ;;  %v7106_v40 = vld [vmem:[#allocation5 + $0x8a0] ss:$16 sps:$4 sm:$0xff]   ;;  %v7109_v41 = vld [vmem:[#allocation5 + $0x8a8] ss:$16 sps:$4 sm:$0xff]  }
 0x111   :  { %4867 = vmatprep.subr.bf16.mxu0 %v7024_v42  ;;  %5359 = vmatprep.subr.bf16.mxu1 %v7027_v43  ;;  %v7114_v42 = vld [vmem:[#allocation5 + $0x8c4] ss:$16 sps:$4 sm:$0xff]   ;;  %v7117_v43 = vld [vmem:[#allocation5 + $0x8cc] ss:$16 sps:$4 sm:$0xff]  }
 0x114   :  { %4868 = vmatpush1.bf16.msra.mxu0 %v7022_v44  ;;  %5360 = vmatpush1.bf16.msra.mxu1 %v7025_v45  ;;  %v7112_v44 = vld [vmem:[#allocation5 + $0x8c0] ss:$16 sps:$4 sm:$0xff]   ;;  %v7115_v45 = vld [vmem:[#allocation5 + $0x8c8] ss:$16 sps:$4 sm:$0xff]  }
 0x115   :  { %4869 = vmatprep.subr.bf16.mxu0 %v7030_v46  ;;  %5361 = vmatprep.subr.bf16.mxu1 %v7033_v47  ;;  %v7120_v46 = vld [vmem:[#allocation5 + $0x8e4] ss:$16 sps:$4 sm:$0xff]   ;;  %v7123_v47 = vld [vmem:[#allocation5 + $0x8ec] ss:$16 sps:$4 sm:$0xff]  }
 0x118   :  { %4870 = vmatpush1.bf16.msra.mxu0 %v7028_v48  ;;  %5362 = vmatpush1.bf16.msra.mxu1 %v7031_v49  ;;  %v7118_v48 = vld [vmem:[#allocation5 + $0x8e0] ss:$16 sps:$4 sm:$0xff]   ;;  %v7121_v49 = vld [vmem:[#allocation5 + $0x8e8] ss:$16 sps:$4 sm:$0xff]  }
 0x119   :  { %4871 = vmatprep.subr.bf16.mxu0 %v7036_v50  ;;  %5363 = vmatprep.subr.bf16.mxu1 %v7039_v51  ;;  %v7126_v50 = vld [vmem:[#allocation5 + $0x904] ss:$16 sps:$4 sm:$0xff]   ;;  %v7129_v51 = vld [vmem:[#allocation5 + $0x90c] ss:$16 sps:$4 sm:$0xff]  }
 0x11c   :  { %4872 = vmatpush1.bf16.msra.mxu0 %v7034_v52  ;;  %5364 = vmatpush1.bf16.msra.mxu1 %v7037_v53  ;;  %v7124_v52 = vld [vmem:[#allocation5 + $0x900] ss:$16 sps:$4 sm:$0xff]   ;;  %v7127_v53 = vld [vmem:[#allocation5 + $0x908] ss:$16 sps:$4 sm:$0xff]  }
 0x11d   :  { %4873 = vmatprep.subr.bf16.mxu0 %v7042_v54  ;;  %5365 = vmatprep.subr.bf16.mxu1 %v7045_v55  ;;  %v7132_v54 = vld [vmem:[#allocation5 + $0x924] ss:$16 sps:$4 sm:$0xff]   ;;  %v7135_v55 = vld [vmem:[#allocation5 + $0x92c] ss:$16 sps:$4 sm:$0xff]  }
 0x120   :  { %4874 = vmatpush1.bf16.msra.mxu0 %v7040_v56  ;;  %5366 = vmatpush1.bf16.msra.mxu1 %v7043_v57  ;;  %v7130_v56 = vld [vmem:[#allocation5 + $0x920] ss:$16 sps:$4 sm:$0xff]   ;;  %v7133_v57 = vld [vmem:[#allocation5 + $0x928] ss:$16 sps:$4 sm:$0xff]  }
 0x121   :  { %4875 = vmatprep.subr.bf16.mxu0 %v7048_v58  ;;  %5367 = vmatprep.subr.bf16.mxu1 %v7051_v59  ;;  %v7138_v58 = vld [vmem:[#allocation5 + $0x944] ss:$16 sps:$4 sm:$0xff]   ;;  %v7141_v59 = vld [vmem:[#allocation5 + $0x94c] ss:$16 sps:$4 sm:$0xff]  }
 0x124   :  { %4876 = vmatpush1.bf16.msra.mxu0 %v7046_v60  ;;  %5368 = vmatpush1.bf16.msra.mxu1 %v7049_v61  ;;  %v7136_v60 = vld [vmem:[#allocation5 + $0x940] ss:$16 sps:$4 sm:$0xff]   ;;  %v7139_v61 = vld [vmem:[#allocation5 + $0x948] ss:$16 sps:$4 sm:$0xff]  }
 0x125   :  { %4877 = vmatprep.subr.bf16.mxu0 %v7054_v62  ;;  %5369 = vmatprep.subr.bf16.mxu1 %v7057_v63  ;;  %v7144_v62 = vld [vmem:[#allocation5 + $0x964] ss:$16 sps:$4 sm:$0xff]   ;;  %v7147_v63 = vld [vmem:[#allocation5 + $0x96c] ss:$16 sps:$4 sm:$0xff]  }
 0x128   :  { %4878 = vmatpush1.bf16.msra.mxu0 %v7052_v0  ;;  %5370 = vmatpush1.bf16.msra.mxu1 %v7055_v1  ;;  %v7142_v0 = vld [vmem:[#allocation5 + $0x960] ss:$16 sps:$4 sm:$0xff]   ;;  %v7145_v1 = vld [vmem:[#allocation5 + $0x968] ss:$16 sps:$4 sm:$0xff]  }
 0x129   :  { %4879 = vmatprep.subr.bf16.mxu0 %v7060_v2  ;;  %5371 = vmatprep.subr.bf16.mxu1 %v7063_v3  ;;  %v7150_v2 = vld [vmem:[#allocation5 + $0x984] ss:$16 sps:$4 sm:$0xff]   ;;  %v7153_v3 = vld [vmem:[#allocation5 + $0x98c] ss:$16 sps:$4 sm:$0xff]  }
 0x12c   :  { %4880 = vmatpush1.bf16.msra.mxu0 %v7058_v4  ;;  %5372 = vmatpush1.bf16.msra.mxu1 %v7061_v5  ;;  %v7148_v4 = vld [vmem:[#allocation5 + $0x980] ss:$16 sps:$4 sm:$0xff]   ;;  %v7151_v5 = vld [vmem:[#allocation5 + $0x988] ss:$16 sps:$4 sm:$0xff]  }
 0x12d   :  { %4881 = vmatprep.subr.bf16.mxu0 %v7066_v6  ;;  %5373 = vmatprep.subr.bf16.mxu1 %v7069_v7  ;;  %v7156_v6 = vld [vmem:[#allocation5 + $0x9a4] ss:$16 sps:$4 sm:$0xff]   ;;  %v7159_v7 = vld [vmem:[#allocation5 + $0x9ac] ss:$16 sps:$4 sm:$0xff]  }
 0x130   :  { %4882 = vmatpush1.bf16.msra.mxu0 %v7064_v8  ;;  %5374 = vmatpush1.bf16.msra.mxu1 %v7067_v9  ;;  %v7154_v8 = vld [vmem:[#allocation5 + $0x9a0] ss:$16 sps:$4 sm:$0xff]   ;;  %v7157_v9 = vld [vmem:[#allocation5 + $0x9a8] ss:$16 sps:$4 sm:$0xff]  }
 0x131   :  { %4883 = vmatprep.subr.bf16.mxu0 %v7072_v10  ;;  %5375 = vmatprep.subr.bf16.mxu1 %v7075_v11  ;;  %v7162_v10 = vld [vmem:[#allocation5 + $0x9c4] ss:$16 sps:$4 sm:$0xff]   ;;  %v7165_v11 = vld [vmem:[#allocation5 + $0x9cc] ss:$16 sps:$4 sm:$0xff]  }
 0x134   :  { %4884 = vmatpush1.bf16.msra.mxu0 %v7070_v12  ;;  %5376 = vmatpush1.bf16.msra.mxu1 %v7073_v13  ;;  %v7160_v12 = vld [vmem:[#allocation5 + $0x9c0] ss:$16 sps:$4 sm:$0xff]   ;;  %v7163_v13 = vld [vmem:[#allocation5 + $0x9c8] ss:$16 sps:$4 sm:$0xff]  }
 0x135   :  { %4894 = vmatprep.subr.bf16.mxu0 %v7078_v15  ;;  %5386 = vmatprep.subr.bf16.mxu1 %v7081_v16  ;;  %v7171_v15 = vld [vmem:[#allocation5 + $0x9ec] ss:$16 sps:$4 sm:$0xff]   ;;  %v7166_v16 = vld [vmem:[#allocation5 + $0x9e0] ss:$16 sps:$4 sm:$0xff]  }
 0x137   :  { %4886 = vmatmul.mubr.bf16.vlgmr.msra.gmra.mrb[0].mxu0 %v82_v17  ;;  %5378 = vmatmul.mubr.bf16.vlgmr.msra.gmra.mrb[0].mxu1 %v82_v17  ;;  %v7169_v17 = vld [vmem:[#allocation5 + $0x9e8] ss:$16 sps:$4 sm:$0xff]  }
 0x138   :  { %4895 = vmatpush1.bf16.msra.mxu0 %v7076_v19  ;;  %5387 = vmatpush1.bf16.msra.mxu1 %v7079_v20  ;;  %v60_v19 = vld [vmem:[#allocation2 + $0x40] sm:$0xff]  ;;  %v7177_v20 = vld [vmem:[#allocation5 + $0xa0c] ss:$16 sps:$4 sm:$0xff]  }
 0x139   :  { %4896 = vmatprep.subr.bf16.mxu0 %v7084_v21  ;;  %5388 = vmatprep.subr.bf16.mxu1 %v7087_v22  ;;  %v63_v21 = vld [vmem:[#allocation2 + $0x58] sm:$0xff]  ;;  %v84_v22 = vpack.c.bf16 %v60_v19, %v60_v19 }
 0x13a   :  { %4926 = vmatprep.mubr.bf16.mxu0 %v85_v23  ;;  %5418 = vmatprep.mubr.bf16.mxu1 %v85_v23  ;;  %v7172_v23 = vld [vmem:[#allocation5 + $0xa00] ss:$16 sps:$4 sm:$0xff]   ;;  %v7267_v19 = vld [vmem:[#allocation5 + $0xbec] ss:$16 sps:$4 sm:$0xff]  }
 0x13c   :  { %4897 = vmatpush1.bf16.msra.mxu0 %v7082_v24  ;;  %5389 = vmatpush1.bf16.msra.mxu1 %v7085_v25  ;;  %v7175_v24 = vld [vmem:[#allocation5 + $0xa08] ss:$16 sps:$4 sm:$0xff]   ;;  %v7180_v25 = vld [vmem:[#allocation5 + $0xa24] ss:$16 sps:$4 sm:$0xff]  }
 0x13d   :  { %4898 = vmatprep.subr.bf16.mxu0 %v7090_v26  ;;  %5390 = vmatprep.subr.bf16.mxu1 %v7093_v27  ;;  %v7183_v26 = vld [vmem:[#allocation5 + $0xa2c] ss:$16 sps:$4 sm:$0xff]   ;;  %v87_v27 = vpack.c.bf16 %v63_v21, %v63_v21  ;;  %v7265_v21 = vld [vmem:[#allocation5 + $0xbe8] ss:$16 sps:$4 sm:$0xff]  }
 0x140   :  { %4899 = vmatpush1.bf16.msra.mxu0 %v7088_v28  ;;  %5391 = vmatpush1.bf16.msra.mxu1 %v7091_v29  ;;  %v7178_v28 = vld [vmem:[#allocation5 + $0xa20] ss:$16 sps:$4 sm:$0xff]   ;;  %v7181_v29 = vld [vmem:[#allocation5 + $0xa28] ss:$16 sps:$4 sm:$0xff]  }
 0x141   :  { %4900 = vmatprep.subr.bf16.mxu0 %v7096_v30  ;;  %5392 = vmatprep.subr.bf16.mxu1 %v7099_v31  ;;  %v7186_v30 = vld [vmem:[#allocation5 + $0xa44] ss:$16 sps:$4 sm:$0xff]   ;;  %v7189_v31 = vld [vmem:[#allocation5 + $0xa4c] ss:$16 sps:$4 sm:$0xff]  }
 0x144   :  { %4901 = vmatpush1.bf16.msra.mxu0 %v7094_v32  ;;  %5393 = vmatpush1.bf16.msra.mxu1 %v7097_v33  ;;  %v7184_v32 = vld [vmem:[#allocation5 + $0xa40] ss:$16 sps:$4 sm:$0xff]   ;;  %v7187_v33 = vld [vmem:[#allocation5 + $0xa48] ss:$16 sps:$4 sm:$0xff]  }
 0x145   :  { %4902 = vmatprep.subr.bf16.mxu0 %v7102_v34  ;;  %5394 = vmatprep.subr.bf16.mxu1 %v7105_v35  ;;  %v7192_v34 = vld [vmem:[#allocation5 + $0xa64] ss:$16 sps:$4 sm:$0xff]   ;;  %v7195_v35 = vld [vmem:[#allocation5 + $0xa6c] ss:$16 sps:$4 sm:$0xff]  }
 0x148   :  { %4903 = vmatpush1.bf16.msra.mxu0 %v7100_v36  ;;  %5395 = vmatpush1.bf16.msra.mxu1 %v7103_v37  ;;  %v7190_v36 = vld [vmem:[#allocation5 + $0xa60] ss:$16 sps:$4 sm:$0xff]   ;;  %v7193_v37 = vld [vmem:[#allocation5 + $0xa68] ss:$16 sps:$4 sm:$0xff]  }
 0x149   :  { %4904 = vmatprep.subr.bf16.mxu0 %v7108_v38  ;;  %5396 = vmatprep.subr.bf16.mxu1 %v7111_v39  ;;  %v7198_v38 = vld [vmem:[#allocation5 + $0xa84] ss:$16 sps:$4 sm:$0xff]   ;;  %v7201_v39 = vld [vmem:[#allocation5 + $0xa8c] ss:$16 sps:$4 sm:$0xff]  }
 0x14c   :  { %4905 = vmatpush1.bf16.msra.mxu0 %v7106_v40  ;;  %5397 = vmatpush1.bf16.msra.mxu1 %v7109_v41  ;;  %v7196_v40 = vld [vmem:[#allocation5 + $0xa80] ss:$16 sps:$4 sm:$0xff]   ;;  %v7199_v41 = vld [vmem:[#allocation5 + $0xa88] ss:$16 sps:$4 sm:$0xff]  }
 0x14d   :  { %4906 = vmatprep.subr.bf16.mxu0 %v7114_v42  ;;  %5398 = vmatprep.subr.bf16.mxu1 %v7117_v43  ;;  %v7204_v42 = vld [vmem:[#allocation5 + $0xaa4] ss:$16 sps:$4 sm:$0xff]   ;;  %v7207_v43 = vld [vmem:[#allocation5 + $0xaac] ss:$16 sps:$4 sm:$0xff]  }
 0x150   :  { %4907 = vmatpush1.bf16.msra.mxu0 %v7112_v44  ;;  %5399 = vmatpush1.bf16.msra.mxu1 %v7115_v45  ;;  %v7202_v44 = vld [vmem:[#allocation5 + $0xaa0] ss:$16 sps:$4 sm:$0xff]   ;;  %v7205_v45 = vld [vmem:[#allocation5 + $0xaa8] ss:$16 sps:$4 sm:$0xff]  }
 0x151   :  { %4908 = vmatprep.subr.bf16.mxu0 %v7120_v46  ;;  %5400 = vmatprep.subr.bf16.mxu1 %v7123_v47  ;;  %v7210_v46 = vld [vmem:[#allocation5 + $0xac4] ss:$16 sps:$4 sm:$0xff]   ;;  %v7213_v47 = vld [vmem:[#allocation5 + $0xacc] ss:$16 sps:$4 sm:$0xff]  }
 0x154   :  { %4909 = vmatpush1.bf16.msra.mxu0 %v7118_v48  ;;  %5401 = vmatpush1.bf16.msra.mxu1 %v7121_v49  ;;  %v7208_v48 = vld [vmem:[#allocation5 + $0xac0] ss:$16 sps:$4 sm:$0xff]   ;;  %v7211_v49 = vld [vmem:[#allocation5 + $0xac8] ss:$16 sps:$4 sm:$0xff]  }
 0x155   :  { %4910 = vmatprep.subr.bf16.mxu0 %v7126_v50  ;;  %5402 = vmatprep.subr.bf16.mxu1 %v7129_v51  ;;  %v7216_v50 = vld [vmem:[#allocation5 + $0xae4] ss:$16 sps:$4 sm:$0xff]   ;;  %v7219_v51 = vld [vmem:[#allocation5 + $0xaec] ss:$16 sps:$4 sm:$0xff]  }
 0x158   :  { %4911 = vmatpush1.bf16.msra.mxu0 %v7124_v52  ;;  %5403 = vmatpush1.bf16.msra.mxu1 %v7127_v53  ;;  %v7214_v52 = vld [vmem:[#allocation5 + $0xae0] ss:$16 sps:$4 sm:$0xff]   ;;  %v7217_v53 = vld [vmem:[#allocation5 + $0xae8] ss:$16 sps:$4 sm:$0xff]  }
 0x159   :  { %4912 = vmatprep.subr.bf16.mxu0 %v7132_v54  ;;  %5404 = vmatprep.subr.bf16.mxu1 %v7135_v55  ;;  %v7222_v54 = vld [vmem:[#allocation5 + $0xb04] ss:$16 sps:$4 sm:$0xff]   ;;  %v7225_v55 = vld [vmem:[#allocation5 + $0xb0c] ss:$16 sps:$4 sm:$0xff]  }
 0x15c   :  { %4913 = vmatpush1.bf16.msra.mxu0 %v7130_v56  ;;  %5405 = vmatpush1.bf16.msra.mxu1 %v7133_v57  ;;  %v7220_v56 = vld [vmem:[#allocation5 + $0xb00] ss:$16 sps:$4 sm:$0xff]   ;;  %v7223_v57 = vld [vmem:[#allocation5 + $0xb08] ss:$16 sps:$4 sm:$0xff]  }
 0x15d   :  { %4914 = vmatprep.subr.bf16.mxu0 %v7138_v58  ;;  %5406 = vmatprep.subr.bf16.mxu1 %v7141_v59  ;;  %v7228_v58 = vld [vmem:[#allocation5 + $0xb24] ss:$16 sps:$4 sm:$0xff]   ;;  %v7231_v59 = vld [vmem:[#allocation5 + $0xb2c] ss:$16 sps:$4 sm:$0xff]  }
 0x160   :  { %4915 = vmatpush1.bf16.msra.mxu0 %v7136_v60  ;;  %5407 = vmatpush1.bf16.msra.mxu1 %v7139_v61  ;;  %v7226_v60 = vld [vmem:[#allocation5 + $0xb20] ss:$16 sps:$4 sm:$0xff]   ;;  %v7229_v61 = vld [vmem:[#allocation5 + $0xb28] ss:$16 sps:$4 sm:$0xff]  }
 0x161   :  { %4916 = vmatprep.subr.bf16.mxu0 %v7144_v62  ;;  %5408 = vmatprep.subr.bf16.mxu1 %v7147_v63  ;;  %v7234_v62 = vld [vmem:[#allocation5 + $0xb44] ss:$16 sps:$4 sm:$0xff]   ;;  %v7237_v63 = vld [vmem:[#allocation5 + $0xb4c] ss:$16 sps:$4 sm:$0xff]  }
 0x164   :  { %4917 = vmatpush1.bf16.msra.mxu0 %v7142_v0  ;;  %5409 = vmatpush1.bf16.msra.mxu1 %v7145_v1  ;;  %v7232_v0 = vld [vmem:[#allocation5 + $0xb40] ss:$16 sps:$4 sm:$0xff]   ;;  %v7235_v1 = vld [vmem:[#allocation5 + $0xb48] ss:$16 sps:$4 sm:$0xff]  }
 0x165   :  { %4918 = vmatprep.subr.bf16.mxu0 %v7150_v2  ;;  %5410 = vmatprep.subr.bf16.mxu1 %v7153_v3  ;;  %v7240_v2 = vld [vmem:[#allocation5 + $0xb64] ss:$16 sps:$4 sm:$0xff]   ;;  %v7243_v3 = vld [vmem:[#allocation5 + $0xb6c] ss:$16 sps:$4 sm:$0xff]  }
 0x168   :  { %4919 = vmatpush1.bf16.msra.mxu0 %v7148_v4  ;;  %5411 = vmatpush1.bf16.msra.mxu1 %v7151_v5  ;;  %v7238_v4 = vld [vmem:[#allocation5 + $0xb60] ss:$16 sps:$4 sm:$0xff]   ;;  %v7241_v5 = vld [vmem:[#allocation5 + $0xb68] ss:$16 sps:$4 sm:$0xff]  }
 0x169   :  { %4920 = vmatprep.subr.bf16.mxu0 %v7156_v6  ;;  %5412 = vmatprep.subr.bf16.mxu1 %v7159_v7  ;;  %v7246_v6 = vld [vmem:[#allocation5 + $0xb84] ss:$16 sps:$4 sm:$0xff]   ;;  %v7249_v7 = vld [vmem:[#allocation5 + $0xb8c] ss:$16 sps:$4 sm:$0xff]  }
 0x16c   :  { %4921 = vmatpush1.bf16.msra.mxu0 %v7154_v8  ;;  %5413 = vmatpush1.bf16.msra.mxu1 %v7157_v9  ;;  %v7244_v8 = vld [vmem:[#allocation5 + $0xb80] ss:$16 sps:$4 sm:$0xff]   ;;  %v7247_v9 = vld [vmem:[#allocation5 + $0xb88] ss:$16 sps:$4 sm:$0xff]  }
 0x16d   :  { %4922 = vmatprep.subr.bf16.mxu0 %v7162_v10  ;;  %5414 = vmatprep.subr.bf16.mxu1 %v7165_v11  ;;  %v7252_v10 = vld [vmem:[#allocation5 + $0xba4] ss:$16 sps:$4 sm:$0xff]   ;;  %v7255_v11 = vld [vmem:[#allocation5 + $0xbac] ss:$16 sps:$4 sm:$0xff]  }
 0x170   :  { %4923 = vmatpush1.bf16.msra.mxu0 %v7160_v12  ;;  %5415 = vmatpush1.bf16.msra.mxu1 %v7163_v13  ;;  %v7250_v12 = vld [vmem:[#allocation5 + $0xba0] ss:$16 sps:$4 sm:$0xff]   ;;  %v7253_v13 = vld [vmem:[#allocation5 + $0xba8] ss:$16 sps:$4 sm:$0xff]  }
 0x171   :  { %4924 = vmatprep.subr.bf16.mxu0 %v7168_v14  ;;  %5416 = vmatprep.subr.bf16.mxu1 %v7171_v15  ;;  %v7258_v14 = vld [vmem:[#allocation5 + $0xbc4] ss:$16 sps:$4 sm:$0xff]   ;;  %v7261_v15 = vld [vmem:[#allocation5 + $0xbcc] ss:$16 sps:$4 sm:$0xff]  }
 0x174   :  { %4925 = vmatpush1.bf16.msra.mxu0 %v7166_v16  ;;  %5417 = vmatpush1.bf16.msra.mxu1 %v7169_v17  ;;  %v7256_v16 = vld [vmem:[#allocation5 + $0xbc0] ss:$16 sps:$4 sm:$0xff]   ;;  %v7259_v17 = vld [vmem:[#allocation5 + $0xbc8] ss:$16 sps:$4 sm:$0xff]  }
 0x175   :  { %4935 = vmatprep.subr.bf16.mxu0 %v7174_v18  ;;  %5427 = vmatprep.subr.bf16.mxu1 %v7177_v20  ;;  %v7264_v18 = vld [vmem:[#allocation5 + $0xbe4] ss:$16 sps:$4 sm:$0xff]   ;;  %v7262_v20 = vld [vmem:[#allocation5 + $0xbe0] ss:$16 sps:$4 sm:$0xff]  }
 0x177   :  { %4927 = vmatmul.mubr.bf16.vlgmr.msra.gmra.mrb[0].mxu0 %v84_v22  ;;  %5419 = vmatmul.mubr.bf16.vlgmr.msra.gmra.mrb[0].mxu1 %v84_v22  ;;  %v7270_v22 = vld [vmem:[#allocation5 + $0xc04] ss:$16 sps:$4 sm:$0xff]  }
 0x178   :  { %4936 = vmatpush1.bf16.msra.mxu0 %v7172_v23  ;;  %5428 = vmatpush1.bf16.msra.mxu1 %v7175_v24  ;;  %v62_v23 = vld [vmem:[#allocation2 + $0x50] sm:$0xff]  ;;  %v7273_v24 = vld [vmem:[#allocation5 + $0xc0c] ss:$16 sps:$4 sm:$0xff]  }
 0x179   :  { %4937 = vmatprep.subr.bf16.mxu0 %v7180_v25  ;;  %5429 = vmatprep.subr.bf16.mxu1 %v7183_v26  ;;  %v65_v25 = vld [vmem:[#allocation2 + $0x68] sm:$0xff]  ;;  %v86_v26 = vpack.c.bf16 %v62_v23, %v62_v23 }
 0x17a   :  { %4967 = vmatprep.mubr.bf16.mxu0 %v87_v27  ;;  %5459 = vmatprep.mubr.bf16.mxu1 %v87_v27  ;;  %v7268_v27 = vld [vmem:[#allocation5 + $0xc00] ss:$16 sps:$4 sm:$0xff]   ;;  %v7363_v23 = vld [vmem:[#allocation5 + $0xdec] ss:$16 sps:$4 sm:$0xff]  }
 0x17c   :  { %4938 = vmatpush1.bf16.msra.mxu0 %v7178_v28  ;;  %5430 = vmatpush1.bf16.msra.mxu1 %v7181_v29  ;;  %v7271_v28 = vld [vmem:[#allocation5 + $0xc08] ss:$16 sps:$4 sm:$0xff]   ;;  %v7276_v29 = vld [vmem:[#allocation5 + $0xc24] ss:$16 sps:$4 sm:$0xff]  }
 0x17d   :  { %4939 = vmatprep.subr.bf16.mxu0 %v7186_v30  ;;  %5431 = vmatprep.subr.bf16.mxu1 %v7189_v31  ;;  %v7279_v30 = vld [vmem:[#allocation5 + $0xc2c] ss:$16 sps:$4 sm:$0xff]   ;;  %v89_v31 = vpack.c.bf16 %v65_v25, %v65_v25  ;;  %v7361_v25 = vld [vmem:[#allocation5 + $0xde8] ss:$16 sps:$4 sm:$0xff]  }
 0x180   :  { %4940 = vmatpush1.bf16.msra.mxu0 %v7184_v32  ;;  %5432 = vmatpush1.bf16.msra.mxu1 %v7187_v33  ;;  %v7274_v32 = vld [vmem:[#allocation5 + $0xc20] ss:$16 sps:$4 sm:$0xff]   ;;  %v7277_v33 = vld [vmem:[#allocation5 + $0xc28] ss:$16 sps:$4 sm:$0xff]  }
 0x181   :  { %4941 = vmatprep.subr.bf16.mxu0 %v7192_v34  ;;  %5433 = vmatprep.subr.bf16.mxu1 %v7195_v35  ;;  %v7282_v34 = vld [vmem:[#allocation5 + $0xc44] ss:$16 sps:$4 sm:$0xff]   ;;  %v7285_v35 = vld [vmem:[#allocation5 + $0xc4c] ss:$16 sps:$4 sm:$0xff]  }
 0x184   :  { %4942 = vmatpush1.bf16.msra.mxu0 %v7190_v36  ;;  %5434 = vmatpush1.bf16.msra.mxu1 %v7193_v37  ;;  %v7280_v36 = vld [vmem:[#allocation5 + $0xc40] ss:$16 sps:$4 sm:$0xff]   ;;  %v7283_v37 = vld [vmem:[#allocation5 + $0xc48] ss:$16 sps:$4 sm:$0xff]  }
 0x185   :  { %4943 = vmatprep.subr.bf16.mxu0 %v7198_v38  ;;  %5435 = vmatprep.subr.bf16.mxu1 %v7201_v39  ;;  %v7288_v38 = vld [vmem:[#allocation5 + $0xc64] ss:$16 sps:$4 sm:$0xff]   ;;  %v7291_v39 = vld [vmem:[#allocation5 + $0xc6c] ss:$16 sps:$4 sm:$0xff]  }
 0x188   :  { %4944 = vmatpush1.bf16.msra.mxu0 %v7196_v40  ;;  %5436 = vmatpush1.bf16.msra.mxu1 %v7199_v41  ;;  %v7286_v40 = vld [vmem:[#allocation5 + $0xc60] ss:$16 sps:$4 sm:$0xff]   ;;  %v7289_v41 = vld [vmem:[#allocation5 + $0xc68] ss:$16 sps:$4 sm:$0xff]  }
 0x189   :  { %4945 = vmatprep.subr.bf16.mxu0 %v7204_v42  ;;  %5437 = vmatprep.subr.bf16.mxu1 %v7207_v43  ;;  %v7294_v42 = vld [vmem:[#allocation5 + $0xc84] ss:$16 sps:$4 sm:$0xff]   ;;  %v7297_v43 = vld [vmem:[#allocation5 + $0xc8c] ss:$16 sps:$4 sm:$0xff]  }
 0x18c   :  { %4946 = vmatpush1.bf16.msra.mxu0 %v7202_v44  ;;  %5438 = vmatpush1.bf16.msra.mxu1 %v7205_v45  ;;  %v7292_v44 = vld [vmem:[#allocation5 + $0xc80] ss:$16 sps:$4 sm:$0xff]   ;;  %v7295_v45 = vld [vmem:[#allocation5 + $0xc88] ss:$16 sps:$4 sm:$0xff]  }
 0x18d   :  { %4947 = vmatprep.subr.bf16.mxu0 %v7210_v46  ;;  %5439 = vmatprep.subr.bf16.mxu1 %v7213_v47  ;;  %v7300_v46 = vld [vmem:[#allocation5 + $0xca4] ss:$16 sps:$4 sm:$0xff]   ;;  %v7303_v47 = vld [vmem:[#allocation5 + $0xcac] ss:$16 sps:$4 sm:$0xff]  }
 0x190   :  { %4948 = vmatpush1.bf16.msra.mxu0 %v7208_v48  ;;  %5440 = vmatpush1.bf16.msra.mxu1 %v7211_v49  ;;  %v7298_v48 = vld [vmem:[#allocation5 + $0xca0] ss:$16 sps:$4 sm:$0xff]   ;;  %v7301_v49 = vld [vmem:[#allocation5 + $0xca8] ss:$16 sps:$4 sm:$0xff]  }
 0x191   :  { %4949 = vmatprep.subr.bf16.mxu0 %v7216_v50  ;;  %5441 = vmatprep.subr.bf16.mxu1 %v7219_v51  ;;  %v7306_v50 = vld [vmem:[#allocation5 + $0xcc4] ss:$16 sps:$4 sm:$0xff]   ;;  %v7309_v51 = vld [vmem:[#allocation5 + $0xccc] ss:$16 sps:$4 sm:$0xff]  }
 0x194   :  { %4950 = vmatpush1.bf16.msra.mxu0 %v7214_v52  ;;  %5442 = vmatpush1.bf16.msra.mxu1 %v7217_v53  ;;  %v7304_v52 = vld [vmem:[#allocation5 + $0xcc0] ss:$16 sps:$4 sm:$0xff]   ;;  %v7307_v53 = vld [vmem:[#allocation5 + $0xcc8] ss:$16 sps:$4 sm:$0xff]  }
 0x195   :  { %4951 = vmatprep.subr.bf16.mxu0 %v7222_v54  ;;  %5443 = vmatprep.subr.bf16.mxu1 %v7225_v55  ;;  %v7312_v54 = vld [vmem:[#allocation5 + $0xce4] ss:$16 sps:$4 sm:$0xff]   ;;  %v7315_v55 = vld [vmem:[#allocation5 + $0xcec] ss:$16 sps:$4 sm:$0xff]  }
 0x198   :  { %4952 = vmatpush1.bf16.msra.mxu0 %v7220_v56  ;;  %5444 = vmatpush1.bf16.msra.mxu1 %v7223_v57  ;;  %v7310_v56 = vld [vmem:[#allocation5 + $0xce0] ss:$16 sps:$4 sm:$0xff]   ;;  %v7313_v57 = vld [vmem:[#allocation5 + $0xce8] ss:$16 sps:$4 sm:$0xff]  }
 0x199   :  { %4953 = vmatprep.subr.bf16.mxu0 %v7228_v58  ;;  %5445 = vmatprep.subr.bf16.mxu1 %v7231_v59  ;;  %v7318_v58 = vld [vmem:[#allocation5 + $0xd04] ss:$16 sps:$4 sm:$0xff]   ;;  %v7321_v59 = vld [vmem:[#allocation5 + $0xd0c] ss:$16 sps:$4 sm:$0xff]  }
 0x19c   :  { %4954 = vmatpush1.bf16.msra.mxu0 %v7226_v60  ;;  %5446 = vmatpush1.bf16.msra.mxu1 %v7229_v61  ;;  %v7316_v60 = vld [vmem:[#allocation5 + $0xd00] ss:$16 sps:$4 sm:$0xff]   ;;  %v7319_v61 = vld [vmem:[#allocation5 + $0xd08] ss:$16 sps:$4 sm:$0xff]  }
 0x19d   :  { %4955 = vmatprep.subr.bf16.mxu0 %v7234_v62  ;;  %5447 = vmatprep.subr.bf16.mxu1 %v7237_v63  ;;  %v7324_v62 = vld [vmem:[#allocation5 + $0xd24] ss:$16 sps:$4 sm:$0xff]   ;;  %v7327_v63 = vld [vmem:[#allocation5 + $0xd2c] ss:$16 sps:$4 sm:$0xff]  }
 0x1a0   :  { %4956 = vmatpush1.bf16.msra.mxu0 %v7232_v0  ;;  %5448 = vmatpush1.bf16.msra.mxu1 %v7235_v1  ;;  %v7322_v0 = vld [vmem:[#allocation5 + $0xd20] ss:$16 sps:$4 sm:$0xff]   ;;  %v7325_v1 = vld [vmem:[#allocation5 + $0xd28] ss:$16 sps:$4 sm:$0xff]  }
 0x1a1   :  { %4957 = vmatprep.subr.bf16.mxu0 %v7240_v2  ;;  %5449 = vmatprep.subr.bf16.mxu1 %v7243_v3  ;;  %v7330_v2 = vld [vmem:[#allocation5 + $0xd44] ss:$16 sps:$4 sm:$0xff]   ;;  %v7333_v3 = vld [vmem:[#allocation5 + $0xd4c] ss:$16 sps:$4 sm:$0xff]  }
 0x1a4   :  { %4958 = vmatpush1.bf16.msra.mxu0 %v7238_v4  ;;  %5450 = vmatpush1.bf16.msra.mxu1 %v7241_v5  ;;  %v7328_v4 = vld [vmem:[#allocation5 + $0xd40] ss:$16 sps:$4 sm:$0xff]   ;;  %v7331_v5 = vld [vmem:[#allocation5 + $0xd48] ss:$16 sps:$4 sm:$0xff]  }
 0x1a5   :  { %4959 = vmatprep.subr.bf16.mxu0 %v7246_v6  ;;  %5451 = vmatprep.subr.bf16.mxu1 %v7249_v7  ;;  %v7336_v6 = vld [vmem:[#allocation5 + $0xd64] ss:$16 sps:$4 sm:$0xff]   ;;  %v7339_v7 = vld [vmem:[#allocation5 + $0xd6c] ss:$16 sps:$4 sm:$0xff]  }
 0x1a8   :  { %4960 = vmatpush1.bf16.msra.mxu0 %v7244_v8  ;;  %5452 = vmatpush1.bf16.msra.mxu1 %v7247_v9  ;;  %v7334_v8 = vld [vmem:[#allocation5 + $0xd60] ss:$16 sps:$4 sm:$0xff]   ;;  %v7337_v9 = vld [vmem:[#allocation5 + $0xd68] ss:$16 sps:$4 sm:$0xff]  }
 0x1a9   :  { %4961 = vmatprep.subr.bf16.mxu0 %v7252_v10  ;;  %5453 = vmatprep.subr.bf16.mxu1 %v7255_v11  ;;  %v7342_v10 = vld [vmem:[#allocation5 + $0xd84] ss:$16 sps:$4 sm:$0xff]   ;;  %v7345_v11 = vld [vmem:[#allocation5 + $0xd8c] ss:$16 sps:$4 sm:$0xff]  }
 0x1ac   :  { %4962 = vmatpush1.bf16.msra.mxu0 %v7250_v12  ;;  %5454 = vmatpush1.bf16.msra.mxu1 %v7253_v13  ;;  %v7340_v12 = vld [vmem:[#allocation5 + $0xd80] ss:$16 sps:$4 sm:$0xff]   ;;  %v7343_v13 = vld [vmem:[#allocation5 + $0xd88] ss:$16 sps:$4 sm:$0xff]  }
 0x1ad   :  { %4963 = vmatprep.subr.bf16.mxu0 %v7258_v14  ;;  %5455 = vmatprep.subr.bf16.mxu1 %v7261_v15  ;;  %v7348_v14 = vld [vmem:[#allocation5 + $0xda4] ss:$16 sps:$4 sm:$0xff]   ;;  %v7351_v15 = vld [vmem:[#allocation5 + $0xdac] ss:$16 sps:$4 sm:$0xff]  }
 0x1b0   :  { %4964 = vmatpush1.bf16.msra.mxu0 %v7256_v16  ;;  %5456 = vmatpush1.bf16.msra.mxu1 %v7259_v17  ;;  %v7346_v16 = vld [vmem:[#allocation5 + $0xda0] ss:$16 sps:$4 sm:$0xff]   ;;  %v7349_v17 = vld [vmem:[#allocation5 + $0xda8] ss:$16 sps:$4 sm:$0xff]  }
 0x1b1   :  { %4965 = vmatprep.subr.bf16.mxu0 %v7264_v18  ;;  %5457 = vmatprep.subr.bf16.mxu1 %v7267_v19  ;;  %v7354_v18 = vld [vmem:[#allocation5 + $0xdc4] ss:$16 sps:$4 sm:$0xff]   ;;  %v7357_v19 = vld [vmem:[#allocation5 + $0xdcc] ss:$16 sps:$4 sm:$0xff]  }
 0x1b4   :  { %4966 = vmatpush1.bf16.msra.mxu0 %v7262_v20  ;;  %5458 = vmatpush1.bf16.msra.mxu1 %v7265_v21  ;;  %v7352_v20 = vld [vmem:[#allocation5 + $0xdc0] ss:$16 sps:$4 sm:$0xff]   ;;  %v7355_v21 = vld [vmem:[#allocation5 + $0xdc8] ss:$16 sps:$4 sm:$0xff]  }
 0x1b5   :  { %4976 = vmatprep.subr.bf16.mxu0 %v7270_v22  ;;  %5468 = vmatprep.subr.bf16.mxu1 %v7273_v24  ;;  %v7360_v22 = vld [vmem:[#allocation5 + $0xde4] ss:$16 sps:$4 sm:$0xff]   ;;  %v7358_v24 = vld [vmem:[#allocation5 + $0xde0] ss:$16 sps:$4 sm:$0xff]  }
 0x1b7   :  { %4968 = vmatmul.mubr.bf16.vlgmr.msra.gmra.mrb[0].mxu0 %v86_v26  ;;  %5460 = vmatmul.mubr.bf16.vlgmr.msra.gmra.mrb[0].mxu1 %v86_v26  ;;  %v7366_v26 = vld [vmem:[#allocation5 + $0xe04] ss:$16 sps:$4 sm:$0xff]  }
 0x1b8   :  { %4977 = vmatpush1.bf16.msra.mxu0 %v7268_v27  ;;  %5469 = vmatpush1.bf16.msra.mxu1 %v7271_v28  ;;  %v64_v27 = vld [vmem:[#allocation2 + $0x60] sm:$0xff]  ;;  %v7369_v28 = vld [vmem:[#allocation5 + $0xe0c] ss:$16 sps:$4 sm:$0xff]  }
 0x1b9   :  { %4978 = vmatprep.subr.bf16.mxu0 %v7276_v29  ;;  %5470 = vmatprep.subr.bf16.mxu1 %v7279_v30  ;;  %v67_v29 = vld [vmem:[#allocation2 + $0x78] sm:$0xff]  ;;  %v88_v30 = vpack.c.bf16 %v64_v27, %v64_v27 }
 0x1ba   :  { %5008 = vmatprep.mubr.bf16.mxu0 %v89_v31  ;;  %5500 = vmatprep.mubr.bf16.mxu1 %v89_v31  ;;  %v7364_v31 = vld [vmem:[#allocation5 + $0xe00] ss:$16 sps:$4 sm:$0xff]   ;;  %v7459_v27 = vld [vmem:[#allocation5 + $0xfec] ss:$16 sps:$4 sm:$0xff]  }
 0x1bc   :  { %4979 = vmatpush1.bf16.msra.mxu0 %v7274_v32  ;;  %5471 = vmatpush1.bf16.msra.mxu1 %v7277_v33  ;;  %v7367_v32 = vld [vmem:[#allocation5 + $0xe08] ss:$16 sps:$4 sm:$0xff]   ;;  %v7372_v33 = vld [vmem:[#allocation5 + $0xe24] ss:$16 sps:$4 sm:$0xff]  }
 0x1bd   :  { %4980 = vmatprep.subr.bf16.mxu0 %v7282_v34  ;;  %5472 = vmatprep.subr.bf16.mxu1 %v7285_v35  ;;  %v7375_v34 = vld [vmem:[#allocation5 + $0xe2c] ss:$16 sps:$4 sm:$0xff]   ;;  %v91_v35 = vpack.c.bf16 %v67_v29, %v67_v29  ;;  %v7457_v29 = vld [vmem:[#allocation5 + $0xfe8] ss:$16 sps:$4 sm:$0xff]  }
 0x1c0   :  { %4981 = vmatpush1.bf16.msra.mxu0 %v7280_v36  ;;  %5473 = vmatpush1.bf16.msra.mxu1 %v7283_v37  ;;  %v7370_v36 = vld [vmem:[#allocation5 + $0xe20] ss:$16 sps:$4 sm:$0xff]   ;;  %v7373_v37 = vld [vmem:[#allocation5 + $0xe28] ss:$16 sps:$4 sm:$0xff]  }
 0x1c1   :  { %4982 = vmatprep.subr.bf16.mxu0 %v7288_v38  ;;  %5474 = vmatprep.subr.bf16.mxu1 %v7291_v39  ;;  %v7378_v38 = vld [vmem:[#allocation5 + $0xe44] ss:$16 sps:$4 sm:$0xff]   ;;  %v7381_v39 = vld [vmem:[#allocation5 + $0xe4c] ss:$16 sps:$4 sm:$0xff]  }
 0x1c4   :  { %4983 = vmatpush1.bf16.msra.mxu0 %v7286_v40  ;;  %5475 = vmatpush1.bf16.msra.mxu1 %v7289_v41  ;;  %v7376_v40 = vld [vmem:[#allocation5 + $0xe40] ss:$16 sps:$4 sm:$0xff]   ;;  %v7379_v41 = vld [vmem:[#allocation5 + $0xe48] ss:$16 sps:$4 sm:$0xff]  }
 0x1c5   :  { %4984 = vmatprep.subr.bf16.mxu0 %v7294_v42  ;;  %5476 = vmatprep.subr.bf16.mxu1 %v7297_v43  ;;  %v7384_v42 = vld [vmem:[#allocation5 + $0xe64] ss:$16 sps:$4 sm:$0xff]   ;;  %v7387_v43 = vld [vmem:[#allocation5 + $0xe6c] ss:$16 sps:$4 sm:$0xff]  }
 0x1c8   :  { %4985 = vmatpush1.bf16.msra.mxu0 %v7292_v44  ;;  %5477 = vmatpush1.bf16.msra.mxu1 %v7295_v45  ;;  %v7382_v44 = vld [vmem:[#allocation5 + $0xe60] ss:$16 sps:$4 sm:$0xff]   ;;  %v7385_v45 = vld [vmem:[#allocation5 + $0xe68] ss:$16 sps:$4 sm:$0xff]  }
 0x1c9   :  { %4986 = vmatprep.subr.bf16.mxu0 %v7300_v46  ;;  %5478 = vmatprep.subr.bf16.mxu1 %v7303_v47  ;;  %v7390_v46 = vld [vmem:[#allocation5 + $0xe84] ss:$16 sps:$4 sm:$0xff]   ;;  %v7393_v47 = vld [vmem:[#allocation5 + $0xe8c] ss:$16 sps:$4 sm:$0xff]  }
 0x1cc   :  { %4987 = vmatpush1.bf16.msra.mxu0 %v7298_v48  ;;  %5479 = vmatpush1.bf16.msra.mxu1 %v7301_v49  ;;  %v7388_v48 = vld [vmem:[#allocation5 + $0xe80] ss:$16 sps:$4 sm:$0xff]   ;;  %v7391_v49 = vld [vmem:[#allocation5 + $0xe88] ss:$16 sps:$4 sm:$0xff]  }
 0x1cd   :  { %4988 = vmatprep.subr.bf16.mxu0 %v7306_v50  ;;  %5480 = vmatprep.subr.bf16.mxu1 %v7309_v51  ;;  %v7396_v50 = vld [vmem:[#allocation5 + $0xea4] ss:$16 sps:$4 sm:$0xff]   ;;  %v7399_v51 = vld [vmem:[#allocation5 + $0xeac] ss:$16 sps:$4 sm:$0xff]  }
 0x1d0   :  { %4989 = vmatpush1.bf16.msra.mxu0 %v7304_v52  ;;  %5481 = vmatpush1.bf16.msra.mxu1 %v7307_v53  ;;  %v7394_v52 = vld [vmem:[#allocation5 + $0xea0] ss:$16 sps:$4 sm:$0xff]   ;;  %v7397_v53 = vld [vmem:[#allocation5 + $0xea8] ss:$16 sps:$4 sm:$0xff]  }
 0x1d1   :  { %4990 = vmatprep.subr.bf16.mxu0 %v7312_v54  ;;  %5482 = vmatprep.subr.bf16.mxu1 %v7315_v55  ;;  %v7402_v54 = vld [vmem:[#allocation5 + $0xec4] ss:$16 sps:$4 sm:$0xff]   ;;  %v7405_v55 = vld [vmem:[#allocation5 + $0xecc] ss:$16 sps:$4 sm:$0xff]  }
 0x1d4   :  { %4991 = vmatpush1.bf16.msra.mxu0 %v7310_v56  ;;  %5483 = vmatpush1.bf16.msra.mxu1 %v7313_v57  ;;  %v7400_v56 = vld [vmem:[#allocation5 + $0xec0] ss:$16 sps:$4 sm:$0xff]   ;;  %v7403_v57 = vld [vmem:[#allocation5 + $0xec8] ss:$16 sps:$4 sm:$0xff]  }
 0x1d5   :  { %4992 = vmatprep.subr.bf16.mxu0 %v7318_v58  ;;  %5484 = vmatprep.subr.bf16.mxu1 %v7321_v59  ;;  %v7408_v58 = vld [vmem:[#allocation5 + $0xee4] ss:$16 sps:$4 sm:$0xff]   ;;  %v7411_v59 = vld [vmem:[#allocation5 + $0xeec] ss:$16 sps:$4 sm:$0xff]  }
 0x1d8   :  { %4993 = vmatpush1.bf16.msra.mxu0 %v7316_v60  ;;  %5485 = vmatpush1.bf16.msra.mxu1 %v7319_v61  ;;  %v7406_v60 = vld [vmem:[#allocation5 + $0xee0] ss:$16 sps:$4 sm:$0xff]   ;;  %v7409_v61 = vld [vmem:[#allocation5 + $0xee8] ss:$16 sps:$4 sm:$0xff]  }
 0x1d9   :  { %4994 = vmatprep.subr.bf16.mxu0 %v7324_v62  ;;  %5486 = vmatprep.subr.bf16.mxu1 %v7327_v63  ;;  %v7414_v62 = vld [vmem:[#allocation5 + $0xf04] ss:$16 sps:$4 sm:$0xff]   ;;  %v7417_v63 = vld [vmem:[#allocation5 + $0xf0c] ss:$16 sps:$4 sm:$0xff]  }
 0x1dc   :  { %4995 = vmatpush1.bf16.msra.mxu0 %v7322_v0  ;;  %5487 = vmatpush1.bf16.msra.mxu1 %v7325_v1  ;;  %v7412_v0 = vld [vmem:[#allocation5 + $0xf00] ss:$16 sps:$4 sm:$0xff]   ;;  %v7415_v1 = vld [vmem:[#allocation5 + $0xf08] ss:$16 sps:$4 sm:$0xff]  }
 0x1dd   :  { %4996 = vmatprep.subr.bf16.mxu0 %v7330_v2  ;;  %5488 = vmatprep.subr.bf16.mxu1 %v7333_v3  ;;  %v7420_v2 = vld [vmem:[#allocation5 + $0xf24] ss:$16 sps:$4 sm:$0xff]   ;;  %v7423_v3 = vld [vmem:[#allocation5 + $0xf2c] ss:$16 sps:$4 sm:$0xff]  }
 0x1e0   :  { %4997 = vmatpush1.bf16.msra.mxu0 %v7328_v4  ;;  %5489 = vmatpush1.bf16.msra.mxu1 %v7331_v5  ;;  %v7418_v4 = vld [vmem:[#allocation5 + $0xf20] ss:$16 sps:$4 sm:$0xff]   ;;  %v7421_v5 = vld [vmem:[#allocation5 + $0xf28] ss:$16 sps:$4 sm:$0xff]  }
 0x1e1   :  { %4998 = vmatprep.subr.bf16.mxu0 %v7336_v6  ;;  %5490 = vmatprep.subr.bf16.mxu1 %v7339_v7  ;;  %v7426_v6 = vld [vmem:[#allocation5 + $0xf44] ss:$16 sps:$4 sm:$0xff]   ;;  %v7429_v7 = vld [vmem:[#allocation5 + $0xf4c] ss:$16 sps:$4 sm:$0xff]  }
 0x1e4   :  { %4999 = vmatpush1.bf16.msra.mxu0 %v7334_v8  ;;  %5491 = vmatpush1.bf16.msra.mxu1 %v7337_v9  ;;  %v7424_v8 = vld [vmem:[#allocation5 + $0xf40] ss:$16 sps:$4 sm:$0xff]   ;;  %v7427_v9 = vld [vmem:[#allocation5 + $0xf48] ss:$16 sps:$4 sm:$0xff]  }
 0x1e5   :  { %5000 = vmatprep.subr.bf16.mxu0 %v7342_v10  ;;  %5492 = vmatprep.subr.bf16.mxu1 %v7345_v11  ;;  %v7432_v10 = vld [vmem:[#allocation5 + $0xf64] ss:$16 sps:$4 sm:$0xff]   ;;  %v7435_v11 = vld [vmem:[#allocation5 + $0xf6c] ss:$16 sps:$4 sm:$0xff]  }
 0x1e8   :  { %5001 = vmatpush1.bf16.msra.mxu0 %v7340_v12  ;;  %5493 = vmatpush1.bf16.msra.mxu1 %v7343_v13  ;;  %v7430_v12 = vld [vmem:[#allocation5 + $0xf60] ss:$16 sps:$4 sm:$0xff]   ;;  %v7433_v13 = vld [vmem:[#allocation5 + $0xf68] ss:$16 sps:$4 sm:$0xff]  }
 0x1e9   :  { %5002 = vmatprep.subr.bf16.mxu0 %v7348_v14  ;;  %5494 = vmatprep.subr.bf16.mxu1 %v7351_v15  ;;  %v7438_v14 = vld [vmem:[#allocation5 + $0xf84] ss:$16 sps:$4 sm:$0xff]   ;;  %v7441_v15 = vld [vmem:[#allocation5 + $0xf8c] ss:$16 sps:$4 sm:$0xff]  }
 0x1ec   :  { %5003 = vmatpush1.bf16.msra.mxu0 %v7346_v16  ;;  %5495 = vmatpush1.bf16.msra.mxu1 %v7349_v17  ;;  %v7436_v16 = vld [vmem:[#allocation5 + $0xf80] ss:$16 sps:$4 sm:$0xff]   ;;  %v7439_v17 = vld [vmem:[#allocation5 + $0xf88] ss:$16 sps:$4 sm:$0xff]  }
 0x1ed   :  { %5004 = vmatprep.subr.bf16.mxu0 %v7354_v18  ;;  %5496 = vmatprep.subr.bf16.mxu1 %v7357_v19  ;;  %v7444_v18 = vld [vmem:[#allocation5 + $0xfa4] ss:$16 sps:$4 sm:$0xff]   ;;  %v7447_v19 = vld [vmem:[#allocation5 + $0xfac] ss:$16 sps:$4 sm:$0xff]  }
 0x1f0   :  { %5005 = vmatpush1.bf16.msra.mxu0 %v7352_v20  ;;  %5497 = vmatpush1.bf16.msra.mxu1 %v7355_v21  ;;  %v7442_v20 = vld [vmem:[#allocation5 + $0xfa0] ss:$16 sps:$4 sm:$0xff]   ;;  %v7445_v21 = vld [vmem:[#allocation5 + $0xfa8] ss:$16 sps:$4 sm:$0xff]  }
 0x1f1   :  { %5006 = vmatprep.subr.bf16.mxu0 %v7360_v22  ;;  %5498 = vmatprep.subr.bf16.mxu1 %v7363_v23  ;;  %v7450_v22 = vld [vmem:[#allocation5 + $0xfc4] ss:$16 sps:$4 sm:$0xff]   ;;  %v7453_v23 = vld [vmem:[#allocation5 + $0xfcc] ss:$16 sps:$4 sm:$0xff]  }
 0x1f4   :  { %5007 = vmatpush1.bf16.msra.mxu0 %v7358_v24  ;;  %5499 = vmatpush1.bf16.msra.mxu1 %v7361_v25  ;;  %v7448_v24 = vld [vmem:[#allocation5 + $0xfc0] ss:$16 sps:$4 sm:$0xff]   ;;  %v7451_v25 = vld [vmem:[#allocation5 + $0xfc8] ss:$16 sps:$4 sm:$0xff]  }
 0x1f5   :  { %5017 = vmatprep.subr.bf16.mxu0 %v7366_v26  ;;  %5509 = vmatprep.subr.bf16.mxu1 %v7369_v28  ;;  %v7456_v26 = vld [vmem:[#allocation5 + $0xfe4] ss:$16 sps:$4 sm:$0xff]   ;;  %v7454_v28 = vld [vmem:[#allocation5 + $0xfe0] ss:$16 sps:$4 sm:$0xff]  }
 0x1f7   :  { %5009 = vmatmul.mubr.bf16.vlgmr.msra.gmra.mrb[0].mxu0 %v88_v30  ;;  %5501 = vmatmul.mubr.bf16.vlgmr.msra.gmra.mrb[0].mxu1 %v88_v30  ;;  %v66_v30 = vld [vmem:[#allocation2 + $0x70] sm:$0xff] }
 0x1f8   :  { %5018 = vmatpush1.bf16.msra.mxu0 %v7364_v31  ;;  %5510 = vmatpush1.bf16.msra.mxu1 %v7367_v32  ;;  %v7462_v31 = vld [vmem:[#allocation5 + $0x1004] ss:$16 sps:$4 sm:$0xff]   ;;  %v7465_v32 = vld [vmem:[#allocation5 + $0x100c] ss:$16 sps:$4 sm:$0xff]  }
 0x1f9   :  { %5019 = vmatprep.subr.bf16.mxu0 %v7372_v33  ;;  %5511 = vmatprep.subr.bf16.mxu1 %v7375_v34  ;;  %v90_v33 = vpack.c.bf16 %v66_v30, %v66_v30  ;;  %v69_v34 = vld [vmem:[#allocation2 + $0x88] sm:$0xff]  ;;  %v7552_v30 = vld [vmem:[#allocation5 + $0x11e4] ss:$16 sps:$4 sm:$0xff]  }
 0x1fa   :  { %5049 = vmatprep.mubr.bf16.mxu0 %v91_v35  ;;  %5541 = vmatprep.mubr.bf16.mxu1 %v91_v35  ;;  %v7460_v35 = vld [vmem:[#allocation5 + $0x1000] ss:$16 sps:$4 sm:$0xff]  }
 0x1fc   :  { %5020 = vmatpush1.bf16.msra.mxu0 %v7370_v36  ;;  %5512 = vmatpush1.bf16.msra.mxu1 %v7373_v37  ;;  %v7463_v36 = vld [vmem:[#allocation5 + $0x1008] ss:$16 sps:$4 sm:$0xff]   ;;  %v7468_v37 = vld [vmem:[#allocation5 + $0x1024] ss:$16 sps:$4 sm:$0xff]  }
 0x1fd   :  { %5021 = vmatprep.subr.bf16.mxu0 %v7378_v38  ;;  %5513 = vmatprep.subr.bf16.mxu1 %v7381_v39  ;;  %v7471_v38 = vld [vmem:[#allocation5 + $0x102c] ss:$16 sps:$4 sm:$0xff]   ;;  %v93_v39 = vpack.c.bf16 %v69_v34, %v69_v34  ;;  %v68_v34 = vld [vmem:[#allocation2 + $0x80] sm:$0xff] }
 0x200   :  { %5022 = vmatpush1.bf16.msra.mxu0 %v7376_v40  ;;  %5514 = vmatpush1.bf16.msra.mxu1 %v7379_v41  ;;  %v7466_v40 = vld [vmem:[#allocation5 + $0x1020] ss:$16 sps:$4 sm:$0xff]   ;;  %v7469_v41 = vld [vmem:[#allocation5 + $0x1028] ss:$16 sps:$4 sm:$0xff]  }
 0x201   :  { %5023 = vmatprep.subr.bf16.mxu0 %v7384_v42  ;;  %5515 = vmatprep.subr.bf16.mxu1 %v7387_v43  ;;  %v7474_v42 = vld [vmem:[#allocation5 + $0x1044] ss:$16 sps:$4 sm:$0xff]   ;;  %v7477_v43 = vld [vmem:[#allocation5 + $0x104c] ss:$16 sps:$4 sm:$0xff]  }
 0x204   :  { %5024 = vmatpush1.bf16.msra.mxu0 %v7382_v44  ;;  %5516 = vmatpush1.bf16.msra.mxu1 %v7385_v45  ;;  %v7472_v44 = vld [vmem:[#allocation5 + $0x1040] ss:$16 sps:$4 sm:$0xff]   ;;  %v7475_v45 = vld [vmem:[#allocation5 + $0x1048] ss:$16 sps:$4 sm:$0xff]  }
 0x205   :  { %5025 = vmatprep.subr.bf16.mxu0 %v7390_v46  ;;  %5517 = vmatprep.subr.bf16.mxu1 %v7393_v47  ;;  %v7480_v46 = vld [vmem:[#allocation5 + $0x1064] ss:$16 sps:$4 sm:$0xff]   ;;  %v7483_v47 = vld [vmem:[#allocation5 + $0x106c] ss:$16 sps:$4 sm:$0xff]  }
 0x208   :  { %5026 = vmatpush1.bf16.msra.mxu0 %v7388_v48  ;;  %5518 = vmatpush1.bf16.msra.mxu1 %v7391_v49  ;;  %v7478_v48 = vld [vmem:[#allocation5 + $0x1060] ss:$16 sps:$4 sm:$0xff]   ;;  %v7481_v49 = vld [vmem:[#allocation5 + $0x1068] ss:$16 sps:$4 sm:$0xff]  }
 0x209   :  { %5027 = vmatprep.subr.bf16.mxu0 %v7396_v50  ;;  %5519 = vmatprep.subr.bf16.mxu1 %v7399_v51  ;;  %v7486_v50 = vld [vmem:[#allocation5 + $0x1084] ss:$16 sps:$4 sm:$0xff]   ;;  %v7489_v51 = vld [vmem:[#allocation5 + $0x108c] ss:$16 sps:$4 sm:$0xff]  }
 0x20c   :  { %5028 = vmatpush1.bf16.msra.mxu0 %v7394_v52  ;;  %5520 = vmatpush1.bf16.msra.mxu1 %v7397_v53  ;;  %v7484_v52 = vld [vmem:[#allocation5 + $0x1080] ss:$16 sps:$4 sm:$0xff]   ;;  %v7487_v53 = vld [vmem:[#allocation5 + $0x1088] ss:$16 sps:$4 sm:$0xff]  }
 0x20d   :  { %5029 = vmatprep.subr.bf16.mxu0 %v7402_v54  ;;  %5521 = vmatprep.subr.bf16.mxu1 %v7405_v55  ;;  %v7492_v54 = vld [vmem:[#allocation5 + $0x10a4] ss:$16 sps:$4 sm:$0xff]   ;;  %v7495_v55 = vld [vmem:[#allocation5 + $0x10ac] ss:$16 sps:$4 sm:$0xff]  }
 0x210   :  { %5030 = vmatpush1.bf16.msra.mxu0 %v7400_v56  ;;  %5522 = vmatpush1.bf16.msra.mxu1 %v7403_v57  ;;  %v7490_v56 = vld [vmem:[#allocation5 + $0x10a0] ss:$16 sps:$4 sm:$0xff]   ;;  %v7493_v57 = vld [vmem:[#allocation5 + $0x10a8] ss:$16 sps:$4 sm:$0xff]  }
 0x211   :  { %5031 = vmatprep.subr.bf16.mxu0 %v7408_v58  ;;  %5523 = vmatprep.subr.bf16.mxu1 %v7411_v59  ;;  %v7498_v58 = vld [vmem:[#allocation5 + $0x10c4] ss:$16 sps:$4 sm:$0xff]   ;;  %v7501_v59 = vld [vmem:[#allocation5 + $0x10cc] ss:$16 sps:$4 sm:$0xff]  }
 0x214   :  { %5032 = vmatpush1.bf16.msra.mxu0 %v7406_v60  ;;  %5524 = vmatpush1.bf16.msra.mxu1 %v7409_v61  ;;  %v7496_v60 = vld [vmem:[#allocation5 + $0x10c0] ss:$16 sps:$4 sm:$0xff]   ;;  %v7499_v61 = vld [vmem:[#allocation5 + $0x10c8] ss:$16 sps:$4 sm:$0xff]  }
 0x215   :  { %5033 = vmatprep.subr.bf16.mxu0 %v7414_v62  ;;  %5525 = vmatprep.subr.bf16.mxu1 %v7417_v63  ;;  %v7504_v62 = vld [vmem:[#allocation5 + $0x10e4] ss:$16 sps:$4 sm:$0xff]   ;;  %v7507_v63 = vld [vmem:[#allocation5 + $0x10ec] ss:$16 sps:$4 sm:$0xff]  }
 0x218   :  { %5034 = vmatpush1.bf16.msra.mxu0 %v7412_v0  ;;  %5526 = vmatpush1.bf16.msra.mxu1 %v7415_v1  ;;  %v7502_v0 = vld [vmem:[#allocation5 + $0x10e0] ss:$16 sps:$4 sm:$0xff]   ;;  %v7505_v1 = vld [vmem:[#allocation5 + $0x10e8] ss:$16 sps:$4 sm:$0xff]  }
 0x219   :  { %5035 = vmatprep.subr.bf16.mxu0 %v7420_v2  ;;  %5527 = vmatprep.subr.bf16.mxu1 %v7423_v3  ;;  %v7510_v2 = vld [vmem:[#allocation5 + $0x1104] ss:$16 sps:$4 sm:$0xff]   ;;  %v7513_v3 = vld [vmem:[#allocation5 + $0x110c] ss:$16 sps:$4 sm:$0xff]  }
 0x21c   :  { %5036 = vmatpush1.bf16.msra.mxu0 %v7418_v4  ;;  %5528 = vmatpush1.bf16.msra.mxu1 %v7421_v5  ;;  %v7508_v4 = vld [vmem:[#allocation5 + $0x1100] ss:$16 sps:$4 sm:$0xff]   ;;  %v7511_v5 = vld [vmem:[#allocation5 + $0x1108] ss:$16 sps:$4 sm:$0xff]  }
 0x21d   :  { %5037 = vmatprep.subr.bf16.mxu0 %v7426_v6  ;;  %5529 = vmatprep.subr.bf16.mxu1 %v7429_v7  ;;  %v7516_v6 = vld [vmem:[#allocation5 + $0x1124] ss:$16 sps:$4 sm:$0xff]   ;;  %v7519_v7 = vld [vmem:[#allocation5 + $0x112c] ss:$16 sps:$4 sm:$0xff]  }
 0x220   :  { %5038 = vmatpush1.bf16.msra.mxu0 %v7424_v8  ;;  %5530 = vmatpush1.bf16.msra.mxu1 %v7427_v9  ;;  %v7514_v8 = vld [vmem:[#allocation5 + $0x1120] ss:$16 sps:$4 sm:$0xff]   ;;  %v7517_v9 = vld [vmem:[#allocation5 + $0x1128] ss:$16 sps:$4 sm:$0xff]  }
 0x221   :  { %5039 = vmatprep.subr.bf16.mxu0 %v7432_v10  ;;  %5531 = vmatprep.subr.bf16.mxu1 %v7435_v11  ;;  %v7522_v10 = vld [vmem:[#allocation5 + $0x1144] ss:$16 sps:$4 sm:$0xff]   ;;  %v7525_v11 = vld [vmem:[#allocation5 + $0x114c] ss:$16 sps:$4 sm:$0xff]  }
 0x224   :  { %5040 = vmatpush1.bf16.msra.mxu0 %v7430_v12  ;;  %5532 = vmatpush1.bf16.msra.mxu1 %v7433_v13  ;;  %v7520_v12 = vld [vmem:[#allocation5 + $0x1140] ss:$16 sps:$4 sm:$0xff]   ;;  %v7523_v13 = vld [vmem:[#allocation5 + $0x1148] ss:$16 sps:$4 sm:$0xff]  }
 0x225   :  { %5041 = vmatprep.subr.bf16.mxu0 %v7438_v14  ;;  %5533 = vmatprep.subr.bf16.mxu1 %v7441_v15  ;;  %v7528_v14 = vld [vmem:[#allocation5 + $0x1164] ss:$16 sps:$4 sm:$0xff]   ;;  %v7531_v15 = vld [vmem:[#allocation5 + $0x116c] ss:$16 sps:$4 sm:$0xff]  }
 0x228   :  { %5042 = vmatpush1.bf16.msra.mxu0 %v7436_v16  ;;  %5534 = vmatpush1.bf16.msra.mxu1 %v7439_v17  ;;  %v7526_v16 = vld [vmem:[#allocation5 + $0x1160] ss:$16 sps:$4 sm:$0xff]   ;;  %v7529_v17 = vld [vmem:[#allocation5 + $0x1168] ss:$16 sps:$4 sm:$0xff]  }
 0x229   :  { %5043 = vmatprep.subr.bf16.mxu0 %v7444_v18  ;;  %5535 = vmatprep.subr.bf16.mxu1 %v7447_v19  ;;  %v7534_v18 = vld [vmem:[#allocation5 + $0x1184] ss:$16 sps:$4 sm:$0xff]   ;;  %v7537_v19 = vld [vmem:[#allocation5 + $0x118c] ss:$16 sps:$4 sm:$0xff]  }
 0x22c   :  { %5044 = vmatpush1.bf16.msra.mxu0 %v7442_v20  ;;  %5536 = vmatpush1.bf16.msra.mxu1 %v7445_v21  ;;  %v7532_v20 = vld [vmem:[#allocation5 + $0x1180] ss:$16 sps:$4 sm:$0xff]   ;;  %v7535_v21 = vld [vmem:[#allocation5 + $0x1188] ss:$16 sps:$4 sm:$0xff]  }
 0x22d   :  { %5045 = vmatprep.subr.bf16.mxu0 %v7450_v22  ;;  %5537 = vmatprep.subr.bf16.mxu1 %v7453_v23  ;;  %v7540_v22 = vld [vmem:[#allocation5 + $0x11a4] ss:$16 sps:$4 sm:$0xff]   ;;  %v7543_v23 = vld [vmem:[#allocation5 + $0x11ac] ss:$16 sps:$4 sm:$0xff]  }
 0x230   :  { %5046 = vmatpush1.bf16.msra.mxu0 %v7448_v24  ;;  %5538 = vmatpush1.bf16.msra.mxu1 %v7451_v25  ;;  %v7538_v24 = vld [vmem:[#allocation5 + $0x11a0] ss:$16 sps:$4 sm:$0xff]   ;;  %v7541_v25 = vld [vmem:[#allocation5 + $0x11a8] ss:$16 sps:$4 sm:$0xff]  }
 0x231   :  { %5047 = vmatprep.subr.bf16.mxu0 %v7456_v26  ;;  %5539 = vmatprep.subr.bf16.mxu1 %v7459_v27  ;;  %v7546_v26 = vld [vmem:[#allocation5 + $0x11c4] ss:$16 sps:$4 sm:$0xff]   ;;  %v7549_v27 = vld [vmem:[#allocation5 + $0x11cc] ss:$16 sps:$4 sm:$0xff]  }
 0x234   :  { %5048 = vmatpush1.bf16.msra.mxu0 %v7454_v28  ;;  %5540 = vmatpush1.bf16.msra.mxu1 %v7457_v29  ;;  %v7544_v28 = vld [vmem:[#allocation5 + $0x11c0] ss:$16 sps:$4 sm:$0xff]   ;;  %v7547_v29 = vld [vmem:[#allocation5 + $0x11c8] ss:$16 sps:$4 sm:$0xff]  }
 0x235   :  { %5058 = vmatprep.subr.bf16.mxu0 %v7462_v31  ;;  %5550 = vmatprep.subr.bf16.mxu1 %v7465_v32  ;;  %v7555_v31 = vld [vmem:[#allocation5 + $0x11ec] ss:$16 sps:$4 sm:$0xff]   ;;  %v7550_v32 = vld [vmem:[#allocation5 + $0x11e0] ss:$16 sps:$4 sm:$0xff]  }
 0x237   :  { %5050 = vmatmul.mubr.bf16.vlgmr.msra.gmra.mrb[0].mxu0 %v90_v33  ;;  %5542 = vmatmul.mubr.bf16.vlgmr.msra.gmra.mrb[0].mxu1 %v90_v33  ;;  %v7553_v33 = vld [vmem:[#allocation5 + $0x11e8] ss:$16 sps:$4 sm:$0xff]  }
 0x238   :  { %5059 = vmatpush1.bf16.msra.mxu0 %v7460_v35  ;;  %5551 = vmatpush1.bf16.msra.mxu1 %v7463_v36  ;;  %v7558_v35 = vld [vmem:[#allocation5 + $0x1204] ss:$16 sps:$4 sm:$0xff]   ;;  %v7561_v36 = vld [vmem:[#allocation5 + $0x120c] ss:$16 sps:$4 sm:$0xff]  }
 0x239   :  { %5060 = vmatprep.subr.bf16.mxu0 %v7468_v37  ;;  %5552 = vmatprep.subr.bf16.mxu1 %v7471_v38  ;;  %v92_v37 = vpack.c.bf16 %v68_v34, %v68_v34  ;;  %v71_v38 = vld [vmem:[#allocation2 + $0x98] sm:$0xff]  ;;  %v7648_v34 = vld [vmem:[#allocation5 + $0x13e4] ss:$16 sps:$4 sm:$0xff]  }
 0x23a   :  { %5090 = vmatprep.mubr.bf16.mxu0 %v93_v39  ;;  %5582 = vmatprep.mubr.bf16.mxu1 %v93_v39  ;;  %v7556_v39 = vld [vmem:[#allocation5 + $0x1200] ss:$16 sps:$4 sm:$0xff]  }
 0x23c   :  { %5061 = vmatpush1.bf16.msra.mxu0 %v7466_v40  ;;  %5553 = vmatpush1.bf16.msra.mxu1 %v7469_v41  ;;  %v7559_v40 = vld [vmem:[#allocation5 + $0x1208] ss:$16 sps:$4 sm:$0xff]   ;;  %v7564_v41 = vld [vmem:[#allocation5 + $0x1224] ss:$16 sps:$4 sm:$0xff]  }
 0x23d   :  { %5062 = vmatprep.subr.bf16.mxu0 %v7474_v42  ;;  %5554 = vmatprep.subr.bf16.mxu1 %v7477_v43  ;;  %v7567_v42 = vld [vmem:[#allocation5 + $0x122c] ss:$16 sps:$4 sm:$0xff]   ;;  %v95_v43 = vpack.c.bf16 %v71_v38, %v71_v38  ;;  %v70_v38 = vld [vmem:[#allocation2 + $0x90] sm:$0xff] }
 0x240   :  { %5063 = vmatpush1.bf16.msra.mxu0 %v7472_v44  ;;  %5555 = vmatpush1.bf16.msra.mxu1 %v7475_v45  ;;  %v7562_v44 = vld [vmem:[#allocation5 + $0x1220] ss:$16 sps:$4 sm:$0xff]   ;;  %v7565_v45 = vld [vmem:[#allocation5 + $0x1228] ss:$16 sps:$4 sm:$0xff]  }
 0x241   :  { %5064 = vmatprep.subr.bf16.mxu0 %v7480_v46  ;;  %5556 = vmatprep.subr.bf16.mxu1 %v7483_v47  ;;  %v7570_v46 = vld [vmem:[#allocation5 + $0x1244] ss:$16 sps:$4 sm:$0xff]   ;;  %v7573_v47 = vld [vmem:[#allocation5 + $0x124c] ss:$16 sps:$4 sm:$0xff]  }
 0x244   :  { %5065 = vmatpush1.bf16.msra.mxu0 %v7478_v48  ;;  %5557 = vmatpush1.bf16.msra.mxu1 %v7481_v49  ;;  %v7568_v48 = vld [vmem:[#allocation5 + $0x1240] ss:$16 sps:$4 sm:$0xff]   ;;  %v7571_v49 = vld [vmem:[#allocation5 + $0x1248] ss:$16 sps:$4 sm:$0xff]  }
 0x245   :  { %5066 = vmatprep.subr.bf16.mxu0 %v7486_v50  ;;  %5558 = vmatprep.subr.bf16.mxu1 %v7489_v51  ;;  %v7576_v50 = vld [vmem:[#allocation5 + $0x1264] ss:$16 sps:$4 sm:$0xff]   ;;  %v7579_v51 = vld [vmem:[#allocation5 + $0x126c] ss:$16 sps:$4 sm:$0xff]  }
 0x248   :  { %5067 = vmatpush1.bf16.msra.mxu0 %v7484_v52  ;;  %5559 = vmatpush1.bf16.msra.mxu1 %v7487_v53  ;;  %v7574_v52 = vld [vmem:[#allocation5 + $0x1260] ss:$16 sps:$4 sm:$0xff]   ;;  %v7577_v53 = vld [vmem:[#allocation5 + $0x1268] ss:$16 sps:$4 sm:$0xff]  }
 0x249   :  { %5068 = vmatprep.subr.bf16.mxu0 %v7492_v54  ;;  %5560 = vmatprep.subr.bf16.mxu1 %v7495_v55  ;;  %v7582_v54 = vld [vmem:[#allocation5 + $0x1284] ss:$16 sps:$4 sm:$0xff]   ;;  %v7585_v55 = vld [vmem:[#allocation5 + $0x128c] ss:$16 sps:$4 sm:$0xff]  }
 0x24c   :  { %5069 = vmatpush1.bf16.msra.mxu0 %v7490_v56  ;;  %5561 = vmatpush1.bf16.msra.mxu1 %v7493_v57  ;;  %v7580_v56 = vld [vmem:[#allocation5 + $0x1280] ss:$16 sps:$4 sm:$0xff]   ;;  %v7583_v57 = vld [vmem:[#allocation5 + $0x1288] ss:$16 sps:$4 sm:$0xff]  }
 0x24d   :  { %5070 = vmatprep.subr.bf16.mxu0 %v7498_v58  ;;  %5562 = vmatprep.subr.bf16.mxu1 %v7501_v59  ;;  %v7588_v58 = vld [vmem:[#allocation5 + $0x12a4] ss:$16 sps:$4 sm:$0xff]   ;;  %v7591_v59 = vld [vmem:[#allocation5 + $0x12ac] ss:$16 sps:$4 sm:$0xff]  }
 0x250   :  { %5071 = vmatpush1.bf16.msra.mxu0 %v7496_v60  ;;  %5563 = vmatpush1.bf16.msra.mxu1 %v7499_v61  ;;  %v7586_v60 = vld [vmem:[#allocation5 + $0x12a0] ss:$16 sps:$4 sm:$0xff]   ;;  %v7589_v61 = vld [vmem:[#allocation5 + $0x12a8] ss:$16 sps:$4 sm:$0xff]  }
 0x251   :  { %5072 = vmatprep.subr.bf16.mxu0 %v7504_v62  ;;  %5564 = vmatprep.subr.bf16.mxu1 %v7507_v63  ;;  %v7594_v62 = vld [vmem:[#allocation5 + $0x12c4] ss:$16 sps:$4 sm:$0xff]   ;;  %v7597_v63 = vld [vmem:[#allocation5 + $0x12cc] ss:$16 sps:$4 sm:$0xff]  }
 0x254   :  { %5073 = vmatpush1.bf16.msra.mxu0 %v7502_v0  ;;  %5565 = vmatpush1.bf16.msra.mxu1 %v7505_v1  ;;  %v7592_v0 = vld [vmem:[#allocation5 + $0x12c0] ss:$16 sps:$4 sm:$0xff]   ;;  %v7595_v1 = vld [vmem:[#allocation5 + $0x12c8] ss:$16 sps:$4 sm:$0xff]  }
 0x255   :  { %5074 = vmatprep.subr.bf16.mxu0 %v7510_v2  ;;  %5566 = vmatprep.subr.bf16.mxu1 %v7513_v3  ;;  %v7600_v2 = vld [vmem:[#allocation5 + $0x12e4] ss:$16 sps:$4 sm:$0xff]   ;;  %v7603_v3 = vld [vmem:[#allocation5 + $0x12ec] ss:$16 sps:$4 sm:$0xff]  }
 0x258   :  { %5075 = vmatpush1.bf16.msra.mxu0 %v7508_v4  ;;  %5567 = vmatpush1.bf16.msra.mxu1 %v7511_v5  ;;  %v7598_v4 = vld [vmem:[#allocation5 + $0x12e0] ss:$16 sps:$4 sm:$0xff]   ;;  %v7601_v5 = vld [vmem:[#allocation5 + $0x12e8] ss:$16 sps:$4 sm:$0xff]  }
 0x259   :  { %5076 = vmatprep.subr.bf16.mxu0 %v7516_v6  ;;  %5568 = vmatprep.subr.bf16.mxu1 %v7519_v7  ;;  %v7606_v6 = vld [vmem:[#allocation5 + $0x1304] ss:$16 sps:$4 sm:$0xff]   ;;  %v7609_v7 = vld [vmem:[#allocation5 + $0x130c] ss:$16 sps:$4 sm:$0xff]  }
 0x25c   :  { %5077 = vmatpush1.bf16.msra.mxu0 %v7514_v8  ;;  %5569 = vmatpush1.bf16.msra.mxu1 %v7517_v9  ;;  %v7604_v8 = vld [vmem:[#allocation5 + $0x1300] ss:$16 sps:$4 sm:$0xff]   ;;  %v7607_v9 = vld [vmem:[#allocation5 + $0x1308] ss:$16 sps:$4 sm:$0xff]  }
 0x25d   :  { %5078 = vmatprep.subr.bf16.mxu0 %v7522_v10  ;;  %5570 = vmatprep.subr.bf16.mxu1 %v7525_v11  ;;  %v7612_v10 = vld [vmem:[#allocation5 + $0x1324] ss:$16 sps:$4 sm:$0xff]   ;;  %v7615_v11 = vld [vmem:[#allocation5 + $0x132c] ss:$16 sps:$4 sm:$0xff]  }
 0x260   :  { %5079 = vmatpush1.bf16.msra.mxu0 %v7520_v12  ;;  %5571 = vmatpush1.bf16.msra.mxu1 %v7523_v13  ;;  %v7610_v12 = vld [vmem:[#allocation5 + $0x1320] ss:$16 sps:$4 sm:$0xff]   ;;  %v7613_v13 = vld [vmem:[#allocation5 + $0x1328] ss:$16 sps:$4 sm:$0xff]  }
 0x261   :  { %5080 = vmatprep.subr.bf16.mxu0 %v7528_v14  ;;  %5572 = vmatprep.subr.bf16.mxu1 %v7531_v15  ;;  %v7618_v14 = vld [vmem:[#allocation5 + $0x1344] ss:$16 sps:$4 sm:$0xff]   ;;  %v7621_v15 = vld [vmem:[#allocation5 + $0x134c] ss:$16 sps:$4 sm:$0xff]  }
 0x264   :  { %5081 = vmatpush1.bf16.msra.mxu0 %v7526_v16  ;;  %5573 = vmatpush1.bf16.msra.mxu1 %v7529_v17  ;;  %v7616_v16 = vld [vmem:[#allocation5 + $0x1340] ss:$16 sps:$4 sm:$0xff]   ;;  %v7619_v17 = vld [vmem:[#allocation5 + $0x1348] ss:$16 sps:$4 sm:$0xff]  }
 0x265   :  { %5082 = vmatprep.subr.bf16.mxu0 %v7534_v18  ;;  %5574 = vmatprep.subr.bf16.mxu1 %v7537_v19  ;;  %v7624_v18 = vld [vmem:[#allocation5 + $0x1364] ss:$16 sps:$4 sm:$0xff]   ;;  %v7627_v19 = vld [vmem:[#allocation5 + $0x136c] ss:$16 sps:$4 sm:$0xff]  }
 0x268   :  { %5083 = vmatpush1.bf16.msra.mxu0 %v7532_v20  ;;  %5575 = vmatpush1.bf16.msra.mxu1 %v7535_v21  ;;  %v7622_v20 = vld [vmem:[#allocation5 + $0x1360] ss:$16 sps:$4 sm:$0xff]   ;;  %v7625_v21 = vld [vmem:[#allocation5 + $0x1368] ss:$16 sps:$4 sm:$0xff]  }
 0x269   :  { %5084 = vmatprep.subr.bf16.mxu0 %v7540_v22  ;;  %5576 = vmatprep.subr.bf16.mxu1 %v7543_v23  ;;  %v7630_v22 = vld [vmem:[#allocation5 + $0x1384] ss:$16 sps:$4 sm:$0xff]   ;;  %v7633_v23 = vld [vmem:[#allocation5 + $0x138c] ss:$16 sps:$4 sm:$0xff]  }
 0x26c   :  { %5085 = vmatpush1.bf16.msra.mxu0 %v7538_v24  ;;  %5577 = vmatpush1.bf16.msra.mxu1 %v7541_v25  ;;  %v7628_v24 = vld [vmem:[#allocation5 + $0x1380] ss:$16 sps:$4 sm:$0xff]   ;;  %v7631_v25 = vld [vmem:[#allocation5 + $0x1388] ss:$16 sps:$4 sm:$0xff]  }
 0x26d   :  { %5086 = vmatprep.subr.bf16.mxu0 %v7546_v26  ;;  %5578 = vmatprep.subr.bf16.mxu1 %v7549_v27  ;;  %v7636_v26 = vld [vmem:[#allocation5 + $0x13a4] ss:$16 sps:$4 sm:$0xff]   ;;  %v7639_v27 = vld [vmem:[#allocation5 + $0x13ac] ss:$16 sps:$4 sm:$0xff]  }
 0x270   :  { %5087 = vmatpush1.bf16.msra.mxu0 %v7544_v28  ;;  %5579 = vmatpush1.bf16.msra.mxu1 %v7547_v29  ;;  %v7634_v28 = vld [vmem:[#allocation5 + $0x13a0] ss:$16 sps:$4 sm:$0xff]   ;;  %v7637_v29 = vld [vmem:[#allocation5 + $0x13a8] ss:$16 sps:$4 sm:$0xff]  }
 0x271   :  { %5088 = vmatprep.subr.bf16.mxu0 %v7552_v30  ;;  %5580 = vmatprep.subr.bf16.mxu1 %v7555_v31  ;;  %v7642_v30 = vld [vmem:[#allocation5 + $0x13c4] ss:$16 sps:$4 sm:$0xff]   ;;  %v7645_v31 = vld [vmem:[#allocation5 + $0x13cc] ss:$16 sps:$4 sm:$0xff]  }
 0x274   :  { %5089 = vmatpush1.bf16.msra.mxu0 %v7550_v32  ;;  %5581 = vmatpush1.bf16.msra.mxu1 %v7553_v33  ;;  %v7640_v32 = vld [vmem:[#allocation5 + $0x13c0] ss:$16 sps:$4 sm:$0xff]   ;;  %v7643_v33 = vld [vmem:[#allocation5 + $0x13c8] ss:$16 sps:$4 sm:$0xff]  }
 0x275   :  { %5099 = vmatprep.subr.bf16.mxu0 %v7558_v35  ;;  %5591 = vmatprep.subr.bf16.mxu1 %v7561_v36  ;;  %v7651_v35 = vld [vmem:[#allocation5 + $0x13ec] ss:$16 sps:$4 sm:$0xff]   ;;  %v7646_v36 = vld [vmem:[#allocation5 + $0x13e0] ss:$16 sps:$4 sm:$0xff]  }
 0x277   :  { %5091 = vmatmul.mubr.bf16.vlgmr.msra.gmra.mrb[0].mxu0 %v92_v37  ;;  %5583 = vmatmul.mubr.bf16.vlgmr.msra.gmra.mrb[0].mxu1 %v92_v37  ;;  %v7649_v37 = vld [vmem:[#allocation5 + $0x13e8] ss:$16 sps:$4 sm:$0xff]  }
 0x278   :  { %5100 = vmatpush1.bf16.msra.mxu0 %v7556_v39  ;;  %5592 = vmatpush1.bf16.msra.mxu1 %v7559_v40  ;;  %v7654_v39 = vld [vmem:[#allocation5 + $0x1404] ss:$16 sps:$4 sm:$0xff]   ;;  %v7657_v40 = vld [vmem:[#allocation5 + $0x140c] ss:$16 sps:$4 sm:$0xff]  }
 0x279   :  { %5101 = vmatprep.subr.bf16.mxu0 %v7564_v41  ;;  %5593 = vmatprep.subr.bf16.mxu1 %v7567_v42  ;;  %v94_v41 = vpack.c.bf16 %v70_v38, %v70_v38  ;;  %v73_v42 = vld [vmem:[#allocation2 + $0xa8] sm:$0xff]  ;;  %v7744_v38 = vld [vmem:[#allocation5 + $0x15e4] ss:$16 sps:$4 sm:$0xff]  }
 0x27a   :  { %5131 = vmatprep.mubr.bf16.mxu0 %v95_v43  ;;  %5623 = vmatprep.mubr.bf16.mxu1 %v95_v43  ;;  %v7652_v43 = vld [vmem:[#allocation5 + $0x1400] ss:$16 sps:$4 sm:$0xff]  }
 0x27c   :  { %5102 = vmatpush1.bf16.msra.mxu0 %v7562_v44  ;;  %5594 = vmatpush1.bf16.msra.mxu1 %v7565_v45  ;;  %v7655_v44 = vld [vmem:[#allocation5 + $0x1408] ss:$16 sps:$4 sm:$0xff]   ;;  %v7660_v45 = vld [vmem:[#allocation5 + $0x1424] ss:$16 sps:$4 sm:$0xff]  }
 0x27d   :  { %5103 = vmatprep.subr.bf16.mxu0 %v7570_v46  ;;  %5595 = vmatprep.subr.bf16.mxu1 %v7573_v47  ;;  %v7663_v46 = vld [vmem:[#allocation5 + $0x142c] ss:$16 sps:$4 sm:$0xff]   ;;  %v97_v47 = vpack.c.bf16 %v73_v42, %v73_v42  ;;  %v72_v42 = vld [vmem:[#allocation2 + $0xa0] sm:$0xff] }
 0x280   :  { %5104 = vmatpush1.bf16.msra.mxu0 %v7568_v48  ;;  %5596 = vmatpush1.bf16.msra.mxu1 %v7571_v49  ;;  %v7658_v48 = vld [vmem:[#allocation5 + $0x1420] ss:$16 sps:$4 sm:$0xff]   ;;  %v7661_v49 = vld [vmem:[#allocation5 + $0x1428] ss:$16 sps:$4 sm:$0xff]  }
 0x281   :  { %5105 = vmatprep.subr.bf16.mxu0 %v7576_v50  ;;  %5597 = vmatprep.subr.bf16.mxu1 %v7579_v51  ;;  %v7666_v50 = vld [vmem:[#allocation5 + $0x1444] ss:$16 sps:$4 sm:$0xff]   ;;  %v7669_v51 = vld [vmem:[#allocation5 + $0x144c] ss:$16 sps:$4 sm:$0xff]  }
 0x284   :  { %5106 = vmatpush1.bf16.msra.mxu0 %v7574_v52  ;;  %5598 = vmatpush1.bf16.msra.mxu1 %v7577_v53  ;;  %v7664_v52 = vld [vmem:[#allocation5 + $0x1440] ss:$16 sps:$4 sm:$0xff]   ;;  %v7667_v53 = vld [vmem:[#allocation5 + $0x1448] ss:$16 sps:$4 sm:$0xff]  }
 0x285   :  { %5107 = vmatprep.subr.bf16.mxu0 %v7582_v54  ;;  %5599 = vmatprep.subr.bf16.mxu1 %v7585_v55  ;;  %v7672_v54 = vld [vmem:[#allocation5 + $0x1464] ss:$16 sps:$4 sm:$0xff]   ;;  %v7675_v55 = vld [vmem:[#allocation5 + $0x146c] ss:$16 sps:$4 sm:$0xff]  }
 0x288   :  { %5108 = vmatpush1.bf16.msra.mxu0 %v7580_v56  ;;  %5600 = vmatpush1.bf16.msra.mxu1 %v7583_v57  ;;  %v7670_v56 = vld [vmem:[#allocation5 + $0x1460] ss:$16 sps:$4 sm:$0xff]   ;;  %v7673_v57 = vld [vmem:[#allocation5 + $0x1468] ss:$16 sps:$4 sm:$0xff]  }
 0x289   :  { %5109 = vmatprep.subr.bf16.mxu0 %v7588_v58  ;;  %5601 = vmatprep.subr.bf16.mxu1 %v7591_v59  ;;  %v7678_v58 = vld [vmem:[#allocation5 + $0x1484] ss:$16 sps:$4 sm:$0xff]   ;;  %v7681_v59 = vld [vmem:[#allocation5 + $0x148c] ss:$16 sps:$4 sm:$0xff]  }
 0x28c   :  { %5110 = vmatpush1.bf16.msra.mxu0 %v7586_v60  ;;  %5602 = vmatpush1.bf16.msra.mxu1 %v7589_v61  ;;  %v7676_v60 = vld [vmem:[#allocation5 + $0x1480] ss:$16 sps:$4 sm:$0xff]   ;;  %v7679_v61 = vld [vmem:[#allocation5 + $0x1488] ss:$16 sps:$4 sm:$0xff]  }
 0x28d   :  { %5111 = vmatprep.subr.bf16.mxu0 %v7594_v62  ;;  %5603 = vmatprep.subr.bf16.mxu1 %v7597_v63  ;;  %v7684_v62 = vld [vmem:[#allocation5 + $0x14a4] ss:$16 sps:$4 sm:$0xff]   ;;  %v7687_v63 = vld [vmem:[#allocation5 + $0x14ac] ss:$16 sps:$4 sm:$0xff]  }
 0x290   :  { %5112 = vmatpush1.bf16.msra.mxu0 %v7592_v0  ;;  %5604 = vmatpush1.bf16.msra.mxu1 %v7595_v1  ;;  %v7682_v0 = vld [vmem:[#allocation5 + $0x14a0] ss:$16 sps:$4 sm:$0xff]   ;;  %v7685_v1 = vld [vmem:[#allocation5 + $0x14a8] ss:$16 sps:$4 sm:$0xff]  }
 0x291   :  { %5113 = vmatprep.subr.bf16.mxu0 %v7600_v2  ;;  %5605 = vmatprep.subr.bf16.mxu1 %v7603_v3  ;;  %v7690_v2 = vld [vmem:[#allocation5 + $0x14c4] ss:$16 sps:$4 sm:$0xff]   ;;  %v7693_v3 = vld [vmem:[#allocation5 + $0x14cc] ss:$16 sps:$4 sm:$0xff]  }
 0x294   :  { %5114 = vmatpush1.bf16.msra.mxu0 %v7598_v4  ;;  %5606 = vmatpush1.bf16.msra.mxu1 %v7601_v5  ;;  %v7688_v4 = vld [vmem:[#allocation5 + $0x14c0] ss:$16 sps:$4 sm:$0xff]   ;;  %v7691_v5 = vld [vmem:[#allocation5 + $0x14c8] ss:$16 sps:$4 sm:$0xff]  }
 0x295   :  { %5115 = vmatprep.subr.bf16.mxu0 %v7606_v6  ;;  %5607 = vmatprep.subr.bf16.mxu1 %v7609_v7  ;;  %v7696_v6 = vld [vmem:[#allocation5 + $0x14e4] ss:$16 sps:$4 sm:$0xff]   ;;  %v7699_v7 = vld [vmem:[#allocation5 + $0x14ec] ss:$16 sps:$4 sm:$0xff]  }
 0x298   :  { %5116 = vmatpush1.bf16.msra.mxu0 %v7604_v8  ;;  %5608 = vmatpush1.bf16.msra.mxu1 %v7607_v9  ;;  %v7694_v8 = vld [vmem:[#allocation5 + $0x14e0] ss:$16 sps:$4 sm:$0xff]   ;;  %v7697_v9 = vld [vmem:[#allocation5 + $0x14e8] ss:$16 sps:$4 sm:$0xff]  }
 0x299   :  { %5117 = vmatprep.subr.bf16.mxu0 %v7612_v10  ;;  %5609 = vmatprep.subr.bf16.mxu1 %v7615_v11  ;;  %v7702_v10 = vld [vmem:[#allocation5 + $0x1504] ss:$16 sps:$4 sm:$0xff]   ;;  %v7705_v11 = vld [vmem:[#allocation5 + $0x150c] ss:$16 sps:$4 sm:$0xff]  }
 0x29c   :  { %5118 = vmatpush1.bf16.msra.mxu0 %v7610_v12  ;;  %5610 = vmatpush1.bf16.msra.mxu1 %v7613_v13  ;;  %v7700_v12 = vld [vmem:[#allocation5 + $0x1500] ss:$16 sps:$4 sm:$0xff]   ;;  %v7703_v13 = vld [vmem:[#allocation5 + $0x1508] ss:$16 sps:$4 sm:$0xff]  }
 0x29d   :  { %5119 = vmatprep.subr.bf16.mxu0 %v7618_v14  ;;  %5611 = vmatprep.subr.bf16.mxu1 %v7621_v15  ;;  %v7708_v14 = vld [vmem:[#allocation5 + $0x1524] ss:$16 sps:$4 sm:$0xff]   ;;  %v7711_v15 = vld [vmem:[#allocation5 + $0x152c] ss:$16 sps:$4 sm:$0xff]  }
 0x2a0   :  { %5120 = vmatpush1.bf16.msra.mxu0 %v7616_v16  ;;  %5612 = vmatpush1.bf16.msra.mxu1 %v7619_v17  ;;  %v7706_v16 = vld [vmem:[#allocation5 + $0x1520] ss:$16 sps:$4 sm:$0xff]   ;;  %v7709_v17 = vld [vmem:[#allocation5 + $0x1528] ss:$16 sps:$4 sm:$0xff]  }
 0x2a1   :  { %5121 = vmatprep.subr.bf16.mxu0 %v7624_v18  ;;  %5613 = vmatprep.subr.bf16.mxu1 %v7627_v19  ;;  %v7714_v18 = vld [vmem:[#allocation5 + $0x1544] ss:$16 sps:$4 sm:$0xff]   ;;  %v7717_v19 = vld [vmem:[#allocation5 + $0x154c] ss:$16 sps:$4 sm:$0xff]  }
 0x2a4   :  { %5122 = vmatpush1.bf16.msra.mxu0 %v7622_v20  ;;  %5614 = vmatpush1.bf16.msra.mxu1 %v7625_v21  ;;  %v7712_v20 = vld [vmem:[#allocation5 + $0x1540] ss:$16 sps:$4 sm:$0xff]   ;;  %v7715_v21 = vld [vmem:[#allocation5 + $0x1548] ss:$16 sps:$4 sm:$0xff]  }
 0x2a5   :  { %5123 = vmatprep.subr.bf16.mxu0 %v7630_v22  ;;  %5615 = vmatprep.subr.bf16.mxu1 %v7633_v23  ;;  %v7720_v22 = vld [vmem:[#allocation5 + $0x1564] ss:$16 sps:$4 sm:$0xff]   ;;  %v7723_v23 = vld [vmem:[#allocation5 + $0x156c] ss:$16 sps:$4 sm:$0xff]  }
 0x2a8   :  { %5124 = vmatpush1.bf16.msra.mxu0 %v7628_v24  ;;  %5616 = vmatpush1.bf16.msra.mxu1 %v7631_v25  ;;  %v7718_v24 = vld [vmem:[#allocation5 + $0x1560] ss:$16 sps:$4 sm:$0xff]   ;;  %v7721_v25 = vld [vmem:[#allocation5 + $0x1568] ss:$16 sps:$4 sm:$0xff]  }
 0x2a9   :  { %5125 = vmatprep.subr.bf16.mxu0 %v7636_v26  ;;  %5617 = vmatprep.subr.bf16.mxu1 %v7639_v27  ;;  %v7726_v26 = vld [vmem:[#allocation5 + $0x1584] ss:$16 sps:$4 sm:$0xff]   ;;  %v7729_v27 = vld [vmem:[#allocation5 + $0x158c] ss:$16 sps:$4 sm:$0xff]  }
 0x2ac   :  { %5126 = vmatpush1.bf16.msra.mxu0 %v7634_v28  ;;  %5618 = vmatpush1.bf16.msra.mxu1 %v7637_v29  ;;  %v7724_v28 = vld [vmem:[#allocation5 + $0x1580] ss:$16 sps:$4 sm:$0xff]   ;;  %v7727_v29 = vld [vmem:[#allocation5 + $0x1588] ss:$16 sps:$4 sm:$0xff]  }
 0x2ad   :  { %5127 = vmatprep.subr.bf16.mxu0 %v7642_v30  ;;  %5619 = vmatprep.subr.bf16.mxu1 %v7645_v31  ;;  %v7732_v30 = vld [vmem:[#allocation5 + $0x15a4] ss:$16 sps:$4 sm:$0xff]   ;;  %v7735_v31 = vld [vmem:[#allocation5 + $0x15ac] ss:$16 sps:$4 sm:$0xff]  }
 0x2b0   :  { %5128 = vmatpush1.bf16.msra.mxu0 %v7640_v32  ;;  %5620 = vmatpush1.bf16.msra.mxu1 %v7643_v33  ;;  %v7730_v32 = vld [vmem:[#allocation5 + $0x15a0] ss:$16 sps:$4 sm:$0xff]   ;;  %v7733_v33 = vld [vmem:[#allocation5 + $0x15a8] ss:$16 sps:$4 sm:$0xff]  }
 0x2b1   :  { %5129 = vmatprep.subr.bf16.mxu0 %v7648_v34  ;;  %5621 = vmatprep.subr.bf16.mxu1 %v7651_v35  ;;  %v7738_v34 = vld [vmem:[#allocation5 + $0x15c4] ss:$16 sps:$4 sm:$0xff]   ;;  %v7741_v35 = vld [vmem:[#allocation5 + $0x15cc] ss:$16 sps:$4 sm:$0xff]  }
 0x2b4   :  { %5130 = vmatpush1.bf16.msra.mxu0 %v7646_v36  ;;  %5622 = vmatpush1.bf16.msra.mxu1 %v7649_v37  ;;  %v7736_v36 = vld [vmem:[#allocation5 + $0x15c0] ss:$16 sps:$4 sm:$0xff]   ;;  %v7739_v37 = vld [vmem:[#allocation5 + $0x15c8] ss:$16 sps:$4 sm:$0xff]  }
 0x2b5   :  { %5140 = vmatprep.subr.bf16.mxu0 %v7654_v39  ;;  %5632 = vmatprep.subr.bf16.mxu1 %v7657_v40  ;;  %v7747_v39 = vld [vmem:[#allocation5 + $0x15ec] ss:$16 sps:$4 sm:$0xff]   ;;  %v7742_v40 = vld [vmem:[#allocation5 + $0x15e0] ss:$16 sps:$4 sm:$0xff]  }
 0x2b7   :  { %5132 = vmatmul.mubr.bf16.vlgmr.msra.gmra.mrb[0].mxu0 %v94_v41  ;;  %5624 = vmatmul.mubr.bf16.vlgmr.msra.gmra.mrb[0].mxu1 %v94_v41  ;;  %v7745_v41 = vld [vmem:[#allocation5 + $0x15e8] ss:$16 sps:$4 sm:$0xff]  }
 0x2b8   :  { %5141 = vmatpush1.bf16.msra.mxu0 %v7652_v43  ;;  %5633 = vmatpush1.bf16.msra.mxu1 %v7655_v44  ;;  %v7750_v43 = vld [vmem:[#allocation5 + $0x1604] ss:$16 sps:$4 sm:$0xff]   ;;  %v7753_v44 = vld [vmem:[#allocation5 + $0x160c] ss:$16 sps:$4 sm:$0xff]  }
 0x2b9   :  { %5142 = vmatprep.subr.bf16.mxu0 %v7660_v45  ;;  %5634 = vmatprep.subr.bf16.mxu1 %v7663_v46  ;;  %v96_v45 = vpack.c.bf16 %v72_v42, %v72_v42  ;;  %v75_v46 = vld [vmem:[#allocation2 + $0xb8] sm:$0xff]  ;;  %v7840_v42 = vld [vmem:[#allocation5 + $0x17e4] ss:$16 sps:$4 sm:$0xff]  }
 0x2ba   :  { %5172 = vmatprep.mubr.bf16.mxu0 %v97_v47  ;;  %5664 = vmatprep.mubr.bf16.mxu1 %v97_v47  ;;  %v7748_v47 = vld [vmem:[#allocation5 + $0x1600] ss:$16 sps:$4 sm:$0xff]  }
 0x2bc   :  { %5143 = vmatpush1.bf16.msra.mxu0 %v7658_v48  ;;  %5635 = vmatpush1.bf16.msra.mxu1 %v7661_v49  ;;  %v7751_v48 = vld [vmem:[#allocation5 + $0x1608] ss:$16 sps:$4 sm:$0xff]   ;;  %v7756_v49 = vld [vmem:[#allocation5 + $0x1624] ss:$16 sps:$4 sm:$0xff]  }
 0x2bd   :  { %5144 = vmatprep.subr.bf16.mxu0 %v7666_v50  ;;  %5636 = vmatprep.subr.bf16.mxu1 %v7669_v51  ;;  %v7759_v50 = vld [vmem:[#allocation5 + $0x162c] ss:$16 sps:$4 sm:$0xff]   ;;  %v99_v51 = vpack.c.bf16 %v75_v46, %v75_v46  ;;  %v74_v46 = vld [vmem:[#allocation2 + $0xb0] sm:$0xff] }
 0x2c0   :  { %5145 = vmatpush1.bf16.msra.mxu0 %v7664_v52  ;;  %5637 = vmatpush1.bf16.msra.mxu1 %v7667_v53  ;;  %v7754_v52 = vld [vmem:[#allocation5 + $0x1620] ss:$16 sps:$4 sm:$0xff]   ;;  %v7757_v53 = vld [vmem:[#allocation5 + $0x1628] ss:$16 sps:$4 sm:$0xff]  }
 0x2c1   :  { %5146 = vmatprep.subr.bf16.mxu0 %v7672_v54  ;;  %5638 = vmatprep.subr.bf16.mxu1 %v7675_v55  ;;  %v7762_v54 = vld [vmem:[#allocation5 + $0x1644] ss:$16 sps:$4 sm:$0xff]   ;;  %v7765_v55 = vld [vmem:[#allocation5 + $0x164c] ss:$16 sps:$4 sm:$0xff]  }
 0x2c4   :  { %5147 = vmatpush1.bf16.msra.mxu0 %v7670_v56  ;;  %5639 = vmatpush1.bf16.msra.mxu1 %v7673_v57  ;;  %v7760_v56 = vld [vmem:[#allocation5 + $0x1640] ss:$16 sps:$4 sm:$0xff]   ;;  %v7763_v57 = vld [vmem:[#allocation5 + $0x1648] ss:$16 sps:$4 sm:$0xff]  }
 0x2c5   :  { %5148 = vmatprep.subr.bf16.mxu0 %v7678_v58  ;;  %5640 = vmatprep.subr.bf16.mxu1 %v7681_v59  ;;  %v7768_v58 = vld [vmem:[#allocation5 + $0x1664] ss:$16 sps:$4 sm:$0xff]   ;;  %v7771_v59 = vld [vmem:[#allocation5 + $0x166c] ss:$16 sps:$4 sm:$0xff]  }
 0x2c8   :  { %5149 = vmatpush1.bf16.msra.mxu0 %v7676_v60  ;;  %5641 = vmatpush1.bf16.msra.mxu1 %v7679_v61  ;;  %v7766_v60 = vld [vmem:[#allocation5 + $0x1660] ss:$16 sps:$4 sm:$0xff]   ;;  %v7769_v61 = vld [vmem:[#allocation5 + $0x1668] ss:$16 sps:$4 sm:$0xff]  }
 0x2c9   :  { %5150 = vmatprep.subr.bf16.mxu0 %v7684_v62  ;;  %5642 = vmatprep.subr.bf16.mxu1 %v7687_v63  ;;  %v7774_v62 = vld [vmem:[#allocation5 + $0x1684] ss:$16 sps:$4 sm:$0xff]   ;;  %v7777_v63 = vld [vmem:[#allocation5 + $0x168c] ss:$16 sps:$4 sm:$0xff]  }
 0x2cc   :  { %5151 = vmatpush1.bf16.msra.mxu0 %v7682_v0  ;;  %5643 = vmatpush1.bf16.msra.mxu1 %v7685_v1  ;;  %v7772_v0 = vld [vmem:[#allocation5 + $0x1680] ss:$16 sps:$4 sm:$0xff]   ;;  %v7775_v1 = vld [vmem:[#allocation5 + $0x1688] ss:$16 sps:$4 sm:$0xff]  }
 0x2cd   :  { %5152 = vmatprep.subr.bf16.mxu0 %v7690_v2  ;;  %5644 = vmatprep.subr.bf16.mxu1 %v7693_v3  ;;  %v7780_v2 = vld [vmem:[#allocation5 + $0x16a4] ss:$16 sps:$4 sm:$0xff]   ;;  %v7783_v3 = vld [vmem:[#allocation5 + $0x16ac] ss:$16 sps:$4 sm:$0xff]  }
 0x2d0   :  { %5153 = vmatpush1.bf16.msra.mxu0 %v7688_v4  ;;  %5645 = vmatpush1.bf16.msra.mxu1 %v7691_v5  ;;  %v7778_v4 = vld [vmem:[#allocation5 + $0x16a0] ss:$16 sps:$4 sm:$0xff]   ;;  %v7781_v5 = vld [vmem:[#allocation5 + $0x16a8] ss:$16 sps:$4 sm:$0xff]  }
 0x2d1   :  { %5154 = vmatprep.subr.bf16.mxu0 %v7696_v6  ;;  %5646 = vmatprep.subr.bf16.mxu1 %v7699_v7  ;;  %v7786_v6 = vld [vmem:[#allocation5 + $0x16c4] ss:$16 sps:$4 sm:$0xff]   ;;  %v7789_v7 = vld [vmem:[#allocation5 + $0x16cc] ss:$16 sps:$4 sm:$0xff]  }
 0x2d4   :  { %5155 = vmatpush1.bf16.msra.mxu0 %v7694_v8  ;;  %5647 = vmatpush1.bf16.msra.mxu1 %v7697_v9  ;;  %v7784_v8 = vld [vmem:[#allocation5 + $0x16c0] ss:$16 sps:$4 sm:$0xff]   ;;  %v7787_v9 = vld [vmem:[#allocation5 + $0x16c8] ss:$16 sps:$4 sm:$0xff]  }
 0x2d5   :  { %5156 = vmatprep.subr.bf16.mxu0 %v7702_v10  ;;  %5648 = vmatprep.subr.bf16.mxu1 %v7705_v11  ;;  %v7792_v10 = vld [vmem:[#allocation5 + $0x16e4] ss:$16 sps:$4 sm:$0xff]   ;;  %v7795_v11 = vld [vmem:[#allocation5 + $0x16ec] ss:$16 sps:$4 sm:$0xff]  }
 0x2d8   :  { %5157 = vmatpush1.bf16.msra.mxu0 %v7700_v12  ;;  %5649 = vmatpush1.bf16.msra.mxu1 %v7703_v13  ;;  %v7790_v12 = vld [vmem:[#allocation5 + $0x16e0] ss:$16 sps:$4 sm:$0xff]   ;;  %v7793_v13 = vld [vmem:[#allocation5 + $0x16e8] ss:$16 sps:$4 sm:$0xff]  }
 0x2d9   :  { %5158 = vmatprep.subr.bf16.mxu0 %v7708_v14  ;;  %5650 = vmatprep.subr.bf16.mxu1 %v7711_v15  ;;  %v7798_v14 = vld [vmem:[#allocation5 + $0x1704] ss:$16 sps:$4 sm:$0xff]   ;;  %v7801_v15 = vld [vmem:[#allocation5 + $0x170c] ss:$16 sps:$4 sm:$0xff]  }
 0x2dc   :  { %5159 = vmatpush1.bf16.msra.mxu0 %v7706_v16  ;;  %5651 = vmatpush1.bf16.msra.mxu1 %v7709_v17  ;;  %v7796_v16 = vld [vmem:[#allocation5 + $0x1700] ss:$16 sps:$4 sm:$0xff]   ;;  %v7799_v17 = vld [vmem:[#allocation5 + $0x1708] ss:$16 sps:$4 sm:$0xff]  }
 0x2dd   :  { %5160 = vmatprep.subr.bf16.mxu0 %v7714_v18  ;;  %5652 = vmatprep.subr.bf16.mxu1 %v7717_v19  ;;  %v7804_v18 = vld [vmem:[#allocation5 + $0x1724] ss:$16 sps:$4 sm:$0xff]   ;;  %v7807_v19 = vld [vmem:[#allocation5 + $0x172c] ss:$16 sps:$4 sm:$0xff]  }
 0x2e0   :  { %5161 = vmatpush1.bf16.msra.mxu0 %v7712_v20  ;;  %5653 = vmatpush1.bf16.msra.mxu1 %v7715_v21  ;;  %v7802_v20 = vld [vmem:[#allocation5 + $0x1720] ss:$16 sps:$4 sm:$0xff]   ;;  %v7805_v21 = vld [vmem:[#allocation5 + $0x1728] ss:$16 sps:$4 sm:$0xff]  }
 0x2e1   :  { %5162 = vmatprep.subr.bf16.mxu0 %v7720_v22  ;;  %5654 = vmatprep.subr.bf16.mxu1 %v7723_v23  ;;  %v7810_v22 = vld [vmem:[#allocation5 + $0x1744] ss:$16 sps:$4 sm:$0xff]   ;;  %v7813_v23 = vld [vmem:[#allocation5 + $0x174c] ss:$16 sps:$4 sm:$0xff]  }
 0x2e4   :  { %5163 = vmatpush1.bf16.msra.mxu0 %v7718_v24  ;;  %5655 = vmatpush1.bf16.msra.mxu1 %v7721_v25  ;;  %v7808_v24 = vld [vmem:[#allocation5 + $0x1740] ss:$16 sps:$4 sm:$0xff]   ;;  %v7811_v25 = vld [vmem:[#allocation5 + $0x1748] ss:$16 sps:$4 sm:$0xff]  }
 0x2e5   :  { %5164 = vmatprep.subr.bf16.mxu0 %v7726_v26  ;;  %5656 = vmatprep.subr.bf16.mxu1 %v7729_v27  ;;  %v7816_v26 = vld [vmem:[#allocation5 + $0x1764] ss:$16 sps:$4 sm:$0xff]   ;;  %v7819_v27 = vld [vmem:[#allocation5 + $0x176c] ss:$16 sps:$4 sm:$0xff]  }
 0x2e8   :  { %5165 = vmatpush1.bf16.msra.mxu0 %v7724_v28  ;;  %5657 = vmatpush1.bf16.msra.mxu1 %v7727_v29  ;;  %v7814_v28 = vld [vmem:[#allocation5 + $0x1760] ss:$16 sps:$4 sm:$0xff]   ;;  %v7817_v29 = vld [vmem:[#allocation5 + $0x1768] ss:$16 sps:$4 sm:$0xff]  }
 0x2e9   :  { %5166 = vmatprep.subr.bf16.mxu0 %v7732_v30  ;;  %5658 = vmatprep.subr.bf16.mxu1 %v7735_v31  ;;  %v7822_v30 = vld [vmem:[#allocation5 + $0x1784] ss:$16 sps:$4 sm:$0xff]   ;;  %v7825_v31 = vld [vmem:[#allocation5 + $0x178c] ss:$16 sps:$4 sm:$0xff]  }
 0x2ec   :  { %5167 = vmatpush1.bf16.msra.mxu0 %v7730_v32  ;;  %5659 = vmatpush1.bf16.msra.mxu1 %v7733_v33  ;;  %v7820_v32 = vld [vmem:[#allocation5 + $0x1780] ss:$16 sps:$4 sm:$0xff]   ;;  %v7823_v33 = vld [vmem:[#allocation5 + $0x1788] ss:$16 sps:$4 sm:$0xff]  }
 0x2ed   :  { %5168 = vmatprep.subr.bf16.mxu0 %v7738_v34  ;;  %5660 = vmatprep.subr.bf16.mxu1 %v7741_v35  ;;  %v7828_v34 = vld [vmem:[#allocation5 + $0x17a4] ss:$16 sps:$4 sm:$0xff]   ;;  %v7831_v35 = vld [vmem:[#allocation5 + $0x17ac] ss:$16 sps:$4 sm:$0xff]  }
 0x2f0   :  { %5169 = vmatpush1.bf16.msra.mxu0 %v7736_v36  ;;  %5661 = vmatpush1.bf16.msra.mxu1 %v7739_v37  ;;  %v7826_v36 = vld [vmem:[#allocation5 + $0x17a0] ss:$16 sps:$4 sm:$0xff]   ;;  %v7829_v37 = vld [vmem:[#allocation5 + $0x17a8] ss:$16 sps:$4 sm:$0xff]  }
 0x2f1   :  { %5170 = vmatprep.subr.bf16.mxu0 %v7744_v38  ;;  %5662 = vmatprep.subr.bf16.mxu1 %v7747_v39  ;;  %v7834_v38 = vld [vmem:[#allocation5 + $0x17c4] ss:$16 sps:$4 sm:$0xff]   ;;  %v7837_v39 = vld [vmem:[#allocation5 + $0x17cc] ss:$16 sps:$4 sm:$0xff]  }
 0x2f4   :  { %5171 = vmatpush1.bf16.msra.mxu0 %v7742_v40  ;;  %5663 = vmatpush1.bf16.msra.mxu1 %v7745_v41  ;;  %v7832_v40 = vld [vmem:[#allocation5 + $0x17c0] ss:$16 sps:$4 sm:$0xff]   ;;  %v7835_v41 = vld [vmem:[#allocation5 + $0x17c8] ss:$16 sps:$4 sm:$0xff]  }
 0x2f5   :  { %5181 = vmatprep.subr.bf16.mxu0 %v7750_v43  ;;  %5673 = vmatprep.subr.bf16.mxu1 %v7753_v44  ;;  %v7843_v43 = vld [vmem:[#allocation5 + $0x17ec] ss:$16 sps:$4 sm:$0xff]   ;;  %v7838_v44 = vld [vmem:[#allocation5 + $0x17e0] ss:$16 sps:$4 sm:$0xff]  }
 0x2f7   :  { %5173 = vmatmul.mubr.bf16.vlgmr.msra.gmra.mrb[0].mxu0 %v96_v45  ;;  %5665 = vmatmul.mubr.bf16.vlgmr.msra.gmra.mrb[0].mxu1 %v96_v45  ;;  %v7841_v45 = vld [vmem:[#allocation5 + $0x17e8] ss:$16 sps:$4 sm:$0xff]  }
 0x2f8   :  { %5182 = vmatpush1.bf16.msra.mxu0 %v7748_v47  ;;  %5674 = vmatpush1.bf16.msra.mxu1 %v7751_v48  ;;  %v98_v47 = vpack.c.bf16 %v74_v46, %v74_v46  ;;  %v7963_v48 = vmov 0  }
 0x2f9   :  { %5183 = vmatprep.subr.bf16.mxu0 %v7756_v49  ;;  %5675 = vmatprep.subr.bf16.mxu1 %v7759_v50  ;;  %v870_v49 = vlaneseq }
 0x2fa   :  { %5213 = vmatprep.mubr.bf16.mxu0 %v99_v51  ;;  %5705 = vmatprep.mubr.bf16.mxu1 %v99_v51 }
 0x2fb   :  { %6690 = vset.pattern.permute.xlu0 %v7963_v48  ;;  %6691 = vset.pattern.permute.xlu1 %v7963_v48  ;;  %v8023_v50 = vshrl.u32 %v870_v49, 7 }
 0x2fc   :  { %5184 = vmatpush1.bf16.msra.mxu0 %v7754_v52  ;;  %5676 = vmatpush1.bf16.msra.mxu1 %v7757_v53  ;;  %v868_v53 = vld [vmem:[#allocation7] ss:$4 sm:$0xf] }
 0x2fd   :  { %5185 = vmatprep.subr.bf16.mxu0 %v7762_v54  ;;  %5677 = vmatprep.subr.bf16.mxu1 %v7765_v55  ;;  %v8026_v51 = vsub.s32 0, %v8023_v50  ;;  %v880_v52 = vsub.s32 2, %v8023_v50  ;;  %v876_v54 = vsub.s32 1, %v8023_v50  ;;  %v884_v55 = vsub.s32 3, %v8023_v50 }
 0x300   :  { %5186 = vmatpush1.bf16.msra.mxu0 %v7760_v56  ;;  %5678 = vmatpush1.bf16.msra.mxu1 %v7763_v57  ;;  %v873_v56 = vrot.slane %v868_v53, %v8026_v51  ;;  %v881_v57 = vrot.slane %v868_v53, %v880_v52 }
 0x301   :  { %5187 = vmatprep.subr.bf16.mxu0 %v7768_v58  ;;  %5679 = vmatprep.subr.bf16.mxu1 %v7771_v59  ;;  %v877_v58 = vrot.slane %v868_v53, %v876_v54  ;;  %v885_v59 = vrot.slane %v868_v53, %v884_v55 }
 0x304   :  { %5188 = vmatpush1.bf16.msra.mxu0 %v7766_v60  ;;  %5680 = vmatpush1.bf16.msra.mxu1 %v7769_v61 }
 0x305   :  { %5189 = vmatprep.subr.bf16.mxu0 %v7774_v62  ;;  %5681 = vmatprep.subr.bf16.mxu1 %v7777_v63 }
 0x308   :  { %5190 = vmatpush1.bf16.msra.mxu0 %v7772_v0  ;;  %5682 = vmatpush1.bf16.msra.mxu1 %v7775_v1 }
 0x309   :  { %5191 = vmatprep.subr.bf16.mxu0 %v7780_v2  ;;  %5683 = vmatprep.subr.bf16.mxu1 %v7783_v3 }
 0x30c   :  { %5192 = vmatpush1.bf16.msra.mxu0 %v7778_v4  ;;  %5684 = vmatpush1.bf16.msra.mxu1 %v7781_v5 }
 0x30d   :  { %5193 = vmatprep.subr.bf16.mxu0 %v7786_v6  ;;  %5685 = vmatprep.subr.bf16.mxu1 %v7789_v7 }
 0x310   :  { %5194 = vmatpush1.bf16.msra.mxu0 %v7784_v8  ;;  %5686 = vmatpush1.bf16.msra.mxu1 %v7787_v9 }
 0x311   :  { %5195 = vmatprep.subr.bf16.mxu0 %v7792_v10  ;;  %5687 = vmatprep.subr.bf16.mxu1 %v7795_v11 }
 0x314   :  { %5196 = vmatpush1.bf16.msra.mxu0 %v7790_v12  ;;  %5688 = vmatpush1.bf16.msra.mxu1 %v7793_v13 }
 0x315   :  { %5197 = vmatprep.subr.bf16.mxu0 %v7798_v14  ;;  %5689 = vmatprep.subr.bf16.mxu1 %v7801_v15 }
 0x318   :  { %5198 = vmatpush1.bf16.msra.mxu0 %v7796_v16  ;;  %5690 = vmatpush1.bf16.msra.mxu1 %v7799_v17 }
 0x319   :  { %5199 = vmatprep.subr.bf16.mxu0 %v7804_v18  ;;  %5691 = vmatprep.subr.bf16.mxu1 %v7807_v19 }
 0x31c   :  { %5200 = vmatpush1.bf16.msra.mxu0 %v7802_v20  ;;  %5692 = vmatpush1.bf16.msra.mxu1 %v7805_v21 }
 0x31d   :  { %5201 = vmatprep.subr.bf16.mxu0 %v7810_v22  ;;  %5693 = vmatprep.subr.bf16.mxu1 %v7813_v23 }
 0x320   :  { %5202 = vmatpush1.bf16.msra.mxu0 %v7808_v24  ;;  %5694 = vmatpush1.bf16.msra.mxu1 %v7811_v25  ;;  %v5735_v24 = vld [vmem:[#allocation7 + $0x1] ss:$4 sm:$0xf] }
 0x321   :  { %5203 = vmatprep.subr.bf16.mxu0 %v7816_v26  ;;  %5695 = vmatprep.subr.bf16.mxu1 %v7819_v27  ;;  %v5740_v25 = vrot.slane %v5735_v24, %v8026_v51  ;;  %v5744_v26 = vrot.slane %v5735_v24, %v876_v54 }
 0x324   :  { %5204 = vmatpush1.bf16.msra.mxu0 %v7814_v28  ;;  %5696 = vmatpush1.bf16.msra.mxu1 %v7817_v29  ;;  %v5748_v29 = vrot.slane %v5735_v24, %v880_v52 }
 0x325   :  { %5205 = vmatprep.subr.bf16.mxu0 %v7822_v30  ;;  %5697 = vmatprep.subr.bf16.mxu1 %v7825_v31 }
 0x328   :  { %5206 = vmatpush1.bf16.msra.mxu0 %v7820_v32  ;;  %5698 = vmatpush1.bf16.msra.mxu1 %v7823_v33  ;;  %v5752_v32 = vrot.slane %v5735_v24, %v884_v55 }
 0x329   :  { %5207 = vmatprep.subr.bf16.mxu0 %v7828_v34  ;;  %5699 = vmatprep.subr.bf16.mxu1 %v7831_v35 }
 0x32c   :  { %5208 = vmatpush1.bf16.msra.mxu0 %v7826_v36  ;;  %5700 = vmatpush1.bf16.msra.mxu1 %v7829_v37 }
 0x32d   :  { %5209 = vmatprep.subr.bf16.mxu0 %v7834_v38  ;;  %5701 = vmatprep.subr.bf16.mxu1 %v7837_v39 }
 0x330   :  { %5210 = vmatpush1.bf16.msra.mxu0 %v7832_v40  ;;  %5702 = vmatpush1.bf16.msra.mxu1 %v7835_v41  ;;  %v5766_v40 = vld [vmem:[#allocation7 + $0x2] sm:$0x1]  ;;  %v7964_v41 = vmov 839922192  }
 0x331   :  { %5211 = vmatprep.subr.bf16.mxu0 %v7840_v42  ;;  %5703 = vmatprep.subr.bf16.mxu1 %v7843_v43  ;;  %v5773_v42 = vunpack.c.l.s4 %v7964_v41 }
 0x333   :  { %v5774_v43 = vunpack.c.0.s8 %v5773_v42 }
 0x334   :  { %5212 = vmatpush1.bf16.msra.mxu0 %v7838_v44  ;;  %5704 = vmatpush1.bf16.msra.mxu1 %v7841_v45 }
 0x335   :  { %v5777_v45 = vsub.s32 %v5774_v43, %v8023_v50 }
 0x337   :  { %5214 = vmatmul.mubr.bf16.vlgmr.msra.gmra.mrb[0].mxu0 %v98_v47  ;;  %5706 = vmatmul.mubr.bf16.vlgmr.msra.gmra.mrb[0].mxu1 %v98_v47 }
 0x40a   :  { %v5215_v60 = vpop.f32.mrb[0].mxu0  ;;  %v5707_v61 = vpop.f32.mrb[0].mxu1 }
 0x40b   :  { %v6590_v62 = vadd.f32 %v5215_v60, %v873_v56  ;;  %v6592_v63 = vadd.f32 %v5707_v61, %v881_v57  ;;  %v5217_v0 = vpop.f32.mrb[1].mxu0  ;;  %v5709_v1 = vpop.f32.mrb[1].mxu1  ;;  %v5797_v57 = vand.u32 127, %v870_v49 }
 0x40c   :  { %v6591_v2 = vadd.f32 %v5217_v0, %v877_v58  ;;  %v6593_v3 = vadd.f32 %v5709_v1, %v885_v59  ;;  %v5219_v4 = vpop.f32.mrb[2].mxu0  ;;  %v5711_v5 = vpop.f32.mrb[2].mxu1 }
 0x40d   :  { %v5714_v6 = vsub.f32 0.0, %v6590_v62  ;;  %v5716_v7 = vsub.f32 0.0, %v6592_v63  ;;  %v5220_v8 = vpop.f32.mrb[3].mxu0  ;;  %v5712_v9 = vpop.f32.mrb[3].mxu1  ;;  %v5800_v58 = vsub.s32 %v5797_v57, %v8023_v50 }
 0x40e   :  { %v5715_v10 = vsub.f32 0.0, %v6591_v2  ;;  %v5717_v11 = vsub.f32 0.0, %v6593_v3 }
 0x40f   :  { %v5718_v12 = vmul.f32 1.442695, %v5714_v6  ;;  %v5722_v13 = vmul.f32 1.442695, %v5716_v7 }
 0x410   :  { %v5720_v14 = vmul.f32 1.442695, %v5715_v10  ;;  %v5724_v15 = vmul.f32 1.442695, %v5717_v11 }
 0x411   :  { %7844 = vpow2.f32 %v5718_v12 }
 0x412   :  { %7846 = vpow2.f32 %v5722_v13 }
 0x413   :  { %7848 = vpow2.f32 %v5720_v14 }
 0x414   :  { %7850 = vpow2.f32 %v5724_v15 }
 0x41b   :  { %v7845_v16 = vpop.eup %7844 }
 0x41c   :  { %v7847_v17 = vpop.eup %7846  ;;  %v5726_v18 = vadd.f32 1.0, %v7845_v16 }
 0x41d   :  { %v7849_v19 = vpop.eup %7848  ;;  %v5728_v20 = vadd.f32 1.0, %v7847_v17 }
 0x41e   :  { %v7851_v21 = vpop.eup %7850  ;;  %7852 = vrcp.f32 %v5726_v18  ;;  %v5727_v22 = vadd.f32 1.0, %v7849_v19 }
 0x41f   :  { %7854 = vrcp.f32 %v5728_v20  ;;  %v5729_v23 = vadd.f32 1.0, %v7851_v21 }
 0x420   :  { %7856 = vrcp.f32 %v5727_v22 }
 0x421   :  { %7858 = vrcp.f32 %v5729_v23 }
 0x428   :  { %v7853_v27 = vpop.eup %7852 }
 0x429   :  { %v7855_v28 = vpop.eup %7854  ;;  %v5757_v30 = vmul.f32 %v7853_v27, %v5740_v25 }
 0x42a   :  { %v7857_v31 = vpop.eup %7856  ;;  %v5759_v35 = vmul.f32 %v7855_v28, %v5748_v29 }
 0x42b   :  { %v5758_v33 = vmul.f32 %v7857_v31, %v5744_v26  ;;  %v7859_v34 = vpop.eup %7858 }
 0x42c   :  { %v5760_v37 = vmul.f32 %v7859_v34, %v5752_v32 }
 0x42d   :  { %v5761_v36 = vadd.f32 %v5758_v33, %v5757_v30 }
 0x42f   :  { %v5762_v38 = vadd.f32 %v5761_v36, %v5759_v35 }
 0x431   :  { %v5763_v39 = vadd.f32 %v5762_v38, %v5760_v37 }
 0x433   :  { %5764 = vadd.xlane.f32.xlu0 %v5763_v39 }
 0x449   :  { %5769 = vperm.xlu0 %6690, %v5766_v40  }
 0x4c0   :  { %v5765_v44 = vpop.xlane.xlu0 %5764 }
 0x4c8   :  { %v5770_v46 = vpop.permute.xlu0 %5769 }
 0x4c9   :  { %v5778_v47 = vrot.slane %v5770_v46, %v5777_v45 }
 0x4cb   :  { %v5783_v48 = vrot.slane %v5778_v47, %v8026_v51 }
 0x4cd   :  { %v5785_v52 = vadd.f32 %v5783_v48, %v5765_v44 }
 0x4cf   :  { %v6589_v53 = vmul.f32 -1.442695, %v5785_v52 }
 0x4d1   :  { %7860 = vpow2.f32 %v6589_v53 }
 0x4db   :  { %v7861_v54 = vpop.eup %7860 }
 0x4dc   :  { %v5789_v55 = vadd.f32 1.0, %v7861_v54 }
 0x4de   :  { %7862 = vrcp.f32 %v5789_v55 }
 0x4e8   :  { %v7863_v56 = vpop.eup %7862 }
 0x4e9   :  { %5794 = vperm.xlu1 %6691, %v7863_v56  }
 0x568   :  { %v5795_v59 = vpop.permute.xlu1 %5794 }
 0x569   :  { %v5801_v60 = vrot.slane %v5795_v59, %v5800_v58 }
 0x56b   :  { %5804 = vst.msk [vmem:[#allocation8] sm:$0x1] %vm5803_vm0, %v5801_v60 }
 0x56c   :  { %7941 = shalt.err (!%p7938_p0)
}
 0x56d   :  { %s7942_s26 = scalar_lea.hbm %s8052_s3, 16 }
 0x56e   :  { %p7943_p1 = scmp.ne.s32.totalorder %s8052_s3, %s7942_s26  ;;  %p7946_p2 = scmp.lt.u32.totalorder %s7942_s26, %s8052_s3 }
 0x570   :  { %p7948_p3 = pnand %p7946_p2, %p7943_p1 }
 0x572   :  { %7951 = shalt.err (!%p7948_p3)
}
 0x573   :  { %5814 = dma.vmem_to_hbm [thread:$0]  %s5812_s21, 16, %s8052_s3, [#allocation4]  }
 0x574   :  { %7956 = dma.done.wait [#allocation4], 16  }
 0x575   :  { %7957 = vsyncadd [#allocation4], 4294967280 }
 0x576   :  { %5818 = vsyncpa [#allocation3], 1 }
 0x577   :  { %5819 = vsyncpa [#allocation6], 1 }
 0x578   :  { %5820 = vsyncpa [#allocation4], 1 }

</bundles_post_ra>
